<compile_context>
chip_gen: v5e
topology: v5e:2x2
jax: 0.10.0
libtpu: 0.0.40
codegen_flags: <defaults>
</compile_context>

<pallas_src>
import functools

import jax
import jax.numpy as jnp
import numpy as np
from jax.experimental import pallas as pl
from jax.experimental.pallas import tpu as pltpu

LRELU_SLOPE = 0.1

# Set to jnp.bfloat16 on v6e/v7x for MXU-native operands (accumulation stays
# f32 via preferred_element_type).  Default f32 keeps reference numerics.
GEMM_COMPUTE_DTYPE = jnp.float32


def _choose_tm(m):
    """M-tile: full block when small (always legal), else 128."""
    return m if m <= 128 else 128


# --------------------------------------------------------------------------
# Pallas kernels
# --------------------------------------------------------------------------
def _gemm_bias_kernel(x_ref, w_ref, b_ref, o_ref, *, act):
    acc = jnp.dot(x_ref[0], w_ref[0], preferred_element_type=jnp.float32)
    acc = acc + b_ref[0]
    if act:
        acc = jnp.where(acc >= 0, acc, LRELU_SLOPE * acc)
    o_ref[0] = acc.astype(o_ref.dtype)


def pallas_gemm_bias(x, w, b, act=False):
    """Batched GEMM: x:(G,M,K) @ w:(G,K,N) + b:(G,1,N), fused LeakyReLU(0.1)."""
    G, M, K = x.shape
    N = w.shape[2]
    TM = _choose_tm(M)
    xc = x.astype(GEMM_COMPUTE_DTYPE)
    wc = w.astype(GEMM_COMPUTE_DTYPE)
    cost = pl.CostEstimate(
        flops=2 * G * M * K * N, transcendentals=0,
        bytes_accessed=4 * (x.size + w.size + b.size + G * M * N))
    return pl.pallas_call(
        functools.partial(_gemm_bias_kernel, act=act),
        out_shape=jax.ShapeDtypeStruct((G, M, N), jnp.float32),
        grid=(G, pl.cdiv(M, TM)),
        in_specs=[
            pl.BlockSpec((1, TM, K), lambda g, i: (g, i, 0)),
            pl.BlockSpec((1, K, N), lambda g, i: (g, 0, 0)),
            pl.BlockSpec((1, 1, N), lambda g, i: (g, 0, 0)),
        ],
        out_specs=pl.BlockSpec((1, TM, N), lambda g, i: (g, i, 0)),
        compiler_params=pltpu.CompilerParams(
            dimension_semantics=("parallel", "parallel")),
        cost_estimate=cost,
    )(xc, wc, b)


def _aspp_offset_kernel(col_ref, wbd_ref, bcat_ref, x_ref, wr_ref, br_ref,
                        w2_ref, b2_ref, o_ref):
    # ResASPP (three dilated convs as one block-diagonal GEMM) + lrelu
    h = jnp.dot(col_ref[0], wbd_ref[0], preferred_element_type=jnp.float32)
    h = h + bcat_ref[0]
    h = jnp.where(h >= 0, h, LRELU_SLOPE * h)
    # conv_r + residual add
    r = x_ref[0] + jnp.dot(h, wr_ref[0], preferred_element_type=jnp.float32)
    r = r + br_ref[0]
    # conv02 (offset head) fused in the same kernel
    o = jnp.dot(r, w2_ref[0], preferred_element_type=jnp.float32) + b2_ref[0]
    o_ref[0] = o.astype(o_ref.dtype)


def pallas_aspp_offset(col, wbd, bcat, xres, wr, br, w2, b2):
    """Fused ResASPP + conv02 (offset head), batched over branches G."""
    G, M, K = col.shape
    N1 = wbd.shape[2]
    C = wr.shape[2]
    N2 = w2.shape[2]
    TM = _choose_tm(M)
    cost = pl.CostEstimate(
        flops=2 * G * M * (K * N1 + N1 * C + C * N2), transcendentals=0,
        bytes_accessed=4 * (col.size + xres.size + wbd.size + wr.size
                            + w2.size + G * M * N2))
    return pl.pallas_call(
        _aspp_offset_kernel,
        out_shape=jax.ShapeDtypeStruct((G, M, N2), jnp.float32),
        grid=(G, pl.cdiv(M, TM)),
        in_specs=[
            pl.BlockSpec((1, TM, K), lambda g, i: (g, i, 0)),
            pl.BlockSpec((1, K, N1), lambda g, i: (g, 0, 0)),
            pl.BlockSpec((1, 1, N1), lambda g, i: (g, 0, 0)),
            pl.BlockSpec((1, TM, C), lambda g, i: (g, i, 0)),
            pl.BlockSpec((1, N1, C), lambda g, i: (g, 0, 0)),
            pl.BlockSpec((1, 1, C), lambda g, i: (g, 0, 0)),
            pl.BlockSpec((1, C, N2), lambda g, i: (g, 0, 0)),
            pl.BlockSpec((1, 1, N2), lambda g, i: (g, 0, 0)),
        ],
        out_specs=pl.BlockSpec((1, TM, N2), lambda g, i: (g, i, 0)),
        compiler_params=pltpu.CompilerParams(
            dimension_semantics=("parallel", "parallel")),
        cost_estimate=cost,
    )(col, wbd, bcat, xres, wr, br, w2, b2)


def _ang_fuse_kernel(x_ref, w_ref, b_ref, wf_ref, bf_ref, o_ref):
    # Three angular convs (ang, aux1, aux2) + lrelu + fuse_conv0, fused.
    acc = jnp.zeros(o_ref.shape, jnp.float32) + bf_ref[...]
    for t in range(3):
        a = jnp.dot(x_ref[t], w_ref[t], preferred_element_type=jnp.float32)
        a = a + b_ref[t]
        a = jnp.where(a >= 0, a, LRELU_SLOPE * a)
        acc = acc + jnp.dot(a, wf_ref[t], preferred_element_type=jnp.float32)
    o_ref[...] = acc.astype(o_ref.dtype)


def pallas_ang_fuse(x, w, b, wf, bf):
    """x:(3,M,K), w:(3,K,C), b:(3,1,C), wf:(3,C,C), bf:(1,C) -> (M,C)."""
    _, M, K = x.shape
    C = w.shape[2]
    TM = _choose_tm(M)
    cost = pl.CostEstimate(
        flops=2 * 3 * M * (K * C + C * C), transcendentals=0,
        bytes_accessed=4 * (x.size + w.size + wf.size + M * C))
    return pl.pallas_call(
        _ang_fuse_kernel,
        out_shape=jax.ShapeDtypeStruct((M, C), jnp.float32),
        grid=(pl.cdiv(M, TM),),
        in_specs=[
            pl.BlockSpec((3, TM, K), lambda i: (0, i, 0)),
            pl.BlockSpec((3, K, C), lambda i: (0, 0, 0)),
            pl.BlockSpec((3, 1, C), lambda i: (0, 0, 0)),
            pl.BlockSpec((3, C, C), lambda i: (0, 0, 0)),
            pl.BlockSpec((1, C), lambda i: (0, 0)),
        ],
        out_specs=pl.BlockSpec((TM, C), lambda i: (i, 0)),
        compiler_params=pltpu.CompilerParams(
            dimension_semantics=("parallel",)),
        cost_estimate=cost,
    )(x, w, b, wf, bf)


# --------------------------------------------------------------------------
# Weight flattening / im2col glue (NHWC, channels-last)
# --------------------------------------------------------------------------
def conv_w_flat(w):
    """(Cout, Cin, kh, kw) -> (kh*kw*Cin, Cout), rows ordered [kh, kw, cin]."""
    Cout, Cin, kh, kw = w.shape
    return jnp.transpose(w, (2, 3, 1, 0)).reshape(kh * kw * Cin, Cout)


def flat1x1(w):
    """(Cout, Cin, 1, 1) -> (Cin, Cout)."""
    return w.reshape(w.shape[0], w.shape[1]).T


def im2col_nhwc(x, kh, kw, stride=1, padding=0, dilation=1):
    """x:(N,H,W,C) -> (N*Ho*Wo, kh*kw*C), feature order [kh, kw, c]."""
    N, H, W, C = x.shape
    xp = jnp.pad(x, ((0, 0), (padding, padding), (padding, padding), (0, 0)))
    Ho = (H + 2 * padding - dilation * (kh - 1) - 1) // stride + 1
    Wo = (W + 2 * padding - dilation * (kw - 1) - 1) // stride + 1
    taps = []
    for i in range(kh):
        for j in range(kw):
            taps.append(
                xp[:, i * dilation:i * dilation + stride * (Ho - 1) + 1:stride,
                      j * dilation:j * dilation + stride * (Wo - 1) + 1:stride, :])
    col = jnp.stack(taps, axis=3)  # (N, Ho, Wo, kh*kw, C)
    return col.reshape(N * Ho * Wo, kh * kw * C), Ho, Wo


def im2col_aspp(x):
    """Combined im2col for the three dilated 3x3 convs (d=1,2,4, 'same').

    x:(N,H,W,C) -> (N*H*W, 27*C), features ordered [dilation, kh, kw, c]."""
    N, H, W, C = x.shape
    xp = jnp.pad(x, ((0, 0), (4, 4), (4, 4), (0, 0)))
    taps = []
    for d in (1, 2, 4):
        for i in range(3):
            for j in range(3):
                ys = 4 + d * (i - 1)
                xs = 4 + d * (j - 1)
                taps.append(xp[:, ys:ys + H, xs:xs + W, :])
    col = jnp.stack(taps, axis=3)  # (N, H, W, 27, C)
    return col.reshape(N * H * W, 27 * C)


def aspp_blockdiag_w(aspp_p):
    """Block-diagonal (27*Cin, 3*Cout) weight for the 3 dilated convs."""
    ws = [aspp_p["c1"]["w"], aspp_p["c2"]["w"], aspp_p["c3"]["w"]]
    rows = []
    for d in range(3):
        wf = conv_w_flat(ws[d])                      # (9*Cin, Cout)
        z = jnp.zeros_like(wf)
        rows.append(jnp.concatenate(
            [wf if d == t else z for t in range(3)], axis=1))
    return jnp.concatenate(rows, axis=0)


def aspp_bcat(aspp_p):
    return jnp.concatenate(
        [aspp_p["c1"]["b"], aspp_p["c2"]["b"], aspp_p["c3"]["b"]])


# --------------------------------------------------------------------------
# Conv / deform building blocks
# --------------------------------------------------------------------------
def conv2d_nhwc(x, w, b, stride=1, padding=0, act=False):
    N, H, W, C = x.shape
    Cout = w.shape[0]
    kh, kw = w.shape[2], w.shape[3]
    col, Ho, Wo = im2col_nhwc(x, kh, kw, stride=stride, padding=padding)
    out = pallas_gemm_bias(col[None], conv_w_flat(w)[None],
                           b[None, None], act=act)[0]
    return out.reshape(N, Ho, Wo, Cout)


def deform_bilinear_col(x, offset):
    """torchvision-style zero-padded bilinear sampling, k=3, s=1, p=1.

    x:(G,B,H,W,C), offset:(G,B,H,W,9,2) [per-tap (dy,dx)] -> (G, B*H*W, 9*C).
    One fused 4-corner gather; validity folded into the bilinear weights."""
    # TODO(synk): data-dependent gather stays in XLA; GEMM hot path is Pallas.
    G, B, H, W, C = x.shape
    K = 9
    off_y = offset[..., 0]
    off_x = offset[..., 1]
    ys = jnp.arange(H, dtype=jnp.float32).reshape(1, 1, H, 1, 1)
    xs = jnp.arange(W, dtype=jnp.float32).reshape(1, 1, 1, W, 1)
    ki = (jnp.arange(K) // 3).astype(jnp.float32)
    kj = (jnp.arange(K) % 3).astype(jnp.float32)
    py = ys - 1.0 + ki + off_y          # (G,B,H,W,9)
    px = xs - 1.0 + kj + off_x
    y0 = jnp.floor(py)
    x0 = jnp.floor(px)
    ty = py - y0
    tx = px - x0

    def corner(yc, xc, wt):
        valid = (yc >= 0) & (yc <= H - 1) & (xc >= 0) & (xc <= W - 1)
        idx = (jnp.clip(yc, 0, H - 1).astype(jnp.int32) * W
               + jnp.clip(xc, 0, W - 1).astype(jnp.int32))
        return idx, wt * valid.astype(jnp.float32)

    i00, w00 = corner(y0, x0, (1.0 - ty) * (1.0 - tx))
    i01, w01 = corner(y0, x0 + 1.0, (1.0 - ty) * tx)
    i10, w10 = corner(y0 + 1.0, x0, ty * (1.0 - tx))
    i11, w11 = corner(y0 + 1.0, x0 + 1.0, ty * tx)
    idx = jnp.stack([i00, i01, i10, i11], axis=-1)   # (G,B,H,W,9,4)
    wts = jnp.stack([w00, w01, w10, w11], axis=-1)

    xf = x.reshape(G * B, H * W, C)
    idxf = idx.reshape(G * B, H * W * K * 4)
    g = jax.vmap(lambda f, i: f[i])(xf, idxf)        # (G*B, H*W*K*4, C)
    g = g.reshape(G, B, H, W, K, 4, C)
    patches = jnp.sum(g * wts[..., None], axis=-2)   # (G,B,H,W,9,C)
    return patches.reshape(G, B * H * W, K * C)


def deform_align_pair(P1, P2, aux1, aux2, ref):
    """Both Deform_align branches of a stage, batched on a leading axis."""
    B, H, W, C = ref.shape
    M = B * H * W
    aux = jnp.stack([aux1, aux2], axis=0)                         # (2,B,H,W,C)
    refb = jnp.broadcast_to(ref[None], (2, B, H, W, C))
    cat = jnp.concatenate([aux, refb], axis=-1).reshape(2, M, 2 * C)

    # conv01 (1x1) + lrelu, both branches in one batched GEMM
    w01 = jnp.stack([flat1x1(P1["conv01"]["w"]), flat1x1(P2["conv01"]["w"])])
    b01 = jnp.stack([P1["conv01"]["b"], P2["conv01"]["b"]])[:, None, :]
    off_feat = pallas_gemm_bias(cat, w01, b01, act=True)          # (2,M,C)

    # ResASPP + conv02 fused (offset head), both branches
    col = im2col_aspp(off_feat.reshape(2 * B, H, W, C)).reshape(2, M, 27 * C)
    wbd = jnp.stack([aspp_blockdiag_w(P1["aspp"]), aspp_blockdiag_w(P2["aspp"])])
    bcat = jnp.stack([aspp_bcat(P1["aspp"]), aspp_bcat(P2["aspp"])])[:, None, :]
    wr = jnp.stack([flat1x1(P1["aspp"]["cr"]["w"]),
                    flat1x1(P2["aspp"]["cr"]["w"])])
    br = jnp.stack([P1["aspp"]["cr"]["b"], P2["aspp"]["cr"]["b"]])[:, None, :]
    w02 = jnp.stack([flat1x1(P1["conv02"]["w"]), flat1x1(P2["conv02"]["w"])])
    b02 = jnp.stack([P1["conv02"]["b"], P2["conv02"]["b"]])[:, None, :]
    offsets = pallas_aspp_offset(col, wbd, bcat, off_feat, wr, br, w02, b02)

    # deformable conv (bilinear gather in XLA, GEMM + lrelu in Pallas)
    dcol = deform_bilinear_col(aux, offsets.reshape(2, B, H, W, 9, 2))
    wd = jnp.stack([conv_w_flat(P1["deform"]["w"]),
                    conv_w_flat(P2["deform"]["w"])])
    bd = jnp.stack([P1["deform"]["b"], P2["deform"]["b"]])[:, None, :]
    aligned = pallas_gemm_bias(dcol, wd, bd, act=True)            # (2,M,C)
    a = aligned.reshape(2, B, H, W, C)
    return a[0], a[1]


# --------------------------------------------------------------------------
# Encoder stage / main encoder (NHWC internally)
# --------------------------------------------------------------------------
def encoder_stage(P, spa, aux1, aux2, an):
    B, H, W, C = spa.shape
    an2 = an * an
    bs = B // an2
    M = B * H * W

    align1, align2 = deform_align_pair(P["align1"], P["align2"],
                                       aux1, aux2, spa)

    # spatial fuse: 1x1 conv over [spa, align1, align2]
    cat_spa = jnp.concatenate([spa, align1, align2], axis=-1).reshape(1, M, 3 * C)
    spa_fuse = pallas_gemm_bias(
        cat_spa, flat1x1(P["fuse"]["w"])[None],
        P["fuse"]["b"][None, None], act=False)[0].reshape(B, H, W, C)

    # angular path, view-collapsed (exact: angular outputs are identical for
    # all an^2 views), fused with fuse_conv0
    def ang_mat(x):
        xr = x.reshape(bs, an2, H, W, C).transpose(0, 2, 3, 4, 1)
        return xr.reshape(bs * H * W, C * an2)      # features [c, view]

    xang = jnp.stack([ang_mat(spa_fuse), ang_mat(align1), ang_mat(align2)])
    wang = jnp.stack([P["ang"]["w"].reshape(C, C * an2).T,
                      P["aux_ang1"]["w"].reshape(C, C * an2).T,
                      P["aux_ang2"]["w"].reshape(C, C * an2).T])
    bang = jnp.stack([P["ang"]["b"], P["aux_ang1"]["b"],
                      P["aux_ang2"]["b"]])[:, None, :]
    wf0 = flat1x1(P["fuse0"]["w"]).reshape(3, C, C)
    bf0 = P["fuse0"]["b"][None]
    ang_fused = pallas_ang_fuse(xang, wang, bang, wf0, bf0)
    ang_fused = ang_fused.reshape(bs, H, W, C)

    # Ang_embed: merged gamma/beta conv (2C lanes), affine left to XLA fusion
    col_gb, _, _ = im2col_nhwc(ang_fused, 3, 3, padding=1)
    wgb = jnp.concatenate([conv_w_flat(P["embed"]["c1"]["w"]),
                           conv_w_flat(P["embed"]["c2"]["w"])], axis=1)
    bgb = jnp.concatenate([P["embed"]["c1"]["b"], P["embed"]["c2"]["b"]])
    gb = pallas_gemm_bias(col_gb[None], wgb[None], bgb[None, None],
                          act=False)[0].reshape(bs, H, W, 2 * C)
    gamma, beta = gb[..., :C], gb[..., C:]
    fuse = (spa_fuse.reshape(bs, an2, H, W, C) * gamma[:, None]
            + beta[:, None])
    return fuse.reshape(B, H, W, C)


def main_encoder(params, in_x, aux_spa1, aux_spa2, an):
    # NCHW -> NHWC only at the module boundary
    x = jnp.transpose(in_x, (0, 2, 3, 1))
    a1 = [jnp.transpose(a, (0, 2, 3, 1)) for a in aux_spa1]
    a2 = [jnp.transpose(a, (0, 2, 3, 1)) for a in aux_spa2]

    spa1 = conv2d_nhwc(x, params["spa1"]["w"], params["spa1"]["b"],
                       stride=2, padding=1, act=True)
    f1 = encoder_stage(params["s1"], spa1, a1[0], a2[0], an)
    spa2 = conv2d_nhwc(f1, params["spa2"]["w"], params["spa2"]["b"],
                       stride=2, padding=1, act=True)
    f2 = encoder_stage(params["s2"], spa2, a1[1], a2[1], an)
    spa3 = conv2d_nhwc(f2, params["spa3"]["w"], params["spa3"]["b"],
                       stride=2, padding=1, act=True)
    f3 = encoder_stage(params["s3"], spa3, a1[2], a2[2], an)
    return [jnp.transpose(f, (0, 3, 1, 2)) for f in (f1, f2, f3)]


# --------------------------------------------------------------------------
# Deterministic parameter construction
# --------------------------------------------------------------------------
class ParamGen:
    def __init__(self, key):
        self.key = key

    def conv(self, cin, cout, k):
        self.key, k1, k2 = jax.random.split(self.key, 3)
        w = jax.random.normal(k1, (cout, cin, k, k), jnp.float32)
        w = w * (0.1 / np.sqrt(cin * k * k))
        b = jax.random.normal(k2, (cout,), jnp.float32) * 0.01
        return {"w": w, "b": b}

    def res_aspp(self, cin, cout):
        return {"c1": self.conv(cin, cout, 3),
                "c2": self.conv(cin, cout, 3),
                "c3": self.conv(cin, cout, 3),
                "cr": self.conv(cout * 3, cout, 1)}

    def deform_align(self, cin, cout):
        return {"conv01": self.conv(cin * 2, cout, 1),
                "aspp": self.res_aspp(cin, cout),
                "conv02": self.conv(cout, 2 * 9, 1),
                "deform": self.conv(cin, cout, 3)}

    def ang_embed(self, cin, cout):
        return {"c1": self.conv(cin, cout, 3),
                "c2": self.conv(cin, cout, 3)}

    def stage(self, ch, an):
        return {"align1": self.deform_align(ch, ch),
                "align2": self.deform_align(ch, ch),
                "fuse": self.conv(ch * 3, ch, 1),
                "aux_ang1": self.conv(ch, ch, an),
                "aux_ang2": self.conv(ch, ch, an),
                "ang": self.conv(ch, ch, an),
                "fuse0": self.conv(ch * 3, ch, 1),
                "embed": self.ang_embed(ch, ch)}


def make_main_encoder_params(key, in_num, out_num, an):
    g = ParamGen(key)
    return {
        "spa1": g.conv(in_num, out_num, 3),
        "spa2": g.conv(out_num, out_num * 2, 3),
        "spa3": g.conv(out_num * 2, out_num * 4, 3),
        "s1": g.stage(out_num, an),
        "s2": g.stage(out_num * 2, an),
        "s3": g.stage(out_num * 4, an),
    }


# --------------------------------------------------------------------------
if __name__ == "__main__":
    in_num, out_num, an = 4, 8, 2
    an2 = an * an
    bs, H, W = 1, 16, 16

    key = jax.random.PRNGKey(0)
    key, kp, kx, ka1, ka2, ka3, kb1, kb2, kb3 = jax.random.split(key, 9)

    params = make_main_encoder_params(kp, in_num, out_num, an)

    in_x = jax.random.normal(kx, (bs * an2, in_num, H, W), jnp.float32)
    aux_spa1 = [
        jax.random.normal(ka1, (bs * an2, out_num, H // 2, W // 2), jnp.float32),
        jax.random.normal(ka2, (bs * an2, out_num * 2, H // 4, W // 4), jnp.float32),
        jax.random.normal(ka3, (bs * an2, out_num * 4, H // 8, W // 8), jnp.float32),
    ]
    aux_spa2 = [
        jax.random.normal(kb1, (bs * an2, out_num, H // 2, W // 2), jnp.float32),
        jax.random.normal(kb2, (bs * an2, out_num * 2, H // 4, W // 4), jnp.float32),
        jax.random.normal(kb3, (bs * an2, out_num * 4, H // 8, W // 8), jnp.float32),
    ]

    fwd = jax.jit(functools.partial(main_encoder, an=an))
    fuse_x1, fuse_x2, fuse_x3 = fwd(params, in_x, aux_spa1, aux_spa2)
    jax.block_until_ready((fuse_x1, fuse_x2, fuse_x3))

    assert fuse_x1.shape == (bs * an2, out_num, H // 2, W // 2)
    assert fuse_x2.shape == (bs * an2, out_num * 2, H // 4, W // 4)
    assert fuse_x3.shape == (bs * an2, out_num * 4, H // 8, W // 8)
    assert all(jnp.all(jnp.isfinite(f)) for f in (fuse_x1, fuse_x2, fuse_x3))
    print("KERNEL_OK")
</pallas_src>

<mosaic_0001>
module attributes {stable_mosaic.version = 11 : i64} {
  func.func @_gemm_bias_kernel(%arg0: i32, %arg1: i32, %arg2: memref<1x128x36xf32, #tpu.memory_space<vmem>>, %arg3: memref<1x36x8xf32, #tpu.memory_space<vmem>>, %arg4: memref<1x1x8xf32, #tpu.memory_space<vmem>>, %arg5: memref<1x128x8xf32, #tpu.memory_space<vmem>>) attributes {dimension_semantics = [#tpu.dimension_semantics<parallel>, #tpu.dimension_semantics<parallel>], iteration_bounds = array<i64: 1, 2>, scalar_prefetch = 0 : i64, scratch_operands = 0 : i64, tpu.core_type = #tpu.core_type<tc>, window_params = [{transform_indices = @transform_0, window_bounds = array<i64: 1, 128, 36>}, {transform_indices = @transform_1, window_bounds = array<i64: 1, 36, 8>}, {transform_indices = @transform_2, window_bounds = array<i64: 1, 1, 8>}, {transform_indices = @transform_3, window_bounds = array<i64: 1, 128, 8>}]} {
    %c0 = arith.constant 0 : index
    %c0_0 = arith.constant 0 : index
    %c0_1 = arith.constant 0 : index
    %0 = vector.load %arg2[%c0, %c0_0, %c0_1] : memref<1x128x36xf32, #tpu.memory_space<vmem>>, vector<1x128x36xf32>
    %1 = vector.shape_cast %0 : vector<1x128x36xf32> to vector<128x36xf32>
    %c0_2 = arith.constant 0 : index
    %c0_3 = arith.constant 0 : index
    %c0_4 = arith.constant 0 : index
    %2 = vector.load %arg3[%c0_2, %c0_3, %c0_4] : memref<1x36x8xf32, #tpu.memory_space<vmem>>, vector<1x36x8xf32>
    %3 = vector.shape_cast %2 : vector<1x36x8xf32> to vector<36x8xf32>
    %cst = arith.constant dense<0.000000e+00> : vector<128x8xf32>
    %4 = tpu.matmul %1, %3, %cst {dimension_numbers = #tpu.dot_dimension_numbers<[1], [0], [0], [1], [0, 0, 1, 1], [], []>} : vector<128x36xf32>, vector<36x8xf32>, vector<128x8xf32> -> vector<128x8xf32>
    %c0_5 = arith.constant 0 : index
    %c0_6 = arith.constant 0 : index
    %c0_7 = arith.constant 0 : index
    %5 = vector.load %arg4[%c0_5, %c0_6, %c0_7] : memref<1x1x8xf32, #tpu.memory_space<vmem>>, vector<1x1x8xf32>
    %6 = vector.shape_cast %5 : vector<1x1x8xf32> to vector<1x8xf32>
    %7 = vector.broadcast %6 : vector<1x8xf32> to vector<128x8xf32>
    %8 = arith.addf %4, %7 : vector<128x8xf32>
    %cst_8 = arith.constant 0.000000e+00 : f32
    %9 = vector.broadcast %cst_8 : f32 to vector<128x8xf32>
    %10 = arith.cmpf oge, %8, %9 : vector<128x8xf32>
    %cst_9 = arith.constant 1.000000e-01 : f32
    %11 = vector.broadcast %cst_9 : f32 to vector<128x8xf32>
    %12 = arith.mulf %11, %8 : vector<128x8xf32>
    %13 = arith.select %10, %8, %12 : vector<128x8xi1>, vector<128x8xf32>
    %c0_10 = arith.constant 0 : index
    %c0_11 = arith.constant 0 : index
    %c0_12 = arith.constant 0 : index
    %14 = vector.load %arg5[%c0_10, %c0_11, %c0_12] : memref<1x128x8xf32, #tpu.memory_space<vmem>>, vector<1x128x8xf32>
    %15 = vector.shape_cast %14 : vector<1x128x8xf32> to vector<128x8xf32>
    %16 = vector.shape_cast %13 : vector<128x8xf32> to vector<1x128x8xf32>
    tpu.vector_store %arg5[%c0_10, %c0_11, %c0_12], %16 {strides = array<i32>} : memref<1x128x8xf32, #tpu.memory_space<vmem>>, vector<1x128x8xf32>,
    return
  }
  func.func @transform_0(%arg0: i32, %arg1: i32) -> (i32, i32, i32) {
    %c0_i32 = arith.constant 0 : i32
    %c0_i32_0 = arith.constant 0 : i32
    return %arg0, %arg1, %c0_i32 : i32, i32, i32
  }
  func.func @transform_1(%arg0: i32, %arg1: i32) -> (i32, i32, i32) {
    %c0_i32 = arith.constant 0 : i32
    %c0_i32_0 = arith.constant 0 : i32
    %c0_i32_1 = arith.constant 0 : i32
    return %arg0, %c0_i32, %c0_i32_0 : i32, i32, i32
  }
  func.func @transform_2(%arg0: i32, %arg1: i32) -> (i32, i32, i32) {
    %c0_i32 = arith.constant 0 : i32
    %c0_i32_0 = arith.constant 0 : i32
    %c0_i32_1 = arith.constant 0 : i32
    return %arg0, %c0_i32, %c0_i32_0 : i32, i32, i32
  }
  func.func @transform_3(%arg0: i32, %arg1: i32) -> (i32, i32, i32) {
    %c0_i32 = arith.constant 0 : i32
    %c0_i32_0 = arith.constant 0 : i32
    return %arg0, %arg1, %c0_i32 : i32, i32, i32
  }
}

module attributes {stable_mosaic.version = 11 : i64} {
  func.func @_gemm_bias_kernel(%arg0: i32, %arg1: i32, %arg2: memref<1x128x16xf32, #tpu.memory_space<vmem>>, %arg3: memref<1x16x8xf32, #tpu.memory_space<vmem>>, %arg4: memref<1x1x8xf32, #tpu.memory_space<vmem>>, %arg5: memref<1x128x8xf32, #tpu.memory_space<vmem>>) attributes {dimension_semantics = [#tpu.dimension_semantics<parallel>, #tpu.dimension_semantics<parallel>], iteration_bounds = array<i64: 2, 2>, scalar_prefetch = 0 : i64, scratch_operands = 0 : i64, tpu.core_type = #tpu.core_type<tc>, window_params = [{transform_indices = @transform_0, window_bounds = array<i64: 1, 128, 16>}, {transform_indices = @transform_1, window_bounds = array<i64: 1, 16, 8>}, {transform_indices = @transform_2, window_bounds = array<i64: 1, 1, 8>}, {transform_indices = @transform_3, window_bounds = array<i64: 1, 128, 8>}]} {
    %c0 = arith.constant 0 : index
    %c0_0 = arith.constant 0 : index
    %c0_1 = arith.constant 0 : index
    %0 = vector.load %arg2[%c0, %c0_0, %c0_1] : memref<1x128x16xf32, #tpu.memory_space<vmem>>, vector<1x128x16xf32>
    %1 = vector.shape_cast %0 : vector<1x128x16xf32> to vector<128x16xf32>
    %c0_2 = arith.constant 0 : index
    %c0_3 = arith.constant 0 : index
    %c0_4 = arith.constant 0 : index
    %2 = vector.load %arg3[%c0_2, %c0_3, %c0_4] : memref<1x16x8xf32, #tpu.memory_space<vmem>>, vector<1x16x8xf32>
    %3 = vector.shape_cast %2 : vector<1x16x8xf32> to vector<16x8xf32>
    %cst = arith.constant dense<0.000000e+00> : vector<128x8xf32>
    %4 = tpu.matmul %1, %3, %cst {dimension_numbers = #tpu.dot_dimension_numbers<[1], [0], [0], [1], [0, 0, 1, 1], [], []>} : vector<128x16xf32>, vector<16x8xf32>, vector<128x8xf32> -> vector<128x8xf32>
    %c0_5 = arith.constant 0 : index
    %c0_6 = arith.constant 0 : index
    %c0_7 = arith.constant 0 : index
    %5 = vector.load %arg4[%c0_5, %c0_6, %c0_7] : memref<1x1x8xf32, #tpu.memory_space<vmem>>, vector<1x1x8xf32>
    %6 = vector.shape_cast %5 : vector<1x1x8xf32> to vector<1x8xf32>
    %7 = vector.broadcast %6 : vector<1x8xf32> to vector<128x8xf32>
    %8 = arith.addf %4, %7 : vector<128x8xf32>
    %cst_8 = arith.constant 0.000000e+00 : f32
    %9 = vector.broadcast %cst_8 : f32 to vector<128x8xf32>
    %10 = arith.cmpf oge, %8, %9 : vector<128x8xf32>
    %cst_9 = arith.constant 1.000000e-01 : f32
    %11 = vector.broadcast %cst_9 : f32 to vector<128x8xf32>
    %12 = arith.mulf %11, %8 : vector<128x8xf32>
    %13 = arith.select %10, %8, %12 : vector<128x8xi1>, vector<128x8xf32>
    %c0_10 = arith.constant 0 : index
    %c0_11 = arith.constant 0 : index
    %c0_12 = arith.constant 0 : index
    %14 = vector.load %arg5[%c0_10, %c0_11, %c0_12] : memref<1x128x8xf32, #tpu.memory_space<vmem>>, vector<1x128x8xf32>
    %15 = vector.shape_cast %14 : vector<1x128x8xf32> to vector<128x8xf32>
    %16 = vector.shape_cast %13 : vector<128x8xf32> to vector<1x128x8xf32>
    tpu.vector_store %arg5[%c0_10, %c0_11, %c0_12], %16 {strides = array<i32>} : memref<1x128x8xf32, #tpu.memory_space<vmem>>, vector<1x128x8xf32>,
    return
  }
  func.func @transform_0(%arg0: i32, %arg1: i32) -> (i32, i32, i32) {
    %c0_i32 = arith.constant 0 : i32
    %c0_i32_0 = arith.constant 0 : i32
    return %arg0, %arg1, %c0_i32 : i32, i32, i32
  }
  func.func @transform_1(%arg0: i32, %arg1: i32) -> (i32, i32, i32) {
    %c0_i32 = arith.constant 0 : i32
    %c0_i32_0 = arith.constant 0 : i32
    %c0_i32_1 = arith.constant 0 : i32
    return %arg0, %c0_i32, %c0_i32_0 : i32, i32, i32
  }
  func.func @transform_2(%arg0: i32, %arg1: i32) -> (i32, i32, i32) {
    %c0_i32 = arith.constant 0 : i32
    %c0_i32_0 = arith.constant 0 : i32
    %c0_i32_1 = arith.constant 0 : i32
    return %arg0, %c0_i32, %c0_i32_0 : i32, i32, i32
  }
  func.func @transform_3(%arg0: i32, %arg1: i32) -> (i32, i32, i32) {
    %c0_i32 = arith.constant 0 : i32
    %c0_i32_0 = arith.constant 0 : i32
    return %arg0, %arg1, %c0_i32 : i32, i32, i32
  }
}

module attributes {stable_mosaic.version = 11 : i64} {
  func.func @_aspp_offset_kernel(%arg0: i32, %arg1: i32, %arg2: memref<1x128x216xf32, #tpu.memory_space<vmem>>, %arg3: memref<1x216x24xf32, #tpu.memory_space<vmem>>, %arg4: memref<1x1x24xf32, #tpu.memory_space<vmem>>, %arg5: memref<1x128x8xf32, #tpu.memory_space<vmem>>, %arg6: memref<1x24x8xf32, #tpu.memory_space<vmem>>, %arg7: memref<1x1x8xf32, #tpu.memory_space<vmem>>, %arg8: memref<1x8x18xf32, #tpu.memory_space<vmem>>, %arg9: memref<1x1x18xf32, #tpu.memory_space<vmem>>, %arg10: memref<1x128x18xf32, #tpu.memory_space<vmem>>) attributes {dimension_semantics = [#tpu.dimension_semantics<parallel>, #tpu.dimension_semantics<parallel>], iteration_bounds = array<i64: 2, 2>, scalar_prefetch = 0 : i64, scratch_operands = 0 : i64, tpu.core_type = #tpu.core_type<tc>, window_params = [{transform_indices = @transform_0, window_bounds = array<i64: 1, 128, 216>}, {transform_indices = @transform_1, window_bounds = array<i64: 1, 216, 24>}, {transform_indices = @transform_2, window_bounds = array<i64: 1, 1, 24>}, {transform_indices = @transform_3, window_bounds = array<i64: 1, 128, 8>}, {transform_indices = @transform_4, window_bounds = array<i64: 1, 24, 8>}, {transform_indices = @transform_5, window_bounds = array<i64: 1, 1, 8>}, {transform_indices = @transform_6, window_bounds = array<i64: 1, 8, 18>}, {transform_indices = @transform_7, window_bounds = array<i64: 1, 1, 18>}, {transform_indices = @transform_8, window_bounds = array<i64: 1, 128, 18>}]} {
    %c0 = arith.constant 0 : index
    %c0_0 = arith.constant 0 : index
    %c0_1 = arith.constant 0 : index
    %0 = vector.load %arg2[%c0, %c0_0, %c0_1] : memref<1x128x216xf32, #tpu.memory_space<vmem>>, vector<1x128x216xf32>
    %1 = vector.shape_cast %0 : vector<1x128x216xf32> to vector<128x216xf32>
    %c0_2 = arith.constant 0 : index
    %c0_3 = arith.constant 0 : index
    %c0_4 = arith.constant 0 : index
    %2 = vector.load %arg3[%c0_2, %c0_3, %c0_4] : memref<1x216x24xf32, #tpu.memory_space<vmem>>, vector<1x216x24xf32>
    %3 = vector.shape_cast %2 : vector<1x216x24xf32> to vector<216x24xf32>
    %cst = arith.constant dense<0.000000e+00> : vector<128x24xf32>
    %4 = tpu.matmul %1, %3, %cst {dimension_numbers = #tpu.dot_dimension_numbers<[1], [0], [0], [1], [0, 0, 1, 1], [], []>} : vector<128x216xf32>, vector<216x24xf32>, vector<128x24xf32> -> vector<128x24xf32>
    %c0_5 = arith.constant 0 : index
    %c0_6 = arith.constant 0 : index
    %c0_7 = arith.constant 0 : index
    %5 = vector.load %arg4[%c0_5, %c0_6, %c0_7] : memref<1x1x24xf32, #tpu.memory_space<vmem>>, vector<1x1x24xf32>
    %6 = vector.shape_cast %5 : vector<1x1x24xf32> to vector<1x24xf32>
    %7 = vector.broadcast %6 : vector<1x24xf32> to vector<128x24xf32>
    %8 = arith.addf %4, %7 : vector<128x24xf32>
    %cst_8 = arith.constant 0.000000e+00 : f32
    %9 = vector.broadcast %cst_8 : f32 to vector<128x24xf32>
    %10 = arith.cmpf oge, %8, %9 : vector<128x24xf32>
    %cst_9 = arith.constant 1.000000e-01 : f32
    %11 = vector.broadcast %cst_9 : f32 to vector<128x24xf32>
    %12 = arith.mulf %11, %8 : vector<128x24xf32>
    %13 = arith.select %10, %8, %12 : vector<128x24xi1>, vector<128x24xf32>
    %c0_10 = arith.constant 0 : index
    %c0_11 = arith.constant 0 : index
    %c0_12 = arith.constant 0 : index
    %14 = vector.load %arg5[%c0_10, %c0_11, %c0_12] : memref<1x128x8xf32, #tpu.memory_space<vmem>>, vector<1x128x8xf32>
    %15 = vector.shape_cast %14 : vector<1x128x8xf32> to vector<128x8xf32>
    %c0_13 = arith.constant 0 : index
    %c0_14 = arith.constant 0 : index
    %c0_15 = arith.constant 0 : index
    %16 = vector.load %arg6[%c0_13, %c0_14, %c0_15] : memref<1x24x8xf32, #tpu.memory_space<vmem>>, vector<1x24x8xf32>
    %17 = vector.shape_cast %16 : vector<1x24x8xf32> to vector<24x8xf32>
    %cst_16 = arith.constant dense<0.000000e+00> : vector<128x8xf32>
    %18 = tpu.matmul %13, %17, %cst_16 {dimension_numbers = #tpu.dot_dimension_numbers<[1], [0], [0], [1], [0, 0, 1, 1], [], []>} : vector<128x24xf32>, vector<24x8xf32>, vector<128x8xf32> -> vector<128x8xf32>
    %19 = arith.addf %15, %18 : vector<128x8xf32>
    %c0_17 = arith.constant 0 : index
    %c0_18 = arith.constant 0 : index
    %c0_19 = arith.constant 0 : index
    %20 = vector.load %arg7[%c0_17, %c0_18, %c0_19] : memref<1x1x8xf32, #tpu.memory_space<vmem>>, vector<1x1x8xf32>
    %21 = vector.shape_cast %20 : vector<1x1x8xf32> to vector<1x8xf32>
    %22 = vector.broadcast %21 : vector<1x8xf32> to vector<128x8xf32>
    %23 = arith.addf %19, %22 : vector<128x8xf32>
    %c0_20 = arith.constant 0 : index
    %c0_21 = arith.constant 0 : index
    %c0_22 = arith.constant 0 : index
    %24 = vector.load %arg8[%c0_20, %c0_21, %c0_22] : memref<1x8x18xf32, #tpu.memory_space<vmem>>, vector<1x8x18xf32>
    %25 = vector.shape_cast %24 : vector<1x8x18xf32> to vector<8x18xf32>
    %cst_23 = arith.constant dense<0.000000e+00> : vector<128x18xf32>
    %26 = tpu.matmul %23, %25, %cst_23 {dimension_numbers = #tpu.dot_dimension_numbers<[1], [0], [0], [1], [0, 0, 1, 1], [], []>} : vector<128x8xf32>, vector<8x18xf32>, vector<128x18xf32> -> vector<128x18xf32>
    %c0_24 = arith.constant 0 : index
    %c0_25 = arith.constant 0 : index
    %c0_26 = arith.constant 0 : index
    %27 = vector.load %arg9[%c0_24, %c0_25, %c0_26] : memref<1x1x18xf32, #tpu.memory_space<vmem>>, vector<1x1x18xf32>
    %28 = vector.shape_cast %27 : vector<1x1x18xf32> to vector<1x18xf32>
    %29 = vector.broadcast %28 : vector<1x18xf32> to vector<128x18xf32>
    %30 = arith.addf %26, %29 : vector<128x18xf32>
    %c0_27 = arith.constant 0 : index
    %c0_28 = arith.constant 0 : index
    %c0_29 = arith.constant 0 : index
    %31 = vector.load %arg10[%c0_27, %c0_28, %c0_29] : memref<1x128x18xf32, #tpu.memory_space<vmem>>, vector<1x128x18xf32>
    %32 = vector.shape_cast %31 : vector<1x128x18xf32> to vector<128x18xf32>
    %33 = vector.shape_cast %30 : vector<128x18xf32> to vector<1x128x18xf32>
    tpu.vector_store %arg10[%c0_27, %c0_28, %c0_29], %33 {strides = array<i32>} : memref<1x128x18xf32, #tpu.memory_space<vmem>>, vector<1x128x18xf32>,
    return
  }
  func.func @transform_0(%arg0: i32, %arg1: i32) -> (i32, i32, i32) {
    %c0_i32 = arith.constant 0 : i32
    %c0_i32_0 = arith.constant 0 : i32
    return %arg0, %arg1, %c0_i32 : i32, i32, i32
  }
  func.func @transform_1(%arg0: i32, %arg1: i32) -> (i32, i32, i32) {
    %c0_i32 = arith.constant 0 : i32
    %c0_i32_0 = arith.constant 0 : i32
    %c0_i32_1 = arith.constant 0 : i32
    return %arg0, %c0_i32, %c0_i32_0 : i32, i32, i32
  }
  func.func @transform_2(%arg0: i32, %arg1: i32) -> (i32, i32, i32) {
    %c0_i32 = arith.constant 0 : i32
    %c0_i32_0 = arith.constant 0 : i32
    %c0_i32_1 = arith.constant 0 : i32
    return %arg0, %c0_i32, %c0_i32_0 : i32, i32, i32
  }
  func.func @transform_3(%arg0: i32, %arg1: i32) -> (i32, i32, i32) {
    %c0_i32 = arith.constant 0 : i32
    %c0_i32_0 = arith.constant 0 : i32
    return %arg0, %arg1, %c0_i32 : i32, i32, i32
  }
  func.func @transform_4(%arg0: i32, %arg1: i32) -> (i32, i32, i32) {
    %c0_i32 = arith.constant 0 : i32
    %c0_i32_0 = arith.constant 0 : i32
    %c0_i32_1 = arith.constant 0 : i32
    return %arg0, %c0_i32, %c0_i32_0 : i32, i32, i32
  }
  func.func @transform_5(%arg0: i32, %arg1: i32) -> (i32, i32, i32) {
    %c0_i32 = arith.constant 0 : i32
    %c0_i32_0 = arith.constant 0 : i32
    %c0_i32_1 = arith.constant 0 : i32
    return %arg0, %c0_i32, %c0_i32_0 : i32, i32, i32
  }
  func.func @transform_6(%arg0: i32, %arg1: i32) -> (i32, i32, i32) {
    %c0_i32 = arith.constant 0 : i32
    %c0_i32_0 = arith.constant 0 : i32
    %c0_i32_1 = arith.constant 0 : i32
    return %arg0, %c0_i32, %c0_i32_0 : i32, i32, i32
  }
  func.func @transform_7(%arg0: i32, %arg1: i32) -> (i32, i32, i32) {
    %c0_i32 = arith.constant 0 : i32
    %c0_i32_0 = arith.constant 0 : i32
    %c0_i32_1 = arith.constant 0 : i32
    return %arg0, %c0_i32, %c0_i32_0 : i32, i32, i32
  }
  func.func @transform_8(%arg0: i32, %arg1: i32) -> (i32, i32, i32) {
    %c0_i32 = arith.constant 0 : i32
    %c0_i32_0 = arith.constant 0 : i32
    return %arg0, %arg1, %c0_i32 : i32, i32, i32
  }
}

module attributes {stable_mosaic.version = 11 : i64} {
  func.func @_gemm_bias_kernel(%arg0: i32, %arg1: i32, %arg2: memref<1x128x72xf32, #tpu.memory_space<vmem>>, %arg3: memref<1x72x8xf32, #tpu.memory_space<vmem>>, %arg4: memref<1x1x8xf32, #tpu.memory_space<vmem>>, %arg5: memref<1x128x8xf32, #tpu.memory_space<vmem>>) attributes {dimension_semantics = [#tpu.dimension_semantics<parallel>, #tpu.dimension_semantics<parallel>], iteration_bounds = array<i64: 2, 2>, scalar_prefetch = 0 : i64, scratch_operands = 0 : i64, tpu.core_type = #tpu.core_type<tc>, window_params = [{transform_indices = @transform_0, window_bounds = array<i64: 1, 128, 72>}, {transform_indices = @transform_1, window_bounds = array<i64: 1, 72, 8>}, {transform_indices = @transform_2, window_bounds = array<i64: 1, 1, 8>}, {transform_indices = @transform_3, window_bounds = array<i64: 1, 128, 8>}]} {
    %c0 = arith.constant 0 : index
    %c0_0 = arith.constant 0 : index
    %c0_1 = arith.constant 0 : index
    %0 = vector.load %arg2[%c0, %c0_0, %c0_1] : memref<1x128x72xf32, #tpu.memory_space<vmem>>, vector<1x128x72xf32>
    %1 = vector.shape_cast %0 : vector<1x128x72xf32> to vector<128x72xf32>
    %c0_2 = arith.constant 0 : index
    %c0_3 = arith.constant 0 : index
    %c0_4 = arith.constant 0 : index
    %2 = vector.load %arg3[%c0_2, %c0_3, %c0_4] : memref<1x72x8xf32, #tpu.memory_space<vmem>>, vector<1x72x8xf32>
    %3 = vector.shape_cast %2 : vector<1x72x8xf32> to vector<72x8xf32>
    %cst = arith.constant dense<0.000000e+00> : vector<128x8xf32>
    %4 = tpu.matmul %1, %3, %cst {dimension_numbers = #tpu.dot_dimension_numbers<[1], [0], [0], [1], [0, 0, 1, 1], [], []>} : vector<128x72xf32>, vector<72x8xf32>, vector<128x8xf32> -> vector<128x8xf32>
    %c0_5 = arith.constant 0 : index
    %c0_6 = arith.constant 0 : index
    %c0_7 = arith.constant 0 : index
    %5 = vector.load %arg4[%c0_5, %c0_6, %c0_7] : memref<1x1x8xf32, #tpu.memory_space<vmem>>, vector<1x1x8xf32>
    %6 = vector.shape_cast %5 : vector<1x1x8xf32> to vector<1x8xf32>
    %7 = vector.broadcast %6 : vector<1x8xf32> to vector<128x8xf32>
    %8 = arith.addf %4, %7 : vector<128x8xf32>
    %cst_8 = arith.constant 0.000000e+00 : f32
    %9 = vector.broadcast %cst_8 : f32 to vector<128x8xf32>
    %10 = arith.cmpf oge, %8, %9 : vector<128x8xf32>
    %cst_9 = arith.constant 1.000000e-01 : f32
    %11 = vector.broadcast %cst_9 : f32 to vector<128x8xf32>
    %12 = arith.mulf %11, %8 : vector<128x8xf32>
    %13 = arith.select %10, %8, %12 : vector<128x8xi1>, vector<128x8xf32>
    %c0_10 = arith.constant 0 : index
    %c0_11 = arith.constant 0 : index
    %c0_12 = arith.constant 0 : index
    %14 = vector.load %arg5[%c0_10, %c0_11, %c0_12] : memref<1x128x8xf32, #tpu.memory_space<vmem>>, vector<1x128x8xf32>
    %15 = vector.shape_cast %14 : vector<1x128x8xf32> to vector<128x8xf32>
    %16 = vector.shape_cast %13 : vector<128x8xf32> to vector<1x128x8xf32>
    tpu.vector_store %arg5[%c0_10, %c0_11, %c0_12], %16 {strides = array<i32>} : memref<1x128x8xf32, #tpu.memory_space<vmem>>, vector<1x128x8xf32>,
    return
  }
  func.func @transform_0(%arg0: i32, %arg1: i32) -> (i32, i32, i32) {
    %c0_i32 = arith.constant 0 : i32
    %c0_i32_0 = arith.constant 0 : i32
    return %arg0, %arg1, %c0_i32 : i32, i32, i32
  }
  func.func @transform_1(%arg0: i32, %arg1: i32) -> (i32, i32, i32) {
    %c0_i32 = arith.constant 0 : i32
    %c0_i32_0 = arith.constant 0 : i32
    %c0_i32_1 = arith.constant 0 : i32
    return %arg0, %c0_i32, %c0_i32_0 : i32, i32, i32
  }
  func.func @transform_2(%arg0: i32, %arg1: i32) -> (i32, i32, i32) {
    %c0_i32 = arith.constant 0 : i32
    %c0_i32_0 = arith.constant 0 : i32
    %c0_i32_1 = arith.constant 0 : i32
    return %arg0, %c0_i32, %c0_i32_0 : i32, i32, i32
  }
  func.func @transform_3(%arg0: i32, %arg1: i32) -> (i32, i32, i32) {
    %c0_i32 = arith.constant 0 : i32
    %c0_i32_0 = arith.constant 0 : i32
    return %arg0, %arg1, %c0_i32 : i32, i32, i32
  }
}

module attributes {stable_mosaic.version = 11 : i64} {
  func.func @_gemm_bias_kernel(%arg0: i32, %arg1: i32, %arg2: memref<1x128x24xf32, #tpu.memory_space<vmem>>, %arg3: memref<1x24x8xf32, #tpu.memory_space<vmem>>, %arg4: memref<1x1x8xf32, #tpu.memory_space<vmem>>, %arg5: memref<1x128x8xf32, #tpu.memory_space<vmem>>) attributes {dimension_semantics = [#tpu.dimension_semantics<parallel>, #tpu.dimension_semantics<parallel>], iteration_bounds = array<i64: 1, 2>, scalar_prefetch = 0 : i64, scratch_operands = 0 : i64, tpu.core_type = #tpu.core_type<tc>, window_params = [{transform_indices = @transform_0, window_bounds = array<i64: 1, 128, 24>}, {transform_indices = @transform_1, window_bounds = array<i64: 1, 24, 8>}, {transform_indices = @transform_2, window_bounds = array<i64: 1, 1, 8>}, {transform_indices = @transform_3, window_bounds = array<i64: 1, 128, 8>}]} {
    %c0 = arith.constant 0 : index
    %c0_0 = arith.constant 0 : index
    %c0_1 = arith.constant 0 : index
    %0 = vector.load %arg2[%c0, %c0_0, %c0_1] : memref<1x128x24xf32, #tpu.memory_space<vmem>>, vector<1x128x24xf32>
    %1 = vector.shape_cast %0 : vector<1x128x24xf32> to vector<128x24xf32>
    %c0_2 = arith.constant 0 : index
    %c0_3 = arith.constant 0 : index
    %c0_4 = arith.constant 0 : index
    %2 = vector.load %arg3[%c0_2, %c0_3, %c0_4] : memref<1x24x8xf32, #tpu.memory_space<vmem>>, vector<1x24x8xf32>
    %3 = vector.shape_cast %2 : vector<1x24x8xf32> to vector<24x8xf32>
    %cst = arith.constant dense<0.000000e+00> : vector<128x8xf32>
    %4 = tpu.matmul %1, %3, %cst {dimension_numbers = #tpu.dot_dimension_numbers<[1], [0], [0], [1], [0, 0, 1, 1], [], []>} : vector<128x24xf32>, vector<24x8xf32>, vector<128x8xf32> -> vector<128x8xf32>
    %c0_5 = arith.constant 0 : index
    %c0_6 = arith.constant 0 : index
    %c0_7 = arith.constant 0 : index
    %5 = vector.load %arg4[%c0_5, %c0_6, %c0_7] : memref<1x1x8xf32, #tpu.memory_space<vmem>>, vector<1x1x8xf32>
    %6 = vector.shape_cast %5 : vector<1x1x8xf32> to vector<1x8xf32>
    %7 = vector.broadcast %6 : vector<1x8xf32> to vector<128x8xf32>
    %8 = arith.addf %4, %7 : vector<128x8xf32>
    %c0_8 = arith.constant 0 : index
    %c0_9 = arith.constant 0 : index
    %c0_10 = arith.constant 0 : index
    %9 = vector.load %arg5[%c0_8, %c0_9, %c0_10] : memref<1x128x8xf32, #tpu.memory_space<vmem>>, vector<1x128x8xf32>
    %10 = vector.shape_cast %9 : vector<1x128x8xf32> to vector<128x8xf32>
    %11 = vector.shape_cast %8 : vector<128x8xf32> to vector<1x128x8xf32>
    tpu.vector_store %arg5[%c0_8, %c0_9, %c0_10], %11 {strides = array<i32>} : memref<1x128x8xf32, #tpu.memory_space<vmem>>, vector<1x128x8xf32>,
    return
  }
  func.func @transform_0(%arg0: i32, %arg1: i32) -> (i32, i32, i32) {
    %c0_i32 = arith.constant 0 : i32
    %c0_i32_0 = arith.constant 0 : i32
    return %arg0, %arg1, %c0_i32 : i32, i32, i32
  }
  func.func @transform_1(%arg0: i32, %arg1: i32) -> (i32, i32, i32) {
    %c0_i32 = arith.constant 0 : i32
    %c0_i32_0 = arith.constant 0 : i32
    %c0_i32_1 = arith.constant 0 : i32
    return %arg0, %c0_i32, %c0_i32_0 : i32, i32, i32
  }
  func.func @transform_2(%arg0: i32, %arg1: i32) -> (i32, i32, i32) {
    %c0_i32 = arith.constant 0 : i32
    %c0_i32_0 = arith.constant 0 : i32
    %c0_i32_1 = arith.constant 0 : i32
    return %arg0, %c0_i32, %c0_i32_0 : i32, i32, i32
  }
  func.func @transform_3(%arg0: i32, %arg1: i32) -> (i32, i32, i32) {
    %c0_i32 = arith.constant 0 : i32
    %c0_i32_0 = arith.constant 0 : i32
    return %arg0, %arg1, %c0_i32 : i32, i32, i32
  }
}

module attributes {stable_mosaic.version = 11 : i64} {
  func.func @_ang_fuse_kernel(%arg0: i32, %arg1: memref<3x64x32xf32, #tpu.memory_space<vmem>>, %arg2: memref<3x32x8xf32, #tpu.memory_space<vmem>>, %arg3: memref<3x1x8xf32, #tpu.memory_space<vmem>>, %arg4: memref<3x8x8xf32, #tpu.memory_space<vmem>>, %arg5: memref<1x8xf32, #tpu.memory_space<vmem>>, %arg6: memref<64x8xf32, #tpu.memory_space<vmem>>) attributes {dimension_semantics = [#tpu.dimension_semantics<parallel>], iteration_bounds = array<i64: 1>, scalar_prefetch = 0 : i64, scratch_operands = 0 : i64, tpu.core_type = #tpu.core_type<tc>, window_params = [{transform_indices = @transform_0, window_bounds = array<i64: 3, 64, 32>}, {pipeline_mode = #tpu.pipeline_mode<synchronous>, transform_indices = @transform_1, window_bounds = array<i64: 3, 32, 8>}, {pipeline_mode = #tpu.pipeline_mode<synchronous>, transform_indices = @transform_2, window_bounds = array<i64: 3, 1, 8>}, {pipeline_mode = #tpu.pipeline_mode<synchronous>, transform_indices = @transform_3, window_bounds = array<i64: 3, 8, 8>}, {pipeline_mode = #tpu.pipeline_mode<synchronous>, transform_indices = @transform_4, window_bounds = array<i64: 1, 8>}, {transform_indices = @transform_5, window_bounds = array<i64: 64, 8>}]} {
    %cst = arith.constant 0.000000e+00 : f32
    %0 = vector.broadcast %cst : f32 to vector<64x8xf32>
    %c0 = arith.constant 0 : index
    %c0_0 = arith.constant 0 : index
    %1 = vector.load %arg5[%c0, %c0_0] : memref<1x8xf32, #tpu.memory_space<vmem>>, vector<1x8xf32>
    %2 = vector.broadcast %1 : vector<1x8xf32> to vector<64x8xf32>
    %3 = arith.addf %0, %2 : vector<64x8xf32>
    %c0_1 = arith.constant 0 : index
    %c0_2 = arith.constant 0 : index
    %c0_3 = arith.constant 0 : index
    %4 = vector.load %arg1[%c0_1, %c0_2, %c0_3] : memref<3x64x32xf32, #tpu.memory_space<vmem>>, vector<1x64x32xf32>
    %5 = vector.shape_cast %4 : vector<1x64x32xf32> to vector<64x32xf32>
    %c0_4 = arith.constant 0 : index
    %c0_5 = arith.constant 0 : index
    %c0_6 = arith.constant 0 : index
    %6 = vector.load %arg2[%c0_4, %c0_5, %c0_6] : memref<3x32x8xf32, #tpu.memory_space<vmem>>, vector<1x32x8xf32>
    %7 = vector.shape_cast %6 : vector<1x32x8xf32> to vector<32x8xf32>
    %cst_7 = arith.constant dense<0.000000e+00> : vector<64x8xf32>
    %8 = tpu.matmul %5, %7, %cst_7 {dimension_numbers = #tpu.dot_dimension_numbers<[1], [0], [0], [1], [0, 0, 1, 1], [], []>} : vector<64x32xf32>, vector<32x8xf32>, vector<64x8xf32> -> vector<64x8xf32>
    %c0_8 = arith.constant 0 : index
    %c0_9 = arith.constant 0 : index
    %c0_10 = arith.constant 0 : index
    %9 = vector.load %arg3[%c0_8, %c0_9, %c0_10] : memref<3x1x8xf32, #tpu.memory_space<vmem>>, vector<1x1x8xf32>
    %10 = vector.shape_cast %9 : vector<1x1x8xf32> to vector<1x8xf32>
    %11 = vector.broadcast %10 : vector<1x8xf32> to vector<64x8xf32>
    %12 = arith.addf %8, %11 : vector<64x8xf32>
    %cst_11 = arith.constant 0.000000e+00 : f32
    %13 = vector.broadcast %cst_11 : f32 to vector<64x8xf32>
    %14 = arith.cmpf oge, %12, %13 : vector<64x8xf32>
    %cst_12 = arith.constant 1.000000e-01 : f32
    %15 = vector.broadcast %cst_12 : f32 to vector<64x8xf32>
    %16 = arith.mulf %15, %12 : vector<64x8xf32>
    %17 = arith.select %14, %12, %16 : vector<64x8xi1>, vector<64x8xf32>
    %c0_13 = arith.constant 0 : index
    %c0_14 = arith.constant 0 : index
    %c0_15 = arith.constant 0 : index
    %18 = vector.load %arg4[%c0_13, %c0_14, %c0_15] : memref<3x8x8xf32, #tpu.memory_space<vmem>>, vector<1x8x8xf32>
    %19 = vector.shape_cast %18 : vector<1x8x8xf32> to vector<8x8xf32>
    %cst_16 = arith.constant dense<0.000000e+00> : vector<64x8xf32>
    %20 = tpu.matmul %17, %19, %cst_16 {dimension_numbers = #tpu.dot_dimension_numbers<[1], [0], [0], [1], [0, 0, 1, 1], [], []>} : vector<64x8xf32>, vector<8x8xf32>, vector<64x8xf32> -> vector<64x8xf32>
    %21 = arith.addf %3, %20 : vector<64x8xf32>
    %c1 = arith.constant 1 : index
    %c0_17 = arith.constant 0 : index
    %c0_18 = arith.constant 0 : index
    %22 = vector.load %arg1[%c1, %c0_17, %c0_18] : memref<3x64x32xf32, #tpu.memory_space<vmem>>, vector<1x64x32xf32>
    %23 = vector.shape_cast %22 : vector<1x64x32xf32> to vector<64x32xf32>
    %c1_19 = arith.constant 1 : index
    %c0_20 = arith.constant 0 : index
    %c0_21 = arith.constant 0 : index
    %24 = vector.load %arg2[%c1_19, %c0_20, %c0_21] : memref<3x32x8xf32, #tpu.memory_space<vmem>>, vector<1x32x8xf32>
    %25 = vector.shape_cast %24 : vector<1x32x8xf32> to vector<32x8xf32>
    %cst_22 = arith.constant dense<0.000000e+00> : vector<64x8xf32>
    %26 = tpu.matmul %23, %25, %cst_22 {dimension_numbers = #tpu.dot_dimension_numbers<[1], [0], [0], [1], [0, 0, 1, 1], [], []>} : vector<64x32xf32>, vector<32x8xf32>, vector<64x8xf32> -> vector<64x8xf32>
    %c1_23 = arith.constant 1 : index
    %c0_24 = arith.constant 0 : index
    %c0_25 = arith.constant 0 : index
    %27 = vector.load %arg3[%c1_23, %c0_24, %c0_25] : memref<3x1x8xf32, #tpu.memory_space<vmem>>, vector<1x1x8xf32>
    %28 = vector.shape_cast %27 : vector<1x1x8xf32> to vector<1x8xf32>
    %29 = vector.broadcast %28 : vector<1x8xf32> to vector<64x8xf32>
    %30 = arith.addf %26, %29 : vector<64x8xf32>
    %cst_26 = arith.constant 0.000000e+00 : f32
    %31 = vector.broadcast %cst_26 : f32 to vector<64x8xf32>
    %32 = arith.cmpf oge, %30, %31 : vector<64x8xf32>
    %cst_27 = arith.constant 1.000000e-01 : f32
    %33 = vector.broadcast %cst_27 : f32 to vector<64x8xf32>
    %34 = arith.mulf %33, %30 : vector<64x8xf32>
    %35 = arith.select %32, %30, %34 : vector<64x8xi1>, vector<64x8xf32>
    %c1_28 = arith.constant 1 : index
    %c0_29 = arith.constant 0 : index
    %c0_30 = arith.constant 0 : index
    %36 = vector.load %arg4[%c1_28, %c0_29, %c0_30] : memref<3x8x8xf32, #tpu.memory_space<vmem>>, vector<1x8x8xf32>
    %37 = vector.shape_cast %36 : vector<1x8x8xf32> to vector<8x8xf32>
    %cst_31 = arith.constant dense<0.000000e+00> : vector<64x8xf32>
    %38 = tpu.matmul %35, %37, %cst_31 {dimension_numbers = #tpu.dot_dimension_numbers<[1], [0], [0], [1], [0, 0, 1, 1], [], []>} : vector<64x8xf32>, vector<8x8xf32>, vector<64x8xf32> -> vector<64x8xf32>
    %39 = arith.addf %21, %38 : vector<64x8xf32>
    %c2 = arith.constant 2 : index
    %c0_32 = arith.constant 0 : index
    %c0_33 = arith.constant 0 : index
    %40 = vector.load %arg1[%c2, %c0_32, %c0_33] : memref<3x64x32xf32, #tpu.memory_space<vmem>>, vector<1x64x32xf32>
    %41 = vector.shape_cast %40 : vector<1x64x32xf32> to vector<64x32xf32>
    %c2_34 = arith.constant 2 : index
    %c0_35 = arith.constant 0 : index
    %c0_36 = arith.constant 0 : index
    %42 = vector.load %arg2[%c2_34, %c0_35, %c0_36] : memref<3x32x8xf32, #tpu.memory_space<vmem>>, vector<1x32x8xf32>
    %43 = vector.shape_cast %42 : vector<1x32x8xf32> to vector<32x8xf32>
    %cst_37 = arith.constant dense<0.000000e+00> : vector<64x8xf32>
    %44 = tpu.matmul %41, %43, %cst_37 {dimension_numbers = #tpu.dot_dimension_numbers<[1], [0], [0], [1], [0, 0, 1, 1], [], []>} : vector<64x32xf32>, vector<32x8xf32>, vector<64x8xf32> -> vector<64x8xf32>
    %c2_38 = arith.constant 2 : index
    %c0_39 = arith.constant 0 : index
    %c0_40 = arith.constant 0 : index
    %45 = vector.load %arg3[%c2_38, %c0_39, %c0_40] : memref<3x1x8xf32, #tpu.memory_space<vmem>>, vector<1x1x8xf32>
    %46 = vector.shape_cast %45 : vector<1x1x8xf32> to vector<1x8xf32>
    %47 = vector.broadcast %46 : vector<1x8xf32> to vector<64x8xf32>
    %48 = arith.addf %44, %47 : vector<64x8xf32>
    %cst_41 = arith.constant 0.000000e+00 : f32
    %49 = vector.broadcast %cst_41 : f32 to vector<64x8xf32>
    %50 = arith.cmpf oge, %48, %49 : vector<64x8xf32>
    %cst_42 = arith.constant 1.000000e-01 : f32
    %51 = vector.broadcast %cst_42 : f32 to vector<64x8xf32>
    %52 = arith.mulf %51, %48 : vector<64x8xf32>
    %53 = arith.select %50, %48, %52 : vector<64x8xi1>, vector<64x8xf32>
    %c2_43 = arith.constant 2 : index
    %c0_44 = arith.constant 0 : index
    %c0_45 = arith.constant 0 : index
    %54 = vector.load %arg4[%c2_43, %c0_44, %c0_45] : memref<3x8x8xf32, #tpu.memory_space<vmem>>, vector<1x8x8xf32>
    %55 = vector.shape_cast %54 : vector<1x8x8xf32> to vector<8x8xf32>
    %cst_46 = arith.constant dense<0.000000e+00> : vector<64x8xf32>
    %56 = tpu.matmul %53, %55, %cst_46 {dimension_numbers = #tpu.dot_dimension_numbers<[1], [0], [0], [1], [0, 0, 1, 1], [], []>} : vector<64x8xf32>, vector<8x8xf32>, vector<64x8xf32> -> vector<64x8xf32>
    %57 = arith.addf %39, %56 : vector<64x8xf32>
    %c0_47 = arith.constant 0 : index
    %c0_48 = arith.constant 0 : index
    %58 = vector.load %arg6[%c0_47, %c0_48] : memref<64x8xf32, #tpu.memory_space<vmem>>, vector<64x8xf32>
    tpu.vector_store %arg6[%c0_47, %c0_48], %57 {strides = array<i32>} : memref<64x8xf32, #tpu.memory_space<vmem>>, vector<64x8xf32>,
    return
  }
  func.func @transform_0(%arg0: i32) -> (i32, i32, i32) {
    %c0_i32 = arith.constant 0 : i32
    %c0_i32_0 = arith.constant 0 : i32
    %c0_i32_1 = arith.constant 0 : i32
    return %c0_i32, %arg0, %c0_i32_0 : i32, i32, i32
  }
  func.func @transform_1(%arg0: i32) -> (i32, i32, i32) {
    %c0_i32 = arith.constant 0 : i32
    %c0_i32_0 = arith.constant 0 : i32
    %c0_i32_1 = arith.constant 0 : i32
    %c0_i32_2 = arith.constant 0 : i32
    return %c0_i32, %c0_i32_0, %c0_i32_1 : i32, i32, i32
  }
  func.func @transform_2(%arg0: i32) -> (i32, i32, i32) {
    %c0_i32 = arith.constant 0 : i32
    %c0_i32_0 = arith.constant 0 : i32
    %c0_i32_1 = arith.constant 0 : i32
    %c0_i32_2 = arith.constant 0 : i32
    return %c0_i32, %c0_i32_0, %c0_i32_1 : i32, i32, i32
  }
  func.func @transform_3(%arg0: i32) -> (i32, i32, i32) {
    %c0_i32 = arith.constant 0 : i32
    %c0_i32_0 = arith.constant 0 : i32
    %c0_i32_1 = arith.constant 0 : i32
    %c0_i32_2 = arith.constant 0 : i32
    return %c0_i32, %c0_i32_0, %c0_i32_1 : i32, i32, i32
  }
  func.func @transform_4(%arg0: i32) -> (i32, i32) {
    %c0_i32 = arith.constant 0 : i32
    %c0_i32_0 = arith.constant 0 : i32
    %c0_i32_1 = arith.constant 0 : i32
    return %c0_i32, %c0_i32_0 : i32, i32
  }
  func.func @transform_5(%arg0: i32) -> (i32, i32) {
    %c0_i32 = arith.constant 0 : i32
    %c0_i32_0 = arith.constant 0 : i32
    return %arg0, %c0_i32 : i32, i32
  }
}

module attributes {stable_mosaic.version = 11 : i64} {
  func.func @_gemm_bias_kernel(%arg0: i32, %arg1: i32, %arg2: memref<1x64x72xf32, #tpu.memory_space<vmem>>, %arg3: memref<1x72x16xf32, #tpu.memory_space<vmem>>, %arg4: memref<1x1x16xf32, #tpu.memory_space<vmem>>, %arg5: memref<1x64x16xf32, #tpu.memory_space<vmem>>) attributes {dimension_semantics = [#tpu.dimension_semantics<parallel>, #tpu.dimension_semantics<parallel>], iteration_bounds = array<i64: 1, 1>, scalar_prefetch = 0 : i64, scratch_operands = 0 : i64, tpu.core_type = #tpu.core_type<tc>, window_params = [{transform_indices = @transform_0, window_bounds = array<i64: 1, 64, 72>}, {transform_indices = @transform_1, window_bounds = array<i64: 1, 72, 16>}, {transform_indices = @transform_2, window_bounds = array<i64: 1, 1, 16>}, {transform_indices = @transform_3, window_bounds = array<i64: 1, 64, 16>}]} {
    %c0 = arith.constant 0 : index
    %c0_0 = arith.constant 0 : index
    %c0_1 = arith.constant 0 : index
    %0 = vector.load %arg2[%c0, %c0_0, %c0_1] : memref<1x64x72xf32, #tpu.memory_space<vmem>>, vector<1x64x72xf32>
    %1 = vector.shape_cast %0 : vector<1x64x72xf32> to vector<64x72xf32>
    %c0_2 = arith.constant 0 : index
    %c0_3 = arith.constant 0 : index
    %c0_4 = arith.constant 0 : index
    %2 = vector.load %arg3[%c0_2, %c0_3, %c0_4] : memref<1x72x16xf32, #tpu.memory_space<vmem>>, vector<1x72x16xf32>
    %3 = vector.shape_cast %2 : vector<1x72x16xf32> to vector<72x16xf32>
    %cst = arith.constant dense<0.000000e+00> : vector<64x16xf32>
    %4 = tpu.matmul %1, %3, %cst {dimension_numbers = #tpu.dot_dimension_numbers<[1], [0], [0], [1], [0, 0, 1, 1], [], []>} : vector<64x72xf32>, vector<72x16xf32>, vector<64x16xf32> -> vector<64x16xf32>
    %c0_5 = arith.constant 0 : index
    %c0_6 = arith.constant 0 : index
    %c0_7 = arith.constant 0 : index
    %5 = vector.load %arg4[%c0_5, %c0_6, %c0_7] : memref<1x1x16xf32, #tpu.memory_space<vmem>>, vector<1x1x16xf32>
    %6 = vector.shape_cast %5 : vector<1x1x16xf32> to vector<1x16xf32>
    %7 = vector.broadcast %6 : vector<1x16xf32> to vector<64x16xf32>
    %8 = arith.addf %4, %7 : vector<64x16xf32>
    %c0_8 = arith.constant 0 : index
    %c0_9 = arith.constant 0 : index
    %c0_10 = arith.constant 0 : index
    %9 = vector.load %arg5[%c0_8, %c0_9, %c0_10] : memref<1x64x16xf32, #tpu.memory_space<vmem>>, vector<1x64x16xf32>
    %10 = vector.shape_cast %9 : vector<1x64x16xf32> to vector<64x16xf32>
    %11 = vector.shape_cast %8 : vector<64x16xf32> to vector<1x64x16xf32>
    tpu.vector_store %arg5[%c0_8, %c0_9, %c0_10], %11 {strides = array<i32>} : memref<1x64x16xf32, #tpu.memory_space<vmem>>, vector<1x64x16xf32>,
    return
  }
  func.func @transform_0(%arg0: i32, %arg1: i32) -> (i32, i32, i32) {
    %c0_i32 = arith.constant 0 : i32
    %c0_i32_0 = arith.constant 0 : i32
    return %arg0, %arg1, %c0_i32 : i32, i32, i32
  }
  func.func @transform_1(%arg0: i32, %arg1: i32) -> (i32, i32, i32) {
    %c0_i32 = arith.constant 0 : i32
    %c0_i32_0 = arith.constant 0 : i32
    %c0_i32_1 = arith.constant 0 : i32
    return %arg0, %c0_i32, %c0_i32_0 : i32, i32, i32
  }
  func.func @transform_2(%arg0: i32, %arg1: i32) -> (i32, i32, i32) {
    %c0_i32 = arith.constant 0 : i32
    %c0_i32_0 = arith.constant 0 : i32
    %c0_i32_1 = arith.constant 0 : i32
    return %arg0, %c0_i32, %c0_i32_0 : i32, i32, i32
  }
  func.func @transform_3(%arg0: i32, %arg1: i32) -> (i32, i32, i32) {
    %c0_i32 = arith.constant 0 : i32
    %c0_i32_0 = arith.constant 0 : i32
    return %arg0, %arg1, %c0_i32 : i32, i32, i32
  }
}

module attributes {stable_mosaic.version = 11 : i64} {
  func.func @_gemm_bias_kernel(%arg0: i32, %arg1: i32, %arg2: memref<1x64x72xf32, #tpu.memory_space<vmem>>, %arg3: memref<1x72x16xf32, #tpu.memory_space<vmem>>, %arg4: memref<1x1x16xf32, #tpu.memory_space<vmem>>, %arg5: memref<1x64x16xf32, #tpu.memory_space<vmem>>) attributes {dimension_semantics = [#tpu.dimension_semantics<parallel>, #tpu.dimension_semantics<parallel>], iteration_bounds = array<i64: 1, 1>, scalar_prefetch = 0 : i64, scratch_operands = 0 : i64, tpu.core_type = #tpu.core_type<tc>, window_params = [{transform_indices = @transform_0, window_bounds = array<i64: 1, 64, 72>}, {transform_indices = @transform_1, window_bounds = array<i64: 1, 72, 16>}, {transform_indices = @transform_2, window_bounds = array<i64: 1, 1, 16>}, {transform_indices = @transform_3, window_bounds = array<i64: 1, 64, 16>}]} {
    %c0 = arith.constant 0 : index
    %c0_0 = arith.constant 0 : index
    %c0_1 = arith.constant 0 : index
    %0 = vector.load %arg2[%c0, %c0_0, %c0_1] : memref<1x64x72xf32, #tpu.memory_space<vmem>>, vector<1x64x72xf32>
    %1 = vector.shape_cast %0 : vector<1x64x72xf32> to vector<64x72xf32>
    %c0_2 = arith.constant 0 : index
    %c0_3 = arith.constant 0 : index
    %c0_4 = arith.constant 0 : index
    %2 = vector.load %arg3[%c0_2, %c0_3, %c0_4] : memref<1x72x16xf32, #tpu.memory_space<vmem>>, vector<1x72x16xf32>
    %3 = vector.shape_cast %2 : vector<1x72x16xf32> to vector<72x16xf32>
    %cst = arith.constant dense<0.000000e+00> : vector<64x16xf32>
    %4 = tpu.matmul %1, %3, %cst {dimension_numbers = #tpu.dot_dimension_numbers<[1], [0], [0], [1], [0, 0, 1, 1], [], []>} : vector<64x72xf32>, vector<72x16xf32>, vector<64x16xf32> -> vector<64x16xf32>
    %c0_5 = arith.constant 0 : index
    %c0_6 = arith.constant 0 : index
    %c0_7 = arith.constant 0 : index
    %5 = vector.load %arg4[%c0_5, %c0_6, %c0_7] : memref<1x1x16xf32, #tpu.memory_space<vmem>>, vector<1x1x16xf32>
    %6 = vector.shape_cast %5 : vector<1x1x16xf32> to vector<1x16xf32>
    %7 = vector.broadcast %6 : vector<1x16xf32> to vector<64x16xf32>
    %8 = arith.addf %4, %7 : vector<64x16xf32>
    %cst_8 = arith.constant 0.000000e+00 : f32
    %9 = vector.broadcast %cst_8 : f32 to vector<64x16xf32>
    %10 = arith.cmpf oge, %8, %9 : vector<64x16xf32>
    %cst_9 = arith.constant 1.000000e-01 : f32
    %11 = vector.broadcast %cst_9 : f32 to vector<64x16xf32>
    %12 = arith.mulf %11, %8 : vector<64x16xf32>
    %13 = arith.select %10, %8, %12 : vector<64x16xi1>, vector<64x16xf32>
    %c0_10 = arith.constant 0 : index
    %c0_11 = arith.constant 0 : index
    %c0_12 = arith.constant 0 : index
    %14 = vector.load %arg5[%c0_10, %c0_11, %c0_12] : memref<1x64x16xf32, #tpu.memory_space<vmem>>, vector<1x64x16xf32>
    %15 = vector.shape_cast %14 : vector<1x64x16xf32> to vector<64x16xf32>
    %16 = vector.shape_cast %13 : vector<64x16xf32> to vector<1x64x16xf32>
    tpu.vector_store %arg5[%c0_10, %c0_11, %c0_12], %16 {strides = array<i32>} : memref<1x64x16xf32, #tpu.memory_space<vmem>>, vector<1x64x16xf32>,
    return
  }
  func.func @transform_0(%arg0: i32, %arg1: i32) -> (i32, i32, i32) {
    %c0_i32 = arith.constant 0 : i32
    %c0_i32_0 = arith.constant 0 : i32
    return %arg0, %arg1, %c0_i32 : i32, i32, i32
  }
  func.func @transform_1(%arg0: i32, %arg1: i32) -> (i32, i32, i32) {
    %c0_i32 = arith.constant 0 : i32
    %c0_i32_0 = arith.constant 0 : i32
    %c0_i32_1 = arith.constant 0 : i32
    return %arg0, %c0_i32, %c0_i32_0 : i32, i32, i32
  }
  func.func @transform_2(%arg0: i32, %arg1: i32) -> (i32, i32, i32) {
    %c0_i32 = arith.constant 0 : i32
    %c0_i32_0 = arith.constant 0 : i32
    %c0_i32_1 = arith.constant 0 : i32
    return %arg0, %c0_i32, %c0_i32_0 : i32, i32, i32
  }
  func.func @transform_3(%arg0: i32, %arg1: i32) -> (i32, i32, i32) {
    %c0_i32 = arith.constant 0 : i32
    %c0_i32_0 = arith.constant 0 : i32
    return %arg0, %arg1, %c0_i32 : i32, i32, i32
  }
}

module attributes {stable_mosaic.version = 11 : i64} {
  func.func @_gemm_bias_kernel(%arg0: i32, %arg1: i32, %arg2: memref<1x64x32xf32, #tpu.memory_space<vmem>>, %arg3: memref<1x32x16xf32, #tpu.memory_space<vmem>>, %arg4: memref<1x1x16xf32, #tpu.memory_space<vmem>>, %arg5: memref<1x64x16xf32, #tpu.memory_space<vmem>>) attributes {dimension_semantics = [#tpu.dimension_semantics<parallel>, #tpu.dimension_semantics<parallel>], iteration_bounds = array<i64: 2, 1>, scalar_prefetch = 0 : i64, scratch_operands = 0 : i64, tpu.core_type = #tpu.core_type<tc>, window_params = [{transform_indices = @transform_0, window_bounds = array<i64: 1, 64, 32>}, {transform_indices = @transform_1, window_bounds = array<i64: 1, 32, 16>}, {transform_indices = @transform_2, window_bounds = array<i64: 1, 1, 16>}, {transform_indices = @transform_3, window_bounds = array<i64: 1, 64, 16>}]} {
    %c0 = arith.constant 0 : index
    %c0_0 = arith.constant 0 : index
    %c0_1 = arith.constant 0 : index
    %0 = vector.load %arg2[%c0, %c0_0, %c0_1] : memref<1x64x32xf32, #tpu.memory_space<vmem>>, vector<1x64x32xf32>
    %1 = vector.shape_cast %0 : vector<1x64x32xf32> to vector<64x32xf32>
    %c0_2 = arith.constant 0 : index
    %c0_3 = arith.constant 0 : index
    %c0_4 = arith.constant 0 : index
    %2 = vector.load %arg3[%c0_2, %c0_3, %c0_4] : memref<1x32x16xf32, #tpu.memory_space<vmem>>, vector<1x32x16xf32>
    %3 = vector.shape_cast %2 : vector<1x32x16xf32> to vector<32x16xf32>
    %cst = arith.constant dense<0.000000e+00> : vector<64x16xf32>
    %4 = tpu.matmul %1, %3, %cst {dimension_numbers = #tpu.dot_dimension_numbers<[1], [0], [0], [1], [0, 0, 1, 1], [], []>} : vector<64x32xf32>, vector<32x16xf32>, vector<64x16xf32> -> vector<64x16xf32>
    %c0_5 = arith.constant 0 : index
    %c0_6 = arith.constant 0 : index
    %c0_7 = arith.constant 0 : index
    %5 = vector.load %arg4[%c0_5, %c0_6, %c0_7] : memref<1x1x16xf32, #tpu.memory_space<vmem>>, vector<1x1x16xf32>
    %6 = vector.shape_cast %5 : vector<1x1x16xf32> to vector<1x16xf32>
    %7 = vector.broadcast %6 : vector<1x16xf32> to vector<64x16xf32>
    %8 = arith.addf %4, %7 : vector<64x16xf32>
    %cst_8 = arith.constant 0.000000e+00 : f32
    %9 = vector.broadcast %cst_8 : f32 to vector<64x16xf32>
    %10 = arith.cmpf oge, %8, %9 : vector<64x16xf32>
    %cst_9 = arith.constant 1.000000e-01 : f32
    %11 = vector.broadcast %cst_9 : f32 to vector<64x16xf32>
    %12 = arith.mulf %11, %8 : vector<64x16xf32>
    %13 = arith.select %10, %8, %12 : vector<64x16xi1>, vector<64x16xf32>
    %c0_10 = arith.constant 0 : index
    %c0_11 = arith.constant 0 : index
    %c0_12 = arith.constant 0 : index
    %14 = vector.load %arg5[%c0_10, %c0_11, %c0_12] : memref<1x64x16xf32, #tpu.memory_space<vmem>>, vector<1x64x16xf32>
    %15 = vector.shape_cast %14 : vector<1x64x16xf32> to vector<64x16xf32>
    %16 = vector.shape_cast %13 : vector<64x16xf32> to vector<1x64x16xf32>
    tpu.vector_store %arg5[%c0_10, %c0_11, %c0_12], %16 {strides = array<i32>} : memref<1x64x16xf32, #tpu.memory_space<vmem>>, vector<1x64x16xf32>,
    return
  }
  func.func @transform_0(%arg0: i32, %arg1: i32) -> (i32, i32, i32) {
    %c0_i32 = arith.constant 0 : i32
    %c0_i32_0 = arith.constant 0 : i32
    return %arg0, %arg1, %c0_i32 : i32, i32, i32
  }
  func.func @transform_1(%arg0: i32, %arg1: i32) -> (i32, i32, i32) {
    %c0_i32 = arith.constant 0 : i32
    %c0_i32_0 = arith.constant 0 : i32
    %c0_i32_1 = arith.constant 0 : i32
    return %arg0, %c0_i32, %c0_i32_0 : i32, i32, i32
  }
  func.func @transform_2(%arg0: i32, %arg1: i32) -> (i32, i32, i32) {
    %c0_i32 = arith.constant 0 : i32
    %c0_i32_0 = arith.constant 0 : i32
    %c0_i32_1 = arith.constant 0 : i32
    return %arg0, %c0_i32, %c0_i32_0 : i32, i32, i32
  }
  func.func @transform_3(%arg0: i32, %arg1: i32) -> (i32, i32, i32) {
    %c0_i32 = arith.constant 0 : i32
    %c0_i32_0 = arith.constant 0 : i32
    return %arg0, %arg1, %c0_i32 : i32, i32, i32
  }
}

module attributes {stable_mosaic.version = 11 : i64} {
  func.func @_aspp_offset_kernel(%arg0: i32, %arg1: i32, %arg2: memref<1x64x432xf32, #tpu.memory_space<vmem>>, %arg3: memref<1x432x48xf32, #tpu.memory_space<vmem>>, %arg4: memref<1x1x48xf32, #tpu.memory_space<vmem>>, %arg5: memref<1x64x16xf32, #tpu.memory_space<vmem>>, %arg6: memref<1x48x16xf32, #tpu.memory_space<vmem>>, %arg7: memref<1x1x16xf32, #tpu.memory_space<vmem>>, %arg8: memref<1x16x18xf32, #tpu.memory_space<vmem>>, %arg9: memref<1x1x18xf32, #tpu.memory_space<vmem>>, %arg10: memref<1x64x18xf32, #tpu.memory_space<vmem>>) attributes {dimension_semantics = [#tpu.dimension_semantics<parallel>, #tpu.dimension_semantics<parallel>], iteration_bounds = array<i64: 2, 1>, scalar_prefetch = 0 : i64, scratch_operands = 0 : i64, tpu.core_type = #tpu.core_type<tc>, window_params = [{transform_indices = @transform_0, window_bounds = array<i64: 1, 64, 432>}, {transform_indices = @transform_1, window_bounds = array<i64: 1, 432, 48>}, {transform_indices = @transform_2, window_bounds = array<i64: 1, 1, 48>}, {transform_indices = @transform_3, window_bounds = array<i64: 1, 64, 16>}, {transform_indices = @transform_4, window_bounds = array<i64: 1, 48, 16>}, {transform_indices = @transform_5, window_bounds = array<i64: 1, 1, 16>}, {transform_indices = @transform_6, window_bounds = array<i64: 1, 16, 18>}, {transform_indices = @transform_7, window_bounds = array<i64: 1, 1, 18>}, {transform_indices = @transform_8, window_bounds = array<i64: 1, 64, 18>}]} {
    %c0 = arith.constant 0 : index
    %c0_0 = arith.constant 0 : index
    %c0_1 = arith.constant 0 : index
    %0 = vector.load %arg2[%c0, %c0_0, %c0_1] : memref<1x64x432xf32, #tpu.memory_space<vmem>>, vector<1x64x432xf32>
    %1 = vector.shape_cast %0 : vector<1x64x432xf32> to vector<64x432xf32>
    %c0_2 = arith.constant 0 : index
    %c0_3 = arith.constant 0 : index
    %c0_4 = arith.constant 0 : index
    %2 = vector.load %arg3[%c0_2, %c0_3, %c0_4] : memref<1x432x48xf32, #tpu.memory_space<vmem>>, vector<1x432x48xf32>
    %3 = vector.shape_cast %2 : vector<1x432x48xf32> to vector<432x48xf32>
    %cst = arith.constant dense<0.000000e+00> : vector<64x48xf32>
    %4 = tpu.matmul %1, %3, %cst {dimension_numbers = #tpu.dot_dimension_numbers<[1], [0], [0], [1], [0, 0, 1, 1], [], []>} : vector<64x432xf32>, vector<432x48xf32>, vector<64x48xf32> -> vector<64x48xf32>
    %c0_5 = arith.constant 0 : index
    %c0_6 = arith.constant 0 : index
    %c0_7 = arith.constant 0 : index
    %5 = vector.load %arg4[%c0_5, %c0_6, %c0_7] : memref<1x1x48xf32, #tpu.memory_space<vmem>>, vector<1x1x48xf32>
    %6 = vector.shape_cast %5 : vector<1x1x48xf32> to vector<1x48xf32>
    %7 = vector.broadcast %6 : vector<1x48xf32> to vector<64x48xf32>
    %8 = arith.addf %4, %7 : vector<64x48xf32>
    %cst_8 = arith.constant 0.000000e+00 : f32
    %9 = vector.broadcast %cst_8 : f32 to vector<64x48xf32>
    %10 = arith.cmpf oge, %8, %9 : vector<64x48xf32>
    %cst_9 = arith.constant 1.000000e-01 : f32
    %11 = vector.broadcast %cst_9 : f32 to vector<64x48xf32>
    %12 = arith.mulf %11, %8 : vector<64x48xf32>
    %13 = arith.select %10, %8, %12 : vector<64x48xi1>, vector<64x48xf32>
    %c0_10 = arith.constant 0 : index
    %c0_11 = arith.constant 0 : index
    %c0_12 = arith.constant 0 : index
    %14 = vector.load %arg5[%c0_10, %c0_11, %c0_12] : memref<1x64x16xf32, #tpu.memory_space<vmem>>, vector<1x64x16xf32>
    %15 = vector.shape_cast %14 : vector<1x64x16xf32> to vector<64x16xf32>
    %c0_13 = arith.constant 0 : index
    %c0_14 = arith.constant 0 : index
    %c0_15 = arith.constant 0 : index
    %16 = vector.load %arg6[%c0_13, %c0_14, %c0_15] : memref<1x48x16xf32, #tpu.memory_space<vmem>>, vector<1x48x16xf32>
    %17 = vector.shape_cast %16 : vector<1x48x16xf32> to vector<48x16xf32>
    %cst_16 = arith.constant dense<0.000000e+00> : vector<64x16xf32>
    %18 = tpu.matmul %13, %17, %cst_16 {dimension_numbers = #tpu.dot_dimension_numbers<[1], [0], [0], [1], [0, 0, 1, 1], [], []>} : vector<64x48xf32>, vector<48x16xf32>, vector<64x16xf32> -> vector<64x16xf32>
    %19 = arith.addf %15, %18 : vector<64x16xf32>
    %c0_17 = arith.constant 0 : index
    %c0_18 = arith.constant 0 : index
    %c0_19 = arith.constant 0 : index
    %20 = vector.load %arg7[%c0_17, %c0_18, %c0_19] : memref<1x1x16xf32, #tpu.memory_space<vmem>>, vector<1x1x16xf32>
    %21 = vector.shape_cast %20 : vector<1x1x16xf32> to vector<1x16xf32>
    %22 = vector.broadcast %21 : vector<1x16xf32> to vector<64x16xf32>
    %23 = arith.addf %19, %22 : vector<64x16xf32>
    %c0_20 = arith.constant 0 : index
    %c0_21 = arith.constant 0 : index
    %c0_22 = arith.constant 0 : index
    %24 = vector.load %arg8[%c0_20, %c0_21, %c0_22] : memref<1x16x18xf32, #tpu.memory_space<vmem>>, vector<1x16x18xf32>
    %25 = vector.shape_cast %24 : vector<1x16x18xf32> to vector<16x18xf32>
    %cst_23 = arith.constant dense<0.000000e+00> : vector<64x18xf32>
    %26 = tpu.matmul %23, %25, %cst_23 {dimension_numbers = #tpu.dot_dimension_numbers<[1], [0], [0], [1], [0, 0, 1, 1], [], []>} : vector<64x16xf32>, vector<16x18xf32>, vector<64x18xf32> -> vector<64x18xf32>
    %c0_24 = arith.constant 0 : index
    %c0_25 = arith.constant 0 : index
    %c0_26 = arith.constant 0 : index
    %27 = vector.load %arg9[%c0_24, %c0_25, %c0_26] : memref<1x1x18xf32, #tpu.memory_space<vmem>>, vector<1x1x18xf32>
    %28 = vector.shape_cast %27 : vector<1x1x18xf32> to vector<1x18xf32>
    %29 = vector.broadcast %28 : vector<1x18xf32> to vector<64x18xf32>
    %30 = arith.addf %26, %29 : vector<64x18xf32>
    %c0_27 = arith.constant 0 : index
    %c0_28 = arith.constant 0 : index
    %c0_29 = arith.constant 0 : index
    %31 = vector.load %arg10[%c0_27, %c0_28, %c0_29] : memref<1x64x18xf32, #tpu.memory_space<vmem>>, vector<1x64x18xf32>
    %32 = vector.shape_cast %31 : vector<1x64x18xf32> to vector<64x18xf32>
    %33 = vector.shape_cast %30 : vector<64x18xf32> to vector<1x64x18xf32>
    tpu.vector_store %arg10[%c0_27, %c0_28, %c0_29], %33 {strides = array<i32>} : memref<1x64x18xf32, #tpu.memory_space<vmem>>, vector<1x64x18xf32>,
    return
  }
  func.func @transform_0(%arg0: i32, %arg1: i32) -> (i32, i32, i32) {
    %c0_i32 = arith.constant 0 : i32
    %c0_i32_0 = arith.constant 0 : i32
    return %arg0, %arg1, %c0_i32 : i32, i32, i32
  }
  func.func @transform_1(%arg0: i32, %arg1: i32) -> (i32, i32, i32) {
    %c0_i32 = arith.constant 0 : i32
    %c0_i32_0 = arith.constant 0 : i32
    %c0_i32_1 = arith.constant 0 : i32
    return %arg0, %c0_i32, %c0_i32_0 : i32, i32, i32
  }
  func.func @transform_2(%arg0: i32, %arg1: i32) -> (i32, i32, i32) {
    %c0_i32 = arith.constant 0 : i32
    %c0_i32_0 = arith.constant 0 : i32
    %c0_i32_1 = arith.constant 0 : i32
    return %arg0, %c0_i32, %c0_i32_0 : i32, i32, i32
  }
  func.func @transform_3(%arg0: i32, %arg1: i32) -> (i32, i32, i32) {
    %c0_i32 = arith.constant 0 : i32
    %c0_i32_0 = arith.constant 0 : i32
    return %arg0, %arg1, %c0_i32 : i32, i32, i32
  }
  func.func @transform_4(%arg0: i32, %arg1: i32) -> (i32, i32, i32) {
    %c0_i32 = arith.constant 0 : i32
    %c0_i32_0 = arith.constant 0 : i32
    %c0_i32_1 = arith.constant 0 : i32
    return %arg0, %c0_i32, %c0_i32_0 : i32, i32, i32
  }
  func.func @transform_5(%arg0: i32, %arg1: i32) -> (i32, i32, i32) {
    %c0_i32 = arith.constant 0 : i32
    %c0_i32_0 = arith.constant 0 : i32
    %c0_i32_1 = arith.constant 0 : i32
    return %arg0, %c0_i32, %c0_i32_0 : i32, i32, i32
  }
  func.func @transform_6(%arg0: i32, %arg1: i32) -> (i32, i32, i32) {
    %c0_i32 = arith.constant 0 : i32
    %c0_i32_0 = arith.constant 0 : i32
    %c0_i32_1 = arith.constant 0 : i32
    return %arg0, %c0_i32, %c0_i32_0 : i32, i32, i32
  }
  func.func @transform_7(%arg0: i32, %arg1: i32) -> (i32, i32, i32) {
    %c0_i32 = arith.constant 0 : i32
    %c0_i32_0 = arith.constant 0 : i32
    %c0_i32_1 = arith.constant 0 : i32
    return %arg0, %c0_i32, %c0_i32_0 : i32, i32, i32
  }
  func.func @transform_8(%arg0: i32, %arg1: i32) -> (i32, i32, i32) {
    %c0_i32 = arith.constant 0 : i32
    %c0_i32_0 = arith.constant 0 : i32
    return %arg0, %arg1, %c0_i32 : i32, i32, i32
  }
}

module attributes {stable_mosaic.version = 11 : i64} {
  func.func @_gemm_bias_kernel(%arg0: i32, %arg1: i32, %arg2: memref<1x64x144xf32, #tpu.memory_space<vmem>>, %arg3: memref<1x144x16xf32, #tpu.memory_space<vmem>>, %arg4: memref<1x1x16xf32, #tpu.memory_space<vmem>>, %arg5: memref<1x64x16xf32, #tpu.memory_space<vmem>>) attributes {dimension_semantics = [#tpu.dimension_semantics<parallel>, #tpu.dimension_semantics<parallel>], iteration_bounds = array<i64: 2, 1>, scalar_prefetch = 0 : i64, scratch_operands = 0 : i64, tpu.core_type = #tpu.core_type<tc>, window_params = [{transform_indices = @transform_0, window_bounds = array<i64: 1, 64, 144>}, {transform_indices = @transform_1, window_bounds = array<i64: 1, 144, 16>}, {transform_indices = @transform_2, window_bounds = array<i64: 1, 1, 16>}, {transform_indices = @transform_3, window_bounds = array<i64: 1, 64, 16>}]} {
    %c0 = arith.constant 0 : index
    %c0_0 = arith.constant 0 : index
    %c0_1 = arith.constant 0 : index
    %0 = vector.load %arg2[%c0, %c0_0, %c0_1] : memref<1x64x144xf32, #tpu.memory_space<vmem>>, vector<1x64x144xf32>
    %1 = vector.shape_cast %0 : vector<1x64x144xf32> to vector<64x144xf32>
    %c0_2 = arith.constant 0 : index
    %c0_3 = arith.constant 0 : index
    %c0_4 = arith.constant 0 : index
    %2 = vector.load %arg3[%c0_2, %c0_3, %c0_4] : memref<1x144x16xf32, #tpu.memory_space<vmem>>, vector<1x144x16xf32>
    %3 = vector.shape_cast %2 : vector<1x144x16xf32> to vector<144x16xf32>
    %cst = arith.constant dense<0.000000e+00> : vector<64x16xf32>
    %4 = tpu.matmul %1, %3, %cst {dimension_numbers = #tpu.dot_dimension_numbers<[1], [0], [0], [1], [0, 0, 1, 1], [], []>} : vector<64x144xf32>, vector<144x16xf32>, vector<64x16xf32> -> vector<64x16xf32>
    %c0_5 = arith.constant 0 : index
    %c0_6 = arith.constant 0 : index
    %c0_7 = arith.constant 0 : index
    %5 = vector.load %arg4[%c0_5, %c0_6, %c0_7] : memref<1x1x16xf32, #tpu.memory_space<vmem>>, vector<1x1x16xf32>
    %6 = vector.shape_cast %5 : vector<1x1x16xf32> to vector<1x16xf32>
    %7 = vector.broadcast %6 : vector<1x16xf32> to vector<64x16xf32>
    %8 = arith.addf %4, %7 : vector<64x16xf32>
    %cst_8 = arith.constant 0.000000e+00 : f32
    %9 = vector.broadcast %cst_8 : f32 to vector<64x16xf32>
    %10 = arith.cmpf oge, %8, %9 : vector<64x16xf32>
    %cst_9 = arith.constant 1.000000e-01 : f32
    %11 = vector.broadcast %cst_9 : f32 to vector<64x16xf32>
    %12 = arith.mulf %11, %8 : vector<64x16xf32>
    %13 = arith.select %10, %8, %12 : vector<64x16xi1>, vector<64x16xf32>
    %c0_10 = arith.constant 0 : index
    %c0_11 = arith.constant 0 : index
    %c0_12 = arith.constant 0 : index
    %14 = vector.load %arg5[%c0_10, %c0_11, %c0_12] : memref<1x64x16xf32, #tpu.memory_space<vmem>>, vector<1x64x16xf32>
    %15 = vector.shape_cast %14 : vector<1x64x16xf32> to vector<64x16xf32>
    %16 = vector.shape_cast %13 : vector<64x16xf32> to vector<1x64x16xf32>
    tpu.vector_store %arg5[%c0_10, %c0_11, %c0_12], %16 {strides = array<i32>} : memref<1x64x16xf32, #tpu.memory_space<vmem>>, vector<1x64x16xf32>,
    return
  }
  func.func @transform_0(%arg0: i32, %arg1: i32) -> (i32, i32, i32) {
    %c0_i32 = arith.constant 0 : i32
    %c0_i32_0 = arith.constant 0 : i32
    return %arg0, %arg1, %c0_i32 : i32, i32, i32
  }
  func.func @transform_1(%arg0: i32, %arg1: i32) -> (i32, i32, i32) {
    %c0_i32 = arith.constant 0 : i32
    %c0_i32_0 = arith.constant 0 : i32
    %c0_i32_1 = arith.constant 0 : i32
    return %arg0, %c0_i32, %c0_i32_0 : i32, i32, i32
  }
  func.func @transform_2(%arg0: i32, %arg1: i32) -> (i32, i32, i32) {
    %c0_i32 = arith.constant 0 : i32
    %c0_i32_0 = arith.constant 0 : i32
    %c0_i32_1 = arith.constant 0 : i32
    return %arg0, %c0_i32, %c0_i32_0 : i32, i32, i32
  }
  func.func @transform_3(%arg0: i32, %arg1: i32) -> (i32, i32, i32) {
    %c0_i32 = arith.constant 0 : i32
    %c0_i32_0 = arith.constant 0 : i32
    return %arg0, %arg1, %c0_i32 : i32, i32, i32
  }
}

module attributes {stable_mosaic.version = 11 : i64} {
  func.func @_gemm_bias_kernel(%arg0: i32, %arg1: i32, %arg2: memref<1x64x48xf32, #tpu.memory_space<vmem>>, %arg3: memref<1x48x16xf32, #tpu.memory_space<vmem>>, %arg4: memref<1x1x16xf32, #tpu.memory_space<vmem>>, %arg5: memref<1x64x16xf32, #tpu.memory_space<vmem>>) attributes {dimension_semantics = [#tpu.dimension_semantics<parallel>, #tpu.dimension_semantics<parallel>], iteration_bounds = array<i64: 1, 1>, scalar_prefetch = 0 : i64, scratch_operands = 0 : i64, tpu.core_type = #tpu.core_type<tc>, window_params = [{transform_indices = @transform_0, window_bounds = array<i64: 1, 64, 48>}, {transform_indices = @transform_1, window_bounds = array<i64: 1, 48, 16>}, {transform_indices = @transform_2, window_bounds = array<i64: 1, 1, 16>}, {transform_indices = @transform_3, window_bounds = array<i64: 1, 64, 16>}]} {
    %c0 = arith.constant 0 : index
    %c0_0 = arith.constant 0 : index
    %c0_1 = arith.constant 0 : index
    %0 = vector.load %arg2[%c0, %c0_0, %c0_1] : memref<1x64x48xf32, #tpu.memory_space<vmem>>, vector<1x64x48xf32>
    %1 = vector.shape_cast %0 : vector<1x64x48xf32> to vector<64x48xf32>
    %c0_2 = arith.constant 0 : index
    %c0_3 = arith.constant 0 : index
    %c0_4 = arith.constant 0 : index
    %2 = vector.load %arg3[%c0_2, %c0_3, %c0_4] : memref<1x48x16xf32, #tpu.memory_space<vmem>>, vector<1x48x16xf32>
    %3 = vector.shape_cast %2 : vector<1x48x16xf32> to vector<48x16xf32>
    %cst = arith.constant dense<0.000000e+00> : vector<64x16xf32>
    %4 = tpu.matmul %1, %3, %cst {dimension_numbers = #tpu.dot_dimension_numbers<[1], [0], [0], [1], [0, 0, 1, 1], [], []>} : vector<64x48xf32>, vector<48x16xf32>, vector<64x16xf32> -> vector<64x16xf32>
    %c0_5 = arith.constant 0 : index
    %c0_6 = arith.constant 0 : index
    %c0_7 = arith.constant 0 : index
    %5 = vector.load %arg4[%c0_5, %c0_6, %c0_7] : memref<1x1x16xf32, #tpu.memory_space<vmem>>, vector<1x1x16xf32>
    %6 = vector.shape_cast %5 : vector<1x1x16xf32> to vector<1x16xf32>
    %7 = vector.broadcast %6 : vector<1x16xf32> to vector<64x16xf32>
    %8 = arith.addf %4, %7 : vector<64x16xf32>
    %c0_8 = arith.constant 0 : index
    %c0_9 = arith.constant 0 : index
    %c0_10 = arith.constant 0 : index
    %9 = vector.load %arg5[%c0_8, %c0_9, %c0_10] : memref<1x64x16xf32, #tpu.memory_space<vmem>>, vector<1x64x16xf32>
    %10 = vector.shape_cast %9 : vector<1x64x16xf32> to vector<64x16xf32>
    %11 = vector.shape_cast %8 : vector<64x16xf32> to vector<1x64x16xf32>
    tpu.vector_store %arg5[%c0_8, %c0_9, %c0_10], %11 {strides = array<i32>} : memref<1x64x16xf32, #tpu.memory_space<vmem>>, vector<1x64x16xf32>,
    return
  }
  func.func @transform_0(%arg0: i32, %arg1: i32) -> (i32, i32, i32) {
    %c0_i32 = arith.constant 0 : i32
    %c0_i32_0 = arith.constant 0 : i32
    return %arg0, %arg1, %c0_i32 : i32, i32, i32
  }
  func.func @transform_1(%arg0: i32, %arg1: i32) -> (i32, i32, i32) {
    %c0_i32 = arith.constant 0 : i32
    %c0_i32_0 = arith.constant 0 : i32
    %c0_i32_1 = arith.constant 0 : i32
    return %arg0, %c0_i32, %c0_i32_0 : i32, i32, i32
  }
  func.func @transform_2(%arg0: i32, %arg1: i32) -> (i32, i32, i32) {
    %c0_i32 = arith.constant 0 : i32
    %c0_i32_0 = arith.constant 0 : i32
    %c0_i32_1 = arith.constant 0 : i32
    return %arg0, %c0_i32, %c0_i32_0 : i32, i32, i32
  }
  func.func @transform_3(%arg0: i32, %arg1: i32) -> (i32, i32, i32) {
    %c0_i32 = arith.constant 0 : i32
    %c0_i32_0 = arith.constant 0 : i32
    return %arg0, %arg1, %c0_i32 : i32, i32, i32
  }
}

module attributes {stable_mosaic.version = 11 : i64} {
  func.func @_ang_fuse_kernel(%arg0: i32, %arg1: memref<3x16x64xf32, #tpu.memory_space<vmem>>, %arg2: memref<3x64x16xf32, #tpu.memory_space<vmem>>, %arg3: memref<3x1x16xf32, #tpu.memory_space<vmem>>, %arg4: memref<3x16x16xf32, #tpu.memory_space<vmem>>, %arg5: memref<1x16xf32, #tpu.memory_space<vmem>>, %arg6: memref<16x16xf32, #tpu.memory_space<vmem>>) attributes {dimension_semantics = [#tpu.dimension_semantics<parallel>], iteration_bounds = array<i64: 1>, scalar_prefetch = 0 : i64, scratch_operands = 0 : i64, tpu.core_type = #tpu.core_type<tc>, window_params = [{transform_indices = @transform_0, window_bounds = array<i64: 3, 16, 64>}, {pipeline_mode = #tpu.pipeline_mode<synchronous>, transform_indices = @transform_1, window_bounds = array<i64: 3, 64, 16>}, {pipeline_mode = #tpu.pipeline_mode<synchronous>, transform_indices = @transform_2, window_bounds = array<i64: 3, 1, 16>}, {pipeline_mode = #tpu.pipeline_mode<synchronous>, transform_indices = @transform_3, window_bounds = array<i64: 3, 16, 16>}, {pipeline_mode = #tpu.pipeline_mode<synchronous>, transform_indices = @transform_4, window_bounds = array<i64: 1, 16>}, {transform_indices = @transform_5, window_bounds = array<i64: 16, 16>}]} {
    %cst = arith.constant 0.000000e+00 : f32
    %0 = vector.broadcast %cst : f32 to vector<16x16xf32>
    %c0 = arith.constant 0 : index
    %c0_0 = arith.constant 0 : index
    %1 = vector.load %arg5[%c0, %c0_0] : memref<1x16xf32, #tpu.memory_space<vmem>>, vector<1x16xf32>
    %2 = vector.broadcast %1 : vector<1x16xf32> to vector<16x16xf32>
    %3 = arith.addf %0, %2 : vector<16x16xf32>
    %c0_1 = arith.constant 0 : index
    %c0_2 = arith.constant 0 : index
    %c0_3 = arith.constant 0 : index
    %4 = vector.load %arg1[%c0_1, %c0_2, %c0_3] : memref<3x16x64xf32, #tpu.memory_space<vmem>>, vector<1x16x64xf32>
    %5 = vector.shape_cast %4 : vector<1x16x64xf32> to vector<16x64xf32>
    %c0_4 = arith.constant 0 : index
    %c0_5 = arith.constant 0 : index
    %c0_6 = arith.constant 0 : index
    %6 = vector.load %arg2[%c0_4, %c0_5, %c0_6] : memref<3x64x16xf32, #tpu.memory_space<vmem>>, vector<1x64x16xf32>
    %7 = vector.shape_cast %6 : vector<1x64x16xf32> to vector<64x16xf32>
    %cst_7 = arith.constant dense<0.000000e+00> : vector<16x16xf32>
    %8 = tpu.matmul %5, %7, %cst_7 {dimension_numbers = #tpu.dot_dimension_numbers<[1], [0], [0], [1], [0, 0, 1, 1], [], []>} : vector<16x64xf32>, vector<64x16xf32>, vector<16x16xf32> -> vector<16x16xf32>
    %c0_8 = arith.constant 0 : index
    %c0_9 = arith.constant 0 : index
    %c0_10 = arith.constant 0 : index
    %9 = vector.load %arg3[%c0_8, %c0_9, %c0_10] : memref<3x1x16xf32, #tpu.memory_space<vmem>>, vector<1x1x16xf32>
    %10 = vector.shape_cast %9 : vector<1x1x16xf32> to vector<1x16xf32>
    %11 = vector.broadcast %10 : vector<1x16xf32> to vector<16x16xf32>
    %12 = arith.addf %8, %11 : vector<16x16xf32>
    %cst_11 = arith.constant 0.000000e+00 : f32
    %13 = vector.broadcast %cst_11 : f32 to vector<16x16xf32>
    %14 = arith.cmpf oge, %12, %13 : vector<16x16xf32>
    %cst_12 = arith.constant 1.000000e-01 : f32
    %15 = vector.broadcast %cst_12 : f32 to vector<16x16xf32>
    %16 = arith.mulf %15, %12 : vector<16x16xf32>
    %17 = arith.select %14, %12, %16 : vector<16x16xi1>, vector<16x16xf32>
    %c0_13 = arith.constant 0 : index
    %c0_14 = arith.constant 0 : index
    %c0_15 = arith.constant 0 : index
    %18 = vector.load %arg4[%c0_13, %c0_14, %c0_15] : memref<3x16x16xf32, #tpu.memory_space<vmem>>, vector<1x16x16xf32>
    %19 = vector.shape_cast %18 : vector<1x16x16xf32> to vector<16x16xf32>
    %cst_16 = arith.constant dense<0.000000e+00> : vector<16x16xf32>
    %20 = tpu.matmul %17, %19, %cst_16 {dimension_numbers = #tpu.dot_dimension_numbers<[1], [0], [0], [1], [0, 0, 1, 1], [], []>} : vector<16x16xf32>, vector<16x16xf32>, vector<16x16xf32> -> vector<16x16xf32>
    %21 = arith.addf %3, %20 : vector<16x16xf32>
    %c1 = arith.constant 1 : index
    %c0_17 = arith.constant 0 : index
    %c0_18 = arith.constant 0 : index
    %22 = vector.load %arg1[%c1, %c0_17, %c0_18] : memref<3x16x64xf32, #tpu.memory_space<vmem>>, vector<1x16x64xf32>
    %23 = vector.shape_cast %22 : vector<1x16x64xf32> to vector<16x64xf32>
    %c1_19 = arith.constant 1 : index
    %c0_20 = arith.constant 0 : index
    %c0_21 = arith.constant 0 : index
    %24 = vector.load %arg2[%c1_19, %c0_20, %c0_21] : memref<3x64x16xf32, #tpu.memory_space<vmem>>, vector<1x64x16xf32>
    %25 = vector.shape_cast %24 : vector<1x64x16xf32> to vector<64x16xf32>
    %cst_22 = arith.constant dense<0.000000e+00> : vector<16x16xf32>
    %26 = tpu.matmul %23, %25, %cst_22 {dimension_numbers = #tpu.dot_dimension_numbers<[1], [0], [0], [1], [0, 0, 1, 1], [], []>} : vector<16x64xf32>, vector<64x16xf32>, vector<16x16xf32> -> vector<16x16xf32>
    %c1_23 = arith.constant 1 : index
    %c0_24 = arith.constant 0 : index
    %c0_25 = arith.constant 0 : index
    %27 = vector.load %arg3[%c1_23, %c0_24, %c0_25] : memref<3x1x16xf32, #tpu.memory_space<vmem>>, vector<1x1x16xf32>
    %28 = vector.shape_cast %27 : vector<1x1x16xf32> to vector<1x16xf32>
    %29 = vector.broadcast %28 : vector<1x16xf32> to vector<16x16xf32>
    %30 = arith.addf %26, %29 : vector<16x16xf32>
    %cst_26 = arith.constant 0.000000e+00 : f32
    %31 = vector.broadcast %cst_26 : f32 to vector<16x16xf32>
    %32 = arith.cmpf oge, %30, %31 : vector<16x16xf32>
    %cst_27 = arith.constant 1.000000e-01 : f32
    %33 = vector.broadcast %cst_27 : f32 to vector<16x16xf32>
    %34 = arith.mulf %33, %30 : vector<16x16xf32>
    %35 = arith.select %32, %30, %34 : vector<16x16xi1>, vector<16x16xf32>
    %c1_28 = arith.constant 1 : index
    %c0_29 = arith.constant 0 : index
    %c0_30 = arith.constant 0 : index
    %36 = vector.load %arg4[%c1_28, %c0_29, %c0_30] : memref<3x16x16xf32, #tpu.memory_space<vmem>>, vector<1x16x16xf32>
    %37 = vector.shape_cast %36 : vector<1x16x16xf32> to vector<16x16xf32>
    %cst_31 = arith.constant dense<0.000000e+00> : vector<16x16xf32>
    %38 = tpu.matmul %35, %37, %cst_31 {dimension_numbers = #tpu.dot_dimension_numbers<[1], [0], [0], [1], [0, 0, 1, 1], [], []>} : vector<16x16xf32>, vector<16x16xf32>, vector<16x16xf32> -> vector<16x16xf32>
    %39 = arith.addf %21, %38 : vector<16x16xf32>
    %c2 = arith.constant 2 : index
    %c0_32 = arith.constant 0 : index
    %c0_33 = arith.constant 0 : index
    %40 = vector.load %arg1[%c2, %c0_32, %c0_33] : memref<3x16x64xf32, #tpu.memory_space<vmem>>, vector<1x16x64xf32>
    %41 = vector.shape_cast %40 : vector<1x16x64xf32> to vector<16x64xf32>
    %c2_34 = arith.constant 2 : index
    %c0_35 = arith.constant 0 : index
    %c0_36 = arith.constant 0 : index
    %42 = vector.load %arg2[%c2_34, %c0_35, %c0_36] : memref<3x64x16xf32, #tpu.memory_space<vmem>>, vector<1x64x16xf32>
    %43 = vector.shape_cast %42 : vector<1x64x16xf32> to vector<64x16xf32>
    %cst_37 = arith.constant dense<0.000000e+00> : vector<16x16xf32>
    %44 = tpu.matmul %41, %43, %cst_37 {dimension_numbers = #tpu.dot_dimension_numbers<[1], [0], [0], [1], [0, 0, 1, 1], [], []>} : vector<16x64xf32>, vector<64x16xf32>, vector<16x16xf32> -> vector<16x16xf32>
    %c2_38 = arith.constant 2 : index
    %c0_39 = arith.constant 0 : index
    %c0_40 = arith.constant 0 : index
    %45 = vector.load %arg3[%c2_38, %c0_39, %c0_40] : memref<3x1x16xf32, #tpu.memory_space<vmem>>, vector<1x1x16xf32>
    %46 = vector.shape_cast %45 : vector<1x1x16xf32> to vector<1x16xf32>
    %47 = vector.broadcast %46 : vector<1x16xf32> to vector<16x16xf32>
    %48 = arith.addf %44, %47 : vector<16x16xf32>
    %cst_41 = arith.constant 0.000000e+00 : f32
    %49 = vector.broadcast %cst_41 : f32 to vector<16x16xf32>
    %50 = arith.cmpf oge, %48, %49 : vector<16x16xf32>
    %cst_42 = arith.constant 1.000000e-01 : f32
    %51 = vector.broadcast %cst_42 : f32 to vector<16x16xf32>
    %52 = arith.mulf %51, %48 : vector<16x16xf32>
    %53 = arith.select %50, %48, %52 : vector<16x16xi1>, vector<16x16xf32>
    %c2_43 = arith.constant 2 : index
    %c0_44 = arith.constant 0 : index
    %c0_45 = arith.constant 0 : index
    %54 = vector.load %arg4[%c2_43, %c0_44, %c0_45] : memref<3x16x16xf32, #tpu.memory_space<vmem>>, vector<1x16x16xf32>
    %55 = vector.shape_cast %54 : vector<1x16x16xf32> to vector<16x16xf32>
    %cst_46 = arith.constant dense<0.000000e+00> : vector<16x16xf32>
    %56 = tpu.matmul %53, %55, %cst_46 {dimension_numbers = #tpu.dot_dimension_numbers<[1], [0], [0], [1], [0, 0, 1, 1], [], []>} : vector<16x16xf32>, vector<16x16xf32>, vector<16x16xf32> -> vector<16x16xf32>
    %57 = arith.addf %39, %56 : vector<16x16xf32>
    %c0_47 = arith.constant 0 : index
    %c0_48 = arith.constant 0 : index
    %58 = vector.load %arg6[%c0_47, %c0_48] : memref<16x16xf32, #tpu.memory_space<vmem>>, vector<16x16xf32>
    tpu.vector_store %arg6[%c0_47, %c0_48], %57 {strides = array<i32>} : memref<16x16xf32, #tpu.memory_space<vmem>>, vector<16x16xf32>,
    return
  }
  func.func @transform_0(%arg0: i32) -> (i32, i32, i32) {
    %c0_i32 = arith.constant 0 : i32
    %c0_i32_0 = arith.constant 0 : i32
    %c0_i32_1 = arith.constant 0 : i32
    return %c0_i32, %arg0, %c0_i32_0 : i32, i32, i32
  }
  func.func @transform_1(%arg0: i32) -> (i32, i32, i32) {
    %c0_i32 = arith.constant 0 : i32
    %c0_i32_0 = arith.constant 0 : i32
    %c0_i32_1 = arith.constant 0 : i32
    %c0_i32_2 = arith.constant 0 : i32
    return %c0_i32, %c0_i32_0, %c0_i32_1 : i32, i32, i32
  }
  func.func @transform_2(%arg0: i32) -> (i32, i32, i32) {
    %c0_i32 = arith.constant 0 : i32
    %c0_i32_0 = arith.constant 0 : i32
    %c0_i32_1 = arith.constant 0 : i32
    %c0_i32_2 = arith.constant 0 : i32
    return %c0_i32, %c0_i32_0, %c0_i32_1 : i32, i32, i32
  }
  func.func @transform_3(%arg0: i32) -> (i32, i32, i32) {
    %c0_i32 = arith.constant 0 : i32
    %c0_i32_0 = arith.constant 0 : i32
    %c0_i32_1 = arith.constant 0 : i32
    %c0_i32_2 = arith.constant 0 : i32
    return %c0_i32, %c0_i32_0, %c0_i32_1 : i32, i32, i32
  }
  func.func @transform_4(%arg0: i32) -> (i32, i32) {
    %c0_i32 = arith.constant 0 : i32
    %c0_i32_0 = arith.constant 0 : i32
    %c0_i32_1 = arith.constant 0 : i32
    return %c0_i32, %c0_i32_0 : i32, i32
  }
  func.func @transform_5(%arg0: i32) -> (i32, i32) {
    %c0_i32 = arith.constant 0 : i32
    %c0_i32_0 = arith.constant 0 : i32
    return %arg0, %c0_i32 : i32, i32
  }
}

module attributes {stable_mosaic.version = 11 : i64} {
  func.func @_gemm_bias_kernel(%arg0: i32, %arg1: i32, %arg2: memref<1x16x144xf32, #tpu.memory_space<vmem>>, %arg3: memref<1x144x32xf32, #tpu.memory_space<vmem>>, %arg4: memref<1x1x32xf32, #tpu.memory_space<vmem>>, %arg5: memref<1x16x32xf32, #tpu.memory_space<vmem>>) attributes {dimension_semantics = [#tpu.dimension_semantics<parallel>, #tpu.dimension_semantics<parallel>], iteration_bounds = array<i64: 1, 1>, scalar_prefetch = 0 : i64, scratch_operands = 0 : i64, tpu.core_type = #tpu.core_type<tc>, window_params = [{transform_indices = @transform_0, window_bounds = array<i64: 1, 16, 144>}, {transform_indices = @transform_1, window_bounds = array<i64: 1, 144, 32>}, {transform_indices = @transform_2, window_bounds = array<i64: 1, 1, 32>}, {transform_indices = @transform_3, window_bounds = array<i64: 1, 16, 32>}]} {
    %c0 = arith.constant 0 : index
    %c0_0 = arith.constant 0 : index
    %c0_1 = arith.constant 0 : index
    %0 = vector.load %arg2[%c0, %c0_0, %c0_1] : memref<1x16x144xf32, #tpu.memory_space<vmem>>, vector<1x16x144xf32>
    %1 = vector.shape_cast %0 : vector<1x16x144xf32> to vector<16x144xf32>
    %c0_2 = arith.constant 0 : index
    %c0_3 = arith.constant 0 : index
    %c0_4 = arith.constant 0 : index
    %2 = vector.load %arg3[%c0_2, %c0_3, %c0_4] : memref<1x144x32xf32, #tpu.memory_space<vmem>>, vector<1x144x32xf32>
    %3 = vector.shape_cast %2 : vector<1x144x32xf32> to vector<144x32xf32>
    %cst = arith.constant dense<0.000000e+00> : vector<16x32xf32>
    %4 = tpu.matmul %1, %3, %cst {dimension_numbers = #tpu.dot_dimension_numbers<[1], [0], [0], [1], [0, 0, 1, 1], [], []>} : vector<16x144xf32>, vector<144x32xf32>, vector<16x32xf32> -> vector<16x32xf32>
    %c0_5 = arith.constant 0 : index
    %c0_6 = arith.constant 0 : index
    %c0_7 = arith.constant 0 : index
    %5 = vector.load %arg4[%c0_5, %c0_6, %c0_7] : memref<1x1x32xf32, #tpu.memory_space<vmem>>, vector<1x1x32xf32>
    %6 = vector.shape_cast %5 : vector<1x1x32xf32> to vector<1x32xf32>
    %7 = vector.broadcast %6 : vector<1x32xf32> to vector<16x32xf32>
    %8 = arith.addf %4, %7 : vector<16x32xf32>
    %c0_8 = arith.constant 0 : index
    %c0_9 = arith.constant 0 : index
    %c0_10 = arith.constant 0 : index
    %9 = vector.load %arg5[%c0_8, %c0_9, %c0_10] : memref<1x16x32xf32, #tpu.memory_space<vmem>>, vector<1x16x32xf32>
    %10 = vector.shape_cast %9 : vector<1x16x32xf32> to vector<16x32xf32>
    %11 = vector.shape_cast %8 : vector<16x32xf32> to vector<1x16x32xf32>
    tpu.vector_store %arg5[%c0_8, %c0_9, %c0_10], %11 {strides = array<i32>} : memref<1x16x32xf32, #tpu.memory_space<vmem>>, vector<1x16x32xf32>,
    return
  }
  func.func @transform_0(%arg0: i32, %arg1: i32) -> (i32, i32, i32) {
    %c0_i32 = arith.constant 0 : i32
    %c0_i32_0 = arith.constant 0 : i32
    return %arg0, %arg1, %c0_i32 : i32, i32, i32
  }
  func.func @transform_1(%arg0: i32, %arg1: i32) -> (i32, i32, i32) {
    %c0_i32 = arith.constant 0 : i32
    %c0_i32_0 = arith.constant 0 : i32
    %c0_i32_1 = arith.constant 0 : i32
    return %arg0, %c0_i32, %c0_i32_0 : i32, i32, i32
  }
  func.func @transform_2(%arg0: i32, %arg1: i32) -> (i32, i32, i32) {
    %c0_i32 = arith.constant 0 : i32
    %c0_i32_0 = arith.constant 0 : i32
    %c0_i32_1 = arith.constant 0 : i32
    return %arg0, %c0_i32, %c0_i32_0 : i32, i32, i32
  }
  func.func @transform_3(%arg0: i32, %arg1: i32) -> (i32, i32, i32) {
    %c0_i32 = arith.constant 0 : i32
    %c0_i32_0 = arith.constant 0 : i32
    return %arg0, %arg1, %c0_i32 : i32, i32, i32
  }
}

module attributes {stable_mosaic.version = 11 : i64} {
  func.func @_gemm_bias_kernel(%arg0: i32, %arg1: i32, %arg2: memref<1x16x144xf32, #tpu.memory_space<vmem>>, %arg3: memref<1x144x32xf32, #tpu.memory_space<vmem>>, %arg4: memref<1x1x32xf32, #tpu.memory_space<vmem>>, %arg5: memref<1x16x32xf32, #tpu.memory_space<vmem>>) attributes {dimension_semantics = [#tpu.dimension_semantics<parallel>, #tpu.dimension_semantics<parallel>], iteration_bounds = array<i64: 1, 1>, scalar_prefetch = 0 : i64, scratch_operands = 0 : i64, tpu.core_type = #tpu.core_type<tc>, window_params = [{transform_indices = @transform_0, window_bounds = array<i64: 1, 16, 144>}, {transform_indices = @transform_1, window_bounds = array<i64: 1, 144, 32>}, {transform_indices = @transform_2, window_bounds = array<i64: 1, 1, 32>}, {transform_indices = @transform_3, window_bounds = array<i64: 1, 16, 32>}]} {
    %c0 = arith.constant 0 : index
    %c0_0 = arith.constant 0 : index
    %c0_1 = arith.constant 0 : index
    %0 = vector.load %arg2[%c0, %c0_0, %c0_1] : memref<1x16x144xf32, #tpu.memory_space<vmem>>, vector<1x16x144xf32>
    %1 = vector.shape_cast %0 : vector<1x16x144xf32> to vector<16x144xf32>
    %c0_2 = arith.constant 0 : index
    %c0_3 = arith.constant 0 : index
    %c0_4 = arith.constant 0 : index
    %2 = vector.load %arg3[%c0_2, %c0_3, %c0_4] : memref<1x144x32xf32, #tpu.memory_space<vmem>>, vector<1x144x32xf32>
    %3 = vector.shape_cast %2 : vector<1x144x32xf32> to vector<144x32xf32>
    %cst = arith.constant dense<0.000000e+00> : vector<16x32xf32>
    %4 = tpu.matmul %1, %3, %cst {dimension_numbers = #tpu.dot_dimension_numbers<[1], [0], [0], [1], [0, 0, 1, 1], [], []>} : vector<16x144xf32>, vector<144x32xf32>, vector<16x32xf32> -> vector<16x32xf32>
    %c0_5 = arith.constant 0 : index
    %c0_6 = arith.constant 0 : index
    %c0_7 = arith.constant 0 : index
    %5 = vector.load %arg4[%c0_5, %c0_6, %c0_7] : memref<1x1x32xf32, #tpu.memory_space<vmem>>, vector<1x1x32xf32>
    %6 = vector.shape_cast %5 : vector<1x1x32xf32> to vector<1x32xf32>
    %7 = vector.broadcast %6 : vector<1x32xf32> to vector<16x32xf32>
    %8 = arith.addf %4, %7 : vector<16x32xf32>
    %cst_8 = arith.constant 0.000000e+00 : f32
    %9 = vector.broadcast %cst_8 : f32 to vector<16x32xf32>
    %10 = arith.cmpf oge, %8, %9 : vector<16x32xf32>
    %cst_9 = arith.constant 1.000000e-01 : f32
    %11 = vector.broadcast %cst_9 : f32 to vector<16x32xf32>
    %12 = arith.mulf %11, %8 : vector<16x32xf32>
    %13 = arith.select %10, %8, %12 : vector<16x32xi1>, vector<16x32xf32>
    %c0_10 = arith.constant 0 : index
    %c0_11 = arith.constant 0 : index
    %c0_12 = arith.constant 0 : index
    %14 = vector.load %arg5[%c0_10, %c0_11, %c0_12] : memref<1x16x32xf32, #tpu.memory_space<vmem>>, vector<1x16x32xf32>
    %15 = vector.shape_cast %14 : vector<1x16x32xf32> to vector<16x32xf32>
    %16 = vector.shape_cast %13 : vector<16x32xf32> to vector<1x16x32xf32>
    tpu.vector_store %arg5[%c0_10, %c0_11, %c0_12], %16 {strides = array<i32>} : memref<1x16x32xf32, #tpu.memory_space<vmem>>, vector<1x16x32xf32>,
    return
  }
  func.func @transform_0(%arg0: i32, %arg1: i32) -> (i32, i32, i32) {
    %c0_i32 = arith.constant 0 : i32
    %c0_i32_0 = arith.constant 0 : i32
    return %arg0, %arg1, %c0_i32 : i32, i32, i32
  }
  func.func @transform_1(%arg0: i32, %arg1: i32) -> (i32, i32, i32) {
    %c0_i32 = arith.constant 0 : i32
    %c0_i32_0 = arith.constant 0 : i32
    %c0_i32_1 = arith.constant 0 : i32
    return %arg0, %c0_i32, %c0_i32_0 : i32, i32, i32
  }
  func.func @transform_2(%arg0: i32, %arg1: i32) -> (i32, i32, i32) {
    %c0_i32 = arith.constant 0 : i32
    %c0_i32_0 = arith.constant 0 : i32
    %c0_i32_1 = arith.constant 0 : i32
    return %arg0, %c0_i32, %c0_i32_0 : i32, i32, i32
  }
  func.func @transform_3(%arg0: i32, %arg1: i32) -> (i32, i32, i32) {
    %c0_i32 = arith.constant 0 : i32
    %c0_i32_0 = arith.constant 0 : i32
    return %arg0, %arg1, %c0_i32 : i32, i32, i32
  }
}

module attributes {stable_mosaic.version = 11 : i64} {
  func.func @_gemm_bias_kernel(%arg0: i32, %arg1: i32, %arg2: memref<1x16x64xf32, #tpu.memory_space<vmem>>, %arg3: memref<1x64x32xf32, #tpu.memory_space<vmem>>, %arg4: memref<1x1x32xf32, #tpu.memory_space<vmem>>, %arg5: memref<1x16x32xf32, #tpu.memory_space<vmem>>) attributes {dimension_semantics = [#tpu.dimension_semantics<parallel>, #tpu.dimension_semantics<parallel>], iteration_bounds = array<i64: 2, 1>, scalar_prefetch = 0 : i64, scratch_operands = 0 : i64, tpu.core_type = #tpu.core_type<tc>, window_params = [{transform_indices = @transform_0, window_bounds = array<i64: 1, 16, 64>}, {transform_indices = @transform_1, window_bounds = array<i64: 1, 64, 32>}, {transform_indices = @transform_2, window_bounds = array<i64: 1, 1, 32>}, {transform_indices = @transform_3, window_bounds = array<i64: 1, 16, 32>}]} {
    %c0 = arith.constant 0 : index
    %c0_0 = arith.constant 0 : index
    %c0_1 = arith.constant 0 : index
    %0 = vector.load %arg2[%c0, %c0_0, %c0_1] : memref<1x16x64xf32, #tpu.memory_space<vmem>>, vector<1x16x64xf32>
    %1 = vector.shape_cast %0 : vector<1x16x64xf32> to vector<16x64xf32>
    %c0_2 = arith.constant 0 : index
    %c0_3 = arith.constant 0 : index
    %c0_4 = arith.constant 0 : index
    %2 = vector.load %arg3[%c0_2, %c0_3, %c0_4] : memref<1x64x32xf32, #tpu.memory_space<vmem>>, vector<1x64x32xf32>
    %3 = vector.shape_cast %2 : vector<1x64x32xf32> to vector<64x32xf32>
    %cst = arith.constant dense<0.000000e+00> : vector<16x32xf32>
    %4 = tpu.matmul %1, %3, %cst {dimension_numbers = #tpu.dot_dimension_numbers<[1], [0], [0], [1], [0, 0, 1, 1], [], []>} : vector<16x64xf32>, vector<64x32xf32>, vector<16x32xf32> -> vector<16x32xf32>
    %c0_5 = arith.constant 0 : index
    %c0_6 = arith.constant 0 : index
    %c0_7 = arith.constant 0 : index
    %5 = vector.load %arg4[%c0_5, %c0_6, %c0_7] : memref<1x1x32xf32, #tpu.memory_space<vmem>>, vector<1x1x32xf32>
    %6 = vector.shape_cast %5 : vector<1x1x32xf32> to vector<1x32xf32>
    %7 = vector.broadcast %6 : vector<1x32xf32> to vector<16x32xf32>
    %8 = arith.addf %4, %7 : vector<16x32xf32>
    %cst_8 = arith.constant 0.000000e+00 : f32
    %9 = vector.broadcast %cst_8 : f32 to vector<16x32xf32>
    %10 = arith.cmpf oge, %8, %9 : vector<16x32xf32>
    %cst_9 = arith.constant 1.000000e-01 : f32
    %11 = vector.broadcast %cst_9 : f32 to vector<16x32xf32>
    %12 = arith.mulf %11, %8 : vector<16x32xf32>
    %13 = arith.select %10, %8, %12 : vector<16x32xi1>, vector<16x32xf32>
    %c0_10 = arith.constant 0 : index
    %c0_11 = arith.constant 0 : index
    %c0_12 = arith.constant 0 : index
    %14 = vector.load %arg5[%c0_10, %c0_11, %c0_12] : memref<1x16x32xf32, #tpu.memory_space<vmem>>, vector<1x16x32xf32>
    %15 = vector.shape_cast %14 : vector<1x16x32xf32> to vector<16x32xf32>
    %16 = vector.shape_cast %13 : vector<16x32xf32> to vector<1x16x32xf32>
    tpu.vector_store %arg5[%c0_10, %c0_11, %c0_12], %16 {strides = array<i32>} : memref<1x16x32xf32, #tpu.memory_space<vmem>>, vector<1x16x32xf32>,
    return
  }
  func.func @transform_0(%arg0: i32, %arg1: i32) -> (i32, i32, i32) {
    %c0_i32 = arith.constant 0 : i32
    %c0_i32_0 = arith.constant 0 : i32
    return %arg0, %arg1, %c0_i32 : i32, i32, i32
  }
  func.func @transform_1(%arg0: i32, %arg1: i32) -> (i32, i32, i32) {
    %c0_i32 = arith.constant 0 : i32
    %c0_i32_0 = arith.constant 0 : i32
    %c0_i32_1 = arith.constant 0 : i32
    return %arg0, %c0_i32, %c0_i32_0 : i32, i32, i32
  }
  func.func @transform_2(%arg0: i32, %arg1: i32) -> (i32, i32, i32) {
    %c0_i32 = arith.constant 0 : i32
    %c0_i32_0 = arith.constant 0 : i32
    %c0_i32_1 = arith.constant 0 : i32
    return %arg0, %c0_i32, %c0_i32_0 : i32, i32, i32
  }
  func.func @transform_3(%arg0: i32, %arg1: i32) -> (i32, i32, i32) {
    %c0_i32 = arith.constant 0 : i32
    %c0_i32_0 = arith.constant 0 : i32
    return %arg0, %arg1, %c0_i32 : i32, i32, i32
  }
}

module attributes {stable_mosaic.version = 11 : i64} {
  func.func @_aspp_offset_kernel(%arg0: i32, %arg1: i32, %arg2: memref<1x16x864xf32, #tpu.memory_space<vmem>>, %arg3: memref<1x864x96xf32, #tpu.memory_space<vmem>>, %arg4: memref<1x1x96xf32, #tpu.memory_space<vmem>>, %arg5: memref<1x16x32xf32, #tpu.memory_space<vmem>>, %arg6: memref<1x96x32xf32, #tpu.memory_space<vmem>>, %arg7: memref<1x1x32xf32, #tpu.memory_space<vmem>>, %arg8: memref<1x32x18xf32, #tpu.memory_space<vmem>>, %arg9: memref<1x1x18xf32, #tpu.memory_space<vmem>>, %arg10: memref<1x16x18xf32, #tpu.memory_space<vmem>>) attributes {dimension_semantics = [#tpu.dimension_semantics<parallel>, #tpu.dimension_semantics<parallel>], iteration_bounds = array<i64: 2, 1>, scalar_prefetch = 0 : i64, scratch_operands = 0 : i64, tpu.core_type = #tpu.core_type<tc>, window_params = [{transform_indices = @transform_0, window_bounds = array<i64: 1, 16, 864>}, {transform_indices = @transform_1, window_bounds = array<i64: 1, 864, 96>}, {transform_indices = @transform_2, window_bounds = array<i64: 1, 1, 96>}, {transform_indices = @transform_3, window_bounds = array<i64: 1, 16, 32>}, {transform_indices = @transform_4, window_bounds = array<i64: 1, 96, 32>}, {transform_indices = @transform_5, window_bounds = array<i64: 1, 1, 32>}, {transform_indices = @transform_6, window_bounds = array<i64: 1, 32, 18>}, {transform_indices = @transform_7, window_bounds = array<i64: 1, 1, 18>}, {transform_indices = @transform_8, window_bounds = array<i64: 1, 16, 18>}]} {
    %c0 = arith.constant 0 : index
    %c0_0 = arith.constant 0 : index
    %c0_1 = arith.constant 0 : index
    %0 = vector.load %arg2[%c0, %c0_0, %c0_1] : memref<1x16x864xf32, #tpu.memory_space<vmem>>, vector<1x16x864xf32>
    %1 = vector.shape_cast %0 : vector<1x16x864xf32> to vector<16x864xf32>
    %c0_2 = arith.constant 0 : index
    %c0_3 = arith.constant 0 : index
    %c0_4 = arith.constant 0 : index
    %2 = vector.load %arg3[%c0_2, %c0_3, %c0_4] : memref<1x864x96xf32, #tpu.memory_space<vmem>>, vector<1x864x96xf32>
    %3 = vector.shape_cast %2 : vector<1x864x96xf32> to vector<864x96xf32>
    %cst = arith.constant dense<0.000000e+00> : vector<16x96xf32>
    %4 = tpu.matmul %1, %3, %cst {dimension_numbers = #tpu.dot_dimension_numbers<[1], [0], [0], [1], [0, 0, 1, 1], [], []>} : vector<16x864xf32>, vector<864x96xf32>, vector<16x96xf32> -> vector<16x96xf32>
    %c0_5 = arith.constant 0 : index
    %c0_6 = arith.constant 0 : index
    %c0_7 = arith.constant 0 : index
    %5 = vector.load %arg4[%c0_5, %c0_6, %c0_7] : memref<1x1x96xf32, #tpu.memory_space<vmem>>, vector<1x1x96xf32>
    %6 = vector.shape_cast %5 : vector<1x1x96xf32> to vector<1x96xf32>
    %7 = vector.broadcast %6 : vector<1x96xf32> to vector<16x96xf32>
    %8 = arith.addf %4, %7 : vector<16x96xf32>
    %cst_8 = arith.constant 0.000000e+00 : f32
    %9 = vector.broadcast %cst_8 : f32 to vector<16x96xf32>
    %10 = arith.cmpf oge, %8, %9 : vector<16x96xf32>
    %cst_9 = arith.constant 1.000000e-01 : f32
    %11 = vector.broadcast %cst_9 : f32 to vector<16x96xf32>
    %12 = arith.mulf %11, %8 : vector<16x96xf32>
    %13 = arith.select %10, %8, %12 : vector<16x96xi1>, vector<16x96xf32>
    %c0_10 = arith.constant 0 : index
    %c0_11 = arith.constant 0 : index
    %c0_12 = arith.constant 0 : index
    %14 = vector.load %arg5[%c0_10, %c0_11, %c0_12] : memref<1x16x32xf32, #tpu.memory_space<vmem>>, vector<1x16x32xf32>
    %15 = vector.shape_cast %14 : vector<1x16x32xf32> to vector<16x32xf32>
    %c0_13 = arith.constant 0 : index
    %c0_14 = arith.constant 0 : index
    %c0_15 = arith.constant 0 : index
    %16 = vector.load %arg6[%c0_13, %c0_14, %c0_15] : memref<1x96x32xf32, #tpu.memory_space<vmem>>, vector<1x96x32xf32>
    %17 = vector.shape_cast %16 : vector<1x96x32xf32> to vector<96x32xf32>
    %cst_16 = arith.constant dense<0.000000e+00> : vector<16x32xf32>
    %18 = tpu.matmul %13, %17, %cst_16 {dimension_numbers = #tpu.dot_dimension_numbers<[1], [0], [0], [1], [0, 0, 1, 1], [], []>} : vector<16x96xf32>, vector<96x32xf32>, vector<16x32xf32> -> vector<16x32xf32>
    %19 = arith.addf %15, %18 : vector<16x32xf32>
    %c0_17 = arith.constant 0 : index
    %c0_18 = arith.constant 0 : index
    %c0_19 = arith.constant 0 : index
    %20 = vector.load %arg7[%c0_17, %c0_18, %c0_19] : memref<1x1x32xf32, #tpu.memory_space<vmem>>, vector<1x1x32xf32>
    %21 = vector.shape_cast %20 : vector<1x1x32xf32> to vector<1x32xf32>
    %22 = vector.broadcast %21 : vector<1x32xf32> to vector<16x32xf32>
    %23 = arith.addf %19, %22 : vector<16x32xf32>
    %c0_20 = arith.constant 0 : index
    %c0_21 = arith.constant 0 : index
    %c0_22 = arith.constant 0 : index
    %24 = vector.load %arg8[%c0_20, %c0_21, %c0_22] : memref<1x32x18xf32, #tpu.memory_space<vmem>>, vector<1x32x18xf32>
    %25 = vector.shape_cast %24 : vector<1x32x18xf32> to vector<32x18xf32>
    %cst_23 = arith.constant dense<0.000000e+00> : vector<16x18xf32>
    %26 = tpu.matmul %23, %25, %cst_23 {dimension_numbers = #tpu.dot_dimension_numbers<[1], [0], [0], [1], [0, 0, 1, 1], [], []>} : vector<16x32xf32>, vector<32x18xf32>, vector<16x18xf32> -> vector<16x18xf32>
    %c0_24 = arith.constant 0 : index
    %c0_25 = arith.constant 0 : index
    %c0_26 = arith.constant 0 : index
    %27 = vector.load %arg9[%c0_24, %c0_25, %c0_26] : memref<1x1x18xf32, #tpu.memory_space<vmem>>, vector<1x1x18xf32>
    %28 = vector.shape_cast %27 : vector<1x1x18xf32> to vector<1x18xf32>
    %29 = vector.broadcast %28 : vector<1x18xf32> to vector<16x18xf32>
    %30 = arith.addf %26, %29 : vector<16x18xf32>
    %c0_27 = arith.constant 0 : index
    %c0_28 = arith.constant 0 : index
    %c0_29 = arith.constant 0 : index
    %31 = vector.load %arg10[%c0_27, %c0_28, %c0_29] : memref<1x16x18xf32, #tpu.memory_space<vmem>>, vector<1x16x18xf32>
    %32 = vector.shape_cast %31 : vector<1x16x18xf32> to vector<16x18xf32>
    %33 = vector.shape_cast %30 : vector<16x18xf32> to vector<1x16x18xf32>
    tpu.vector_store %arg10[%c0_27, %c0_28, %c0_29], %33 {strides = array<i32>} : memref<1x16x18xf32, #tpu.memory_space<vmem>>, vector<1x16x18xf32>,
    return
  }
  func.func @transform_0(%arg0: i32, %arg1: i32) -> (i32, i32, i32) {
    %c0_i32 = arith.constant 0 : i32
    %c0_i32_0 = arith.constant 0 : i32
    return %arg0, %arg1, %c0_i32 : i32, i32, i32
  }
  func.func @transform_1(%arg0: i32, %arg1: i32) -> (i32, i32, i32) {
    %c0_i32 = arith.constant 0 : i32
    %c0_i32_0 = arith.constant 0 : i32
    %c0_i32_1 = arith.constant 0 : i32
    return %arg0, %c0_i32, %c0_i32_0 : i32, i32, i32
  }
  func.func @transform_2(%arg0: i32, %arg1: i32) -> (i32, i32, i32) {
    %c0_i32 = arith.constant 0 : i32
    %c0_i32_0 = arith.constant 0 : i32
    %c0_i32_1 = arith.constant 0 : i32
    return %arg0, %c0_i32, %c0_i32_0 : i32, i32, i32
  }
  func.func @transform_3(%arg0: i32, %arg1: i32) -> (i32, i32, i32) {
    %c0_i32 = arith.constant 0 : i32
    %c0_i32_0 = arith.constant 0 : i32
    return %arg0, %arg1, %c0_i32 : i32, i32, i32
  }
  func.func @transform_4(%arg0: i32, %arg1: i32) -> (i32, i32, i32) {
    %c0_i32 = arith.constant 0 : i32
    %c0_i32_0 = arith.constant 0 : i32
    %c0_i32_1 = arith.constant 0 : i32
    return %arg0, %c0_i32, %c0_i32_0 : i32, i32, i32
  }
  func.func @transform_5(%arg0: i32, %arg1: i32) -> (i32, i32, i32) {
    %c0_i32 = arith.constant 0 : i32
    %c0_i32_0 = arith.constant 0 : i32
    %c0_i32_1 = arith.constant 0 : i32
    return %arg0, %c0_i32, %c0_i32_0 : i32, i32, i32
  }
  func.func @transform_6(%arg0: i32, %arg1: i32) -> (i32, i32, i32) {
    %c0_i32 = arith.constant 0 : i32
    %c0_i32_0 = arith.constant 0 : i32
    %c0_i32_1 = arith.constant 0 : i32
    return %arg0, %c0_i32, %c0_i32_0 : i32, i32, i32
  }
  func.func @transform_7(%arg0: i32, %arg1: i32) -> (i32, i32, i32) {
    %c0_i32 = arith.constant 0 : i32
    %c0_i32_0 = arith.constant 0 : i32
    %c0_i32_1 = arith.constant 0 : i32
    return %arg0, %c0_i32, %c0_i32_0 : i32, i32, i32
  }
  func.func @transform_8(%arg0: i32, %arg1: i32) -> (i32, i32, i32) {
    %c0_i32 = arith.constant 0 : i32
    %c0_i32_0 = arith.constant 0 : i32
    return %arg0, %arg1, %c0_i32 : i32, i32, i32
  }
}

module attributes {stable_mosaic.version = 11 : i64} {
  func.func @_gemm_bias_kernel(%arg0: i32, %arg1: i32, %arg2: memref<1x16x288xf32, #tpu.memory_space<vmem>>, %arg3: memref<1x288x32xf32, #tpu.memory_space<vmem>>, %arg4: memref<1x1x32xf32, #tpu.memory_space<vmem>>, %arg5: memref<1x16x32xf32, #tpu.memory_space<vmem>>) attributes {dimension_semantics = [#tpu.dimension_semantics<parallel>, #tpu.dimension_semantics<parallel>], iteration_bounds = array<i64: 2, 1>, scalar_prefetch = 0 : i64, scratch_operands = 0 : i64, tpu.core_type = #tpu.core_type<tc>, window_params = [{transform_indices = @transform_0, window_bounds = array<i64: 1, 16, 288>}, {transform_indices = @transform_1, window_bounds = array<i64: 1, 288, 32>}, {transform_indices = @transform_2, window_bounds = array<i64: 1, 1, 32>}, {transform_indices = @transform_3, window_bounds = array<i64: 1, 16, 32>}]} {
    %c0 = arith.constant 0 : index
    %c0_0 = arith.constant 0 : index
    %c0_1 = arith.constant 0 : index
    %0 = vector.load %arg2[%c0, %c0_0, %c0_1] : memref<1x16x288xf32, #tpu.memory_space<vmem>>, vector<1x16x288xf32>
    %1 = vector.shape_cast %0 : vector<1x16x288xf32> to vector<16x288xf32>
    %c0_2 = arith.constant 0 : index
    %c0_3 = arith.constant 0 : index
    %c0_4 = arith.constant 0 : index
    %2 = vector.load %arg3[%c0_2, %c0_3, %c0_4] : memref<1x288x32xf32, #tpu.memory_space<vmem>>, vector<1x288x32xf32>
    %3 = vector.shape_cast %2 : vector<1x288x32xf32> to vector<288x32xf32>
    %cst = arith.constant dense<0.000000e+00> : vector<16x32xf32>
    %4 = tpu.matmul %1, %3, %cst {dimension_numbers = #tpu.dot_dimension_numbers<[1], [0], [0], [1], [0, 0, 1, 1], [], []>} : vector<16x288xf32>, vector<288x32xf32>, vector<16x32xf32> -> vector<16x32xf32>
    %c0_5 = arith.constant 0 : index
    %c0_6 = arith.constant 0 : index
    %c0_7 = arith.constant 0 : index
    %5 = vector.load %arg4[%c0_5, %c0_6, %c0_7] : memref<1x1x32xf32, #tpu.memory_space<vmem>>, vector<1x1x32xf32>
    %6 = vector.shape_cast %5 : vector<1x1x32xf32> to vector<1x32xf32>
    %7 = vector.broadcast %6 : vector<1x32xf32> to vector<16x32xf32>
    %8 = arith.addf %4, %7 : vector<16x32xf32>
    %cst_8 = arith.constant 0.000000e+00 : f32
    %9 = vector.broadcast %cst_8 : f32 to vector<16x32xf32>
    %10 = arith.cmpf oge, %8, %9 : vector<16x32xf32>
    %cst_9 = arith.constant 1.000000e-01 : f32
    %11 = vector.broadcast %cst_9 : f32 to vector<16x32xf32>
    %12 = arith.mulf %11, %8 : vector<16x32xf32>
    %13 = arith.select %10, %8, %12 : vector<16x32xi1>, vector<16x32xf32>
    %c0_10 = arith.constant 0 : index
    %c0_11 = arith.constant 0 : index
    %c0_12 = arith.constant 0 : index
    %14 = vector.load %arg5[%c0_10, %c0_11, %c0_12] : memref<1x16x32xf32, #tpu.memory_space<vmem>>, vector<1x16x32xf32>
    %15 = vector.shape_cast %14 : vector<1x16x32xf32> to vector<16x32xf32>
    %16 = vector.shape_cast %13 : vector<16x32xf32> to vector<1x16x32xf32>
    tpu.vector_store %arg5[%c0_10, %c0_11, %c0_12], %16 {strides = array<i32>} : memref<1x16x32xf32, #tpu.memory_space<vmem>>, vector<1x16x32xf32>,
    return
  }
  func.func @transform_0(%arg0: i32, %arg1: i32) -> (i32, i32, i32) {
    %c0_i32 = arith.constant 0 : i32
    %c0_i32_0 = arith.constant 0 : i32
    return %arg0, %arg1, %c0_i32 : i32, i32, i32
  }
  func.func @transform_1(%arg0: i32, %arg1: i32) -> (i32, i32, i32) {
    %c0_i32 = arith.constant 0 : i32
    %c0_i32_0 = arith.constant 0 : i32
    %c0_i32_1 = arith.constant 0 : i32
    return %arg0, %c0_i32, %c0_i32_0 : i32, i32, i32
  }
  func.func @transform_2(%arg0: i32, %arg1: i32) -> (i32, i32, i32) {
    %c0_i32 = arith.constant 0 : i32
    %c0_i32_0 = arith.constant 0 : i32
    %c0_i32_1 = arith.constant 0 : i32
    return %arg0, %c0_i32, %c0_i32_0 : i32, i32, i32
  }
  func.func @transform_3(%arg0: i32, %arg1: i32) -> (i32, i32, i32) {
    %c0_i32 = arith.constant 0 : i32
    %c0_i32_0 = arith.constant 0 : i32
    return %arg0, %arg1, %c0_i32 : i32, i32, i32
  }
}

module attributes {stable_mosaic.version = 11 : i64} {
  func.func @_gemm_bias_kernel(%arg0: i32, %arg1: i32, %arg2: memref<1x16x96xf32, #tpu.memory_space<vmem>>, %arg3: memref<1x96x32xf32, #tpu.memory_space<vmem>>, %arg4: memref<1x1x32xf32, #tpu.memory_space<vmem>>, %arg5: memref<1x16x32xf32, #tpu.memory_space<vmem>>) attributes {dimension_semantics = [#tpu.dimension_semantics<parallel>, #tpu.dimension_semantics<parallel>], iteration_bounds = array<i64: 1, 1>, scalar_prefetch = 0 : i64, scratch_operands = 0 : i64, tpu.core_type = #tpu.core_type<tc>, window_params = [{transform_indices = @transform_0, window_bounds = array<i64: 1, 16, 96>}, {transform_indices = @transform_1, window_bounds = array<i64: 1, 96, 32>}, {transform_indices = @transform_2, window_bounds = array<i64: 1, 1, 32>}, {transform_indices = @transform_3, window_bounds = array<i64: 1, 16, 32>}]} {
    %c0 = arith.constant 0 : index
    %c0_0 = arith.constant 0 : index
    %c0_1 = arith.constant 0 : index
    %0 = vector.load %arg2[%c0, %c0_0, %c0_1] : memref<1x16x96xf32, #tpu.memory_space<vmem>>, vector<1x16x96xf32>
    %1 = vector.shape_cast %0 : vector<1x16x96xf32> to vector<16x96xf32>
    %c0_2 = arith.constant 0 : index
    %c0_3 = arith.constant 0 : index
    %c0_4 = arith.constant 0 : index
    %2 = vector.load %arg3[%c0_2, %c0_3, %c0_4] : memref<1x96x32xf32, #tpu.memory_space<vmem>>, vector<1x96x32xf32>
    %3 = vector.shape_cast %2 : vector<1x96x32xf32> to vector<96x32xf32>
    %cst = arith.constant dense<0.000000e+00> : vector<16x32xf32>
    %4 = tpu.matmul %1, %3, %cst {dimension_numbers = #tpu.dot_dimension_numbers<[1], [0], [0], [1], [0, 0, 1, 1], [], []>} : vector<16x96xf32>, vector<96x32xf32>, vector<16x32xf32> -> vector<16x32xf32>
    %c0_5 = arith.constant 0 : index
    %c0_6 = arith.constant 0 : index
    %c0_7 = arith.constant 0 : index
    %5 = vector.load %arg4[%c0_5, %c0_6, %c0_7] : memref<1x1x32xf32, #tpu.memory_space<vmem>>, vector<1x1x32xf32>
    %6 = vector.shape_cast %5 : vector<1x1x32xf32> to vector<1x32xf32>
    %7 = vector.broadcast %6 : vector<1x32xf32> to vector<16x32xf32>
    %8 = arith.addf %4, %7 : vector<16x32xf32>
    %c0_8 = arith.constant 0 : index
    %c0_9 = arith.constant 0 : index
    %c0_10 = arith.constant 0 : index
    %9 = vector.load %arg5[%c0_8, %c0_9, %c0_10] : memref<1x16x32xf32, #tpu.memory_space<vmem>>, vector<1x16x32xf32>
    %10 = vector.shape_cast %9 : vector<1x16x32xf32> to vector<16x32xf32>
    %11 = vector.shape_cast %8 : vector<16x32xf32> to vector<1x16x32xf32>
    tpu.vector_store %arg5[%c0_8, %c0_9, %c0_10], %11 {strides = array<i32>} : memref<1x16x32xf32, #tpu.memory_space<vmem>>, vector<1x16x32xf32>,
    return
  }
  func.func @transform_0(%arg0: i32, %arg1: i32) -> (i32, i32, i32) {
    %c0_i32 = arith.constant 0 : i32
    %c0_i32_0 = arith.constant 0 : i32
    return %arg0, %arg1, %c0_i32 : i32, i32, i32
  }
  func.func @transform_1(%arg0: i32, %arg1: i32) -> (i32, i32, i32) {
    %c0_i32 = arith.constant 0 : i32
    %c0_i32_0 = arith.constant 0 : i32
    %c0_i32_1 = arith.constant 0 : i32
    return %arg0, %c0_i32, %c0_i32_0 : i32, i32, i32
  }
  func.func @transform_2(%arg0: i32, %arg1: i32) -> (i32, i32, i32) {
    %c0_i32 = arith.constant 0 : i32
    %c0_i32_0 = arith.constant 0 : i32
    %c0_i32_1 = arith.constant 0 : i32
    return %arg0, %c0_i32, %c0_i32_0 : i32, i32, i32
  }
  func.func @transform_3(%arg0: i32, %arg1: i32) -> (i32, i32, i32) {
    %c0_i32 = arith.constant 0 : i32
    %c0_i32_0 = arith.constant 0 : i32
    return %arg0, %arg1, %c0_i32 : i32, i32, i32
  }
}

module attributes {stable_mosaic.version = 11 : i64} {
  func.func @_ang_fuse_kernel(%arg0: i32, %arg1: memref<3x4x128xf32, #tpu.memory_space<vmem>>, %arg2: memref<3x128x32xf32, #tpu.memory_space<vmem>>, %arg3: memref<3x1x32xf32, #tpu.memory_space<vmem>>, %arg4: memref<3x32x32xf32, #tpu.memory_space<vmem>>, %arg5: memref<1x32xf32, #tpu.memory_space<vmem>>, %arg6: memref<4x32xf32, #tpu.memory_space<vmem>>) attributes {dimension_semantics = [#tpu.dimension_semantics<parallel>], iteration_bounds = array<i64: 1>, scalar_prefetch = 0 : i64, scratch_operands = 0 : i64, tpu.core_type = #tpu.core_type<tc>, window_params = [{transform_indices = @transform_0, window_bounds = array<i64: 3, 4, 128>}, {pipeline_mode = #tpu.pipeline_mode<synchronous>, transform_indices = @transform_1, window_bounds = array<i64: 3, 128, 32>}, {pipeline_mode = #tpu.pipeline_mode<synchronous>, transform_indices = @transform_2, window_bounds = array<i64: 3, 1, 32>}, {pipeline_mode = #tpu.pipeline_mode<synchronous>, transform_indices = @transform_3, window_bounds = array<i64: 3, 32, 32>}, {pipeline_mode = #tpu.pipeline_mode<synchronous>, transform_indices = @transform_4, window_bounds = array<i64: 1, 32>}, {transform_indices = @transform_5, window_bounds = array<i64: 4, 32>}]} {
    %cst = arith.constant 0.000000e+00 : f32
    %0 = vector.broadcast %cst : f32 to vector<4x32xf32>
    %c0 = arith.constant 0 : index
    %c0_0 = arith.constant 0 : index
    %1 = vector.load %arg5[%c0, %c0_0] : memref<1x32xf32, #tpu.memory_space<vmem>>, vector<1x32xf32>
    %2 = vector.broadcast %1 : vector<1x32xf32> to vector<4x32xf32>
    %3 = arith.addf %0, %2 : vector<4x32xf32>
    %c0_1 = arith.constant 0 : index
    %c0_2 = arith.constant 0 : index
    %c0_3 = arith.constant 0 : index
    %4 = vector.load %arg1[%c0_1, %c0_2, %c0_3] : memref<3x4x128xf32, #tpu.memory_space<vmem>>, vector<1x4x128xf32>
    %5 = vector.shape_cast %4 : vector<1x4x128xf32> to vector<4x128xf32>
    %c0_4 = arith.constant 0 : index
    %c0_5 = arith.constant 0 : index
    %c0_6 = arith.constant 0 : index
    %6 = vector.load %arg2[%c0_4, %c0_5, %c0_6] : memref<3x128x32xf32, #tpu.memory_space<vmem>>, vector<1x128x32xf32>
    %7 = vector.shape_cast %6 : vector<1x128x32xf32> to vector<128x32xf32>
    %cst_7 = arith.constant dense<0.000000e+00> : vector<4x32xf32>
    %8 = tpu.matmul %5, %7, %cst_7 {dimension_numbers = #tpu.dot_dimension_numbers<[1], [0], [0], [1], [0, 0, 1, 1], [], []>} : vector<4x128xf32>, vector<128x32xf32>, vector<4x32xf32> -> vector<4x32xf32>
    %c0_8 = arith.constant 0 : index
    %c0_9 = arith.constant 0 : index
    %c0_10 = arith.constant 0 : index
    %9 = vector.load %arg3[%c0_8, %c0_9, %c0_10] : memref<3x1x32xf32, #tpu.memory_space<vmem>>, vector<1x1x32xf32>
    %10 = vector.shape_cast %9 : vector<1x1x32xf32> to vector<1x32xf32>
    %11 = vector.broadcast %10 : vector<1x32xf32> to vector<4x32xf32>
    %12 = arith.addf %8, %11 : vector<4x32xf32>
    %cst_11 = arith.constant 0.000000e+00 : f32
    %13 = vector.broadcast %cst_11 : f32 to vector<4x32xf32>
    %14 = arith.cmpf oge, %12, %13 : vector<4x32xf32>
    %cst_12 = arith.constant 1.000000e-01 : f32
    %15 = vector.broadcast %cst_12 : f32 to vector<4x32xf32>
    %16 = arith.mulf %15, %12 : vector<4x32xf32>
    %17 = arith.select %14, %12, %16 : vector<4x32xi1>, vector<4x32xf32>
    %c0_13 = arith.constant 0 : index
    %c0_14 = arith.constant 0 : index
    %c0_15 = arith.constant 0 : index
    %18 = vector.load %arg4[%c0_13, %c0_14, %c0_15] : memref<3x32x32xf32, #tpu.memory_space<vmem>>, vector<1x32x32xf32>
    %19 = vector.shape_cast %18 : vector<1x32x32xf32> to vector<32x32xf32>
    %cst_16 = arith.constant dense<0.000000e+00> : vector<4x32xf32>
    %20 = tpu.matmul %17, %19, %cst_16 {dimension_numbers = #tpu.dot_dimension_numbers<[1], [0], [0], [1], [0, 0, 1, 1], [], []>} : vector<4x32xf32>, vector<32x32xf32>, vector<4x32xf32> -> vector<4x32xf32>
    %21 = arith.addf %3, %20 : vector<4x32xf32>
    %c1 = arith.constant 1 : index
    %c0_17 = arith.constant 0 : index
    %c0_18 = arith.constant 0 : index
    %22 = vector.load %arg1[%c1, %c0_17, %c0_18] : memref<3x4x128xf32, #tpu.memory_space<vmem>>, vector<1x4x128xf32>
    %23 = vector.shape_cast %22 : vector<1x4x128xf32> to vector<4x128xf32>
    %c1_19 = arith.constant 1 : index
    %c0_20 = arith.constant 0 : index
    %c0_21 = arith.constant 0 : index
    %24 = vector.load %arg2[%c1_19, %c0_20, %c0_21] : memref<3x128x32xf32, #tpu.memory_space<vmem>>, vector<1x128x32xf32>
    %25 = vector.shape_cast %24 : vector<1x128x32xf32> to vector<128x32xf32>
    %cst_22 = arith.constant dense<0.000000e+00> : vector<4x32xf32>
    %26 = tpu.matmul %23, %25, %cst_22 {dimension_numbers = #tpu.dot_dimension_numbers<[1], [0], [0], [1], [0, 0, 1, 1], [], []>} : vector<4x128xf32>, vector<128x32xf32>, vector<4x32xf32> -> vector<4x32xf32>
    %c1_23 = arith.constant 1 : index
    %c0_24 = arith.constant 0 : index
    %c0_25 = arith.constant 0 : index
    %27 = vector.load %arg3[%c1_23, %c0_24, %c0_25] : memref<3x1x32xf32, #tpu.memory_space<vmem>>, vector<1x1x32xf32>
    %28 = vector.shape_cast %27 : vector<1x1x32xf32> to vector<1x32xf32>
    %29 = vector.broadcast %28 : vector<1x32xf32> to vector<4x32xf32>
    %30 = arith.addf %26, %29 : vector<4x32xf32>
    %cst_26 = arith.constant 0.000000e+00 : f32
    %31 = vector.broadcast %cst_26 : f32 to vector<4x32xf32>
    %32 = arith.cmpf oge, %30, %31 : vector<4x32xf32>
    %cst_27 = arith.constant 1.000000e-01 : f32
    %33 = vector.broadcast %cst_27 : f32 to vector<4x32xf32>
    %34 = arith.mulf %33, %30 : vector<4x32xf32>
    %35 = arith.select %32, %30, %34 : vector<4x32xi1>, vector<4x32xf32>
    %c1_28 = arith.constant 1 : index
    %c0_29 = arith.constant 0 : index
    %c0_30 = arith.constant 0 : index
    %36 = vector.load %arg4[%c1_28, %c0_29, %c0_30] : memref<3x32x32xf32, #tpu.memory_space<vmem>>, vector<1x32x32xf32>
    %37 = vector.shape_cast %36 : vector<1x32x32xf32> to vector<32x32xf32>
    %cst_31 = arith.constant dense<0.000000e+00> : vector<4x32xf32>
    %38 = tpu.matmul %35, %37, %cst_31 {dimension_numbers = #tpu.dot_dimension_numbers<[1], [0], [0], [1], [0, 0, 1, 1], [], []>} : vector<4x32xf32>, vector<32x32xf32>, vector<4x32xf32> -> vector<4x32xf32>
    %39 = arith.addf %21, %38 : vector<4x32xf32>
    %c2 = arith.constant 2 : index
    %c0_32 = arith.constant 0 : index
    %c0_33 = arith.constant 0 : index
    %40 = vector.load %arg1[%c2, %c0_32, %c0_33] : memref<3x4x128xf32, #tpu.memory_space<vmem>>, vector<1x4x128xf32>
    %41 = vector.shape_cast %40 : vector<1x4x128xf32> to vector<4x128xf32>
    %c2_34 = arith.constant 2 : index
    %c0_35 = arith.constant 0 : index
    %c0_36 = arith.constant 0 : index
    %42 = vector.load %arg2[%c2_34, %c0_35, %c0_36] : memref<3x128x32xf32, #tpu.memory_space<vmem>>, vector<1x128x32xf32>
    %43 = vector.shape_cast %42 : vector<1x128x32xf32> to vector<128x32xf32>
    %cst_37 = arith.constant dense<0.000000e+00> : vector<4x32xf32>
    %44 = tpu.matmul %41, %43, %cst_37 {dimension_numbers = #tpu.dot_dimension_numbers<[1], [0], [0], [1], [0, 0, 1, 1], [], []>} : vector<4x128xf32>, vector<128x32xf32>, vector<4x32xf32> -> vector<4x32xf32>
    %c2_38 = arith.constant 2 : index
    %c0_39 = arith.constant 0 : index
    %c0_40 = arith.constant 0 : index
    %45 = vector.load %arg3[%c2_38, %c0_39, %c0_40] : memref<3x1x32xf32, #tpu.memory_space<vmem>>, vector<1x1x32xf32>
    %46 = vector.shape_cast %45 : vector<1x1x32xf32> to vector<1x32xf32>
    %47 = vector.broadcast %46 : vector<1x32xf32> to vector<4x32xf32>
    %48 = arith.addf %44, %47 : vector<4x32xf32>
    %cst_41 = arith.constant 0.000000e+00 : f32
    %49 = vector.broadcast %cst_41 : f32 to vector<4x32xf32>
    %50 = arith.cmpf oge, %48, %49 : vector<4x32xf32>
    %cst_42 = arith.constant 1.000000e-01 : f32
    %51 = vector.broadcast %cst_42 : f32 to vector<4x32xf32>
    %52 = arith.mulf %51, %48 : vector<4x32xf32>
    %53 = arith.select %50, %48, %52 : vector<4x32xi1>, vector<4x32xf32>
    %c2_43 = arith.constant 2 : index
    %c0_44 = arith.constant 0 : index
    %c0_45 = arith.constant 0 : index
    %54 = vector.load %arg4[%c2_43, %c0_44, %c0_45] : memref<3x32x32xf32, #tpu.memory_space<vmem>>, vector<1x32x32xf32>
    %55 = vector.shape_cast %54 : vector<1x32x32xf32> to vector<32x32xf32>
    %cst_46 = arith.constant dense<0.000000e+00> : vector<4x32xf32>
    %56 = tpu.matmul %53, %55, %cst_46 {dimension_numbers = #tpu.dot_dimension_numbers<[1], [0], [0], [1], [0, 0, 1, 1], [], []>} : vector<4x32xf32>, vector<32x32xf32>, vector<4x32xf32> -> vector<4x32xf32>
    %57 = arith.addf %39, %56 : vector<4x32xf32>
    %c0_47 = arith.constant 0 : index
    %c0_48 = arith.constant 0 : index
    %58 = vector.load %arg6[%c0_47, %c0_48] : memref<4x32xf32, #tpu.memory_space<vmem>>, vector<4x32xf32>
    tpu.vector_store %arg6[%c0_47, %c0_48], %57 {strides = array<i32>} : memref<4x32xf32, #tpu.memory_space<vmem>>, vector<4x32xf32>,
    return
  }
  func.func @transform_0(%arg0: i32) -> (i32, i32, i32) {
    %c0_i32 = arith.constant 0 : i32
    %c0_i32_0 = arith.constant 0 : i32
    %c0_i32_1 = arith.constant 0 : i32
    return %c0_i32, %arg0, %c0_i32_0 : i32, i32, i32
  }
  func.func @transform_1(%arg0: i32) -> (i32, i32, i32) {
    %c0_i32 = arith.constant 0 : i32
    %c0_i32_0 = arith.constant 0 : i32
    %c0_i32_1 = arith.constant 0 : i32
    %c0_i32_2 = arith.constant 0 : i32
    return %c0_i32, %c0_i32_0, %c0_i32_1 : i32, i32, i32
  }
  func.func @transform_2(%arg0: i32) -> (i32, i32, i32) {
    %c0_i32 = arith.constant 0 : i32
    %c0_i32_0 = arith.constant 0 : i32
    %c0_i32_1 = arith.constant 0 : i32
    %c0_i32_2 = arith.constant 0 : i32
    return %c0_i32, %c0_i32_0, %c0_i32_1 : i32, i32, i32
  }
  func.func @transform_3(%arg0: i32) -> (i32, i32, i32) {
    %c0_i32 = arith.constant 0 : i32
    %c0_i32_0 = arith.constant 0 : i32
    %c0_i32_1 = arith.constant 0 : i32
    %c0_i32_2 = arith.constant 0 : i32
    return %c0_i32, %c0_i32_0, %c0_i32_1 : i32, i32, i32
  }
  func.func @transform_4(%arg0: i32) -> (i32, i32) {
    %c0_i32 = arith.constant 0 : i32
    %c0_i32_0 = arith.constant 0 : i32
    %c0_i32_1 = arith.constant 0 : i32
    return %c0_i32, %c0_i32_0 : i32, i32
  }
  func.func @transform_5(%arg0: i32) -> (i32, i32) {
    %c0_i32 = arith.constant 0 : i32
    %c0_i32_0 = arith.constant 0 : i32
    return %arg0, %c0_i32 : i32, i32
  }
}

module attributes {stable_mosaic.version = 11 : i64} {
  func.func @_gemm_bias_kernel(%arg0: i32, %arg1: i32, %arg2: memref<1x4x288xf32, #tpu.memory_space<vmem>>, %arg3: memref<1x288x64xf32, #tpu.memory_space<vmem>>, %arg4: memref<1x1x64xf32, #tpu.memory_space<vmem>>, %arg5: memref<1x4x64xf32, #tpu.memory_space<vmem>>) attributes {dimension_semantics = [#tpu.dimension_semantics<parallel>, #tpu.dimension_semantics<parallel>], iteration_bounds = array<i64: 1, 1>, scalar_prefetch = 0 : i64, scratch_operands = 0 : i64, tpu.core_type = #tpu.core_type<tc>, window_params = [{transform_indices = @transform_0, window_bounds = array<i64: 1, 4, 288>}, {transform_indices = @transform_1, window_bounds = array<i64: 1, 288, 64>}, {transform_indices = @transform_2, window_bounds = array<i64: 1, 1, 64>}, {transform_indices = @transform_3, window_bounds = array<i64: 1, 4, 64>}]} {
    %c0 = arith.constant 0 : index
    %c0_0 = arith.constant 0 : index
    %c0_1 = arith.constant 0 : index
    %0 = vector.load %arg2[%c0, %c0_0, %c0_1] : memref<1x4x288xf32, #tpu.memory_space<vmem>>, vector<1x4x288xf32>
    %1 = vector.shape_cast %0 : vector<1x4x288xf32> to vector<4x288xf32>
    %c0_2 = arith.constant 0 : index
    %c0_3 = arith.constant 0 : index
    %c0_4 = arith.constant 0 : index
    %2 = vector.load %arg3[%c0_2, %c0_3, %c0_4] : memref<1x288x64xf32, #tpu.memory_space<vmem>>, vector<1x288x64xf32>
    %3 = vector.shape_cast %2 : vector<1x288x64xf32> to vector<288x64xf32>
    %cst = arith.constant dense<0.000000e+00> : vector<4x64xf32>
    %4 = tpu.matmul %1, %3, %cst {dimension_numbers = #tpu.dot_dimension_numbers<[1], [0], [0], [1], [0, 0, 1, 1], [], []>} : vector<4x288xf32>, vector<288x64xf32>, vector<4x64xf32> -> vector<4x64xf32>
    %c0_5 = arith.constant 0 : index
    %c0_6 = arith.constant 0 : index
    %c0_7 = arith.constant 0 : index
    %5 = vector.load %arg4[%c0_5, %c0_6, %c0_7] : memref<1x1x64xf32, #tpu.memory_space<vmem>>, vector<1x1x64xf32>
    %6 = vector.shape_cast %5 : vector<1x1x64xf32> to vector<1x64xf32>
    %7 = vector.broadcast %6 : vector<1x64xf32> to vector<4x64xf32>
    %8 = arith.addf %4, %7 : vector<4x64xf32>
    %c0_8 = arith.constant 0 : index
    %c0_9 = arith.constant 0 : index
    %c0_10 = arith.constant 0 : index
    %9 = vector.load %arg5[%c0_8, %c0_9, %c0_10] : memref<1x4x64xf32, #tpu.memory_space<vmem>>, vector<1x4x64xf32>
    %10 = vector.shape_cast %9 : vector<1x4x64xf32> to vector<4x64xf32>
    %11 = vector.shape_cast %8 : vector<4x64xf32> to vector<1x4x64xf32>
    tpu.vector_store %arg5[%c0_8, %c0_9, %c0_10], %11 {strides = array<i32>} : memref<1x4x64xf32, #tpu.memory_space<vmem>>, vector<1x4x64xf32>,
    return
  }
  func.func @transform_0(%arg0: i32, %arg1: i32) -> (i32, i32, i32) {
    %c0_i32 = arith.constant 0 : i32
    %c0_i32_0 = arith.constant 0 : i32
    return %arg0, %arg1, %c0_i32 : i32, i32, i32
  }
  func.func @transform_1(%arg0: i32, %arg1: i32) -> (i32, i32, i32) {
    %c0_i32 = arith.constant 0 : i32
    %c0_i32_0 = arith.constant 0 : i32
    %c0_i32_1 = arith.constant 0 : i32
    return %arg0, %c0_i32, %c0_i32_0 : i32, i32, i32
  }
  func.func @transform_2(%arg0: i32, %arg1: i32) -> (i32, i32, i32) {
    %c0_i32 = arith.constant 0 : i32
    %c0_i32_0 = arith.constant 0 : i32
    %c0_i32_1 = arith.constant 0 : i32
    return %arg0, %c0_i32, %c0_i32_0 : i32, i32, i32
  }
  func.func @transform_3(%arg0: i32, %arg1: i32) -> (i32, i32, i32) {
    %c0_i32 = arith.constant 0 : i32
    %c0_i32_0 = arith.constant 0 : i32
    return %arg0, %arg1, %c0_i32 : i32, i32, i32
  }
}

</mosaic_0001>

<bundles_post_ra>
// kernel: main_encoder.21
= control target key start
LH: loop header
LB: loop body
LE: loop exit
PB: predicated region body
PF: predicated region fallthrough
CT: control target
= control target key end

     0   :  { %8 = vsyncpa [#allocation3], 0  ;;  %s735_s12 = smov 0   ;;  %s737_s13 = smov 0   ;;  %s880_s0 = inlined_call_operand.vmem [shape: f32[1,256,36], index: 0, kind: input, shape index: {}]   ;;  %s881_s1 = inlined_call_operand.vmem [shape: f32[1,36,8], index: 1, kind: input, shape index: {}]   ;;  %s882_s2 = inlined_call_operand.hbm [shape: f32[1,1,8], index: 2, kind: input, shape index: {}]   ;;  %s883_s3 = inlined_call_operand.vmem [shape: f32[1,256,8], index: 3, kind: output, shape index: {}]  }
   0x1   :  { %s739_s14 = smov 0  }
   0x2 LB: > { %s574_s15 = sadd.s32 4294967295, %s712_s14   ;;  %s23_s16 = sadd.s32 1, %s708_s13  ;;  %s712_s14 = sphi %s739_s14, %s14_s14   ;;  %s708_s13 = sphi %s737_s13, %s885_s13   ;;  %s704_s12 = sphi %s735_s12, %s884_s12  }
   0x3   : > { %p24_p0 = scmp.ge.s32.totalorder %s23_s16, 2  ;;  %p576_p1 = scmp.ge.s32.totalorder %s712_s14, 1 }
   0x4   : > { %p139_p2 = scmp.lt.s32.totalorder %s712_s14, 3  ;;  %p628_p4 = scmp.eq.s32.totalorder %s574_s15, 0 }
   0x5   : > { %s887_s16 = smov (%p24_p0, %s23_s16), 0  ;;  %s160_s19 = sshll.u32 %s882_s2, 4  ;;  %s161_s19 = int_to_ptr.hbm [resolvable:$true] %s160_s19 }
   0x6   : > { %p140_p3 = pnand %p576_p1, %p139_p2  ;;  %s714_s20 = smov [#allocation2]  }
   0x7   : > { %s162_s21 = sshll.u32 %s714_s20, 4  ;;  %s163_s21 = int_to_ptr.vmem [resolvable:$true] %s162_s21 }
   0x8   : > { %p624_p5 = pneg %p140_p3  ;;  %188 = sbr.rel (%p140_p3) target bundleno = 187 (0xbb), region = 32 }
   0xa   : > { %p625_p6 = pnand %p628_p4, %p624_p5 }
   0xc   : > { %627 = dma.hbm_to_vmem [thread:$0]  (!%p625_p6), %s161_s19, 16, %s163_s21, [#allocation3]  }
   0xd   : > { %699 = dma.done.wait (%p628_p4), [#allocation3], 16  }
   0xe   : > { %701 = vsyncadd (%p628_p4), [#allocation3], 4294967280  ;;  %s582_s22 = sshll.u32 %s704_s12, 4  ;;  %vm325_vm0 = vcmask 1043456   ;;  %v271_v0 = vld [vmem:[%s881_s1 + $0x20] sm:$0xf] }
   0xf   : > { %p229_p7 = scmp.lt.s32.totalorder %s582_s22, 31  ;;  %v270_v1 = vld [vmem:[%s881_s1 + $0x18] sm:$0xff]  ;;  %606 = vmatpush.msk.msra.mxu2 %vm325_vm0, %v271_v0  ;;  %607 = vmatpush.msk.msra.mxu3 %vm325_vm0, %v271_v0  ;;  %v269_v2 = vld [vmem:[%s881_s1 + $0x10] sm:$0xff]  ;;  %v268_v3 = vld [vmem:[%s881_s1 + $0x8] sm:$0xff]  ;;  %vm276_vm1 = vcmask 293888   ;;  %vm442_vm2 = vcmask 64512  }
  0x10   : > { %586 = vmatpush.msk.msra.mxu0 %vm325_vm0, %v271_v0  ;;  %605 = vmatpush.msk.msra.mxu1 %vm325_vm0, %v271_v0  ;;  %v267_v4 = vld [vmem:[%s881_s1] sm:$0xff] }
  0x11   : > { %s889_s22 = smov (!%p229_p7, %s582_s22), 31  ;;  %609 = vmatpush.msra.mxu2 %v270_v1  ;;  %610 = vmatpush.msra.mxu3 %v270_v1  ;;  %v814_v21 = vld [vmem:[#allocation2] ss:$0 sm:$0xff] }
  0x12   : > { %s583_s27 = sshll.u32 %s889_s22, 3  ;;  %341 = vmatpush.msra.mxu0 %v270_v1  ;;  %608 = vmatpush.msra.mxu1 %v270_v1 }
  0x13   : > { %s777_s7 = scalar_lea.vmem %s880_s0, %s583_s27  ;;  %612 = vmatpush.msra.mxu2 %v269_v2  ;;  %613 = vmatpush.msra.mxu3 %v269_v2  ;;  %s823_s12 = scalar_lea.vmem %s883_s3, %s583_s27 }
  0x14   : > { %342 = vmatpush.msra.mxu0 %v269_v2  ;;  %611 = vmatpush.msra.mxu1 %v269_v2  ;;  %v259_v5 = vld [vmem:[%s777_s7 + $0x40] sm:$0xff]  ;;  %v260_v9 = vld [vmem:[%s777_s7 + $0x48] sm:$0xff]  ;;  %v261_v13 = vld [vmem:[%s777_s7 + $0x50] sm:$0xff] }
  0x15   : > { %615 = vmatpush.msra.mxu2 %v268_v3  ;;  %616 = vmatpush.msra.mxu3 %v268_v3  ;;  %v263_v6 = vld [vmem:[%s777_s7 + $0x60] sm:$0xff]  ;;  %v264_v10 = vld [vmem:[%s777_s7 + $0x68] sm:$0xff]  ;;  %v265_v14 = vld [vmem:[%s777_s7 + $0x70] sm:$0xff] }
  0x16   : > { %343 = vmatpush.msra.mxu0 %v268_v3  ;;  %614 = vmatpush.msra.mxu1 %v268_v3  ;;  %v251_v7 = vld [vmem:[%s777_s7] sm:$0xff]  ;;  %v252_v11 = vld [vmem:[%s777_s7 + $0x8] sm:$0xff]  ;;  %v253_v15 = vld [vmem:[%s777_s7 + $0x10] sm:$0xff] }
  0x17   : > { %618 = vmatpush.msra.mxu2 %v267_v4  ;;  %619 = vmatpush.msra.mxu3 %v267_v4  ;;  %v255_v8 = vld [vmem:[%s777_s7 + $0x20] sm:$0xff]  ;;  %v256_v12 = vld [vmem:[%s777_s7 + $0x28] sm:$0xff]  ;;  %v257_v16 = vld [vmem:[%s777_s7 + $0x30] sm:$0xff] }
  0x18   : > { %595 = vmatmul.msk.f32.vlgmr.msra.gmra.mxu2 %vm276_vm1, %v259_v5  ;;  %599 = vmatmul.msk.f32.vlgmr.msra.gmra.mxu3 %vm276_vm1, %v263_v6  ;;  %v262_v17 = vld [vmem:[%s777_s7 + $0x58] sm:$0xff] }
  0x19   : > { %344 = vmatpush.msra.mxu0 %v267_v4  ;;  %617 = vmatpush.msra.mxu1 %v267_v4  ;;  %v266_v18 = vld [vmem:[%s777_s7 + $0x78] sm:$0xff] }
  0x1a   : > { %587 = vmatmul.msk.f32.vlgmr.msra.gmra.mxu0 %vm276_vm1, %v251_v7  ;;  %591 = vmatmul.msk.f32.vlgmr.msra.gmra.mxu1 %vm276_vm1, %v255_v8  ;;  %v254_v19 = vld [vmem:[%s777_s7 + $0x18] sm:$0xff] }
  0x1b   : > { %v258_v20 = vld [vmem:[%s777_s7 + $0x38] sm:$0xff] }
  0x20   : > { %596 = vmatmul.msk.f32.gmra.mxu2 %vm276_vm1, %v260_v9  ;;  %600 = vmatmul.msk.f32.gmra.mxu3 %vm276_vm1, %v264_v10 }
  0x22   : > { %588 = vmatmul.msk.f32.gmra.mxu0 %vm276_vm1, %v252_v11  ;;  %592 = vmatmul.msk.f32.gmra.mxu1 %vm276_vm1, %v256_v12 }
  0x28   : > { %597 = vmatmul.msk.f32.gmra.mxu2 %vm276_vm1, %v261_v13  ;;  %601 = vmatmul.msk.f32.gmra.mxu3 %vm276_vm1, %v265_v14 }
  0x2a   : > { %589 = vmatmul.msk.f32.gmra.mxu0 %vm276_vm1, %v253_v15  ;;  %593 = vmatmul.msk.f32.gmra.mxu1 %vm276_vm1, %v257_v16 }
  0x30   : > { %598 = vmatmul.msk.f32.gmra.mxu2 %vm276_vm1, %v262_v17  ;;  %602 = vmatmul.msk.f32.gmra.mxu3 %vm276_vm1, %v266_v18 }
  0x32   : > { %590 = vmatmul.msk.f32.gmra.mxu0 %vm276_vm1, %v254_v19  ;;  %594 = vmatmul.msk.f32.gmra.mxu1 %vm276_vm1, %v258_v20 }
  0x97   : > { %v346_v22 = vpop.f32.mrf.mxu0  ;;  %v358_v23 = vpop.f32.mrf.mxu1 }
  0x98   : > { %v347_v24 = vadd.f32 %v814_v21, %v346_v22  ;;  %v359_v25 = vadd.f32 %v814_v21, %v358_v23 }
  0x9a   : > { %vm394_vm3 = vcmp.ge.f32.partialorder %v347_v24, 0.0  ;;  %v410_v26 = vmul.f32 0.1, %v347_v24  ;;  %vm398_vm4 = vcmp.ge.f32.partialorder %v359_v25, 0.0  ;;  %v414_v27 = vmul.f32 0.1, %v359_v25 }
  0x9b   : > { %v370_v28 = vpop.f32.mrf.mxu2  ;;  %v382_v29 = vpop.f32.mrf.mxu3 }
  0x9c   : > { %v426_v30 = vsel %vm394_vm3, %v347_v24, %v410_v26  ;;  %v430_v31 = vsel %vm398_vm4, %v359_v25, %v414_v27  ;;  %v371_v32 = vadd.f32 %v814_v21, %v370_v28  ;;  %v383_v33 = vadd.f32 %v814_v21, %v382_v29 }
  0x9d   : > { %443 = vst.msk [vmem:[%s823_s12] sm:$0xff] %vm442_vm2, %v426_v30 }
  0x9e   : > { %447 = vst.msk [vmem:[%s823_s12 + $0x20] sm:$0xff] %vm442_vm2, %v430_v31  ;;  %vm402_vm5 = vcmp.ge.f32.partialorder %v371_v32, 0.0  ;;  %v418_v34 = vmul.f32 0.1, %v371_v32  ;;  %vm406_vm6 = vcmp.ge.f32.partialorder %v383_v33, 0.0 }
  0x9f   : > { %v422_v35 = vmul.f32 0.1, %v383_v33  ;;  %v349_v36 = vpop.f32.mrf.mxu0  ;;  %v361_v37 = vpop.f32.mrf.mxu1 }
  0xa0   : > { %v434_v38 = vsel %vm402_vm5, %v371_v32, %v418_v34  ;;  %v350_v39 = vadd.f32 %v814_v21, %v349_v36  ;;  %v362_v40 = vadd.f32 %v814_v21, %v361_v37 }
  0xa1   : > { %451 = vst.msk [vmem:[%s823_s12 + $0x40] sm:$0xff] %vm442_vm2, %v434_v38  ;;  %v438_v41 = vsel %vm406_vm6, %v383_v33, %v422_v35 }
  0xa2   : > { %455 = vst.msk [vmem:[%s823_s12 + $0x60] sm:$0xff] %vm442_vm2, %v438_v41  ;;  %vm395_vm7 = vcmp.ge.f32.partialorder %v350_v39, 0.0  ;;  %v411_v42 = vmul.f32 0.1, %v350_v39  ;;  %vm399_vm8 = vcmp.ge.f32.partialorder %v362_v40, 0.0 }
  0xa3   : > { %v415_v43 = vmul.f32 0.1, %v362_v40  ;;  %v373_v44 = vpop.f32.mrf.mxu2  ;;  %v385_v45 = vpop.f32.mrf.mxu3 }
  0xa4   : > { %v427_v46 = vsel %vm395_vm7, %v350_v39, %v411_v42  ;;  %v374_v47 = vadd.f32 %v814_v21, %v373_v44  ;;  %v386_v48 = vadd.f32 %v814_v21, %v385_v45 }
  0xa5   : > { %444 = vst.msk [vmem:[%s823_s12 + $0x8] sm:$0xff] %vm442_vm2, %v427_v46  ;;  %v431_v49 = vsel %vm399_vm8, %v362_v40, %v415_v43 }
  0xa6   : > { %448 = vst.msk [vmem:[%s823_s12 + $0x28] sm:$0xff] %vm442_vm2, %v431_v49  ;;  %vm403_vm9 = vcmp.ge.f32.partialorder %v374_v47, 0.0  ;;  %v419_v50 = vmul.f32 0.1, %v374_v47  ;;  %vm407_vm10 = vcmp.ge.f32.partialorder %v386_v48, 0.0 }
  0xa7   : > { %v423_v51 = vmul.f32 0.1, %v386_v48  ;;  %v352_v52 = vpop.f32.mrf.mxu0  ;;  %v364_v53 = vpop.f32.mrf.mxu1 }
  0xa8   : > { %v435_v54 = vsel %vm403_vm9, %v374_v47, %v419_v50  ;;  %v353_v55 = vadd.f32 %v814_v21, %v352_v52  ;;  %v365_v56 = vadd.f32 %v814_v21, %v364_v53 }
  0xa9   : > { %452 = vst.msk [vmem:[%s823_s12 + $0x48] sm:$0xff] %vm442_vm2, %v435_v54  ;;  %v439_v57 = vsel %vm407_vm10, %v386_v48, %v423_v51 }
  0xaa   : > { %456 = vst.msk [vmem:[%s823_s12 + $0x68] sm:$0xff] %vm442_vm2, %v439_v57  ;;  %vm396_vm11 = vcmp.ge.f32.partialorder %v353_v55, 0.0  ;;  %v412_v58 = vmul.f32 0.1, %v353_v55  ;;  %vm400_vm12 = vcmp.ge.f32.partialorder %v365_v56, 0.0 }
  0xab   : > { %v416_v59 = vmul.f32 0.1, %v365_v56  ;;  %v376_v60 = vpop.f32.mrf.mxu2  ;;  %v388_v61 = vpop.f32.mrf.mxu3 }
  0xac   : > { %v428_v62 = vsel %vm396_vm11, %v353_v55, %v412_v58  ;;  %v377_v63 = vadd.f32 %v814_v21, %v376_v60  ;;  %v389_v0 = vadd.f32 %v814_v21, %v388_v61 }
  0xad   : > { %445 = vst.msk [vmem:[%s823_s12 + $0x10] sm:$0xff] %vm442_vm2, %v428_v62  ;;  %v432_v1 = vsel %vm400_vm12, %v365_v56, %v416_v59 }
  0xae   : > { %449 = vst.msk [vmem:[%s823_s12 + $0x30] sm:$0xff] %vm442_vm2, %v432_v1  ;;  %vm404_vm13 = vcmp.ge.f32.partialorder %v377_v63, 0.0  ;;  %v420_v2 = vmul.f32 0.1, %v377_v63  ;;  %vm408_vm14 = vcmp.ge.f32.partialorder %v389_v0, 0.0 }
  0xaf   : > { %v424_v3 = vmul.f32 0.1, %v389_v0  ;;  %v355_v4 = vpop.f32.mrf.mxu0  ;;  %v367_v5 = vpop.f32.mrf.mxu1 }
  0xb0   : > { %v436_v6 = vsel %vm404_vm13, %v377_v63, %v420_v2  ;;  %v356_v7 = vadd.f32 %v814_v21, %v355_v4  ;;  %v368_v8 = vadd.f32 %v814_v21, %v367_v5 }
  0xb1   : > { %453 = vst.msk [vmem:[%s823_s12 + $0x50] sm:$0xff] %vm442_vm2, %v436_v6  ;;  %v440_v9 = vsel %vm408_vm14, %v389_v0, %v424_v3 }
  0xb2   : > { %457 = vst.msk [vmem:[%s823_s12 + $0x70] sm:$0xff] %vm442_vm2, %v440_v9  ;;  %vm397_vm15 = vcmp.ge.f32.partialorder %v356_v7, 0.0  ;;  %v413_v10 = vmul.f32 0.1, %v356_v7  ;;  %vm401_vm0 = vcmp.ge.f32.partialorder %v368_v8, 0.0 }
  0xb3   : > { %v417_v11 = vmul.f32 0.1, %v368_v8  ;;  %v379_v12 = vpop.f32.mrf.mxu2  ;;  %v391_v13 = vpop.f32.mrf.mxu3 }
  0xb4   : > { %v429_v14 = vsel %vm397_vm15, %v356_v7, %v413_v10  ;;  %v380_v15 = vadd.f32 %v814_v21, %v379_v12  ;;  %v392_v16 = vadd.f32 %v814_v21, %v391_v13 }
  0xb5   : > { %446 = vst.msk [vmem:[%s823_s12 + $0x18] sm:$0xff] %vm442_vm2, %v429_v14  ;;  %v433_v17 = vsel %vm401_vm0, %v368_v8, %v417_v11 }
  0xb6   : > { %450 = vst.msk [vmem:[%s823_s12 + $0x38] sm:$0xff] %vm442_vm2, %v433_v17  ;;  %vm405_vm1 = vcmp.ge.f32.partialorder %v380_v15, 0.0  ;;  %v421_v18 = vmul.f32 0.1, %v380_v15  ;;  %vm409_vm3 = vcmp.ge.f32.partialorder %v392_v16, 0.0 }
  0xb7   : > { %v425_v19 = vmul.f32 0.1, %v392_v16 }
  0xb8   : > { %v437_v20 = vsel %vm405_vm1, %v380_v15, %v421_v18 }
  0xb9   : > { %454 = vst.msk [vmem:[%s823_s12 + $0x58] sm:$0xff] %vm442_vm2, %v437_v20  ;;  %v441_v22 = vsel %vm409_vm3, %v392_v16, %v425_v19 }
  0xba   : > { %458 = vst.msk [vmem:[%s823_s12 + $0x78] sm:$0xff] %vm442_vm2, %v441_v22 }
  0xbb PF: > { %s14_s14 = sadd.s32 1, %s712_s14   ;;  %s884_s12 = smov %s708_s13 }
  0xbc   : > { %p11_p8 = scmp.ge.s32.totalorder %s14_s14, 4   ;;  %s885_s13 = smov %s887_s16 }
  0xbe   :  { %13 = sbr.rel (!%p11_p8) target bundleno = 2 (0x2), region = 71 }
  0xc3   :  { %489 = vsyncpa [#allocation3], 1 }
  0xc4   :  { %491 = vsyncpa [#allocation3 + $0x1], 1 }

// kernel: main_encoder.22
= control target key start
LH: loop header
LB: loop body
LE: loop exit
PB: predicated region body
PF: predicated region fallthrough
CT: control target
= control target key end

     0   :  { %s695_s12 = smov 0   ;;  %s697_s13 = smov 0   ;;  %s855_s0 = inlined_call_operand.vmem [shape: f32[2,256,16], index: 0, kind: input, shape index: {}]   ;;  %s856_s1 = inlined_call_operand.vmem [shape: f32[2,16,8], index: 1, kind: input, shape index: {}]   ;;  %s857_s2 = inlined_call_operand.vmem [shape: f32[2,1,8], index: 2, kind: input, shape index: {}]   ;;  %s858_s3 = inlined_call_operand.vmem [shape: f32[2,256,8], index: 3, kind: output, shape index: {}]  }
   0x1   :  { %s699_s14 = smov 0   ;;  %s701_s15 = smov 0  }
   0x2   :  { %s703_s16 = smov 0  }
   0x3 LB: > { %s22_s17 = sadd.s32 1, %s665_s14  ;;  %s25_s18 = sadd.s32 1, %s669_s15  ;;  %s673_s16 = sphi %s703_s16, %s13_s16   ;;  %s669_s15 = sphi %s701_s15, %s862_s15   ;;  %s665_s14 = sphi %s699_s14, %s861_s14   ;;  %s661_s13 = sphi %s697_s13, %s860_s13   ;;  %s657_s12 = sphi %s695_s12, %s859_s12  }
   0x4   : > { %p23_p0 = scmp.ge.s32.totalorder %s22_s17, 2  ;;  %p560_p1 = scmp.ge.s32.totalorder %s673_s16, 1 }
   0x5   : > { %p176_p2 = scmp.lt.s32.totalorder %s673_s16, 5 }
   0x6   : > { %s864_s17 = smov (%p23_p0, %s22_s17), 0  ;;  %s866_s18 = smov (!%p23_p0, %s25_s18), %s669_s15 }
   0x7   : > { %p177_p3 = pnand %p560_p1, %p176_p2  ;;  %p27_p4 = scmp.ge.s32.totalorder %s866_s18, 2 }
   0x8   : > { %s561_s19 = sshll.u32 (!%p177_p3), %s657_s12, 4  ;;  %p217_p5 = scmp.lt.s32.totalorder (!%p177_p3), %s661_s13, 1 }
   0x9   : > { %s868_s18 = smov (%p27_p4, %s866_s18), 0  ;;  %180 = sbr.rel (%p177_p3) target bundleno = 184 (0xb8), region = 32 }
   0xa   : > { %p219_p6 = scmp.lt.s32.totalorder (!%p177_p3), %s561_s19, 31 }
   0xe   : > { %s870_s13 = smov (!%p217_p5, %s661_s13), 1  ;;  %s872_s19 = smov (!%p219_p6, %s561_s19), 31  ;;  %vm266_vm0 = vcmask 130048   ;;  %vm428_vm1 = vcmask 64512  }
   0xf   : > { %s562_s20 = sshll.u32 %s870_s13, 5  ;;  %s587_s21 = sshll.u32 %s870_s13, 4 }
  0x10   : > { %s729_s22 = sadd.s32 %s562_s20, %s872_s19  ;;  %s230_s25 = scalar_lea.vmem %s856_s1, %s587_s21 }
  0x11   : > { %s563_s26 = sshll.u32 %s729_s22, 3  ;;  %s233_s29 = scalar_lea.vmem %s857_s2, %s870_s13  ;;  %v261_v0 = vld [vmem:[%s230_s25 + $0x8] sm:$0xff]  ;;  %v260_v1 = vld [vmem:[%s230_s25] sm:$0xff] }
  0x12   : > { %s744_s5 = scalar_lea.vmem %s855_s0, %s563_s26  ;;  %589 = vmatpush.msra.mxu2 %v261_v0  ;;  %590 = vmatpush.msra.mxu3 %v261_v0  ;;  %v783_v18 = vld [vmem:[%s233_s29] ss:$0 sm:$0xff]  ;;  %s792_s10 = scalar_lea.vmem %s858_s3, %s563_s26 }
  0x13   : > { %v252_v2 = vld [vmem:[%s744_s5 + $0x40] sm:$0xff]  ;;  %329 = vmatpush.msra.mxu0 %v261_v0  ;;  %588 = vmatpush.msra.mxu1 %v261_v0  ;;  %v253_v6 = vld [vmem:[%s744_s5 + $0x48] sm:$0xff]  ;;  %v254_v10 = vld [vmem:[%s744_s5 + $0x50] sm:$0xff] }
  0x14   : > { %v256_v3 = vld [vmem:[%s744_s5 + $0x60] sm:$0xff]  ;;  %592 = vmatpush.msra.mxu2 %v260_v1  ;;  %593 = vmatpush.msra.mxu3 %v260_v1  ;;  %v257_v7 = vld [vmem:[%s744_s5 + $0x68] sm:$0xff]  ;;  %v258_v11 = vld [vmem:[%s744_s5 + $0x70] sm:$0xff] }
  0x15   : > { %v244_v4 = vld [vmem:[%s744_s5] sm:$0xff]  ;;  %577 = vmatmul.msk.f32.vlgmr.msra.gmra.mxu2 %vm266_vm0, %v252_v2  ;;  %581 = vmatmul.msk.f32.vlgmr.msra.gmra.mxu3 %vm266_vm0, %v256_v3  ;;  %v245_v8 = vld [vmem:[%s744_s5 + $0x8] sm:$0xff]  ;;  %v246_v12 = vld [vmem:[%s744_s5 + $0x10] sm:$0xff] }
  0x16   : > { %v248_v5 = vld [vmem:[%s744_s5 + $0x20] sm:$0xff]  ;;  %330 = vmatpush.msra.mxu0 %v260_v1  ;;  %591 = vmatpush.msra.mxu1 %v260_v1  ;;  %v249_v9 = vld [vmem:[%s744_s5 + $0x28] sm:$0xff]  ;;  %v250_v13 = vld [vmem:[%s744_s5 + $0x30] sm:$0xff] }
  0x17   : > { %569 = vmatmul.msk.f32.vlgmr.msra.gmra.mxu0 %vm266_vm0, %v244_v4  ;;  %573 = vmatmul.msk.f32.vlgmr.msra.gmra.mxu1 %vm266_vm0, %v248_v5  ;;  %v255_v14 = vld [vmem:[%s744_s5 + $0x58] sm:$0xff] }
  0x18   : > { %v259_v15 = vld [vmem:[%s744_s5 + $0x78] sm:$0xff] }
  0x19   : > { %v247_v16 = vld [vmem:[%s744_s5 + $0x18] sm:$0xff] }
  0x1a   : > { %v251_v17 = vld [vmem:[%s744_s5 + $0x38] sm:$0xff] }
  0x1d   : > { %578 = vmatmul.msk.f32.gmra.mxu2 %vm266_vm0, %v253_v6  ;;  %582 = vmatmul.msk.f32.gmra.mxu3 %vm266_vm0, %v257_v7 }
  0x1f   : > { %570 = vmatmul.msk.f32.gmra.mxu0 %vm266_vm0, %v245_v8  ;;  %574 = vmatmul.msk.f32.gmra.mxu1 %vm266_vm0, %v249_v9 }
  0x25   : > { %579 = vmatmul.msk.f32.gmra.mxu2 %vm266_vm0, %v254_v10  ;;  %583 = vmatmul.msk.f32.gmra.mxu3 %vm266_vm0, %v258_v11 }
  0x27   : > { %571 = vmatmul.msk.f32.gmra.mxu0 %vm266_vm0, %v246_v12  ;;  %575 = vmatmul.msk.f32.gmra.mxu1 %vm266_vm0, %v250_v13 }
  0x2d   : > { %580 = vmatmul.msk.f32.gmra.mxu2 %vm266_vm0, %v255_v14  ;;  %584 = vmatmul.msk.f32.gmra.mxu3 %vm266_vm0, %v259_v15 }
  0x2f   : > { %572 = vmatmul.msk.f32.gmra.mxu0 %vm266_vm0, %v247_v16  ;;  %576 = vmatmul.msk.f32.gmra.mxu1 %vm266_vm0, %v251_v17 }
  0x94   : > { %v332_v19 = vpop.f32.mrf.mxu0  ;;  %v344_v20 = vpop.f32.mrf.mxu1 }
  0x95   : > { %v333_v21 = vadd.f32 %v783_v18, %v332_v19  ;;  %v345_v22 = vadd.f32 %v783_v18, %v344_v20 }
  0x97   : > { %vm380_vm2 = vcmp.ge.f32.partialorder %v333_v21, 0.0  ;;  %v396_v23 = vmul.f32 0.1, %v333_v21  ;;  %vm384_vm3 = vcmp.ge.f32.partialorder %v345_v22, 0.0  ;;  %v400_v24 = vmul.f32 0.1, %v345_v22 }
  0x98   : > { %v356_v25 = vpop.f32.mrf.mxu2  ;;  %v368_v26 = vpop.f32.mrf.mxu3 }
  0x99   : > { %v412_v27 = vsel %vm380_vm2, %v333_v21, %v396_v23  ;;  %v416_v28 = vsel %vm384_vm3, %v345_v22, %v400_v24  ;;  %v357_v29 = vadd.f32 %v783_v18, %v356_v25  ;;  %v369_v30 = vadd.f32 %v783_v18, %v368_v26 }
  0x9a   : > { %429 = vst.msk [vmem:[%s792_s10] sm:$0xff] %vm428_vm1, %v412_v27 }
  0x9b   : > { %433 = vst.msk [vmem:[%s792_s10 + $0x20] sm:$0xff] %vm428_vm1, %v416_v28  ;;  %vm388_vm4 = vcmp.ge.f32.partialorder %v357_v29, 0.0  ;;  %v404_v31 = vmul.f32 0.1, %v357_v29  ;;  %vm392_vm5 = vcmp.ge.f32.partialorder %v369_v30, 0.0 }
  0x9c   : > { %v408_v32 = vmul.f32 0.1, %v369_v30  ;;  %v335_v33 = vpop.f32.mrf.mxu0  ;;  %v347_v34 = vpop.f32.mrf.mxu1 }
  0x9d   : > { %v420_v35 = vsel %vm388_vm4, %v357_v29, %v404_v31  ;;  %v336_v36 = vadd.f32 %v783_v18, %v335_v33  ;;  %v348_v37 = vadd.f32 %v783_v18, %v347_v34 }
  0x9e   : > { %437 = vst.msk [vmem:[%s792_s10 + $0x40] sm:$0xff] %vm428_vm1, %v420_v35  ;;  %v424_v38 = vsel %vm392_vm5, %v369_v30, %v408_v32 }
  0x9f   : > { %441 = vst.msk [vmem:[%s792_s10 + $0x60] sm:$0xff] %vm428_vm1, %v424_v38  ;;  %vm381_vm6 = vcmp.ge.f32.partialorder %v336_v36, 0.0  ;;  %v397_v39 = vmul.f32 0.1, %v336_v36  ;;  %vm385_vm7 = vcmp.ge.f32.partialorder %v348_v37, 0.0 }
  0xa0   : > { %v401_v40 = vmul.f32 0.1, %v348_v37  ;;  %v359_v41 = vpop.f32.mrf.mxu2  ;;  %v371_v42 = vpop.f32.mrf.mxu3 }
  0xa1   : > { %v413_v43 = vsel %vm381_vm6, %v336_v36, %v397_v39  ;;  %v360_v44 = vadd.f32 %v783_v18, %v359_v41  ;;  %v372_v45 = vadd.f32 %v783_v18, %v371_v42 }
  0xa2   : > { %430 = vst.msk [vmem:[%s792_s10 + $0x8] sm:$0xff] %vm428_vm1, %v413_v43  ;;  %v417_v46 = vsel %vm385_vm7, %v348_v37, %v401_v40 }
  0xa3   : > { %434 = vst.msk [vmem:[%s792_s10 + $0x28] sm:$0xff] %vm428_vm1, %v417_v46  ;;  %vm389_vm8 = vcmp.ge.f32.partialorder %v360_v44, 0.0  ;;  %v405_v47 = vmul.f32 0.1, %v360_v44  ;;  %vm393_vm9 = vcmp.ge.f32.partialorder %v372_v45, 0.0 }
  0xa4   : > { %v409_v48 = vmul.f32 0.1, %v372_v45  ;;  %v338_v49 = vpop.f32.mrf.mxu0  ;;  %v350_v50 = vpop.f32.mrf.mxu1 }
  0xa5   : > { %v421_v51 = vsel %vm389_vm8, %v360_v44, %v405_v47  ;;  %v339_v52 = vadd.f32 %v783_v18, %v338_v49  ;;  %v351_v53 = vadd.f32 %v783_v18, %v350_v50 }
  0xa6   : > { %438 = vst.msk [vmem:[%s792_s10 + $0x48] sm:$0xff] %vm428_vm1, %v421_v51  ;;  %v425_v54 = vsel %vm393_vm9, %v372_v45, %v409_v48 }
  0xa7   : > { %442 = vst.msk [vmem:[%s792_s10 + $0x68] sm:$0xff] %vm428_vm1, %v425_v54  ;;  %vm382_vm10 = vcmp.ge.f32.partialorder %v339_v52, 0.0  ;;  %v398_v55 = vmul.f32 0.1, %v339_v52  ;;  %vm386_vm11 = vcmp.ge.f32.partialorder %v351_v53, 0.0 }
  0xa8   : > { %v402_v56 = vmul.f32 0.1, %v351_v53  ;;  %v362_v57 = vpop.f32.mrf.mxu2  ;;  %v374_v58 = vpop.f32.mrf.mxu3 }
  0xa9   : > { %v414_v59 = vsel %vm382_vm10, %v339_v52, %v398_v55  ;;  %v363_v60 = vadd.f32 %v783_v18, %v362_v57  ;;  %v375_v61 = vadd.f32 %v783_v18, %v374_v58 }
  0xaa   : > { %431 = vst.msk [vmem:[%s792_s10 + $0x10] sm:$0xff] %vm428_vm1, %v414_v59  ;;  %v418_v62 = vsel %vm386_vm11, %v351_v53, %v402_v56 }
  0xab   : > { %435 = vst.msk [vmem:[%s792_s10 + $0x30] sm:$0xff] %vm428_vm1, %v418_v62  ;;  %vm390_vm12 = vcmp.ge.f32.partialorder %v363_v60, 0.0  ;;  %v406_v63 = vmul.f32 0.1, %v363_v60  ;;  %vm394_vm13 = vcmp.ge.f32.partialorder %v375_v61, 0.0 }
  0xac   : > { %v410_v0 = vmul.f32 0.1, %v375_v61  ;;  %v341_v1 = vpop.f32.mrf.mxu0  ;;  %v353_v2 = vpop.f32.mrf.mxu1 }
  0xad   : > { %v422_v3 = vsel %vm390_vm12, %v363_v60, %v406_v63  ;;  %v342_v4 = vadd.f32 %v783_v18, %v341_v1  ;;  %v354_v5 = vadd.f32 %v783_v18, %v353_v2 }
  0xae   : > { %439 = vst.msk [vmem:[%s792_s10 + $0x50] sm:$0xff] %vm428_vm1, %v422_v3  ;;  %v426_v6 = vsel %vm394_vm13, %v375_v61, %v410_v0 }
  0xaf   : > { %443 = vst.msk [vmem:[%s792_s10 + $0x70] sm:$0xff] %vm428_vm1, %v426_v6  ;;  %vm383_vm14 = vcmp.ge.f32.partialorder %v342_v4, 0.0  ;;  %v399_v7 = vmul.f32 0.1, %v342_v4  ;;  %vm387_vm15 = vcmp.ge.f32.partialorder %v354_v5, 0.0 }
  0xb0   : > { %v403_v8 = vmul.f32 0.1, %v354_v5  ;;  %v365_v9 = vpop.f32.mrf.mxu2  ;;  %v377_v10 = vpop.f32.mrf.mxu3 }
  0xb1   : > { %v415_v11 = vsel %vm383_vm14, %v342_v4, %v399_v7  ;;  %v366_v12 = vadd.f32 %v783_v18, %v365_v9  ;;  %v378_v13 = vadd.f32 %v783_v18, %v377_v10 }
  0xb2   : > { %432 = vst.msk [vmem:[%s792_s10 + $0x18] sm:$0xff] %vm428_vm1, %v415_v11  ;;  %v419_v14 = vsel %vm387_vm15, %v354_v5, %v403_v8 }
  0xb3   : > { %436 = vst.msk [vmem:[%s792_s10 + $0x38] sm:$0xff] %vm428_vm1, %v419_v14  ;;  %vm391_vm0 = vcmp.ge.f32.partialorder %v366_v12, 0.0  ;;  %v407_v15 = vmul.f32 0.1, %v366_v12  ;;  %vm395_vm2 = vcmp.ge.f32.partialorder %v378_v13, 0.0 }
  0xb4   : > { %v411_v16 = vmul.f32 0.1, %v378_v13 }
  0xb5   : > { %v423_v17 = vsel %vm391_vm0, %v366_v12, %v407_v15 }
  0xb6   : > { %440 = vst.msk [vmem:[%s792_s10 + $0x58] sm:$0xff] %vm428_vm1, %v423_v17  ;;  %v427_v19 = vsel %vm395_vm2, %v378_v13, %v411_v16 }
  0xb7   : > { %444 = vst.msk [vmem:[%s792_s10 + $0x78] sm:$0xff] %vm428_vm1, %v427_v19 }
  0xb8 PF: > { %s13_s16 = sadd.s32 1, %s673_s16   ;;  %s859_s12 = smov %s665_s14 }
  0xb9   : > { %p10_p7 = scmp.ge.s32.totalorder %s13_s16, 6   ;;  %s860_s13 = smov %s669_s15 }
  0xba   : > { %s861_s14 = smov %s864_s17  ;;  %s862_s15 = smov %s868_s18 }
  0xbb   :  { %12 = sbr.rel (!%p10_p7) target bundleno = 3 (0x3), region = 68 }

// kernel: main_encoder.23
= control target key start
LH: loop header
LB: loop body
LE: loop exit
PB: predicated region body
PF: predicated region fallthrough
CT: control target
= control target key end

     0   :  { %s1450_s27 = smov 0   ;;  %s1452_s28 = smov 0   ;;  %s1760_s0 = inlined_call_operand.vmem [shape: f32[2,256,216], index: 0, kind: input, shape index: {}]   ;;  %s1761_s1 = inlined_call_operand.vmem [shape: f32[2,216,24], index: 1, kind: input, shape index: {}]   ;;  %s1762_s2 = inlined_call_operand.vmem [shape: f32[2,1,24], index: 2, kind: input, shape index: {}]   ;;  %s1763_s3 = inlined_call_operand.vmem [shape: f32[2,256,8], index: 3, kind: input, shape index: {}]   ;;  %s1764_s4 = inlined_call_operand.vmem [shape: f32[2,24,8], index: 4, kind: input, shape index: {}]   ;;  %s1765_s5 = inlined_call_operand.vmem [shape: f32[2,1,8], index: 5, kind: input, shape index: {}]   ;;  %s1766_s6 = inlined_call_operand.vmem [shape: f32[2,8,18], index: 6, kind: input, shape index: {}]   ;;  %s1767_s7 = inlined_call_operand.vmem [shape: f32[2,1,18], index: 7, kind: input, shape index: {}]   ;;  %s1768_s8 = inlined_call_operand.vmem [shape: f32[2,256,18], index: 8, kind: output, shape index: {}]  }
   0x1   :  { %s1454_s29 = smov 0   ;;  %s1456_s30 = smov 0  }
   0x2   :  { %s1458_s9 = smov 0  }
   0x3 LB: > { %s27_s10 = sadd.s32 1, %s1395_s29  ;;  %s30_s11 = sadd.s32 1, %s1399_s30  ;;  %s1403_s9 = sphi %s1458_s9, %s18_s9   ;;  %s1399_s30 = sphi %s1456_s30, %s1772_s30   ;;  %s1395_s29 = sphi %s1454_s29, %s1771_s29   ;;  %s1391_s28 = sphi %s1452_s28, %s1770_s28   ;;  %s1387_s27 = sphi %s1450_s27, %s1769_s27  }
   0x4   : > { %p28_p0 = scmp.ge.s32.totalorder %s27_s10, 2  ;;  %p1256_p1 = scmp.ge.s32.totalorder %s1403_s9, 1 }
   0x5   : > { %p354_p2 = scmp.lt.s32.totalorder %s1403_s9, 5 }
   0x6   : > { %s1774_s10 = smov (%p28_p0, %s27_s10), 0  ;;  %s1776_s11 = smov (!%p28_p0, %s30_s11), %s1399_s30 }
   0x7   : > { %p355_p3 = pnand %p1256_p1, %p354_p2  ;;  %p32_p4 = scmp.ge.s32.totalorder %s1776_s11, 2 }
   0x8   : > { %p430_p5 = scmp.lt.s32.totalorder (!%p355_p3), %s1391_s28, 1  ;;  %s1257_s16 = sshll.u32 (!%p355_p3), %s1387_s27, 4 }
   0x9   : > { %s1778_s11 = smov (%p32_p4, %s1776_s11), 0  ;;  %358 = sbr.rel (%p355_p3) target bundleno = 574 (0x23e), region = 52 }
   0xa   : > { %p432_p6 = scmp.lt.s32.totalorder (!%p355_p3), %s1257_s16, 31 }
   0xe   : > { %s1780_s28 = smov (!%p430_p5, %s1391_s28), 1  ;;  %s1782_s16 = smov (!%p432_p6, %s1257_s16), 31  ;;  %vm546_vm0 = vcmask 719872   ;;  %vm792_vm2 = vcmask 195584  }
   0xf   : > { %s1320_s12 = smul.u32 216, %s1780_s28  ;;  %s1258_s17 = sshll.u32 %s1782_s16, 1 }
  0x10   : > { %s1259_s18 = sshll.u32 %s1780_s28, 6  ;;  %s447_s26 = scalar_lea.vmem %s1762_s2, %s1780_s28 }
  0x11   : > { %s1488_s15 = scalar_lea.vmem %s1761_s1, %s1320_s12  ;;  %s436_s19 = sadd.s32 %s1259_s18, %s1258_s17  ;;  %v1588_v63 = vld [vmem:[%s447_s26] ss:$0 sm:$0xff] }
  0x12   : > { %v530_v0 = vld [vmem:[%s1488_s15 + $0x78] sm:$0xff]  ;;  %v529_v1 = vld [vmem:[%s1488_s15 + $0x70] sm:$0xff]  ;;  %v528_v2 = vld [vmem:[%s1488_s15 + $0x68] sm:$0xff]  ;;  %s1260_s20 = sshll.u32 %s436_s19, 3  ;;  %s1321_s27 = smul.u32 24, %s1780_s28 }
  0x13   : > { %595 = vmatpush.msra.mxu0 %v530_v0  ;;  %v541_v3 = vld [vmem:[%s1488_s15 + $0xd0] sm:$0xff]  ;;  %v540_v4 = vld [vmem:[%s1488_s15 + $0xc8] sm:$0xff]  ;;  %v527_v5 = vld [vmem:[%s1488_s15 + $0x60] sm:$0xff]  ;;  %s1519_s23 = scalar_lea.vmem %s1760_s0, %s1260_s20  ;;  %s465_s20 = scalar_lea.vmem %s1765_s5, %s1780_s28 }
  0x14   : > { %665 = vmatpush.msra.mxu1 %v541_v3  ;;  %v539_v6 = vld [vmem:[%s1488_s15 + $0xc0] sm:$0xff]  ;;  %v526_v7 = vld [vmem:[%s1488_s15 + $0x58] sm:$0xff]  ;;  %v525_v9 = vld [vmem:[%s1488_s15 + $0x50] sm:$0xff]  ;;  %s462_s14 = scalar_lea.vmem %s1764_s4, %s1321_s27  ;;  %s1266_s21 = sshll.u32 %s1780_s28, 3 }
  0x15   : > { %596 = vmatpush.msra.mxu0 %v529_v1  ;;  %v538_v8 = vld [vmem:[%s1488_s15 + $0xb8] sm:$0xff]  ;;  %v537_v10 = vld [vmem:[%s1488_s15 + $0xb0] sm:$0xff]  ;;  %v524_v11 = vld [vmem:[%s1488_s15 + $0x48] sm:$0xff]  ;;  %s469_s24 = scalar_lea.vmem %s1766_s6, %s1266_s21  ;;  %s1263_s25 = sshll.u32 %s1780_s28, 5 }
  0x16   : > { %666 = vmatpush.msra.mxu1 %v540_v4  ;;  %v536_v12 = vld [vmem:[%s1488_s15 + $0xa8] sm:$0xff]  ;;  %v523_v13 = vld [vmem:[%s1488_s15 + $0x40] sm:$0xff]  ;;  %v522_v15 = vld [vmem:[%s1488_s15 + $0x38] sm:$0xff]  ;;  %s1632_s26 = sadd.s32 %s1263_s25, %s1782_s16  ;;  %s472_s18 = scalar_lea.vmem %s1767_s7, %s1780_s28 }
  0x17   : > { %597 = vmatpush.msra.mxu0 %v528_v2  ;;  %v535_v14 = vld [vmem:[%s1488_s15 + $0xa0] sm:$0xff]  ;;  %v534_v16 = vld [vmem:[%s1488_s15 + $0x98] sm:$0xff]  ;;  %v521_v17 = vld [vmem:[%s1488_s15 + $0x30] sm:$0xff]  ;;  %s1264_s27 = sshll.u32 %s1632_s26, 3 }
  0x18   : > { %667 = vmatpush.msra.mxu1 %v539_v6  ;;  %v533_v18 = vld [vmem:[%s1488_s15 + $0x90] sm:$0xff]  ;;  %v520_v19 = vld [vmem:[%s1488_s15 + $0x28] sm:$0xff]  ;;  %v519_v21 = vld [vmem:[%s1488_s15 + $0x20] sm:$0xff] }
  0x19   : > { %598 = vmatpush.msra.mxu0 %v527_v5  ;;  %v532_v20 = vld [vmem:[%s1488_s15 + $0x88] sm:$0xff]  ;;  %v531_v22 = vld [vmem:[%s1488_s15 + $0x80] sm:$0xff]  ;;  %v518_v24 = vld [vmem:[%s1488_s15 + $0x18] sm:$0xff] }
  0x1a   : > { %668 = vmatpush.msra.mxu1 %v538_v8  ;;  %v484_v23 = vld [vmem:[%s1519_s23 + $0x8] sm:$0xff]  ;;  %v517_v25 = vld [vmem:[%s1488_s15 + $0x10] sm:$0xff]  ;;  %v515_v27 = vld [vmem:[%s1488_s15] sm:$0xff] }
  0x1b   : > { %599 = vmatpush.msra.mxu0 %v526_v7  ;;  %v516_v26 = vld [vmem:[%s1488_s15 + $0x8] sm:$0xff]  ;;  %v483_v28 = vld [vmem:[%s1519_s23] sm:$0xff]  ;;  %v486_v29 = vld [vmem:[%s1519_s23 + $0x18] sm:$0xff] }
  0x1c   : > { %669 = vmatpush.msra.mxu1 %v537_v10  ;;  %v485_v30 = vld [vmem:[%s1519_s23 + $0x10] sm:$0xff]  ;;  %v488_v31 = vld [vmem:[%s1519_s23 + $0x28] sm:$0xff]  ;;  %v487_v32 = vld [vmem:[%s1519_s23 + $0x20] sm:$0xff] }
  0x1d   : > { %600 = vmatpush.msra.mxu0 %v525_v9  ;;  %v490_v33 = vld [vmem:[%s1519_s23 + $0x38] sm:$0xff]  ;;  %v489_v34 = vld [vmem:[%s1519_s23 + $0x30] sm:$0xff]  ;;  %v492_v35 = vld [vmem:[%s1519_s23 + $0x48] sm:$0xff] }
  0x1e   : > { %670 = vmatpush.msra.mxu1 %v536_v12  ;;  %v491_v36 = vld [vmem:[%s1519_s23 + $0x40] sm:$0xff]  ;;  %v494_v37 = vld [vmem:[%s1519_s23 + $0x58] sm:$0xff]  ;;  %v493_v38 = vld [vmem:[%s1519_s23 + $0x50] sm:$0xff] }
  0x1f   : > { %601 = vmatpush.msra.mxu0 %v524_v11  ;;  %v496_v39 = vld [vmem:[%s1519_s23 + $0x68] sm:$0xff]  ;;  %v495_v40 = vld [vmem:[%s1519_s23 + $0x60] sm:$0xff]  ;;  %v498_v41 = vld [vmem:[%s1519_s23 + $0x78] sm:$0xff] }
  0x20   : > { %671 = vmatpush.msra.mxu1 %v535_v14  ;;  %v497_v42 = vld [vmem:[%s1519_s23 + $0x70] sm:$0xff]  ;;  %v500_v43 = vld [vmem:[%s1519_s23 + $0x88] sm:$0xff]  ;;  %v499_v44 = vld [vmem:[%s1519_s23 + $0x80] sm:$0xff] }
  0x21   : > { %602 = vmatpush.msra.mxu0 %v523_v13  ;;  %v502_v45 = vld [vmem:[%s1519_s23 + $0x98] sm:$0xff]  ;;  %v501_v46 = vld [vmem:[%s1519_s23 + $0x90] sm:$0xff]  ;;  %v504_v47 = vld [vmem:[%s1519_s23 + $0xa8] sm:$0xff] }
  0x22   : > { %672 = vmatpush.msra.mxu1 %v534_v16  ;;  %v503_v48 = vld [vmem:[%s1519_s23 + $0xa0] sm:$0xff]  ;;  %v506_v49 = vld [vmem:[%s1519_s23 + $0xb8] sm:$0xff]  ;;  %v505_v50 = vld [vmem:[%s1519_s23 + $0xb0] sm:$0xff] }
  0x23   : > { %603 = vmatpush.msra.mxu0 %v522_v15  ;;  %v508_v51 = vld [vmem:[%s1519_s23 + $0xc8] sm:$0xff]  ;;  %v507_v52 = vld [vmem:[%s1519_s23 + $0xc0] sm:$0xff]  ;;  %v510_v53 = vld [vmem:[%s1519_s23 + $0xd8] sm:$0xff] }
  0x24   : > { %673 = vmatpush.msra.mxu1 %v533_v18  ;;  %v791_v54 = vld [vmem:[%s462_s14 + $0x10] sm:$0xff]  ;;  %v790_v55 = vld [vmem:[%s462_s14 + $0x8] sm:$0xff]  ;;  %v789_v56 = vld [vmem:[%s462_s14] sm:$0xff]  ;;  %s1640_s14 = scalar_lea.vmem %s1763_s3, %s1264_s27 }
  0x25   : > { %604 = vmatpush.msra.mxu0 %v521_v17  ;;  %854 = vmatpush.msra.mxu2 %v791_v54  ;;  %v509_v57 = vld [vmem:[%s1519_s23 + $0xd0] sm:$0xff]  ;;  %v512_v58 = vld [vmem:[%s1519_s23 + $0xe8] sm:$0xff]  ;;  %v511_v59 = vld [vmem:[%s1519_s23 + $0xe0] sm:$0xff] }
  0x26   : > { %674 = vmatpush.msra.mxu1 %v532_v20  ;;  %v514_v60 = vld [vmem:[%s1519_s23 + $0xf8] sm:$0xff]  ;;  %v513_v61 = vld [vmem:[%s1519_s23 + $0xf0] sm:$0xff] }
  0x27   : > { %605 = vmatpush.msra.mxu0 %v520_v19  ;;  %855 = vmatpush.msra.mxu2 %v790_v55 }
  0x28   : > { %675 = vmatpush.msra.mxu1 %v531_v22 }
  0x29   : > { %606 = vmatpush.msra.mxu0 %v519_v21  ;;  %1270 = vmatmul.msk.f32.vlgmr.msra.gmra.mxu1 %vm546_vm0, %v484_v23 }
  0x2a   : > { %856 = vmatpush.msra.mxu2 %v789_v56 }
  0x2b   : > { %607 = vmatpush.msra.mxu0 %v518_v24 }
  0x2d   : > { %608 = vmatpush.msra.mxu0 %v517_v25 }
  0x2f   : > { %609 = vmatpush.msra.mxu0 %v516_v26 }
  0x31   : > { %610 = vmatpush.msra.mxu0 %v515_v27  ;;  %1271 = vmatmul.msk.f32.gmra.mxu1 %vm546_vm0, %v486_v29 }
  0x32   : > { %611 = vmatmul.f32.vlgmr.msra.gmra.mxu0 %v483_v28 }
  0x39   : > { %1272 = vmatmul.msk.f32.gmra.mxu1 %vm546_vm0, %v488_v31 }
  0x3a   : > { %614 = vmatmul.f32.gmra.mxu0 %v485_v30 }
  0x41   : > { %1273 = vmatmul.msk.f32.gmra.mxu1 %vm546_vm0, %v490_v33 }
  0x42   : > { %617 = vmatmul.f32.gmra.mxu0 %v487_v32 }
  0x49   : > { %1274 = vmatmul.msk.f32.gmra.mxu1 %vm546_vm0, %v492_v35 }
  0x4a   : > { %620 = vmatmul.f32.gmra.mxu0 %v489_v34 }
  0x51   : > { %1275 = vmatmul.msk.f32.gmra.mxu1 %vm546_vm0, %v494_v37 }
  0x52   : > { %623 = vmatmul.f32.gmra.mxu0 %v491_v36 }
  0x59   : > { %1276 = vmatmul.msk.f32.gmra.mxu1 %vm546_vm0, %v496_v39 }
  0x5a   : > { %626 = vmatmul.f32.gmra.mxu0 %v493_v38 }
  0x61   : > { %1277 = vmatmul.msk.f32.gmra.mxu1 %vm546_vm0, %v498_v41 }
  0x62   : > { %629 = vmatmul.f32.gmra.mxu0 %v495_v40 }
  0x69   : > { %1278 = vmatmul.msk.f32.gmra.mxu1 %vm546_vm0, %v500_v43 }
  0x6a   : > { %632 = vmatmul.f32.gmra.mxu0 %v497_v42 }
  0x71   : > { %1279 = vmatmul.msk.f32.gmra.mxu1 %vm546_vm0, %v502_v45 }
  0x72   : > { %635 = vmatmul.f32.gmra.mxu0 %v499_v44 }
  0x79   : > { %1280 = vmatmul.msk.f32.gmra.mxu1 %vm546_vm0, %v504_v47 }
  0x7a   : > { %638 = vmatmul.f32.gmra.mxu0 %v501_v46 }
  0x81   : > { %1281 = vmatmul.msk.f32.gmra.mxu1 %vm546_vm0, %v506_v49 }
  0x82   : > { %641 = vmatmul.f32.gmra.mxu0 %v503_v48 }
  0x89   : > { %1282 = vmatmul.msk.f32.gmra.mxu1 %vm546_vm0, %v508_v51 }
  0x8a   : > { %644 = vmatmul.f32.gmra.mxu0 %v505_v50 }
  0x91   : > { %1283 = vmatmul.msk.f32.gmra.mxu1 %vm546_vm0, %v510_v53 }
  0x92   : > { %647 = vmatmul.f32.gmra.mxu0 %v507_v52 }
  0x99   : > { %1284 = vmatmul.msk.f32.gmra.mxu1 %vm546_vm0, %v512_v58 }
  0x9a   : > { %650 = vmatmul.f32.gmra.mxu0 %v509_v57 }
  0xa1   : > { %1285 = vmatmul.msk.f32.gmra.mxu1 %vm546_vm0, %v514_v60 }
  0xa2   : > { %653 = vmatmul.f32.gmra.mxu0 %v511_v59 }
  0xa6   : > { %v677_v62 = vpop.f32.mrf.mxu1 }
  0xaa   : > { %656 = vmatmul.f32.gmra.mxu0 %v513_v61 }
  0xae   : > { %v680_v1 = vpop.f32.mrf.mxu1 }
  0xaf   : > { %v612_v0 = vpop.f32.mrf.mxu0 }
  0xb0   : > { %v613_v2 = vadd.f32 %v1588_v63, %v612_v0 }
  0xb2   : > { %v678_v3 = vadd.f32 %v677_v62, %v613_v2 }
  0xb4   : > { %v741_v4 = vmul.f32 0.1, %v678_v3  ;;  %vm725_vm1 = vcmp.ge.f32.partialorder %v678_v3, 0.0 }
  0xb6   : > { %v757_v5 = vsel %vm725_vm1, %v678_v3, %v741_v4  ;;  %v683_v7 = vpop.f32.mrf.mxu1 }
  0xb7   : > { %v615_v6 = vpop.f32.mrf.mxu0  ;;  %1286 = vmatmul.msk.f32.vlgmr.msra.gmra.mxu2 %vm792_vm2, %v757_v5 }
  0xb8   : > { %v616_v8 = vadd.f32 %v1588_v63, %v615_v6 }
  0xba   : > { %v681_v9 = vadd.f32 %v680_v1, %v616_v8 }
  0xbc   : > { %v742_v10 = vmul.f32 0.1, %v681_v9  ;;  %vm726_vm3 = vcmp.ge.f32.partialorder %v681_v9, 0.0 }
  0xbe   : > { %v758_v11 = vsel %vm726_vm3, %v681_v9, %v742_v10  ;;  %v686_v13 = vpop.f32.mrf.mxu1  ;;  %vm1061_vm3 = vcmask 146432  }
  0xbf   : > { %v618_v12 = vpop.f32.mrf.mxu0  ;;  %1287 = vmatmul.msk.f32.gmra.mxu2 %vm792_vm2, %v758_v11 }
  0xc0   : > { %v619_v14 = vadd.f32 %v1588_v63, %v618_v12 }
  0xc2   : > { %v684_v15 = vadd.f32 %v683_v7, %v619_v14 }
  0xc4   : > { %v743_v16 = vmul.f32 0.1, %v684_v15  ;;  %vm727_vm4 = vcmp.ge.f32.partialorder %v684_v15, 0.0 }
  0xc6   : > { %v759_v17 = vsel %vm727_vm4, %v684_v15, %v743_v16  ;;  %v689_v19 = vpop.f32.mrf.mxu1 }
  0xc7   : > { %v621_v18 = vpop.f32.mrf.mxu0  ;;  %1288 = vmatmul.msk.f32.gmra.mxu2 %vm792_vm2, %v759_v17 }
  0xc8   : > { %v622_v20 = vadd.f32 %v1588_v63, %v621_v18 }
  0xca   : > { %v687_v21 = vadd.f32 %v686_v13, %v622_v20  ;;  %v942_v20 = vld [vmem:[%s469_s24] sm:$0xff]  ;;  %s1711_s24 = scalar_lea.vmem %s1768_s8, %s1264_s27 }
  0xcb   : > { %1011 = vmatpush.msra.mxu3 %v942_v20 }
  0xcc   : > { %v744_v22 = vmul.f32 0.1, %v687_v21  ;;  %vm728_vm5 = vcmp.ge.f32.partialorder %v687_v21, 0.0 }
  0xce   : > { %v760_v23 = vsel %vm728_vm5, %v687_v21, %v744_v22  ;;  %v692_v25 = vpop.f32.mrf.mxu1 }
  0xcf   : > { %v624_v24 = vpop.f32.mrf.mxu0  ;;  %1289 = vmatmul.msk.f32.gmra.mxu2 %vm792_vm2, %v760_v23 }
  0xd0   : > { %v625_v26 = vadd.f32 %v1588_v63, %v624_v24 }
  0xd2   : > { %v690_v27 = vadd.f32 %v689_v19, %v625_v26 }
  0xd4   : > { %v745_v28 = vmul.f32 0.1, %v690_v27  ;;  %vm729_vm6 = vcmp.ge.f32.partialorder %v690_v27, 0.0 }
  0xd6   : > { %v761_v29 = vsel %vm729_vm6, %v690_v27, %v745_v28  ;;  %v695_v31 = vpop.f32.mrf.mxu1 }
  0xd7   : > { %v627_v30 = vpop.f32.mrf.mxu0  ;;  %1290 = vmatmul.msk.f32.gmra.mxu2 %vm792_vm2, %v761_v29 }
  0xd8   : > { %v628_v32 = vadd.f32 %v1588_v63, %v627_v30 }
  0xda   : > { %v693_v33 = vadd.f32 %v692_v25, %v628_v32 }
  0xdc   : > { %v746_v34 = vmul.f32 0.1, %v693_v33  ;;  %vm730_vm7 = vcmp.ge.f32.partialorder %v693_v33, 0.0 }
  0xde   : > { %v762_v35 = vsel %vm730_vm7, %v693_v33, %v746_v34  ;;  %v698_v37 = vpop.f32.mrf.mxu1  ;;  %v1652_v33 = vld [vmem:[%s465_s20] ss:$0 sm:$0xff] }
  0xdf   : > { %v630_v36 = vpop.f32.mrf.mxu0  ;;  %1291 = vmatmul.msk.f32.gmra.mxu2 %vm792_vm2, %v762_v35 }
  0xe0   : > { %v631_v38 = vadd.f32 %v1588_v63, %v630_v36 }
  0xe2   : > { %v696_v39 = vadd.f32 %v695_v31, %v631_v38 }
  0xe4   : > { %v747_v40 = vmul.f32 0.1, %v696_v39  ;;  %vm731_vm8 = vcmp.ge.f32.partialorder %v696_v39, 0.0 }
  0xe6   : > { %v763_v41 = vsel %vm731_vm8, %v696_v39, %v747_v40  ;;  %v701_v43 = vpop.f32.mrf.mxu1 }
  0xe7   : > { %v633_v42 = vpop.f32.mrf.mxu0  ;;  %1292 = vmatmul.msk.f32.gmra.mxu2 %vm792_vm2, %v763_v41  ;;  %v775_v41 = vld [vmem:[%s1640_s14 + $0x10] sm:$0xff] }
  0xe8   : > { %v634_v44 = vadd.f32 %v1588_v63, %v633_v42 }
  0xea   : > { %v699_v45 = vadd.f32 %v698_v37, %v634_v44  ;;  %v774_v37 = vld [vmem:[%s1640_s14 + $0x8] sm:$0xff] }
  0xec   : > { %v748_v46 = vmul.f32 0.1, %v699_v45  ;;  %vm732_vm9 = vcmp.ge.f32.partialorder %v699_v45, 0.0 }
  0xee   : > { %v764_v47 = vsel %vm732_vm9, %v699_v45, %v748_v46  ;;  %v704_v49 = vpop.f32.mrf.mxu1  ;;  %v776_v45 = vld [vmem:[%s1640_s14 + $0x18] sm:$0xff] }
  0xef   : > { %v636_v48 = vpop.f32.mrf.mxu0  ;;  %1293 = vmatmul.msk.f32.gmra.mxu2 %vm792_vm2, %v764_v47 }
  0xf0   : > { %v637_v50 = vadd.f32 %v1588_v63, %v636_v48 }
  0xf2   : > { %v702_v51 = vadd.f32 %v701_v43, %v637_v50 }
  0xf4   : > { %v749_v52 = vmul.f32 0.1, %v702_v51  ;;  %vm733_vm10 = vcmp.ge.f32.partialorder %v702_v51, 0.0 }
  0xf6   : > { %v765_v53 = vsel %vm733_vm10, %v702_v51, %v749_v52  ;;  %v707_v55 = vpop.f32.mrf.mxu1 }
  0xf7   : > { %v639_v54 = vpop.f32.mrf.mxu0  ;;  %1294 = vmatmul.msk.f32.gmra.mxu2 %vm792_vm2, %v765_v53  ;;  %v778_v53 = vld [vmem:[%s1640_s14 + $0x28] sm:$0xff] }
  0xf8   : > { %v640_v56 = vadd.f32 %v1588_v63, %v639_v54 }
  0xfa   : > { %v705_v57 = vadd.f32 %v704_v49, %v640_v56  ;;  %v777_v49 = vld [vmem:[%s1640_s14 + $0x20] sm:$0xff] }
  0xfc   : > { %v750_v58 = vmul.f32 0.1, %v705_v57  ;;  %vm734_vm11 = vcmp.ge.f32.partialorder %v705_v57, 0.0 }
  0xfe   : > { %v766_v59 = vsel %vm734_vm11, %v705_v57, %v750_v58  ;;  %v710_v61 = vpop.f32.mrf.mxu1  ;;  %v779_v57 = vld [vmem:[%s1640_s14 + $0x30] sm:$0xff] }
  0xff   : > { %v642_v60 = vpop.f32.mrf.mxu0  ;;  %1295 = vmatmul.msk.f32.gmra.mxu2 %vm792_vm2, %v766_v59 }
 0x100   : > { %v643_v62 = vadd.f32 %v1588_v63, %v642_v60 }
 0x102   : > { %v708_v0 = vadd.f32 %v707_v55, %v643_v62 }
 0x104   : > { %v751_v1 = vmul.f32 0.1, %v708_v0  ;;  %vm735_vm12 = vcmp.ge.f32.partialorder %v708_v0, 0.0 }
 0x106   : > { %v767_v2 = vsel %vm735_vm12, %v708_v0, %v751_v1  ;;  %v713_v5 = vpop.f32.mrf.mxu1 }
 0x107   : > { %v645_v3 = vpop.f32.mrf.mxu0  ;;  %1296 = vmatmul.msk.f32.gmra.mxu2 %vm792_vm2, %v767_v2  ;;  %v781_v2 = vld [vmem:[%s1640_s14 + $0x40] sm:$0xff] }
 0x108   : > { %v646_v4 = vadd.f32 %v1588_v63, %v645_v3 }
 0x10a   : > { %v711_v6 = vadd.f32 %v710_v61, %v646_v4  ;;  %v780_v61 = vld [vmem:[%s1640_s14 + $0x38] sm:$0xff] }
 0x10c   : > { %v752_v7 = vmul.f32 0.1, %v711_v6  ;;  %vm736_vm13 = vcmp.ge.f32.partialorder %v711_v6, 0.0 }
 0x10e   : > { %v768_v8 = vsel %vm736_vm13, %v711_v6, %v752_v7  ;;  %v716_v12 = vpop.f32.mrf.mxu1  ;;  %v782_v6 = vld [vmem:[%s1640_s14 + $0x48] sm:$0xff] }
 0x10f   : > { %v648_v9 = vpop.f32.mrf.mxu0  ;;  %1297 = vmatmul.msk.f32.gmra.mxu2 %vm792_vm2, %v768_v8 }
 0x110   : > { %v649_v10 = vadd.f32 %v1588_v63, %v648_v9 }
 0x112   : > { %v714_v11 = vadd.f32 %v713_v5, %v649_v10  ;;  %v783_v10 = vld [vmem:[%s1640_s14 + $0x50] sm:$0xff] }
 0x114   : > { %v753_v13 = vmul.f32 0.1, %v714_v11  ;;  %vm737_vm14 = vcmp.ge.f32.partialorder %v714_v11, 0.0 }
 0x116   : > { %v769_v14 = vsel %vm737_vm14, %v714_v11, %v753_v13  ;;  %v719_v19 = vpop.f32.mrf.mxu1 }
 0x117   : > { %v651_v15 = vpop.f32.mrf.mxu0  ;;  %1298 = vmatmul.msk.f32.gmra.mxu2 %vm792_vm2, %v769_v14  ;;  %v784_v14 = vld [vmem:[%s1640_s14 + $0x58] sm:$0xff] }
 0x118   : > { %v652_v16 = vadd.f32 %v1588_v63, %v651_v15 }
 0x11a   : > { %v717_v17 = vadd.f32 %v716_v12, %v652_v16 }
 0x11c   : > { %v754_v18 = vmul.f32 0.1, %v717_v17  ;;  %vm738_vm15 = vcmp.ge.f32.partialorder %v717_v17, 0.0 }
 0x11e   : > { %v770_v21 = vsel %vm738_vm15, %v717_v17, %v754_v18  ;;  %v722_v28 = vpop.f32.mrf.mxu1  ;;  %v785_v18 = vld [vmem:[%s1640_s14 + $0x60] sm:$0xff] }
 0x11f   : > { %v654_v22 = vpop.f32.mrf.mxu0  ;;  %1299 = vmatmul.msk.f32.gmra.mxu2 %vm792_vm2, %v770_v21 }
 0x120   : > { %v655_v23 = vadd.f32 %v1588_v63, %v654_v22  ;;  %v786_v22 = vld [vmem:[%s1640_s14 + $0x68] sm:$0xff] }
 0x122   : > { %v720_v24 = vadd.f32 %v719_v19, %v655_v23 }
 0x124   : > { %v755_v25 = vmul.f32 0.1, %v720_v24  ;;  %vm739_vm0 = vcmp.ge.f32.partialorder %v720_v24, 0.0 }
 0x126   : > { %v771_v26 = vsel %vm739_vm0, %v720_v24, %v755_v25 }
 0x127   : > { %v657_v27 = vpop.f32.mrf.mxu0  ;;  %1300 = vmatmul.msk.f32.gmra.mxu2 %vm792_vm2, %v771_v26  ;;  %v787_v26 = vld [vmem:[%s1640_s14 + $0x70] sm:$0xff] }
 0x128   : > { %v658_v29 = vadd.f32 %v1588_v63, %v657_v27  ;;  %v773_v63 = vld [vmem:[%s1640_s14] sm:$0xff] }
 0x12a   : > { %v723_v30 = vadd.f32 %v722_v28, %v658_v29 }
 0x12c   : > { %v756_v31 = vmul.f32 0.1, %v723_v30  ;;  %vm740_vm1 = vcmp.ge.f32.partialorder %v723_v30, 0.0 }
 0x12e   : > { %v772_v32 = vsel %vm740_vm1, %v723_v30, %v756_v31  ;;  %v788_v30 = vld [vmem:[%s1640_s14 + $0x78] sm:$0xff] }
 0x12f   : > { %1301 = vmatmul.msk.f32.gmra.mxu2 %vm792_vm2, %v772_v32  ;;  %vm947_vm2 = vcmask 64512  }
 0x13a   : > { %v858_v34 = vpop.f32.mrf.mxu2 }
 0x13b   : > { %v906_v35 = vadd.f32 %v858_v34, %v773_v63  ;;  %v1364_v34 = vld [vmem:[%s472_s18] ss:$0 sm:$0xff] }
 0x13d   : > { %v926_v36 = vadd.f32 %v1652_v33, %v906_v35 }
 0x13f   : > { %1302 = vmatmul.msk.f32.vlgmr.msra.gmra.mxu3 %vm947_vm2, %v926_v36 }
 0x142   : > { %v861_v38 = vpop.f32.mrf.mxu2 }
 0x143   : > { %v907_v39 = vadd.f32 %v861_v38, %v774_v37 }
 0x145   : > { %v927_v40 = vadd.f32 %v1652_v33, %v907_v39 }
 0x147   : > { %1303 = vmatmul.msk.f32.gmra.mxu3 %vm947_vm2, %v927_v40 }
 0x14a   : > { %v864_v42 = vpop.f32.mrf.mxu2 }
 0x14b   : > { %v908_v43 = vadd.f32 %v864_v42, %v775_v41 }
 0x14d   : > { %v928_v44 = vadd.f32 %v1652_v33, %v908_v43 }
 0x14f   : > { %1304 = vmatmul.msk.f32.gmra.mxu3 %vm947_vm2, %v928_v44 }
 0x152   : > { %v867_v46 = vpop.f32.mrf.mxu2 }
 0x153   : > { %v909_v47 = vadd.f32 %v867_v46, %v776_v45 }
 0x155   : > { %v929_v48 = vadd.f32 %v1652_v33, %v909_v47 }
 0x157   : > { %1305 = vmatmul.msk.f32.gmra.mxu3 %vm947_vm2, %v929_v48 }
 0x15a   : > { %v870_v50 = vpop.f32.mrf.mxu2 }
 0x15b   : > { %v910_v51 = vadd.f32 %v870_v50, %v777_v49 }
 0x15d   : > { %v930_v52 = vadd.f32 %v1652_v33, %v910_v51 }
 0x15f   : > { %1306 = vmatmul.msk.f32.gmra.mxu3 %vm947_vm2, %v930_v52 }
 0x162   : > { %v873_v54 = vpop.f32.mrf.mxu2 }
 0x163   : > { %v911_v55 = vadd.f32 %v873_v54, %v778_v53 }
 0x165   : > { %v931_v56 = vadd.f32 %v1652_v33, %v911_v55 }
 0x167   : > { %1307 = vmatmul.msk.f32.gmra.mxu3 %vm947_vm2, %v931_v56 }
 0x16a   : > { %v876_v58 = vpop.f32.mrf.mxu2 }
 0x16b   : > { %v912_v59 = vadd.f32 %v876_v58, %v779_v57 }
 0x16d   : > { %v932_v60 = vadd.f32 %v1652_v33, %v912_v59 }
 0x16f   : > { %1308 = vmatmul.msk.f32.gmra.mxu3 %vm947_vm2, %v932_v60 }
 0x172   : > { %v879_v62 = vpop.f32.mrf.mxu2 }
 0x173   : > { %v913_v0 = vadd.f32 %v879_v62, %v780_v61 }
 0x175   : > { %v933_v1 = vadd.f32 %v1652_v33, %v913_v0 }
 0x177   : > { %1309 = vmatmul.msk.f32.gmra.mxu3 %vm947_vm2, %v933_v1 }
 0x17a   : > { %v882_v3 = vpop.f32.mrf.mxu2 }
 0x17b   : > { %v914_v4 = vadd.f32 %v882_v3, %v781_v2 }
 0x17d   : > { %v934_v5 = vadd.f32 %v1652_v33, %v914_v4 }
 0x17f   : > { %1310 = vmatmul.msk.f32.gmra.mxu3 %vm947_vm2, %v934_v5 }
 0x182   : > { %v885_v7 = vpop.f32.mrf.mxu2 }
 0x183   : > { %v915_v8 = vadd.f32 %v885_v7, %v782_v6 }
 0x185   : > { %v935_v9 = vadd.f32 %v1652_v33, %v915_v8 }
 0x187   : > { %1311 = vmatmul.msk.f32.gmra.mxu3 %vm947_vm2, %v935_v9 }
 0x18a   : > { %v888_v11 = vpop.f32.mrf.mxu2 }
 0x18b   : > { %v916_v12 = vadd.f32 %v888_v11, %v783_v10 }
 0x18d   : > { %v936_v13 = vadd.f32 %v1652_v33, %v916_v12 }
 0x18f   : > { %1312 = vmatmul.msk.f32.gmra.mxu3 %vm947_vm2, %v936_v13 }
 0x192   : > { %v891_v15 = vpop.f32.mrf.mxu2 }
 0x193   : > { %v917_v16 = vadd.f32 %v891_v15, %v784_v14 }
 0x195   : > { %v937_v17 = vadd.f32 %v1652_v33, %v917_v16 }
 0x197   : > { %1313 = vmatmul.msk.f32.gmra.mxu3 %vm947_vm2, %v937_v17 }
 0x19a   : > { %v894_v19 = vpop.f32.mrf.mxu2 }
 0x19b   : > { %v918_v20 = vadd.f32 %v894_v19, %v785_v18 }
 0x19d   : > { %v938_v21 = vadd.f32 %v1652_v33, %v918_v20 }
 0x19f   : > { %1314 = vmatmul.msk.f32.gmra.mxu3 %vm947_vm2, %v938_v21 }
 0x1a2   : > { %v897_v23 = vpop.f32.mrf.mxu2 }
 0x1a3   : > { %v919_v24 = vadd.f32 %v897_v23, %v786_v22 }
 0x1a5   : > { %v939_v25 = vadd.f32 %v1652_v33, %v919_v24 }
 0x1a7   : > { %1315 = vmatmul.msk.f32.gmra.mxu3 %vm947_vm2, %v939_v25 }
 0x1aa   : > { %v900_v27 = vpop.f32.mrf.mxu2 }
 0x1ab   : > { %v920_v28 = vadd.f32 %v900_v27, %v787_v26 }
 0x1ad   : > { %v940_v29 = vadd.f32 %v1652_v33, %v920_v28 }
 0x1af   : > { %1316 = vmatmul.msk.f32.gmra.mxu3 %vm947_vm2, %v940_v29 }
 0x1b2   : > { %v903_v31 = vpop.f32.mrf.mxu2 }
 0x1b3   : > { %v921_v32 = vadd.f32 %v903_v31, %v788_v30 }
 0x1b5   : > { %v941_v63 = vadd.f32 %v1652_v33, %v921_v32 }
 0x1b7   : > { %1317 = vmatmul.msk.f32.gmra.mxu3 %vm947_vm2, %v941_v63 }
 0x1c2   : > { %v1013_v35 = vpop.f32.mrf.mxu3 }
 0x1c3   : > { %v1014_v33 = vadd.f32 %v1364_v34, %v1013_v35 }
 0x1c5   : > { %1062 = vst.msk [vmem:[%s1711_s24] sm:$0xff] %vm1061_vm3, %v1014_v33 }
 0x1ca   : > { %v1016_v36 = vpop.f32.mrf.mxu3 }
 0x1cb   : > { %v1017_v37 = vadd.f32 %v1364_v34, %v1016_v36 }
 0x1cd   : > { %1063 = vst.msk [vmem:[%s1711_s24 + $0x8] sm:$0xff] %vm1061_vm3, %v1017_v37 }
 0x1d2   : > { %v1019_v38 = vpop.f32.mrf.mxu3 }
 0x1d3   : > { %v1020_v39 = vadd.f32 %v1364_v34, %v1019_v38 }
 0x1d5   : > { %1064 = vst.msk [vmem:[%s1711_s24 + $0x10] sm:$0xff] %vm1061_vm3, %v1020_v39 }
 0x1da   : > { %v1022_v40 = vpop.f32.mrf.mxu3 }
 0x1db   : > { %v1023_v41 = vadd.f32 %v1364_v34, %v1022_v40 }
 0x1dd   : > { %1065 = vst.msk [vmem:[%s1711_s24 + $0x18] sm:$0xff] %vm1061_vm3, %v1023_v41 }
 0x1e2   : > { %v1025_v42 = vpop.f32.mrf.mxu3 }
 0x1e3   : > { %v1026_v43 = vadd.f32 %v1364_v34, %v1025_v42 }
 0x1e5   : > { %1066 = vst.msk [vmem:[%s1711_s24 + $0x20] sm:$0xff] %vm1061_vm3, %v1026_v43 }
 0x1ea   : > { %v1028_v44 = vpop.f32.mrf.mxu3 }
 0x1eb   : > { %v1029_v45 = vadd.f32 %v1364_v34, %v1028_v44 }
 0x1ed   : > { %1067 = vst.msk [vmem:[%s1711_s24 + $0x28] sm:$0xff] %vm1061_vm3, %v1029_v45 }
 0x1f2   : > { %v1031_v46 = vpop.f32.mrf.mxu3 }
 0x1f3   : > { %v1032_v47 = vadd.f32 %v1364_v34, %v1031_v46 }
 0x1f5   : > { %1068 = vst.msk [vmem:[%s1711_s24 + $0x30] sm:$0xff] %vm1061_vm3, %v1032_v47 }
 0x1fa   : > { %v1034_v48 = vpop.f32.mrf.mxu3 }
 0x1fb   : > { %v1035_v49 = vadd.f32 %v1364_v34, %v1034_v48 }
 0x1fd   : > { %1069 = vst.msk [vmem:[%s1711_s24 + $0x38] sm:$0xff] %vm1061_vm3, %v1035_v49 }
 0x202   : > { %v1037_v50 = vpop.f32.mrf.mxu3 }
 0x203   : > { %v1038_v51 = vadd.f32 %v1364_v34, %v1037_v50 }
 0x205   : > { %1070 = vst.msk [vmem:[%s1711_s24 + $0x40] sm:$0xff] %vm1061_vm3, %v1038_v51 }
 0x20a   : > { %v1040_v52 = vpop.f32.mrf.mxu3 }
 0x20b   : > { %v1041_v53 = vadd.f32 %v1364_v34, %v1040_v52 }
 0x20d   : > { %1071 = vst.msk [vmem:[%s1711_s24 + $0x48] sm:$0xff] %vm1061_vm3, %v1041_v53 }
 0x212   : > { %v1043_v54 = vpop.f32.mrf.mxu3 }
 0x213   : > { %v1044_v55 = vadd.f32 %v1364_v34, %v1043_v54 }
 0x215   : > { %1072 = vst.msk [vmem:[%s1711_s24 + $0x50] sm:$0xff] %vm1061_vm3, %v1044_v55 }
 0x21a   : > { %v1046_v56 = vpop.f32.mrf.mxu3 }
 0x21b   : > { %v1047_v57 = vadd.f32 %v1364_v34, %v1046_v56 }
 0x21d   : > { %1073 = vst.msk [vmem:[%s1711_s24 + $0x58] sm:$0xff] %vm1061_vm3, %v1047_v57 }
 0x222   : > { %v1049_v58 = vpop.f32.mrf.mxu3 }
 0x223   : > { %v1050_v59 = vadd.f32 %v1364_v34, %v1049_v58 }
 0x225   : > { %1074 = vst.msk [vmem:[%s1711_s24 + $0x60] sm:$0xff] %vm1061_vm3, %v1050_v59 }
 0x22a   : > { %v1052_v60 = vpop.f32.mrf.mxu3 }
 0x22b   : > { %v1053_v61 = vadd.f32 %v1364_v34, %v1052_v60 }
 0x22d   : > { %1075 = vst.msk [vmem:[%s1711_s24 + $0x68] sm:$0xff] %vm1061_vm3, %v1053_v61 }
 0x232   : > { %v1055_v62 = vpop.f32.mrf.mxu3 }
 0x233   : > { %v1056_v0 = vadd.f32 %v1364_v34, %v1055_v62 }
 0x235   : > { %1076 = vst.msk [vmem:[%s1711_s24 + $0x70] sm:$0xff] %vm1061_vm3, %v1056_v0 }
 0x23a   : > { %v1058_v1 = vpop.f32.mrf.mxu3 }
 0x23b   : > { %v1059_v2 = vadd.f32 %v1364_v34, %v1058_v1 }
 0x23d   : > { %1077 = vst.msk [vmem:[%s1711_s24 + $0x78] sm:$0xff] %vm1061_vm3, %v1059_v2 }
 0x23e PF: > { %s18_s9 = sadd.s32 1, %s1403_s9   ;;  %s1769_s27 = smov %s1395_s29 }
 0x23f   : > { %p15_p7 = scmp.ge.s32.totalorder %s18_s9, 6   ;;  %s1770_s28 = smov %s1399_s30 }
 0x240   : > { %s1771_s29 = smov %s1774_s10  ;;  %s1772_s30 = smov %s1778_s11 }
 0x241   :  { %17 = sbr.rel (!%p15_p7) target bundleno = 3 (0x3), region = 103 }

// kernel: main_encoder.24
= control target key start
LH: loop header
LB: loop body
LE: loop exit
PB: predicated region body
PF: predicated region fallthrough
CT: control target
= control target key end

     0   :  { %s722_s12 = smov 0   ;;  %s724_s13 = smov 0   ;;  %s893_s0 = inlined_call_operand.vmem [shape: f32[2,256,72], index: 0, kind: input, shape index: {}]   ;;  %s894_s1 = inlined_call_operand.vmem [shape: f32[2,72,8], index: 1, kind: input, shape index: {}]   ;;  %s895_s2 = inlined_call_operand.vmem [shape: f32[2,1,8], index: 2, kind: input, shape index: {}]   ;;  %s896_s3 = inlined_call_operand.vmem [shape: f32[2,256,8], index: 3, kind: output, shape index: {}]  }
   0x1   :  { %s726_s14 = smov 0   ;;  %s728_s15 = smov 0  }
   0x2   :  { %s730_s16 = smov 0  }
   0x3 LB: > { %s22_s17 = sadd.s32 1, %s692_s14  ;;  %s25_s18 = sadd.s32 1, %s696_s15  ;;  %s700_s16 = sphi %s730_s16, %s13_s16   ;;  %s696_s15 = sphi %s728_s15, %s900_s15   ;;  %s692_s14 = sphi %s726_s14, %s899_s14   ;;  %s688_s13 = sphi %s724_s13, %s898_s13   ;;  %s684_s12 = sphi %s722_s12, %s897_s12  }
   0x4   : > { %p23_p0 = scmp.ge.s32.totalorder %s22_s17, 2  ;;  %p567_p1 = scmp.ge.s32.totalorder %s700_s16, 1 }
   0x5   : > { %p176_p2 = scmp.lt.s32.totalorder %s700_s16, 5 }
   0x6   : > { %s902_s17 = smov (%p23_p0, %s22_s17), 0  ;;  %s904_s18 = smov (!%p23_p0, %s25_s18), %s696_s15 }
   0x7   : > { %p177_p3 = pnand %p567_p1, %p176_p2  ;;  %p27_p4 = scmp.ge.s32.totalorder %s904_s18, 2 }
   0x8   : > { %p217_p5 = scmp.lt.s32.totalorder (!%p177_p3), %s688_s13, 1  ;;  %s568_s19 = sshll.u32 (!%p177_p3), %s684_s12, 4 }
   0x9   : > { %s906_s18 = smov (%p27_p4, %s904_s18), 0  ;;  %180 = sbr.rel (%p177_p3) target bundleno = 199 (0xc7), region = 32 }
   0xa   : > { %p219_p6 = scmp.lt.s32.totalorder (!%p177_p3), %s568_s19, 31 }
   0xe   : > { %s908_s13 = smov (!%p217_p5, %s688_s13), 1  ;;  %s910_s19 = smov (!%p219_p6, %s568_s19), 31  ;;  %vm273_vm0 = vcmask 588800   ;;  %vm435_vm1 = vcmask 64512  }
   0xf   : > { %s620_s20 = smul.u32 72, %s908_s13  ;;  %s233_s23 = scalar_lea.vmem %s895_s2, %s908_s13 }
  0x10   : > { %s569_s27 = sshll.u32 %s908_s13, 5  ;;  %v821_v25 = vld [vmem:[%s233_s23] ss:$0 sm:$0xff] }
  0x11   : > { %s762_s26 = scalar_lea.vmem %s894_s1, %s620_s20  ;;  %s769_s28 = sadd.s32 %s569_s27, %s910_s19 }
  0x12   : > { %v268_v0 = vld [vmem:[%s762_s26 + $0x40] sm:$0xff]  ;;  %v267_v1 = vld [vmem:[%s762_s26 + $0x38] sm:$0xff]  ;;  %v266_v2 = vld [vmem:[%s762_s26 + $0x30] sm:$0xff]  ;;  %s570_s29 = sshll.u32 %s769_s28, 3 }
  0x13   : > { %594 = vmatpush.msra.mxu2 %v268_v0  ;;  %595 = vmatpush.msra.mxu3 %v268_v0  ;;  %v265_v3 = vld [vmem:[%s762_s26 + $0x28] sm:$0xff]  ;;  %v264_v4 = vld [vmem:[%s762_s26 + $0x20] sm:$0xff]  ;;  %v263_v5 = vld [vmem:[%s762_s26 + $0x18] sm:$0xff]  ;;  %s780_s5 = scalar_lea.vmem %s893_s0, %s570_s29  ;;  %s830_s10 = scalar_lea.vmem %s896_s3, %s570_s29 }
  0x14   : > { %329 = vmatpush.msra.mxu0 %v268_v0  ;;  %593 = vmatpush.msra.mxu1 %v268_v0  ;;  %v262_v6 = vld [vmem:[%s762_s26 + $0x10] sm:$0xff]  ;;  %v261_v7 = vld [vmem:[%s762_s26 + $0x8] sm:$0xff]  ;;  %v260_v8 = vld [vmem:[%s762_s26] sm:$0xff] }
  0x15   : > { %597 = vmatpush.msra.mxu2 %v267_v1  ;;  %598 = vmatpush.msra.mxu3 %v267_v1  ;;  %v252_v9 = vld [vmem:[%s780_s5 + $0x40] sm:$0xff]  ;;  %v253_v13 = vld [vmem:[%s780_s5 + $0x48] sm:$0xff]  ;;  %v254_v17 = vld [vmem:[%s780_s5 + $0x50] sm:$0xff] }
  0x16   : > { %330 = vmatpush.msra.mxu0 %v267_v1  ;;  %596 = vmatpush.msra.mxu1 %v267_v1  ;;  %v256_v10 = vld [vmem:[%s780_s5 + $0x60] sm:$0xff]  ;;  %v257_v14 = vld [vmem:[%s780_s5 + $0x68] sm:$0xff]  ;;  %v258_v18 = vld [vmem:[%s780_s5 + $0x70] sm:$0xff] }
  0x17   : > { %600 = vmatpush.msra.mxu2 %v266_v2  ;;  %601 = vmatpush.msra.mxu3 %v266_v2  ;;  %v244_v11 = vld [vmem:[%s780_s5] sm:$0xff]  ;;  %v245_v15 = vld [vmem:[%s780_s5 + $0x8] sm:$0xff]  ;;  %v246_v19 = vld [vmem:[%s780_s5 + $0x10] sm:$0xff] }
  0x18   : > { %331 = vmatpush.msra.mxu0 %v266_v2  ;;  %599 = vmatpush.msra.mxu1 %v266_v2  ;;  %v248_v12 = vld [vmem:[%s780_s5 + $0x20] sm:$0xff]  ;;  %v249_v16 = vld [vmem:[%s780_s5 + $0x28] sm:$0xff]  ;;  %v250_v20 = vld [vmem:[%s780_s5 + $0x30] sm:$0xff] }
  0x19   : > { %603 = vmatpush.msra.mxu2 %v265_v3  ;;  %604 = vmatpush.msra.mxu3 %v265_v3  ;;  %v255_v21 = vld [vmem:[%s780_s5 + $0x58] sm:$0xff] }
  0x1a   : > { %332 = vmatpush.msra.mxu0 %v265_v3  ;;  %602 = vmatpush.msra.mxu1 %v265_v3  ;;  %v259_v22 = vld [vmem:[%s780_s5 + $0x78] sm:$0xff] }
  0x1b   : > { %606 = vmatpush.msra.mxu2 %v264_v4  ;;  %607 = vmatpush.msra.mxu3 %v264_v4  ;;  %v247_v23 = vld [vmem:[%s780_s5 + $0x18] sm:$0xff] }
  0x1c   : > { %333 = vmatpush.msra.mxu0 %v264_v4  ;;  %605 = vmatpush.msra.mxu1 %v264_v4  ;;  %v251_v24 = vld [vmem:[%s780_s5 + $0x38] sm:$0xff] }
  0x1d   : > { %609 = vmatpush.msra.mxu2 %v263_v5  ;;  %610 = vmatpush.msra.mxu3 %v263_v5 }
  0x1e   : > { %334 = vmatpush.msra.mxu0 %v263_v5  ;;  %608 = vmatpush.msra.mxu1 %v263_v5 }
  0x1f   : > { %612 = vmatpush.msra.mxu2 %v262_v6  ;;  %613 = vmatpush.msra.mxu3 %v262_v6 }
  0x20   : > { %335 = vmatpush.msra.mxu0 %v262_v6  ;;  %611 = vmatpush.msra.mxu1 %v262_v6 }
  0x21   : > { %615 = vmatpush.msra.mxu2 %v261_v7  ;;  %616 = vmatpush.msra.mxu3 %v261_v7 }
  0x22   : > { %336 = vmatpush.msra.mxu0 %v261_v7  ;;  %614 = vmatpush.msra.mxu1 %v261_v7 }
  0x23   : > { %618 = vmatpush.msra.mxu2 %v260_v8  ;;  %619 = vmatpush.msra.mxu3 %v260_v8 }
  0x24   : > { %583 = vmatmul.msk.f32.vlgmr.msra.gmra.mxu2 %vm273_vm0, %v252_v9  ;;  %587 = vmatmul.msk.f32.vlgmr.msra.gmra.mxu3 %vm273_vm0, %v256_v10 }
  0x25   : > { %337 = vmatpush.msra.mxu0 %v260_v8  ;;  %617 = vmatpush.msra.mxu1 %v260_v8 }
  0x26   : > { %575 = vmatmul.msk.f32.vlgmr.msra.gmra.mxu0 %vm273_vm0, %v244_v11  ;;  %579 = vmatmul.msk.f32.vlgmr.msra.gmra.mxu1 %vm273_vm0, %v248_v12 }
  0x2c   : > { %584 = vmatmul.msk.f32.gmra.mxu2 %vm273_vm0, %v253_v13  ;;  %588 = vmatmul.msk.f32.gmra.mxu3 %vm273_vm0, %v257_v14 }
  0x2e   : > { %576 = vmatmul.msk.f32.gmra.mxu0 %vm273_vm0, %v245_v15  ;;  %580 = vmatmul.msk.f32.gmra.mxu1 %vm273_vm0, %v249_v16 }
  0x34   : > { %585 = vmatmul.msk.f32.gmra.mxu2 %vm273_vm0, %v254_v17  ;;  %589 = vmatmul.msk.f32.gmra.mxu3 %vm273_vm0, %v258_v18 }
  0x36   : > { %577 = vmatmul.msk.f32.gmra.mxu0 %vm273_vm0, %v246_v19  ;;  %581 = vmatmul.msk.f32.gmra.mxu1 %vm273_vm0, %v250_v20 }
  0x3c   : > { %586 = vmatmul.msk.f32.gmra.mxu2 %vm273_vm0, %v255_v21  ;;  %590 = vmatmul.msk.f32.gmra.mxu3 %vm273_vm0, %v259_v22 }
  0x3e   : > { %578 = vmatmul.msk.f32.gmra.mxu0 %vm273_vm0, %v247_v23  ;;  %582 = vmatmul.msk.f32.gmra.mxu1 %vm273_vm0, %v251_v24 }
  0xa3   : > { %v339_v26 = vpop.f32.mrf.mxu0  ;;  %v351_v27 = vpop.f32.mrf.mxu1 }
  0xa4   : > { %v340_v28 = vadd.f32 %v821_v25, %v339_v26  ;;  %v352_v29 = vadd.f32 %v821_v25, %v351_v27 }
  0xa6   : > { %vm387_vm2 = vcmp.ge.f32.partialorder %v340_v28, 0.0  ;;  %v403_v30 = vmul.f32 0.1, %v340_v28  ;;  %vm391_vm3 = vcmp.ge.f32.partialorder %v352_v29, 0.0  ;;  %v407_v31 = vmul.f32 0.1, %v352_v29 }
  0xa7   : > { %v363_v32 = vpop.f32.mrf.mxu2  ;;  %v375_v33 = vpop.f32.mrf.mxu3 }
  0xa8   : > { %v419_v34 = vsel %vm387_vm2, %v340_v28, %v403_v30  ;;  %v423_v35 = vsel %vm391_vm3, %v352_v29, %v407_v31  ;;  %v364_v36 = vadd.f32 %v821_v25, %v363_v32  ;;  %v376_v37 = vadd.f32 %v821_v25, %v375_v33 }
  0xa9   : > { %436 = vst.msk [vmem:[%s830_s10] sm:$0xff] %vm435_vm1, %v419_v34 }
  0xaa   : > { %440 = vst.msk [vmem:[%s830_s10 + $0x20] sm:$0xff] %vm435_vm1, %v423_v35  ;;  %vm395_vm4 = vcmp.ge.f32.partialorder %v364_v36, 0.0  ;;  %v411_v38 = vmul.f32 0.1, %v364_v36  ;;  %vm399_vm5 = vcmp.ge.f32.partialorder %v376_v37, 0.0 }
  0xab   : > { %v415_v39 = vmul.f32 0.1, %v376_v37  ;;  %v342_v40 = vpop.f32.mrf.mxu0  ;;  %v354_v41 = vpop.f32.mrf.mxu1 }
  0xac   : > { %v427_v42 = vsel %vm395_vm4, %v364_v36, %v411_v38  ;;  %v343_v43 = vadd.f32 %v821_v25, %v342_v40  ;;  %v355_v44 = vadd.f32 %v821_v25, %v354_v41 }
  0xad   : > { %444 = vst.msk [vmem:[%s830_s10 + $0x40] sm:$0xff] %vm435_vm1, %v427_v42  ;;  %v431_v45 = vsel %vm399_vm5, %v376_v37, %v415_v39 }
  0xae   : > { %448 = vst.msk [vmem:[%s830_s10 + $0x60] sm:$0xff] %vm435_vm1, %v431_v45  ;;  %vm388_vm6 = vcmp.ge.f32.partialorder %v343_v43, 0.0  ;;  %v404_v46 = vmul.f32 0.1, %v343_v43  ;;  %vm392_vm7 = vcmp.ge.f32.partialorder %v355_v44, 0.0 }
  0xaf   : > { %v408_v47 = vmul.f32 0.1, %v355_v44  ;;  %v366_v48 = vpop.f32.mrf.mxu2  ;;  %v378_v49 = vpop.f32.mrf.mxu3 }
  0xb0   : > { %v420_v50 = vsel %vm388_vm6, %v343_v43, %v404_v46  ;;  %v367_v51 = vadd.f32 %v821_v25, %v366_v48  ;;  %v379_v52 = vadd.f32 %v821_v25, %v378_v49 }
  0xb1   : > { %437 = vst.msk [vmem:[%s830_s10 + $0x8] sm:$0xff] %vm435_vm1, %v420_v50  ;;  %v424_v53 = vsel %vm392_vm7, %v355_v44, %v408_v47 }
  0xb2   : > { %441 = vst.msk [vmem:[%s830_s10 + $0x28] sm:$0xff] %vm435_vm1, %v424_v53  ;;  %vm396_vm8 = vcmp.ge.f32.partialorder %v367_v51, 0.0  ;;  %v412_v54 = vmul.f32 0.1, %v367_v51  ;;  %vm400_vm9 = vcmp.ge.f32.partialorder %v379_v52, 0.0 }
  0xb3   : > { %v416_v55 = vmul.f32 0.1, %v379_v52  ;;  %v345_v56 = vpop.f32.mrf.mxu0  ;;  %v357_v57 = vpop.f32.mrf.mxu1 }
  0xb4   : > { %v428_v58 = vsel %vm396_vm8, %v367_v51, %v412_v54  ;;  %v346_v59 = vadd.f32 %v821_v25, %v345_v56  ;;  %v358_v60 = vadd.f32 %v821_v25, %v357_v57 }
  0xb5   : > { %445 = vst.msk [vmem:[%s830_s10 + $0x48] sm:$0xff] %vm435_vm1, %v428_v58  ;;  %v432_v61 = vsel %vm400_vm9, %v379_v52, %v416_v55 }
  0xb6   : > { %449 = vst.msk [vmem:[%s830_s10 + $0x68] sm:$0xff] %vm435_vm1, %v432_v61  ;;  %vm389_vm10 = vcmp.ge.f32.partialorder %v346_v59, 0.0  ;;  %v405_v62 = vmul.f32 0.1, %v346_v59  ;;  %vm393_vm11 = vcmp.ge.f32.partialorder %v358_v60, 0.0 }
  0xb7   : > { %v409_v63 = vmul.f32 0.1, %v358_v60  ;;  %v369_v0 = vpop.f32.mrf.mxu2  ;;  %v381_v1 = vpop.f32.mrf.mxu3 }
  0xb8   : > { %v421_v2 = vsel %vm389_vm10, %v346_v59, %v405_v62  ;;  %v370_v3 = vadd.f32 %v821_v25, %v369_v0  ;;  %v382_v4 = vadd.f32 %v821_v25, %v381_v1 }
  0xb9   : > { %438 = vst.msk [vmem:[%s830_s10 + $0x10] sm:$0xff] %vm435_vm1, %v421_v2  ;;  %v425_v5 = vsel %vm393_vm11, %v358_v60, %v409_v63 }
  0xba   : > { %442 = vst.msk [vmem:[%s830_s10 + $0x30] sm:$0xff] %vm435_vm1, %v425_v5  ;;  %vm397_vm12 = vcmp.ge.f32.partialorder %v370_v3, 0.0  ;;  %v413_v6 = vmul.f32 0.1, %v370_v3  ;;  %vm401_vm13 = vcmp.ge.f32.partialorder %v382_v4, 0.0 }
  0xbb   : > { %v417_v7 = vmul.f32 0.1, %v382_v4  ;;  %v348_v8 = vpop.f32.mrf.mxu0  ;;  %v360_v9 = vpop.f32.mrf.mxu1 }
  0xbc   : > { %v429_v10 = vsel %vm397_vm12, %v370_v3, %v413_v6  ;;  %v349_v11 = vadd.f32 %v821_v25, %v348_v8  ;;  %v361_v12 = vadd.f32 %v821_v25, %v360_v9 }
  0xbd   : > { %446 = vst.msk [vmem:[%s830_s10 + $0x50] sm:$0xff] %vm435_vm1, %v429_v10  ;;  %v433_v13 = vsel %vm401_vm13, %v382_v4, %v417_v7 }
  0xbe   : > { %450 = vst.msk [vmem:[%s830_s10 + $0x70] sm:$0xff] %vm435_vm1, %v433_v13  ;;  %vm390_vm14 = vcmp.ge.f32.partialorder %v349_v11, 0.0  ;;  %v406_v14 = vmul.f32 0.1, %v349_v11  ;;  %vm394_vm15 = vcmp.ge.f32.partialorder %v361_v12, 0.0 }
  0xbf   : > { %v410_v15 = vmul.f32 0.1, %v361_v12  ;;  %v372_v16 = vpop.f32.mrf.mxu2  ;;  %v384_v17 = vpop.f32.mrf.mxu3 }
  0xc0   : > { %v422_v18 = vsel %vm390_vm14, %v349_v11, %v406_v14  ;;  %v373_v19 = vadd.f32 %v821_v25, %v372_v16  ;;  %v385_v20 = vadd.f32 %v821_v25, %v384_v17 }
  0xc1   : > { %439 = vst.msk [vmem:[%s830_s10 + $0x18] sm:$0xff] %vm435_vm1, %v422_v18  ;;  %v426_v21 = vsel %vm394_vm15, %v361_v12, %v410_v15 }
  0xc2   : > { %443 = vst.msk [vmem:[%s830_s10 + $0x38] sm:$0xff] %vm435_vm1, %v426_v21  ;;  %vm398_vm0 = vcmp.ge.f32.partialorder %v373_v19, 0.0  ;;  %v414_v22 = vmul.f32 0.1, %v373_v19  ;;  %vm402_vm2 = vcmp.ge.f32.partialorder %v385_v20, 0.0 }
  0xc3   : > { %v418_v23 = vmul.f32 0.1, %v385_v20 }
  0xc4   : > { %v430_v24 = vsel %vm398_vm0, %v373_v19, %v414_v22 }
  0xc5   : > { %447 = vst.msk [vmem:[%s830_s10 + $0x58] sm:$0xff] %vm435_vm1, %v430_v24  ;;  %v434_v26 = vsel %vm402_vm2, %v385_v20, %v418_v23 }
  0xc6   : > { %451 = vst.msk [vmem:[%s830_s10 + $0x78] sm:$0xff] %vm435_vm1, %v434_v26 }
  0xc7 PF: > { %s13_s16 = sadd.s32 1, %s700_s16   ;;  %s897_s12 = smov %s692_s14 }
  0xc8   : > { %p10_p7 = scmp.ge.s32.totalorder %s13_s16, 6   ;;  %s898_s13 = smov %s696_s15 }
  0xc9   : > { %s899_s14 = smov %s902_s17  ;;  %s900_s15 = smov %s906_s18 }
  0xca   :  { %12 = sbr.rel (!%p10_p7) target bundleno = 3 (0x3), region = 68 }

// kernel: main_encoder.25
= control target key start
LH: loop header
LB: loop body
LE: loop exit
PB: predicated region body
PF: predicated region fallthrough
CT: control target
= control target key end

     0   :  { %s619_s12 = smov 0   ;;  %s621_s13 = smov 0   ;;  %s721_s0 = inlined_call_operand.vmem [shape: f32[1,256,24], index: 0, kind: input, shape index: {}]   ;;  %s722_s1 = inlined_call_operand.vmem [shape: f32[1,24,8], index: 1, kind: input, shape index: {}]   ;;  %s723_s2 = inlined_call_operand.vmem [shape: f32[1,1,8], index: 2, kind: input, shape index: {}]   ;;  %s724_s3 = inlined_call_operand.vmem [shape: f32[1,256,8], index: 3, kind: output, shape index: {}]  }
   0x1   :  { %s623_s14 = smov 0  }
   0x2 LB: > { %s22_s15 = sadd.s32 1, %s593_s13  ;;  %p518_p0 = scmp.ge.s32.totalorder %s597_s14, 1  ;;  %s597_s14 = sphi %s623_s14, %s13_s14   ;;  %s593_s13 = sphi %s621_s13, %s726_s13   ;;  %s589_s12 = sphi %s619_s12, %s725_s12  }
   0x3   : > { %p23_p1 = scmp.ge.s32.totalorder %s22_s15, 2  ;;  %p176_p2 = scmp.lt.s32.totalorder %s597_s14, 3 }
   0x5   : > { %s728_s15 = smov (%p23_p1, %s22_s15), 0  ;;  %p177_p3 = pnand %p518_p0, %p176_p2 }
   0x6   : > { %s519_s20 = sshll.u32 (!%p177_p3), %s589_s12, 4 }
   0x7   : > { %180 = sbr.rel (%p177_p3) target bundleno = 179 (0xb3), region = 32  ;;  %p219_p4 = scmp.lt.s32.totalorder (!%p177_p3), %s519_s20, 31 }
   0xc   : > { %v262_v0 = vld [vmem:[%s722_s1 + $0x10] sm:$0xff]  ;;  %v261_v1 = vld [vmem:[%s722_s1 + $0x8] sm:$0xff]  ;;  %v260_v2 = vld [vmem:[%s722_s1] sm:$0xff]  ;;  %s730_s20 = smov (!%p219_p4, %s519_s20), 31  ;;  %vm267_vm0 = vcmask 195584   ;;  %vm381_vm1 = vcmask 64512  }
   0xd   : > { %542 = vmatpush.msra.mxu2 %v262_v0  ;;  %543 = vmatpush.msra.mxu3 %v262_v0  ;;  %s520_s23 = sshll.u32 %s730_s20, 3  ;;  %v574_v19 = vld [vmem:[%s723_s2] ss:$0 sm:$0xff] }
   0xe   : > { %329 = vmatpush.msra.mxu0 %v262_v0  ;;  %541 = vmatpush.msra.mxu1 %v262_v0  ;;  %s224_s26 = scalar_lea.vmem %s721_s0, %s520_s23  ;;  %s678_s4 = scalar_lea.vmem %s724_s3, %s520_s23 }
   0xf   : > { %545 = vmatpush.msra.mxu2 %v261_v1  ;;  %546 = vmatpush.msra.mxu3 %v261_v1  ;;  %v252_v3 = vld [vmem:[%s224_s26 + $0x40] sm:$0xff]  ;;  %v253_v7 = vld [vmem:[%s224_s26 + $0x48] sm:$0xff]  ;;  %v254_v11 = vld [vmem:[%s224_s26 + $0x50] sm:$0xff] }
  0x10   : > { %330 = vmatpush.msra.mxu0 %v261_v1  ;;  %544 = vmatpush.msra.mxu1 %v261_v1  ;;  %v256_v4 = vld [vmem:[%s224_s26 + $0x60] sm:$0xff]  ;;  %v257_v8 = vld [vmem:[%s224_s26 + $0x68] sm:$0xff]  ;;  %v258_v12 = vld [vmem:[%s224_s26 + $0x70] sm:$0xff] }
  0x11   : > { %548 = vmatpush.msra.mxu2 %v260_v2  ;;  %549 = vmatpush.msra.mxu3 %v260_v2  ;;  %v244_v5 = vld [vmem:[%s224_s26] sm:$0xff]  ;;  %v245_v9 = vld [vmem:[%s224_s26 + $0x8] sm:$0xff]  ;;  %v246_v13 = vld [vmem:[%s224_s26 + $0x10] sm:$0xff] }
  0x12   : > { %331 = vmatpush.msra.mxu0 %v260_v2  ;;  %547 = vmatpush.msra.mxu1 %v260_v2  ;;  %v248_v6 = vld [vmem:[%s224_s26 + $0x20] sm:$0xff]  ;;  %v249_v10 = vld [vmem:[%s224_s26 + $0x28] sm:$0xff]  ;;  %v250_v14 = vld [vmem:[%s224_s26 + $0x30] sm:$0xff] }
  0x13   : > { %531 = vmatmul.msk.f32.vlgmr.msra.gmra.mxu2 %vm267_vm0, %v252_v3  ;;  %535 = vmatmul.msk.f32.vlgmr.msra.gmra.mxu3 %vm267_vm0, %v256_v4  ;;  %v255_v15 = vld [vmem:[%s224_s26 + $0x58] sm:$0xff] }
  0x14   : > { %523 = vmatmul.msk.f32.vlgmr.msra.gmra.mxu0 %vm267_vm0, %v244_v5  ;;  %527 = vmatmul.msk.f32.vlgmr.msra.gmra.mxu1 %vm267_vm0, %v248_v6  ;;  %v259_v16 = vld [vmem:[%s224_s26 + $0x78] sm:$0xff] }
  0x15   : > { %v247_v17 = vld [vmem:[%s224_s26 + $0x18] sm:$0xff] }
  0x16   : > { %v251_v18 = vld [vmem:[%s224_s26 + $0x38] sm:$0xff] }
  0x1b   : > { %532 = vmatmul.msk.f32.gmra.mxu2 %vm267_vm0, %v253_v7  ;;  %536 = vmatmul.msk.f32.gmra.mxu3 %vm267_vm0, %v257_v8 }
  0x1c   : > { %524 = vmatmul.msk.f32.gmra.mxu0 %vm267_vm0, %v245_v9  ;;  %528 = vmatmul.msk.f32.gmra.mxu1 %vm267_vm0, %v249_v10 }
  0x23   : > { %533 = vmatmul.msk.f32.gmra.mxu2 %vm267_vm0, %v254_v11  ;;  %537 = vmatmul.msk.f32.gmra.mxu3 %vm267_vm0, %v258_v12 }
  0x24   : > { %525 = vmatmul.msk.f32.gmra.mxu0 %vm267_vm0, %v246_v13  ;;  %529 = vmatmul.msk.f32.gmra.mxu1 %vm267_vm0, %v250_v14 }
  0x2b   : > { %534 = vmatmul.msk.f32.gmra.mxu2 %vm267_vm0, %v255_v15  ;;  %538 = vmatmul.msk.f32.gmra.mxu3 %vm267_vm0, %v259_v16 }
  0x2c   : > { %526 = vmatmul.msk.f32.gmra.mxu0 %vm267_vm0, %v247_v17  ;;  %530 = vmatmul.msk.f32.gmra.mxu1 %vm267_vm0, %v251_v18 }
  0x91   : > { %v333_v20 = vpop.f32.mrf.mxu0  ;;  %v345_v21 = vpop.f32.mrf.mxu1 }
  0x92   : > { %v334_v22 = vadd.f32 %v574_v19, %v333_v20  ;;  %v346_v23 = vadd.f32 %v574_v19, %v345_v21 }
  0x94   : > { %382 = vst.msk [vmem:[%s678_s4] sm:$0xff] %vm381_vm1, %v334_v22 }
  0x95   : > { %386 = vst.msk [vmem:[%s678_s4 + $0x20] sm:$0xff] %vm381_vm1, %v346_v23 }
  0x96   : > { %v357_v24 = vpop.f32.mrf.mxu2  ;;  %v369_v25 = vpop.f32.mrf.mxu3 }
  0x97   : > { %v358_v26 = vadd.f32 %v574_v19, %v357_v24  ;;  %v370_v27 = vadd.f32 %v574_v19, %v369_v25 }
  0x99   : > { %390 = vst.msk [vmem:[%s678_s4 + $0x40] sm:$0xff] %vm381_vm1, %v358_v26  ;;  %v336_v28 = vpop.f32.mrf.mxu0  ;;  %v348_v29 = vpop.f32.mrf.mxu1 }
  0x9a   : > { %394 = vst.msk [vmem:[%s678_s4 + $0x60] sm:$0xff] %vm381_vm1, %v370_v27  ;;  %v337_v30 = vadd.f32 %v574_v19, %v336_v28  ;;  %v349_v31 = vadd.f32 %v574_v19, %v348_v29 }
  0x9c   : > { %383 = vst.msk [vmem:[%s678_s4 + $0x8] sm:$0xff] %vm381_vm1, %v337_v30 }
  0x9d   : > { %387 = vst.msk [vmem:[%s678_s4 + $0x28] sm:$0xff] %vm381_vm1, %v349_v31 }
  0x9e   : > { %v360_v32 = vpop.f32.mrf.mxu2  ;;  %v372_v33 = vpop.f32.mrf.mxu3 }
  0x9f   : > { %v361_v34 = vadd.f32 %v574_v19, %v360_v32  ;;  %v373_v35 = vadd.f32 %v574_v19, %v372_v33 }
  0xa1   : > { %391 = vst.msk [vmem:[%s678_s4 + $0x48] sm:$0xff] %vm381_vm1, %v361_v34  ;;  %v339_v36 = vpop.f32.mrf.mxu0  ;;  %v351_v37 = vpop.f32.mrf.mxu1 }
  0xa2   : > { %395 = vst.msk [vmem:[%s678_s4 + $0x68] sm:$0xff] %vm381_vm1, %v373_v35  ;;  %v340_v38 = vadd.f32 %v574_v19, %v339_v36  ;;  %v352_v39 = vadd.f32 %v574_v19, %v351_v37 }
  0xa4   : > { %384 = vst.msk [vmem:[%s678_s4 + $0x10] sm:$0xff] %vm381_vm1, %v340_v38 }
  0xa5   : > { %388 = vst.msk [vmem:[%s678_s4 + $0x30] sm:$0xff] %vm381_vm1, %v352_v39 }
  0xa6   : > { %v363_v40 = vpop.f32.mrf.mxu2  ;;  %v375_v41 = vpop.f32.mrf.mxu3 }
  0xa7   : > { %v364_v42 = vadd.f32 %v574_v19, %v363_v40  ;;  %v376_v43 = vadd.f32 %v574_v19, %v375_v41 }
  0xa9   : > { %392 = vst.msk [vmem:[%s678_s4 + $0x50] sm:$0xff] %vm381_vm1, %v364_v42  ;;  %v342_v44 = vpop.f32.mrf.mxu0  ;;  %v354_v45 = vpop.f32.mrf.mxu1 }
  0xaa   : > { %396 = vst.msk [vmem:[%s678_s4 + $0x70] sm:$0xff] %vm381_vm1, %v376_v43  ;;  %v343_v46 = vadd.f32 %v574_v19, %v342_v44  ;;  %v355_v47 = vadd.f32 %v574_v19, %v354_v45 }
  0xac   : > { %385 = vst.msk [vmem:[%s678_s4 + $0x18] sm:$0xff] %vm381_vm1, %v343_v46 }
  0xad   : > { %389 = vst.msk [vmem:[%s678_s4 + $0x38] sm:$0xff] %vm381_vm1, %v355_v47 }
  0xae   : > { %v366_v48 = vpop.f32.mrf.mxu2  ;;  %v378_v49 = vpop.f32.mrf.mxu3 }
  0xaf   : > { %v367_v50 = vadd.f32 %v574_v19, %v366_v48  ;;  %v379_v51 = vadd.f32 %v574_v19, %v378_v49 }
  0xb1   : > { %393 = vst.msk [vmem:[%s678_s4 + $0x58] sm:$0xff] %vm381_vm1, %v367_v50 }
  0xb2   : > { %397 = vst.msk [vmem:[%s678_s4 + $0x78] sm:$0xff] %vm381_vm1, %v379_v51 }
  0xb3 PF: > { %s13_s14 = sadd.s32 1, %s597_s14   ;;  %s725_s12 = smov %s593_s13 }
  0xb4   : > { %p10_p5 = scmp.ge.s32.totalorder %s13_s14, 4   ;;  %s726_s13 = smov %s728_s15 }
  0xb6   :  { %12 = sbr.rel (!%p10_p5) target bundleno = 2 (0x2), region = 68 }

// kernel: main_encoder.26
= control target key start
LH: loop header
LB: loop body
LE: loop exit
PB: predicated region body
PF: predicated region fallthrough
CT: control target
= control target key end

     0   :  { %vm41_vm0 = vcmask 261120   ;;  %vm132_vm2 = vcmask 64512   ;;  %s940_s1 = inlined_call_operand.vmem [shape: f32[3,32,8], index: 1, kind: input, shape index: {}]   ;;  %s941_s0 = inlined_call_operand.vmem [shape: f32[3,64,32], index: 0, kind: input, shape index: {}]   ;;  %s942_s2 = inlined_call_operand.vmem [shape: f32[3,1,8], index: 2, kind: input, shape index: {}]   ;;  %s943_s3 = inlined_call_operand.vmem [shape: f32[3,8,8], index: 3, kind: input, shape index: {}]   ;;  %s944_s4 = inlined_call_operand.vmem [shape: f32[1,8], index: 4, kind: input, shape index: {}]   ;;  %s945_s5 = inlined_call_operand.vmem [shape: f32[64,8], index: 5, kind: output, shape index: {}]  }
   0x1   :  { %v36_v0 = vld [vmem:[%s940_s1 + $0x18] sm:$0xff]  ;;  %v35_v2 = vld [vmem:[%s940_s1 + $0x10] sm:$0xff]  ;;  %v34_v4 = vld [vmem:[%s940_s1 + $0x8] sm:$0xff] }
   0x2   :  { %v611_v1 = vld [vmem:[%s940_s1 + $0x38] sm:$0xff]  ;;  %78 = vmatpush.msra.mxu0 %v36_v0  ;;  %v610_v3 = vld [vmem:[%s940_s1 + $0x30] sm:$0xff]  ;;  %v609_v5 = vld [vmem:[%s940_s1 + $0x28] sm:$0xff] }
   0x3   :  { %261 = vmatpush.msra.mxu2 %v611_v1  ;;  %v33_v6 = vld [vmem:[%s940_s1] sm:$0xff]  ;;  %v26_v10 = vld [vmem:[%s941_s0 + $0x8] sm:$0xff]  ;;  %v27_v12 = vld [vmem:[%s941_s0 + $0x10] sm:$0xff] }
   0x4   :  { %79 = vmatpush.msra.mxu0 %v35_v2  ;;  %v608_v7 = vld [vmem:[%s940_s1 + $0x20] sm:$0xff]  ;;  %v601_v11 = vld [vmem:[%s941_s0 + $0x48] sm:$0xff]  ;;  %v602_v13 = vld [vmem:[%s941_s0 + $0x50] sm:$0xff] }
   0x5   :  { %262 = vmatpush.msra.mxu2 %v610_v3  ;;  %v25_v8 = vld [vmem:[%s941_s0] sm:$0xff]  ;;  %v28_v14 = vld [vmem:[%s941_s0 + $0x18] sm:$0xff]  ;;  %v30_v18 = vld [vmem:[%s941_s0 + $0x28] sm:$0xff] }
   0x6   :  { %80 = vmatpush.msra.mxu0 %v34_v4  ;;  %v600_v9 = vld [vmem:[%s941_s0 + $0x40] sm:$0xff]  ;;  %v603_v15 = vld [vmem:[%s941_s0 + $0x58] sm:$0xff]  ;;  %v605_v19 = vld [vmem:[%s941_s0 + $0x68] sm:$0xff] }
   0x7   :  { %263 = vmatpush.msra.mxu2 %v609_v5  ;;  %v29_v16 = vld [vmem:[%s941_s0 + $0x20] sm:$0xff]  ;;  %v31_v20 = vld [vmem:[%s941_s0 + $0x30] sm:$0xff]  ;;  %v32_v22 = vld [vmem:[%s941_s0 + $0x38] sm:$0xff] }
   0x8   :  { %81 = vmatpush.msra.mxu0 %v33_v6  ;;  %v604_v17 = vld [vmem:[%s941_s0 + $0x60] sm:$0xff]  ;;  %v606_v21 = vld [vmem:[%s941_s0 + $0x70] sm:$0xff]  ;;  %v607_v23 = vld [vmem:[%s941_s0 + $0x78] sm:$0xff] }
   0x9   :  { %264 = vmatpush.msra.mxu2 %v608_v7  ;;  %584 = vmatmul.msk.f32.vlgmr.msra.gmra.mxu0 %vm41_vm0, %v25_v8  ;;  %v131_v24 = vld [vmem:[%s943_s3] sm:$0xff]  ;;  %v621_v25 = vld [vmem:[%s943_s3 + $0x8] sm:$0xff]  ;;  %v641_v29 = vld [vmem:[%s940_s1 + $0x58] sm:$0xff] }
   0xa   :  { %613 = vmatmul.msk.f32.vlgmr.msra.gmra.mxu2 %vm41_vm0, %v600_v9  ;;  %172 = vmatpush.msrb.mxu0 %v131_v24  ;;  %v793_v26 = vld [vmem:[%s942_s2] ss:$0 sm:$0xff]  ;;  %v802_v31 = vld [vmem:[%s942_s2 + $0x1] ss:$0 sm:$0xff]  ;;  %v640_v40 = vld [vmem:[%s940_s1 + $0x50] sm:$0xff] }
   0xb   :  { %660 = vmatpush.msra.mxu1 %v131_v24  ;;  %355 = vmatpush.msrb.mxu2 %v621_v25  ;;  %v639_v49 = vld [vmem:[%s940_s1 + $0x48] sm:$0xff]  ;;  %v638_v58 = vld [vmem:[%s940_s1 + $0x40] sm:$0xff] }
   0xc   :  { %661 = vmatpush.msra.mxu3 %v621_v25 }
   0xd   :  { %444 = vmatpush.msrb.mxu1 %v641_v29 }
   0xf   :  { %445 = vmatpush.msrb.mxu1 %v640_v40  ;;  %v651_v40 = vld [vmem:[%s943_s3 + $0x10] sm:$0xff] }
  0x10   :  { %538 = vmatpush.msrb.mxu3 %v651_v40 }
  0x11   :  { %585 = vmatmul.msk.f32.gmra.mxu0 %vm41_vm0, %v26_v10  ;;  %446 = vmatpush.msrb.mxu1 %v639_v49 }
  0x12   :  { %614 = vmatmul.msk.f32.gmra.mxu2 %vm41_vm0, %v601_v11 }
  0x13   :  { %447 = vmatpush.msrb.mxu1 %v638_v58 }
  0x19   :  { %586 = vmatmul.msk.f32.gmra.mxu0 %vm41_vm0, %v27_v12 }
  0x1a   :  { %615 = vmatmul.msk.f32.gmra.mxu2 %vm41_vm0, %v602_v13 }
  0x21   :  { %587 = vmatmul.msk.f32.gmra.mxu0 %vm41_vm0, %v28_v14 }
  0x22   :  { %616 = vmatmul.msk.f32.gmra.mxu2 %vm41_vm0, %v603_v15 }
  0x29   :  { %588 = vmatmul.msk.f32.gmra.mxu0 %vm41_vm0, %v29_v16 }
  0x2a   :  { %617 = vmatmul.msk.f32.gmra.mxu2 %vm41_vm0, %v604_v17 }
  0x31   :  { %589 = vmatmul.msk.f32.gmra.mxu0 %vm41_vm0, %v30_v18 }
  0x32   :  { %618 = vmatmul.msk.f32.gmra.mxu2 %vm41_vm0, %v605_v19 }
  0x39   :  { %590 = vmatmul.msk.f32.gmra.mxu0 %vm41_vm0, %v31_v20 }
  0x3a   :  { %619 = vmatmul.msk.f32.gmra.mxu2 %vm41_vm0, %v606_v21 }
  0x41   :  { %591 = vmatmul.msk.f32.gmra.mxu0 %vm41_vm0, %v32_v22 }
  0x42   :  { %620 = vmatmul.msk.f32.gmra.mxu2 %vm41_vm0, %v607_v23 }
  0x86   :  { %v83_v27 = vpop.f32.mrf.mxu0 }
  0x87   :  { %v84_v28 = vadd.f32 %v793_v26, %v83_v27 }
  0x89   :  { %vm107_vm1 = vcmp.ge.f32.partialorder %v84_v28, 0.0  ;;  %v115_v30 = vmul.f32 0.1, %v84_v28 }
  0x8b   :  { %v123_v32 = vsel %vm107_vm1, %v84_v28, %v115_v30 }
  0x8c   :  { %592 = vmatmul.msk.f32.vlgmr.msrb.gmra.mxu0 %vm132_vm2, %v123_v32 }
  0x8d   :  { %v266_v33 = vpop.f32.mrf.mxu2 }
  0x8e   :  { %v267_v34 = vadd.f32 %v802_v31, %v266_v33  ;;  %v86_v35 = vpop.f32.mrf.mxu0 }
  0x8f   :  { %v87_v37 = vadd.f32 %v793_v26, %v86_v35  ;;  %v633_v35 = vld [vmem:[%s941_s0 + $0x98] sm:$0xff] }
  0x90   :  { %vm290_vm3 = vcmp.ge.f32.partialorder %v267_v34, 0.0  ;;  %v298_v36 = vmul.f32 0.1, %v267_v34 }
  0x91   :  { %v116_v38 = vmul.f32 0.1, %v87_v37  ;;  %vm108_vm4 = vcmp.ge.f32.partialorder %v87_v37, 0.0 }
  0x92   :  { %v306_v39 = vsel %vm290_vm3, %v267_v34, %v298_v36  ;;  %v630_v34 = vld [vmem:[%s941_s0 + $0x80] sm:$0xff] }
  0x93   :  { %622 = vmatmul.msk.f32.vlgmr.msrb.gmra.mxu2 %vm132_vm2, %v306_v39  ;;  %v124_v41 = vsel %vm108_vm4, %v87_v37, %v116_v38  ;;  %v634_v36 = vld [vmem:[%s941_s0 + $0xa0] sm:$0xff]  ;;  %v635_v37 = vld [vmem:[%s941_s0 + $0xa8] sm:$0xff]  ;;  %v636_v38 = vld [vmem:[%s941_s0 + $0xb0] sm:$0xff] }
  0x94   :  { %593 = vmatmul.msk.f32.gmra.mxu0 %vm132_vm2, %v124_v41  ;;  %v637_v39 = vld [vmem:[%s941_s0 + $0xb8] sm:$0xff] }
  0x95   :  { %v269_v42 = vpop.f32.mrf.mxu2 }
  0x96   :  { %v270_v43 = vadd.f32 %v802_v31, %v269_v42  ;;  %v89_v44 = vpop.f32.mrf.mxu0 }
  0x97   :  { %v90_v46 = vadd.f32 %v793_v26, %v89_v44 }
  0x98   :  { %v299_v45 = vmul.f32 0.1, %v270_v43  ;;  %vm291_vm5 = vcmp.ge.f32.partialorder %v270_v43, 0.0 }
  0x99   :  { %v117_v47 = vmul.f32 0.1, %v90_v46  ;;  %vm109_vm6 = vcmp.ge.f32.partialorder %v90_v46, 0.0 }
  0x9a   :  { %v307_v48 = vsel %vm291_vm5, %v270_v43, %v299_v45 }
  0x9b   :  { %623 = vmatmul.msk.f32.gmra.mxu2 %vm132_vm2, %v307_v48  ;;  %v125_v50 = vsel %vm109_vm6, %v90_v46, %v117_v47  ;;  %v665_v46 = vld [vmem:[%s942_s2 + $0x2] ss:$0 sm:$0xff] }
  0x9c   :  { %594 = vmatmul.msk.f32.gmra.mxu0 %vm132_vm2, %v125_v50 }
  0x9d   :  { %v272_v51 = vpop.f32.mrf.mxu2 }
  0x9e   :  { %v273_v52 = vadd.f32 %v802_v31, %v272_v51  ;;  %v92_v53 = vpop.f32.mrf.mxu0 }
  0x9f   :  { %v93_v55 = vadd.f32 %v793_v26, %v92_v53 }
  0xa0   :  { %v300_v54 = vmul.f32 0.1, %v273_v52  ;;  %vm292_vm7 = vcmp.ge.f32.partialorder %v273_v52, 0.0 }
  0xa1   :  { %v118_v56 = vmul.f32 0.1, %v93_v55  ;;  %vm110_vm8 = vcmp.ge.f32.partialorder %v93_v55, 0.0 }
  0xa2   :  { %v308_v57 = vsel %vm292_vm7, %v273_v52, %v300_v54 }
  0xa3   :  { %624 = vmatmul.msk.f32.gmra.mxu2 %vm132_vm2, %v308_v57  ;;  %v126_v59 = vsel %vm110_vm8, %v93_v55, %v118_v56 }
  0xa4   :  { %595 = vmatmul.msk.f32.vlgmr.msra.gmra.mxu1 %vm132_vm2, %v126_v59 }
  0xa5   :  { %v275_v60 = vpop.f32.mrf.mxu2 }
  0xa6   :  { %v276_v61 = vadd.f32 %v802_v31, %v275_v60  ;;  %v95_v62 = vpop.f32.mrf.mxu0 }
  0xa7   :  { %v96_v0 = vadd.f32 %v793_v26, %v95_v62 }
  0xa8   :  { %v301_v63 = vmul.f32 0.1, %v276_v61  ;;  %vm293_vm9 = vcmp.ge.f32.partialorder %v276_v61, 0.0 }
  0xa9   :  { %v119_v1 = vmul.f32 0.1, %v96_v0  ;;  %vm111_vm10 = vcmp.ge.f32.partialorder %v96_v0, 0.0 }
  0xaa   :  { %v309_v2 = vsel %vm293_vm9, %v276_v61, %v301_v63 }
  0xab   :  { %625 = vmatmul.msk.f32.vlgmr.msra.gmra.mxu3 %vm132_vm2, %v309_v2  ;;  %v127_v3 = vsel %vm111_vm10, %v96_v0, %v119_v1 }
  0xac   :  { %596 = vmatmul.msk.f32.gmra.mxu1 %vm132_vm2, %v127_v3 }
  0xad   :  { %v278_v4 = vpop.f32.mrf.mxu2 }
  0xae   :  { %v279_v5 = vadd.f32 %v802_v31, %v278_v4  ;;  %v98_v6 = vpop.f32.mrf.mxu0 }
  0xaf   :  { %v99_v8 = vadd.f32 %v793_v26, %v98_v6 }
  0xb0   :  { %v302_v7 = vmul.f32 0.1, %v279_v5  ;;  %vm294_vm11 = vcmp.ge.f32.partialorder %v279_v5, 0.0 }
  0xb1   :  { %v120_v9 = vmul.f32 0.1, %v99_v8  ;;  %vm112_vm12 = vcmp.ge.f32.partialorder %v99_v8, 0.0 }
  0xb2   :  { %v310_v10 = vsel %vm294_vm11, %v279_v5, %v302_v7 }
  0xb3   :  { %626 = vmatmul.msk.f32.gmra.mxu3 %vm132_vm2, %v310_v10  ;;  %v128_v11 = vsel %vm112_vm12, %v99_v8, %v120_v9 }
  0xb4   :  { %597 = vmatmul.msk.f32.gmra.mxu1 %vm132_vm2, %v128_v11 }
  0xb5   :  { %v281_v12 = vpop.f32.mrf.mxu2 }
  0xb6   :  { %v282_v13 = vadd.f32 %v802_v31, %v281_v12  ;;  %v101_v14 = vpop.f32.mrf.mxu0 }
  0xb7   :  { %v102_v16 = vadd.f32 %v793_v26, %v101_v14 }
  0xb8   :  { %v303_v15 = vmul.f32 0.1, %v282_v13  ;;  %vm295_vm13 = vcmp.ge.f32.partialorder %v282_v13, 0.0 }
  0xb9   :  { %v121_v17 = vmul.f32 0.1, %v102_v16  ;;  %vm113_vm14 = vcmp.ge.f32.partialorder %v102_v16, 0.0 }
  0xba   :  { %v311_v18 = vsel %vm295_vm13, %v282_v13, %v303_v15 }
  0xbb   :  { %627 = vmatmul.msk.f32.gmra.mxu3 %vm132_vm2, %v311_v18  ;;  %v129_v19 = vsel %vm113_vm14, %v102_v16, %v121_v17 }
  0xbc   :  { %598 = vmatmul.msk.f32.gmra.mxu1 %vm132_vm2, %v129_v19 }
  0xbd   :  { %v284_v20 = vpop.f32.mrf.mxu2 }
  0xbe   :  { %v285_v21 = vadd.f32 %v802_v31, %v284_v20  ;;  %v104_v22 = vpop.f32.mrf.mxu0 }
  0xbf   :  { %v105_v24 = vadd.f32 %v793_v26, %v104_v22  ;;  %v631_v26 = vld [vmem:[%s941_s0 + $0x88] sm:$0xff]  ;;  %v664_v22 = vld [vmem:[%s944_s4] ss:$0 sm:$0xff] }
  0xc0   :  { %v304_v23 = vmul.f32 0.1, %v285_v21  ;;  %vm296_vm15 = vcmp.ge.f32.partialorder %v285_v21, 0.0 }
  0xc1   :  { %v122_v25 = vmul.f32 0.1, %v105_v24  ;;  %vm114_vm1 = vcmp.ge.f32.partialorder %v105_v24, 0.0 }
  0xc2   :  { %v312_v27 = vsel %vm296_vm15, %v285_v21, %v304_v23 }
  0xc3   :  { %628 = vmatmul.msk.f32.gmra.mxu3 %vm132_vm2, %v312_v27  ;;  %v130_v28 = vsel %vm114_vm1, %v105_v24, %v122_v25 }
  0xc4   :  { %599 = vmatmul.msk.f32.gmra.mxu1 %vm132_vm2, %v130_v28 }
  0xc5   :  { %v287_v29 = vpop.f32.mrf.mxu2 }
  0xc6   :  { %v288_v30 = vadd.f32 %v802_v31, %v287_v29  ;;  %v632_v31 = vld [vmem:[%s941_s0 + $0x90] sm:$0xff] }
  0xc8   :  { %v305_v32 = vmul.f32 0.1, %v288_v30  ;;  %vm297_vm3 = vcmp.ge.f32.partialorder %v288_v30, 0.0 }
  0xca   :  { %v313_v33 = vsel %vm297_vm3, %v288_v30, %v305_v32 }
  0xcb   :  { %629 = vmatmul.msk.f32.gmra.mxu3 %vm132_vm2, %v313_v33 }
  0xcc   :  { %643 = vmatmul.msk.f32.vlgmr.msrb.gmra.mxu1 %vm41_vm0, %v630_v34 }
  0xd4   :  { %644 = vmatmul.msk.f32.gmra.mxu1 %vm41_vm0, %v631_v26 }
  0xdc   :  { %645 = vmatmul.msk.f32.gmra.mxu1 %vm41_vm0, %v632_v31 }
  0xe4   :  { %646 = vmatmul.msk.f32.gmra.mxu1 %vm41_vm0, %v633_v35 }
  0xec   :  { %647 = vmatmul.msk.f32.gmra.mxu1 %vm41_vm0, %v634_v36 }
  0xf4   :  { %648 = vmatmul.msk.f32.gmra.mxu1 %vm41_vm0, %v635_v37 }
  0xfc   :  { %649 = vmatmul.msk.f32.gmra.mxu1 %vm41_vm0, %v636_v38 }
 0x104   :  { %650 = vmatmul.msk.f32.gmra.mxu1 %vm41_vm0, %v637_v39 }
 0x109   :  { %v174_v19 = vpop.f32.mrf.mxu0 }
 0x10a   :  { %v198_v23 = vadd.f32 %v664_v22, %v174_v19 }
 0x111   :  { %v177_v25 = vpop.f32.mrf.mxu0 }
 0x112   :  { %v199_v30 = vadd.f32 %v664_v22, %v177_v25 }
 0x116   :  { %v357_v20 = vpop.f32.mrf.mxu2 }
 0x117   :  { %v381_v24 = vadd.f32 %v357_v20, %v198_v23 }
 0x119   :  { %v180_v26 = vpop.f32.mrf.mxu0 }
 0x11a   :  { %v200_v35 = vadd.f32 %v664_v22, %v180_v26 }
 0x11e   :  { %v360_v29 = vpop.f32.mrf.mxu2 }
 0x11f   :  { %v382_v32 = vadd.f32 %v360_v29, %v199_v30 }
 0x121   :  { %v879_v41 = vpop.f32.mrf.mxu1 }
 0x122   :  { %v201_v39 = vadd.f32 %v664_v22, %v879_v41 }
 0x126   :  { %v363_v31 = vpop.f32.mrf.mxu2 }
 0x127   :  { %v383_v36 = vadd.f32 %v363_v31, %v200_v35 }
 0x129   :  { %v881_v42 = vpop.f32.mrf.mxu1 }
 0x12e   :  { %v366_v15 = vpop.f32.mrf.mxu3 }
 0x12f   :  { %v384_v40 = vadd.f32 %v366_v15, %v201_v39 }
 0x131   :  { %v883_v43 = vpop.f32.mrf.mxu1 }
 0x132   :  { %v203_v41 = vadd.f32 %v664_v22, %v883_v43 }
 0x136   :  { %v369_v16 = vpop.f32.mrf.mxu3 }
 0x139   :  { %v885_v44 = vpop.f32.mrf.mxu1 }
 0x13e   :  { %v372_v17 = vpop.f32.mrf.mxu3 }
 0x141   :  { %v887_v45 = vpop.f32.mrf.mxu1 }
 0x142   :  { %v205_v43 = vadd.f32 %v664_v22, %v887_v45 }
 0x146   :  { %v375_v18 = vpop.f32.mrf.mxu3 }
 0x149   :  { %v449_v47 = vpop.f32.mrf.mxu1 }
 0x14a   :  { %v450_v48 = vadd.f32 %v665_v46, %v449_v47 }
 0x14c   :  { %vm473_vm0 = vcmp.ge.f32.partialorder %v450_v48, 0.0  ;;  %v481_v49 = vmul.f32 0.1, %v450_v48 }
 0x14e   :  { %v489_v50 = vsel %vm473_vm0, %v450_v48, %v481_v49  ;;  %v378_v21 = vpop.f32.mrf.mxu3  ;;  %v202_v48 = vadd.f32 %v664_v22, %v881_v42  ;;  %v204_v42 = vadd.f32 %v664_v22, %v885_v44 }
 0x14f   :  { %652 = vmatmul.msk.f32.vlgmr.msrb.gmra.mxu3 %vm132_vm2, %v489_v50 }
 0x150   :  { %v385_v49 = vadd.f32 %v369_v16, %v202_v48 }
 0x151   :  { %v452_v51 = vpop.f32.mrf.mxu1 }
 0x152   :  { %v453_v52 = vadd.f32 %v665_v46, %v452_v51 }
 0x154   :  { %v482_v53 = vmul.f32 0.1, %v453_v52  ;;  %vm474_vm4 = vcmp.ge.f32.partialorder %v453_v52, 0.0 }
 0x156   :  { %v490_v54 = vsel %vm474_vm4, %v453_v52, %v482_v53  ;;  %v386_v52 = vadd.f32 %v372_v17, %v203_v41 }
 0x157   :  { %653 = vmatmul.msk.f32.gmra.mxu3 %vm132_vm2, %v490_v54 }
 0x159   :  { %v455_v55 = vpop.f32.mrf.mxu1 }
 0x15a   :  { %v456_v56 = vadd.f32 %v665_v46, %v455_v55  ;;  %v387_v55 = vadd.f32 %v375_v18, %v204_v42 }
 0x15c   :  { %v483_v57 = vmul.f32 0.1, %v456_v56  ;;  %vm475_vm5 = vcmp.ge.f32.partialorder %v456_v56, 0.0 }
 0x15e   :  { %v491_v58 = vsel %vm475_vm5, %v456_v56, %v483_v57 }
 0x15f   :  { %654 = vmatmul.msk.f32.gmra.mxu3 %vm132_vm2, %v491_v58  ;;  %v388_v58 = vadd.f32 %v378_v21, %v205_v43 }
 0x161   :  { %v458_v59 = vpop.f32.mrf.mxu1 }
 0x162   :  { %v459_v60 = vadd.f32 %v665_v46, %v458_v59 }
 0x164   :  { %v484_v61 = vmul.f32 0.1, %v459_v60  ;;  %vm476_vm6 = vcmp.ge.f32.partialorder %v459_v60, 0.0 }
 0x166   :  { %v492_v62 = vsel %vm476_vm6, %v459_v60, %v484_v61 }
 0x167   :  { %655 = vmatmul.msk.f32.gmra.mxu3 %vm132_vm2, %v492_v62 }
 0x169   :  { %v461_v63 = vpop.f32.mrf.mxu1 }
 0x16a   :  { %v462_v0 = vadd.f32 %v665_v46, %v461_v63 }
 0x16c   :  { %v485_v1 = vmul.f32 0.1, %v462_v0  ;;  %vm477_vm7 = vcmp.ge.f32.partialorder %v462_v0, 0.0 }
 0x16e   :  { %v493_v2 = vsel %vm477_vm7, %v462_v0, %v485_v1 }
 0x16f   :  { %656 = vmatmul.msk.f32.gmra.mxu3 %vm132_vm2, %v493_v2 }
 0x171   :  { %v464_v3 = vpop.f32.mrf.mxu1 }
 0x172   :  { %v465_v4 = vadd.f32 %v665_v46, %v464_v3 }
 0x174   :  { %v486_v5 = vmul.f32 0.1, %v465_v4  ;;  %vm478_vm8 = vcmp.ge.f32.partialorder %v465_v4, 0.0 }
 0x176   :  { %v494_v6 = vsel %vm478_vm8, %v465_v4, %v486_v5 }
 0x177   :  { %657 = vmatmul.msk.f32.gmra.mxu3 %vm132_vm2, %v494_v6 }
 0x179   :  { %v467_v7 = vpop.f32.mrf.mxu1 }
 0x17a   :  { %v468_v8 = vadd.f32 %v665_v46, %v467_v7 }
 0x17c   :  { %v487_v9 = vmul.f32 0.1, %v468_v8  ;;  %vm479_vm9 = vcmp.ge.f32.partialorder %v468_v8, 0.0 }
 0x17e   :  { %v495_v10 = vsel %vm479_vm9, %v468_v8, %v487_v9 }
 0x17f   :  { %658 = vmatmul.msk.f32.gmra.mxu3 %vm132_vm2, %v495_v10 }
 0x181   :  { %v470_v11 = vpop.f32.mrf.mxu1 }
 0x182   :  { %v471_v12 = vadd.f32 %v665_v46, %v470_v11 }
 0x184   :  { %v488_v13 = vmul.f32 0.1, %v471_v12  ;;  %vm480_vm10 = vcmp.ge.f32.partialorder %v471_v12, 0.0 }
 0x186   :  { %v496_v14 = vsel %vm480_vm10, %v471_v12, %v488_v13 }
 0x187   :  { %659 = vmatmul.msk.f32.gmra.mxu3 %vm132_vm2, %v496_v14 }
 0x1d2   :  { %v540_v27 = vpop.f32.mrf.mxu3 }
 0x1d3   :  { %v564_v28 = vadd.f32 %v540_v27, %v381_v24 }
 0x1d5   :  { %572 = vst.msk [vmem:[%s945_s5] sm:$0xff] %vm132_vm2, %v564_v28 }
 0x1da   :  { %v543_v33 = vpop.f32.mrf.mxu3 }
 0x1db   :  { %v565_v34 = vadd.f32 %v543_v33, %v382_v32 }
 0x1dd   :  { %573 = vst.msk [vmem:[%s945_s5 + $0x8] sm:$0xff] %vm132_vm2, %v565_v34 }
 0x1e2   :  { %v546_v37 = vpop.f32.mrf.mxu3 }
 0x1e3   :  { %v566_v38 = vadd.f32 %v546_v37, %v383_v36 }
 0x1e5   :  { %574 = vst.msk [vmem:[%s945_s5 + $0x10] sm:$0xff] %vm132_vm2, %v566_v38 }
 0x1ea   :  { %v549_v46 = vpop.f32.mrf.mxu3 }
 0x1eb   :  { %v567_v47 = vadd.f32 %v549_v46, %v384_v40 }
 0x1ed   :  { %575 = vst.msk [vmem:[%s945_s5 + $0x18] sm:$0xff] %vm132_vm2, %v567_v47 }
 0x1f2   :  { %v552_v50 = vpop.f32.mrf.mxu3 }
 0x1f3   :  { %v568_v51 = vadd.f32 %v552_v50, %v385_v49 }
 0x1f5   :  { %576 = vst.msk [vmem:[%s945_s5 + $0x20] sm:$0xff] %vm132_vm2, %v568_v51 }
 0x1fa   :  { %v555_v53 = vpop.f32.mrf.mxu3 }
 0x1fb   :  { %v569_v54 = vadd.f32 %v555_v53, %v386_v52 }
 0x1fd   :  { %577 = vst.msk [vmem:[%s945_s5 + $0x28] sm:$0xff] %vm132_vm2, %v569_v54 }
 0x202   :  { %v558_v56 = vpop.f32.mrf.mxu3 }
 0x203   :  { %v570_v57 = vadd.f32 %v558_v56, %v387_v55 }
 0x205   :  { %578 = vst.msk [vmem:[%s945_s5 + $0x30] sm:$0xff] %vm132_vm2, %v570_v57 }
 0x20a   :  { %v561_v59 = vpop.f32.mrf.mxu3 }
 0x20b   :  { %v571_v60 = vadd.f32 %v561_v59, %v388_v58 }
 0x20d   :  { %579 = vst.msk [vmem:[%s945_s5 + $0x38] sm:$0xff] %vm132_vm2, %v571_v60 }

// kernel: main_encoder.27
= control target key start
LH: loop header
LB: loop body
LE: loop exit
PB: predicated region body
PF: predicated region fallthrough
CT: control target
= control target key end

     0   :  { %vm35_vm0 = vcmask 588800   ;;  %vm101_vm1 = vcmask 130048   ;;  %s264_s1 = inlined_call_operand.vmem [shape: f32[1,72,16], index: 1, kind: input, shape index: {}]   ;;  %s265_s2 = inlined_call_operand.vmem [shape: f32[1,1,16], index: 2, kind: input, shape index: {}]   ;;  %s266_s0 = inlined_call_operand.vmem [shape: f32[1,64,72], index: 0, kind: input, shape index: {}]   ;;  %s267_s3 = inlined_call_operand.vmem [shape: f32[1,64,16], index: 3, kind: output, shape index: {}]  }
   0x1   :  { %v30_v0 = vld [vmem:[%s264_s1 + $0x40] sm:$0xff]  ;;  %v29_v1 = vld [vmem:[%s264_s1 + $0x38] sm:$0xff]  ;;  %v28_v2 = vld [vmem:[%s264_s1 + $0x30] sm:$0xff] }
   0x2   :  { %123 = vmatpush.msra.mxu2 %v30_v0  ;;  %124 = vmatpush.msra.mxu3 %v30_v0  ;;  %v27_v3 = vld [vmem:[%s264_s1 + $0x28] sm:$0xff]  ;;  %v26_v4 = vld [vmem:[%s264_s1 + $0x20] sm:$0xff]  ;;  %v25_v5 = vld [vmem:[%s264_s1 + $0x18] sm:$0xff] }
   0x3   :  { %67 = vmatpush.msra.mxu0 %v30_v0  ;;  %122 = vmatpush.msra.mxu1 %v30_v0  ;;  %v24_v6 = vld [vmem:[%s264_s1 + $0x10] sm:$0xff]  ;;  %v23_v7 = vld [vmem:[%s264_s1 + $0x8] sm:$0xff]  ;;  %v22_v8 = vld [vmem:[%s264_s1] sm:$0xff] }
   0x4   :  { %126 = vmatpush.msra.mxu2 %v29_v1  ;;  %127 = vmatpush.msra.mxu3 %v29_v1  ;;  %v18_v9 = vld [vmem:[%s266_s0 + $0x20] sm:$0xff]  ;;  %v20_v10 = vld [vmem:[%s266_s0 + $0x30] sm:$0xff]  ;;  %v19_v13 = vld [vmem:[%s266_s0 + $0x28] sm:$0xff] }
   0x5   :  { %68 = vmatpush.msra.mxu0 %v29_v1  ;;  %125 = vmatpush.msra.mxu1 %v29_v1  ;;  %v14_v11 = vld [vmem:[%s266_s0] sm:$0xff]  ;;  %v16_v12 = vld [vmem:[%s266_s0 + $0x10] sm:$0xff]  ;;  %v21_v14 = vld [vmem:[%s266_s0 + $0x38] sm:$0xff] }
   0x6   :  { %129 = vmatpush.msra.mxu2 %v28_v2  ;;  %130 = vmatpush.msra.mxu3 %v28_v2  ;;  %v15_v15 = vld [vmem:[%s266_s0 + $0x8] sm:$0xff]  ;;  %v17_v16 = vld [vmem:[%s266_s0 + $0x18] sm:$0xff]  ;;  %v149_v17 = vld [vmem:[%s265_s2] ss:$0 sm:$0xff] }
   0x7   :  { %69 = vmatpush.msra.mxu0 %v28_v2  ;;  %128 = vmatpush.msra.mxu1 %v28_v2 }
   0x8   :  { %132 = vmatpush.msra.mxu2 %v27_v3  ;;  %133 = vmatpush.msra.mxu3 %v27_v3 }
   0x9   :  { %70 = vmatpush.msra.mxu0 %v27_v3  ;;  %131 = vmatpush.msra.mxu1 %v27_v3 }
   0xa   :  { %135 = vmatpush.msra.mxu2 %v26_v4  ;;  %136 = vmatpush.msra.mxu3 %v26_v4 }
   0xb   :  { %71 = vmatpush.msra.mxu0 %v26_v4  ;;  %134 = vmatpush.msra.mxu1 %v26_v4 }
   0xc   :  { %138 = vmatpush.msra.mxu2 %v25_v5  ;;  %139 = vmatpush.msra.mxu3 %v25_v5 }
   0xd   :  { %72 = vmatpush.msra.mxu0 %v25_v5  ;;  %137 = vmatpush.msra.mxu1 %v25_v5 }
   0xe   :  { %141 = vmatpush.msra.mxu2 %v24_v6  ;;  %142 = vmatpush.msra.mxu3 %v24_v6 }
   0xf   :  { %73 = vmatpush.msra.mxu0 %v24_v6  ;;  %140 = vmatpush.msra.mxu1 %v24_v6 }
  0x10   :  { %144 = vmatpush.msra.mxu2 %v23_v7  ;;  %145 = vmatpush.msra.mxu3 %v23_v7 }
  0x11   :  { %74 = vmatpush.msra.mxu0 %v23_v7  ;;  %143 = vmatpush.msra.mxu1 %v23_v7 }
  0x12   :  { %147 = vmatpush.msra.mxu2 %v22_v8  ;;  %148 = vmatpush.msra.mxu3 %v22_v8 }
  0x13   :  { %118 = vmatmul.msk.f32.vlgmr.msra.gmra.mxu2 %vm35_vm0, %v18_v9  ;;  %120 = vmatmul.msk.f32.vlgmr.msra.gmra.mxu3 %vm35_vm0, %v20_v10 }
  0x14   :  { %75 = vmatpush.msra.mxu0 %v22_v8  ;;  %146 = vmatpush.msra.mxu1 %v22_v8 }
  0x15   :  { %114 = vmatmul.msk.f32.vlgmr.msra.gmra.mxu0 %vm35_vm0, %v14_v11  ;;  %116 = vmatmul.msk.f32.vlgmr.msra.gmra.mxu1 %vm35_vm0, %v16_v12 }
  0x1b   :  { %119 = vmatmul.msk.f32.gmra.mxu2 %vm35_vm0, %v19_v13  ;;  %121 = vmatmul.msk.f32.gmra.mxu3 %vm35_vm0, %v21_v14 }
  0x1d   :  { %115 = vmatmul.msk.f32.gmra.mxu0 %vm35_vm0, %v15_v15  ;;  %117 = vmatmul.msk.f32.gmra.mxu1 %vm35_vm0, %v17_v16 }
  0x92   :  { %v77_v18 = vpop.f32.mrf.mxu0  ;;  %v83_v19 = vpop.f32.mrf.mxu1 }
  0x93   :  { %v78_v20 = vadd.f32 %v149_v17, %v77_v18  ;;  %v84_v21 = vadd.f32 %v149_v17, %v83_v19 }
  0x95   :  { %102 = vst.msk [vmem:[%s267_s3] sm:$0xff] %vm101_vm1, %v78_v20 }
  0x96   :  { %104 = vst.msk [vmem:[%s267_s3 + $0x10] sm:$0xff] %vm101_vm1, %v84_v21  ;;  %v89_v22 = vpop.f32.mrf.mxu2  ;;  %v95_v23 = vpop.f32.mrf.mxu3 }
  0x97   :  { %v90_v24 = vadd.f32 %v149_v17, %v89_v22  ;;  %v96_v25 = vadd.f32 %v149_v17, %v95_v23 }
  0x99   :  { %106 = vst.msk [vmem:[%s267_s3 + $0x20] sm:$0xff] %vm101_vm1, %v90_v24 }
  0x9a   :  { %108 = vst.msk [vmem:[%s267_s3 + $0x30] sm:$0xff] %vm101_vm1, %v96_v25  ;;  %v80_v26 = vpop.f32.mrf.mxu0  ;;  %v86_v27 = vpop.f32.mrf.mxu1 }
  0x9b   :  { %v81_v28 = vadd.f32 %v149_v17, %v80_v26  ;;  %v87_v29 = vadd.f32 %v149_v17, %v86_v27 }
  0x9d   :  { %103 = vst.msk [vmem:[%s267_s3 + $0x8] sm:$0xff] %vm101_vm1, %v81_v28 }
  0x9e   :  { %105 = vst.msk [vmem:[%s267_s3 + $0x18] sm:$0xff] %vm101_vm1, %v87_v29  ;;  %v92_v30 = vpop.f32.mrf.mxu2  ;;  %v98_v31 = vpop.f32.mrf.mxu3 }
  0x9f   :  { %v93_v32 = vadd.f32 %v149_v17, %v92_v30  ;;  %v99_v33 = vadd.f32 %v149_v17, %v98_v31 }
  0xa1   :  { %107 = vst.msk [vmem:[%s267_s3 + $0x28] sm:$0xff] %vm101_vm1, %v93_v32 }
  0xa2   :  { %109 = vst.msk [vmem:[%s267_s3 + $0x38] sm:$0xff] %vm101_vm1, %v99_v33 }

// kernel: main_encoder.28
= control target key start
LH: loop header
LB: loop body
LE: loop exit
PB: predicated region body
PF: predicated region fallthrough
CT: control target
= control target key end

     0   :  { %vm35_vm0 = vcmask 588800   ;;  %vm125_vm1 = vcmask 130048   ;;  %s288_s1 = inlined_call_operand.vmem [shape: f32[1,72,16], index: 1, kind: input, shape index: {}]   ;;  %s289_s2 = inlined_call_operand.vmem [shape: f32[1,1,16], index: 2, kind: input, shape index: {}]   ;;  %s290_s0 = inlined_call_operand.vmem [shape: f32[1,64,72], index: 0, kind: input, shape index: {}]   ;;  %s291_s3 = inlined_call_operand.vmem [shape: f32[1,64,16], index: 3, kind: output, shape index: {}]  }
   0x1   :  { %v30_v0 = vld [vmem:[%s288_s1 + $0x40] sm:$0xff]  ;;  %v29_v1 = vld [vmem:[%s288_s1 + $0x38] sm:$0xff]  ;;  %v28_v2 = vld [vmem:[%s288_s1 + $0x30] sm:$0xff] }
   0x2   :  { %147 = vmatpush.msra.mxu2 %v30_v0  ;;  %148 = vmatpush.msra.mxu3 %v30_v0  ;;  %v27_v3 = vld [vmem:[%s288_s1 + $0x28] sm:$0xff]  ;;  %v26_v4 = vld [vmem:[%s288_s1 + $0x20] sm:$0xff]  ;;  %v25_v5 = vld [vmem:[%s288_s1 + $0x18] sm:$0xff] }
   0x3   :  { %67 = vmatpush.msra.mxu0 %v30_v0  ;;  %146 = vmatpush.msra.mxu1 %v30_v0  ;;  %v24_v6 = vld [vmem:[%s288_s1 + $0x10] sm:$0xff]  ;;  %v23_v7 = vld [vmem:[%s288_s1 + $0x8] sm:$0xff]  ;;  %v22_v8 = vld [vmem:[%s288_s1] sm:$0xff] }
   0x4   :  { %150 = vmatpush.msra.mxu2 %v29_v1  ;;  %151 = vmatpush.msra.mxu3 %v29_v1  ;;  %v18_v9 = vld [vmem:[%s290_s0 + $0x20] sm:$0xff]  ;;  %v20_v10 = vld [vmem:[%s290_s0 + $0x30] sm:$0xff]  ;;  %v19_v13 = vld [vmem:[%s290_s0 + $0x28] sm:$0xff] }
   0x5   :  { %68 = vmatpush.msra.mxu0 %v29_v1  ;;  %149 = vmatpush.msra.mxu1 %v29_v1  ;;  %v14_v11 = vld [vmem:[%s290_s0] sm:$0xff]  ;;  %v16_v12 = vld [vmem:[%s290_s0 + $0x10] sm:$0xff]  ;;  %v21_v14 = vld [vmem:[%s290_s0 + $0x38] sm:$0xff] }
   0x6   :  { %153 = vmatpush.msra.mxu2 %v28_v2  ;;  %154 = vmatpush.msra.mxu3 %v28_v2  ;;  %v15_v15 = vld [vmem:[%s290_s0 + $0x8] sm:$0xff]  ;;  %v17_v16 = vld [vmem:[%s290_s0 + $0x18] sm:$0xff]  ;;  %v173_v17 = vld [vmem:[%s289_s2] ss:$0 sm:$0xff] }
   0x7   :  { %69 = vmatpush.msra.mxu0 %v28_v2  ;;  %152 = vmatpush.msra.mxu1 %v28_v2 }
   0x8   :  { %156 = vmatpush.msra.mxu2 %v27_v3  ;;  %157 = vmatpush.msra.mxu3 %v27_v3 }
   0x9   :  { %70 = vmatpush.msra.mxu0 %v27_v3  ;;  %155 = vmatpush.msra.mxu1 %v27_v3 }
   0xa   :  { %159 = vmatpush.msra.mxu2 %v26_v4  ;;  %160 = vmatpush.msra.mxu3 %v26_v4 }
   0xb   :  { %71 = vmatpush.msra.mxu0 %v26_v4  ;;  %158 = vmatpush.msra.mxu1 %v26_v4 }
   0xc   :  { %162 = vmatpush.msra.mxu2 %v25_v5  ;;  %163 = vmatpush.msra.mxu3 %v25_v5 }
   0xd   :  { %72 = vmatpush.msra.mxu0 %v25_v5  ;;  %161 = vmatpush.msra.mxu1 %v25_v5 }
   0xe   :  { %165 = vmatpush.msra.mxu2 %v24_v6  ;;  %166 = vmatpush.msra.mxu3 %v24_v6 }
   0xf   :  { %73 = vmatpush.msra.mxu0 %v24_v6  ;;  %164 = vmatpush.msra.mxu1 %v24_v6 }
  0x10   :  { %168 = vmatpush.msra.mxu2 %v23_v7  ;;  %169 = vmatpush.msra.mxu3 %v23_v7 }
  0x11   :  { %74 = vmatpush.msra.mxu0 %v23_v7  ;;  %167 = vmatpush.msra.mxu1 %v23_v7 }
  0x12   :  { %171 = vmatpush.msra.mxu2 %v22_v8  ;;  %172 = vmatpush.msra.mxu3 %v22_v8 }
  0x13   :  { %142 = vmatmul.msk.f32.vlgmr.msra.gmra.mxu2 %vm35_vm0, %v18_v9  ;;  %144 = vmatmul.msk.f32.vlgmr.msra.gmra.mxu3 %vm35_vm0, %v20_v10 }
  0x14   :  { %75 = vmatpush.msra.mxu0 %v22_v8  ;;  %170 = vmatpush.msra.mxu1 %v22_v8 }
  0x15   :  { %138 = vmatmul.msk.f32.vlgmr.msra.gmra.mxu0 %vm35_vm0, %v14_v11  ;;  %140 = vmatmul.msk.f32.vlgmr.msra.gmra.mxu1 %vm35_vm0, %v16_v12 }
  0x1b   :  { %143 = vmatmul.msk.f32.gmra.mxu2 %vm35_vm0, %v19_v13  ;;  %145 = vmatmul.msk.f32.gmra.mxu3 %vm35_vm0, %v21_v14 }
  0x1d   :  { %139 = vmatmul.msk.f32.gmra.mxu0 %vm35_vm0, %v15_v15  ;;  %141 = vmatmul.msk.f32.gmra.mxu1 %vm35_vm0, %v17_v16 }
  0x92   :  { %v77_v18 = vpop.f32.mrf.mxu0  ;;  %v83_v19 = vpop.f32.mrf.mxu1 }
  0x93   :  { %v78_v20 = vadd.f32 %v173_v17, %v77_v18  ;;  %v84_v21 = vadd.f32 %v173_v17, %v83_v19 }
  0x95   :  { %vm101_vm2 = vcmp.ge.f32.partialorder %v78_v20, 0.0  ;;  %v109_v22 = vmul.f32 0.1, %v78_v20  ;;  %vm103_vm3 = vcmp.ge.f32.partialorder %v84_v21, 0.0  ;;  %v111_v23 = vmul.f32 0.1, %v84_v21 }
  0x96   :  { %v89_v24 = vpop.f32.mrf.mxu2  ;;  %v95_v25 = vpop.f32.mrf.mxu3 }
  0x97   :  { %v117_v26 = vsel %vm101_vm2, %v78_v20, %v109_v22  ;;  %v119_v27 = vsel %vm103_vm3, %v84_v21, %v111_v23  ;;  %v90_v28 = vadd.f32 %v173_v17, %v89_v24  ;;  %v96_v29 = vadd.f32 %v173_v17, %v95_v25 }
  0x98   :  { %126 = vst.msk [vmem:[%s291_s3] sm:$0xff] %vm125_vm1, %v117_v26 }
  0x99   :  { %128 = vst.msk [vmem:[%s291_s3 + $0x10] sm:$0xff] %vm125_vm1, %v119_v27  ;;  %vm105_vm4 = vcmp.ge.f32.partialorder %v90_v28, 0.0  ;;  %v113_v30 = vmul.f32 0.1, %v90_v28  ;;  %vm107_vm5 = vcmp.ge.f32.partialorder %v96_v29, 0.0 }
  0x9a   :  { %v115_v31 = vmul.f32 0.1, %v96_v29  ;;  %v80_v32 = vpop.f32.mrf.mxu0  ;;  %v86_v33 = vpop.f32.mrf.mxu1 }
  0x9b   :  { %v121_v34 = vsel %vm105_vm4, %v90_v28, %v113_v30  ;;  %v81_v35 = vadd.f32 %v173_v17, %v80_v32  ;;  %v87_v36 = vadd.f32 %v173_v17, %v86_v33 }
  0x9c   :  { %130 = vst.msk [vmem:[%s291_s3 + $0x20] sm:$0xff] %vm125_vm1, %v121_v34  ;;  %v123_v37 = vsel %vm107_vm5, %v96_v29, %v115_v31 }
  0x9d   :  { %132 = vst.msk [vmem:[%s291_s3 + $0x30] sm:$0xff] %vm125_vm1, %v123_v37  ;;  %vm102_vm6 = vcmp.ge.f32.partialorder %v81_v35, 0.0  ;;  %v110_v38 = vmul.f32 0.1, %v81_v35  ;;  %vm104_vm7 = vcmp.ge.f32.partialorder %v87_v36, 0.0 }
  0x9e   :  { %v112_v39 = vmul.f32 0.1, %v87_v36  ;;  %v92_v40 = vpop.f32.mrf.mxu2  ;;  %v98_v41 = vpop.f32.mrf.mxu3 }
  0x9f   :  { %v118_v42 = vsel %vm102_vm6, %v81_v35, %v110_v38  ;;  %v93_v43 = vadd.f32 %v173_v17, %v92_v40  ;;  %v99_v44 = vadd.f32 %v173_v17, %v98_v41 }
  0xa0   :  { %127 = vst.msk [vmem:[%s291_s3 + $0x8] sm:$0xff] %vm125_vm1, %v118_v42  ;;  %v120_v45 = vsel %vm104_vm7, %v87_v36, %v112_v39 }
  0xa1   :  { %129 = vst.msk [vmem:[%s291_s3 + $0x18] sm:$0xff] %vm125_vm1, %v120_v45  ;;  %vm106_vm8 = vcmp.ge.f32.partialorder %v93_v43, 0.0  ;;  %v114_v46 = vmul.f32 0.1, %v93_v43  ;;  %vm108_vm9 = vcmp.ge.f32.partialorder %v99_v44, 0.0 }
  0xa2   :  { %v116_v47 = vmul.f32 0.1, %v99_v44 }
  0xa3   :  { %v122_v48 = vsel %vm106_vm8, %v93_v43, %v114_v46 }
  0xa4   :  { %131 = vst.msk [vmem:[%s291_s3 + $0x28] sm:$0xff] %vm125_vm1, %v122_v48  ;;  %v124_v49 = vsel %vm108_vm9, %v99_v44, %v116_v47 }
  0xa5   :  { %133 = vst.msk [vmem:[%s291_s3 + $0x38] sm:$0xff] %vm125_vm1, %v124_v49 }

// kernel: main_encoder.29
= control target key start
LH: loop header
LB: loop body
LE: loop exit
PB: predicated region body
PF: predicated region fallthrough
CT: control target
= control target key end

     0   :  { %s572_s12 = smov 0   ;;  %s574_s13 = smov 0   ;;  %s651_s0 = inlined_call_operand.vmem [shape: f32[2,64,32], index: 0, kind: input, shape index: {}]   ;;  %s652_s1 = inlined_call_operand.vmem [shape: f32[2,32,16], index: 1, kind: input, shape index: {}]   ;;  %s653_s2 = inlined_call_operand.vmem [shape: f32[2,1,16], index: 2, kind: input, shape index: {}]   ;;  %s654_s3 = inlined_call_operand.vmem [shape: f32[2,64,16], index: 3, kind: output, shape index: {}]  }
   0x1   :  { %s576_s14 = smov 0  }
   0x2 LB: > { %s25_s15 = sadd.s32 1, %s546_s13  ;;  %p471_p0 = scmp.ge.s32.totalorder %s550_s14, 1  ;;  %s550_s14 = sphi %s576_s14, %s13_s14   ;;  %s546_s13 = sphi %s574_s13, %s656_s13   ;;  %s542_s12 = sphi %s572_s12, %s655_s12  }
   0x3   : > { %p27_p1 = scmp.ge.s32.totalorder %s25_s15, 2  ;;  %p176_p2 = scmp.lt.s32.totalorder %s550_s14, 3 }
   0x5   : > { %s658_s15 = smov (%p27_p1, %s25_s15), 0  ;;  %p177_p3 = pnand %p471_p0, %p176_p2 }
   0x6   : > { %p217_p4 = scmp.lt.s32.totalorder (!%p177_p3), %s542_s12, 1 }
   0x7   : > { %180 = sbr.rel (%p177_p3) target bundleno = 170 (0xaa), region = 32 }
   0xc   : > { %s660_s12 = smov (!%p217_p4, %s542_s12), 1  ;;  %vm260_vm0 = vcmask 261120   ;;  %vm350_vm1 = vcmask 130048  }
   0xd   : > { %s488_s16 = sshll.u32 %s660_s12, 6  ;;  %s489_s17 = sshll.u32 %s660_s12, 5 }
   0xe   : > { %s230_s20 = scalar_lea.vmem %s652_s1, %s489_s17  ;;  %s233_s23 = scalar_lea.vmem %s653_s2, %s660_s12 }
   0xf   : > { %v255_v0 = vld [vmem:[%s230_s20 + $0x18] sm:$0xff]  ;;  %v254_v1 = vld [vmem:[%s230_s20 + $0x10] sm:$0xff]  ;;  %v253_v2 = vld [vmem:[%s230_s20 + $0x8] sm:$0xff]  ;;  %s224_s26 = scalar_lea.vmem %s651_s0, %s488_s16  ;;  %s624_s4 = scalar_lea.vmem %s654_s3, %s488_s16 }
  0x10   : > { %492 = vmatpush.msra.mxu2 %v255_v0  ;;  %493 = vmatpush.msra.mxu3 %v255_v0  ;;  %v252_v3 = vld [vmem:[%s230_s20] sm:$0xff]  ;;  %v250_v5 = vld [vmem:[%s224_s26 + $0x30] sm:$0xff]  ;;  %v249_v8 = vld [vmem:[%s224_s26 + $0x28] sm:$0xff] }
  0x11   : > { %297 = vmatpush.msra.mxu0 %v255_v0  ;;  %491 = vmatpush.msra.mxu1 %v255_v0  ;;  %v248_v4 = vld [vmem:[%s224_s26 + $0x20] sm:$0xff]  ;;  %v246_v7 = vld [vmem:[%s224_s26 + $0x10] sm:$0xff]  ;;  %v251_v9 = vld [vmem:[%s224_s26 + $0x38] sm:$0xff] }
  0x12   : > { %495 = vmatpush.msra.mxu2 %v254_v1  ;;  %496 = vmatpush.msra.mxu3 %v254_v1  ;;  %v244_v6 = vld [vmem:[%s224_s26] sm:$0xff]  ;;  %v245_v10 = vld [vmem:[%s224_s26 + $0x8] sm:$0xff]  ;;  %v247_v11 = vld [vmem:[%s224_s26 + $0x18] sm:$0xff] }
  0x13   : > { %298 = vmatpush.msra.mxu0 %v254_v1  ;;  %494 = vmatpush.msra.mxu1 %v254_v1  ;;  %v527_v12 = vld [vmem:[%s233_s23] ss:$0 sm:$0xff] }
  0x14   : > { %498 = vmatpush.msra.mxu2 %v253_v2  ;;  %499 = vmatpush.msra.mxu3 %v253_v2 }
  0x15   : > { %299 = vmatpush.msra.mxu0 %v253_v2  ;;  %497 = vmatpush.msra.mxu1 %v253_v2 }
  0x16   : > { %501 = vmatpush.msra.mxu2 %v252_v3  ;;  %502 = vmatpush.msra.mxu3 %v252_v3 }
  0x17   : > { %482 = vmatmul.msk.f32.vlgmr.msra.gmra.mxu2 %vm260_vm0, %v248_v4  ;;  %484 = vmatmul.msk.f32.vlgmr.msra.gmra.mxu3 %vm260_vm0, %v250_v5 }
  0x18   : > { %300 = vmatpush.msra.mxu0 %v252_v3  ;;  %500 = vmatpush.msra.mxu1 %v252_v3 }
  0x19   : > { %478 = vmatmul.msk.f32.vlgmr.msra.gmra.mxu0 %vm260_vm0, %v244_v6  ;;  %480 = vmatmul.msk.f32.vlgmr.msra.gmra.mxu1 %vm260_vm0, %v246_v7 }
  0x1f   : > { %483 = vmatmul.msk.f32.gmra.mxu2 %vm260_vm0, %v249_v8  ;;  %485 = vmatmul.msk.f32.gmra.mxu3 %vm260_vm0, %v251_v9 }
  0x21   : > { %479 = vmatmul.msk.f32.gmra.mxu0 %vm260_vm0, %v245_v10  ;;  %481 = vmatmul.msk.f32.gmra.mxu1 %vm260_vm0, %v247_v11 }
  0x96   : > { %v302_v13 = vpop.f32.mrf.mxu0  ;;  %v308_v14 = vpop.f32.mrf.mxu1 }
  0x97   : > { %v303_v15 = vadd.f32 %v527_v12, %v302_v13  ;;  %v309_v16 = vadd.f32 %v527_v12, %v308_v14 }
  0x99   : > { %vm326_vm2 = vcmp.ge.f32.partialorder %v303_v15, 0.0  ;;  %v334_v17 = vmul.f32 0.1, %v303_v15  ;;  %vm328_vm3 = vcmp.ge.f32.partialorder %v309_v16, 0.0  ;;  %v336_v18 = vmul.f32 0.1, %v309_v16 }
  0x9a   : > { %v314_v19 = vpop.f32.mrf.mxu2  ;;  %v320_v20 = vpop.f32.mrf.mxu3 }
  0x9b   : > { %v342_v21 = vsel %vm326_vm2, %v303_v15, %v334_v17  ;;  %v344_v22 = vsel %vm328_vm3, %v309_v16, %v336_v18  ;;  %v315_v23 = vadd.f32 %v527_v12, %v314_v19  ;;  %v321_v24 = vadd.f32 %v527_v12, %v320_v20 }
  0x9c   : > { %351 = vst.msk [vmem:[%s624_s4] sm:$0xff] %vm350_vm1, %v342_v21 }
  0x9d   : > { %353 = vst.msk [vmem:[%s624_s4 + $0x10] sm:$0xff] %vm350_vm1, %v344_v22  ;;  %vm330_vm4 = vcmp.ge.f32.partialorder %v315_v23, 0.0  ;;  %v338_v25 = vmul.f32 0.1, %v315_v23  ;;  %vm332_vm5 = vcmp.ge.f32.partialorder %v321_v24, 0.0 }
  0x9e   : > { %v340_v26 = vmul.f32 0.1, %v321_v24  ;;  %v305_v27 = vpop.f32.mrf.mxu0  ;;  %v311_v28 = vpop.f32.mrf.mxu1 }
  0x9f   : > { %v346_v29 = vsel %vm330_vm4, %v315_v23, %v338_v25  ;;  %v306_v30 = vadd.f32 %v527_v12, %v305_v27  ;;  %v312_v31 = vadd.f32 %v527_v12, %v311_v28 }
  0xa0   : > { %355 = vst.msk [vmem:[%s624_s4 + $0x20] sm:$0xff] %vm350_vm1, %v346_v29  ;;  %v348_v32 = vsel %vm332_vm5, %v321_v24, %v340_v26 }
  0xa1   : > { %357 = vst.msk [vmem:[%s624_s4 + $0x30] sm:$0xff] %vm350_vm1, %v348_v32  ;;  %vm327_vm6 = vcmp.ge.f32.partialorder %v306_v30, 0.0  ;;  %v335_v33 = vmul.f32 0.1, %v306_v30  ;;  %vm329_vm7 = vcmp.ge.f32.partialorder %v312_v31, 0.0 }
  0xa2   : > { %v337_v34 = vmul.f32 0.1, %v312_v31  ;;  %v317_v35 = vpop.f32.mrf.mxu2  ;;  %v323_v36 = vpop.f32.mrf.mxu3 }
  0xa3   : > { %v343_v37 = vsel %vm327_vm6, %v306_v30, %v335_v33  ;;  %v318_v38 = vadd.f32 %v527_v12, %v317_v35  ;;  %v324_v39 = vadd.f32 %v527_v12, %v323_v36 }
  0xa4   : > { %352 = vst.msk [vmem:[%s624_s4 + $0x8] sm:$0xff] %vm350_vm1, %v343_v37  ;;  %v345_v40 = vsel %vm329_vm7, %v312_v31, %v337_v34 }
  0xa5   : > { %354 = vst.msk [vmem:[%s624_s4 + $0x18] sm:$0xff] %vm350_vm1, %v345_v40  ;;  %vm331_vm8 = vcmp.ge.f32.partialorder %v318_v38, 0.0  ;;  %v339_v41 = vmul.f32 0.1, %v318_v38  ;;  %vm333_vm9 = vcmp.ge.f32.partialorder %v324_v39, 0.0 }
  0xa6   : > { %v341_v42 = vmul.f32 0.1, %v324_v39 }
  0xa7   : > { %v347_v43 = vsel %vm331_vm8, %v318_v38, %v339_v41 }
  0xa8   : > { %356 = vst.msk [vmem:[%s624_s4 + $0x28] sm:$0xff] %vm350_vm1, %v347_v43  ;;  %v349_v44 = vsel %vm333_vm9, %v324_v39, %v341_v42 }
  0xa9   : > { %358 = vst.msk [vmem:[%s624_s4 + $0x38] sm:$0xff] %vm350_vm1, %v349_v44 }
  0xaa PF: > { %s13_s14 = sadd.s32 1, %s550_s14   ;;  %s655_s12 = smov %s546_s13 }
  0xab   : > { %p10_p5 = scmp.ge.s32.totalorder %s13_s14, 4   ;;  %s656_s13 = smov %s658_s15 }
  0xad   :  { %12 = sbr.rel (!%p10_p5) target bundleno = 2 (0x2), region = 68 }

// kernel: main_encoder.30
= control target key start
LH: loop header
LB: loop body
LE: loop exit
PB: predicated region body
PF: predicated region fallthrough
CT: control target
= control target key end

     0   :  { %s1305_s27 = smov 0   ;;  %s1307_s28 = smov 0   ;;  %s1552_s0 = inlined_call_operand.vmem [shape: f32[2,64,432], index: 0, kind: input, shape index: {}]   ;;  %s1553_s1 = inlined_call_operand.vmem [shape: f32[2,432,48], index: 1, kind: input, shape index: {}]   ;;  %s1554_s2 = inlined_call_operand.vmem [shape: f32[2,1,48], index: 2, kind: input, shape index: {}]   ;;  %s1555_s3 = inlined_call_operand.vmem [shape: f32[2,64,16], index: 3, kind: input, shape index: {}]   ;;  %s1556_s4 = inlined_call_operand.vmem [shape: f32[2,48,16], index: 4, kind: input, shape index: {}]   ;;  %s1557_s5 = inlined_call_operand.vmem [shape: f32[2,1,16], index: 5, kind: input, shape index: {}]   ;;  %s1558_s6 = inlined_call_operand.vmem [shape: f32[2,16,18], index: 6, kind: input, shape index: {}]   ;;  %s1559_s7 = inlined_call_operand.vmem [shape: f32[2,1,18], index: 7, kind: input, shape index: {}]   ;;  %s1560_s8 = inlined_call_operand.vmem [shape: f32[2,64,18], index: 8, kind: output, shape index: {}]  }
   0x1   :  { %s1309_s29 = smov 0  }
   0x2 LB: > { %s30_s30 = sadd.s32 1, %s1254_s28  ;;  %p1144_p0 = scmp.ge.s32.totalorder %s1258_s29, 1  ;;  %s1258_s29 = sphi %s1309_s29, %s18_s29   ;;  %s1254_s28 = sphi %s1307_s28, %s1562_s28   ;;  %s1250_s27 = sphi %s1305_s27, %s1561_s27  }
   0x3   : > { %p32_p1 = scmp.ge.s32.totalorder %s30_s30, 2  ;;  %p355_p2 = scmp.lt.s32.totalorder %s1258_s29, 3 }
   0x5   : > { %s1564_s30 = smov (%p32_p1, %s30_s30), 0  ;;  %p356_p3 = pnand %p1144_p0, %p355_p2 }
   0x6   : > { %p432_p4 = scmp.lt.s32.totalorder (!%p356_p3), %s1250_s27, 1 }
   0x7   : > { %359 = sbr.rel (%p356_p3) target bundleno = 571 (0x23b), region = 52 }
   0xc   : > { %s1566_s27 = smov (!%p432_p4, %s1250_s27), 1  ;;  %vm576_vm0 = vcmask 392192   ;;  %vm894_vm9 = vcmask 130048   ;;  %vm960_vm10 = vcmask 146432  }
   0xd   : > { %s1207_s9 = smul.u32 432, %s1566_s27  ;;  %s449_s12 = scalar_lea.vmem %s1554_s2, %s1566_s27 }
   0xe   : > { %s1181_s16 = sshll.u32 %s1566_s27, 8  ;;  %s1208_s20 = smul.u32 48, %s1566_s27 }
   0xf   : > { %s1333_s15 = scalar_lea.vmem %s1553_s1, %s1207_s9  ;;  %s1375_s19 = scalar_lea.vmem %s1552_s0, %s1181_s16 }
  0x10   : > { %v533_v0 = vld [vmem:[%s1333_s15 + $0x78] sm:$0xff]  ;;  %v532_v2 = vld [vmem:[%s1333_s15 + $0x70] sm:$0xff]  ;;  %v531_v4 = vld [vmem:[%s1333_s15 + $0x68] sm:$0xff]  ;;  %s464_s23 = scalar_lea.vmem %s1556_s4, %s1208_s20  ;;  %s467_s26 = scalar_lea.vmem %s1557_s5, %s1566_s27 }
  0x11   : > { %v565_v1 = vld [vmem:[%s1333_s15 + $0x178] sm:$0xff]  ;;  %1185 = vmatpush.msra.mxu1 %v533_v0  ;;  %v564_v3 = vld [vmem:[%s1333_s15 + $0x170] sm:$0xff]  ;;  %v563_v5 = vld [vmem:[%s1333_s15 + $0x168] sm:$0xff]  ;;  %601 = vmatpush.msra.mxu0 %v533_v0  ;;  %s1183_s11 = sshll.u32 %s1566_s27, 4  ;;  %s475_s17 = scalar_lea.vmem %s1559_s7, %s1566_s27 }
  0x12   : > { %683 = vmatpush.msra.mxu2 %v565_v1  ;;  %v530_v6 = vld [vmem:[%s1333_s15 + $0x60] sm:$0xff]  ;;  %v529_v8 = vld [vmem:[%s1333_s15 + $0x58] sm:$0xff]  ;;  %v528_v10 = vld [vmem:[%s1333_s15 + $0x50] sm:$0xff]  ;;  %s472_s14 = scalar_lea.vmem %s1558_s6, %s1183_s11  ;;  %s1182_s18 = sshll.u32 %s1566_s27, 6 }
  0x13   : > { %1186 = vmatpush.msra.mxu1 %v532_v2  ;;  %v562_v7 = vld [vmem:[%s1333_s15 + $0x160] sm:$0xff]  ;;  %602 = vmatpush.msra.mxu0 %v532_v2  ;;  %v561_v9 = vld [vmem:[%s1333_s15 + $0x158] sm:$0xff]  ;;  %v560_v11 = vld [vmem:[%s1333_s15 + $0x150] sm:$0xff]  ;;  %s1502_s21 = scalar_lea.vmem %s1555_s3, %s1182_s18  ;;  %s484_s10 = scalar_lea.vmem %s1560_s8, %s1182_s18 }
  0x14   : > { %684 = vmatpush.msra.mxu2 %v564_v3  ;;  %v527_v12 = vld [vmem:[%s1333_s15 + $0x48] sm:$0xff]  ;;  %v526_v15 = vld [vmem:[%s1333_s15 + $0x40] sm:$0xff]  ;;  %v525_v18 = vld [vmem:[%s1333_s15 + $0x38] sm:$0xff] }
  0x15   : > { %1187 = vmatpush.msra.mxu1 %v531_v4  ;;  %603 = vmatpush.msra.mxu0 %v531_v4  ;;  %v559_v13 = vld [vmem:[%s1333_s15 + $0x148] sm:$0xff]  ;;  %v558_v16 = vld [vmem:[%s1333_s15 + $0x140] sm:$0xff]  ;;  %v557_v19 = vld [vmem:[%s1333_s15 + $0x138] sm:$0xff] }
  0x16   : > { %685 = vmatpush.msra.mxu2 %v563_v5  ;;  %v1350_v14 = vld [vmem:[%s1333_s15 + $0x1a8] sm:$0xff]  ;;  %v570_v17 = vld [vmem:[%s1333_s15 + $0x1a0] sm:$0xff]  ;;  %v524_v20 = vld [vmem:[%s1333_s15 + $0x30] sm:$0xff] }
  0x17   : > { %1188 = vmatpush.msra.mxu1 %v530_v6  ;;  %604 = vmatpush.msra.mxu0 %v530_v6  ;;  %v556_v21 = vld [vmem:[%s1333_s15 + $0x130] sm:$0xff]  ;;  %v523_v22 = vld [vmem:[%s1333_s15 + $0x28] sm:$0xff]  ;;  %v522_v24 = vld [vmem:[%s1333_s15 + $0x20] sm:$0xff] }
  0x18   : > { %686 = vmatpush.msra.mxu2 %v562_v7  ;;  %1201 = vmatpush.msra.mxu3 %v1350_v14  ;;  %v555_v23 = vld [vmem:[%s1333_s15 + $0x128] sm:$0xff]  ;;  %v554_v25 = vld [vmem:[%s1333_s15 + $0x120] sm:$0xff]  ;;  %v569_v26 = vld [vmem:[%s1333_s15 + $0x198] sm:$0xff] }
  0x19   : > { %1189 = vmatpush.msra.mxu1 %v529_v8  ;;  %605 = vmatpush.msra.mxu0 %v529_v8  ;;  %v521_v27 = vld [vmem:[%s1333_s15 + $0x18] sm:$0xff]  ;;  %v520_v29 = vld [vmem:[%s1333_s15 + $0x10] sm:$0xff]  ;;  %v519_v31 = vld [vmem:[%s1333_s15 + $0x8] sm:$0xff] }
  0x1a   : > { %687 = vmatpush.msra.mxu2 %v561_v9  ;;  %1202 = vmatpush.msra.mxu3 %v570_v17  ;;  %v553_v28 = vld [vmem:[%s1333_s15 + $0x118] sm:$0xff]  ;;  %v552_v30 = vld [vmem:[%s1333_s15 + $0x110] sm:$0xff]  ;;  %v551_v32 = vld [vmem:[%s1333_s15 + $0x108] sm:$0xff] }
  0x1b   : > { %1190 = vmatpush.msra.mxu1 %v528_v10  ;;  %606 = vmatpush.msra.mxu0 %v528_v10  ;;  %v518_v33 = vld [vmem:[%s1333_s15] sm:$0xff]  ;;  %v488_v36 = vld [vmem:[%s1375_s19 + $0x10] sm:$0xff]  ;;  %v549_v37 = vld [vmem:[%s1333_s15 + $0xf8] sm:$0xff] }
  0x1c   : > { %688 = vmatpush.msra.mxu2 %v560_v11  ;;  %1203 = vmatpush.msra.mxu3 %v569_v26  ;;  %v550_v34 = vld [vmem:[%s1333_s15 + $0x100] sm:$0xff]  ;;  %v548_v38 = vld [vmem:[%s1333_s15 + $0xf0] sm:$0xff]  ;;  %v547_v41 = vld [vmem:[%s1333_s15 + $0xe8] sm:$0xff] }
  0x1d   : > { %1191 = vmatpush.msra.mxu1 %v527_v12  ;;  %607 = vmatpush.msra.mxu0 %v527_v12  ;;  %v502_v35 = vld [vmem:[%s1375_s19 + $0x80] sm:$0xff]  ;;  %v568_v39 = vld [vmem:[%s1333_s15 + $0x190] sm:$0xff]  ;;  %v545_v45 = vld [vmem:[%s1333_s15 + $0xd8] sm:$0xff] }
  0x1e   : > { %689 = vmatpush.msra.mxu2 %v559_v13  ;;  %v486_v40 = vld [vmem:[%s1375_s19] sm:$0xff]  ;;  %1204 = vmatpush.msra.mxu3 %v568_v39  ;;  %v492_v44 = vld [vmem:[%s1375_s19 + $0x30] sm:$0xff]  ;;  %v567_v47 = vld [vmem:[%s1333_s15 + $0x188] sm:$0xff] }
  0x1f   : > { %1192 = vmatpush.msra.mxu1 %v526_v15  ;;  %608 = vmatpush.msra.mxu0 %v526_v15  ;;  %v546_v42 = vld [vmem:[%s1333_s15 + $0xe0] sm:$0xff]  ;;  %v544_v46 = vld [vmem:[%s1333_s15 + $0xd0] sm:$0xff]  ;;  %v543_v50 = vld [vmem:[%s1333_s15 + $0xc8] sm:$0xff] }
  0x20   : > { %690 = vmatpush.msra.mxu2 %v558_v16  ;;  %v506_v43 = vld [vmem:[%s1375_s19 + $0xa0] sm:$0xff]  ;;  %1205 = vmatpush.msra.mxu3 %v567_v47  ;;  %v497_v51 = vld [vmem:[%s1375_s19 + $0x58] sm:$0xff]  ;;  %v496_v54 = vld [vmem:[%s1375_s19 + $0x50] sm:$0xff] }
  0x21   : > { %1193 = vmatpush.msra.mxu1 %v525_v18  ;;  %609 = vmatpush.msra.mxu0 %v525_v18  ;;  %v490_v48 = vld [vmem:[%s1375_s19 + $0x20] sm:$0xff]  ;;  %v541_v55 = vld [vmem:[%s1333_s15 + $0xb8] sm:$0xff]  ;;  %v540_v56 = vld [vmem:[%s1333_s15 + $0xb0] sm:$0xff] }
  0x22   : > { %691 = vmatpush.msra.mxu2 %v557_v19  ;;  %v566_v49 = vld [vmem:[%s1333_s15 + $0x180] sm:$0xff]  ;;  %v539_v58 = vld [vmem:[%s1333_s15 + $0xa8] sm:$0xff]  ;;  %v501_v59 = vld [vmem:[%s1375_s19 + $0x78] sm:$0xff] }
  0x23   : > { %1194 = vmatpush.msra.mxu1 %v524_v20  ;;  %610 = vmatpush.msra.mxu0 %v524_v20  ;;  %v542_v52 = vld [vmem:[%s1333_s15 + $0xc0] sm:$0xff]  ;;  %v500_v62 = vld [vmem:[%s1375_s19 + $0x70] sm:$0xff]  ;;  %v537_v63 = vld [vmem:[%s1333_s15 + $0x98] sm:$0xff] }
  0x24   : > { %692 = vmatpush.msra.mxu2 %v556_v21  ;;  %1206 = vmatpush.msra.mxu3 %v566_v49  ;;  %v510_v53 = vld [vmem:[%s1375_s19 + $0xc0] sm:$0xff]  ;;  %v536_v0 = vld [vmem:[%s1333_s15 + $0x90] sm:$0xff]  ;;  %v535_v2 = vld [vmem:[%s1333_s15 + $0x88] sm:$0xff] }
  0x25   : > { %1195 = vmatpush.msra.mxu1 %v523_v22  ;;  %611 = vmatpush.msra.mxu0 %v523_v22  ;;  %v494_v57 = vld [vmem:[%s1375_s19 + $0x40] sm:$0xff]  ;;  %v505_v3 = vld [vmem:[%s1375_s19 + $0x98] sm:$0xff]  ;;  %v487_v5 = vld [vmem:[%s1375_s19 + $0x8] sm:$0xff] }
  0x26   : > { %693 = vmatpush.msra.mxu2 %v555_v23  ;;  %1157 = vmatmul.msk.f32.vlgmr.msra.gmra.mxu3 %vm576_vm0, %v497_v51  ;;  %v538_v60 = vld [vmem:[%s1333_s15 + $0xa0] sm:$0xff]  ;;  %v504_v6 = vld [vmem:[%s1375_s19 + $0x90] sm:$0xff]  ;;  %v509_v7 = vld [vmem:[%s1375_s19 + $0xb8] sm:$0xff] }
  0x27   : > { %1196 = vmatpush.msra.mxu1 %v522_v24  ;;  %612 = vmatpush.msra.mxu0 %v522_v24  ;;  %v514_v61 = vld [vmem:[%s1375_s19 + $0xe0] sm:$0xff]  ;;  %v491_v8 = vld [vmem:[%s1375_s19 + $0x28] sm:$0xff]  ;;  %v508_v9 = vld [vmem:[%s1375_s19 + $0xb0] sm:$0xff] }
  0x28   : > { %694 = vmatpush.msra.mxu2 %v554_v25  ;;  %v498_v1 = vld [vmem:[%s1375_s19 + $0x60] sm:$0xff]  ;;  %v513_v10 = vld [vmem:[%s1375_s19 + $0xd8] sm:$0xff]  ;;  %v495_v11 = vld [vmem:[%s1375_s19 + $0x48] sm:$0xff] }
  0x29   : > { %1197 = vmatpush.msra.mxu1 %v521_v27  ;;  %613 = vmatpush.msra.mxu0 %v521_v27  ;;  %v534_v4 = vld [vmem:[%s1333_s15 + $0x80] sm:$0xff]  ;;  %v512_v12 = vld [vmem:[%s1375_s19 + $0xd0] sm:$0xff]  ;;  %v517_v13 = vld [vmem:[%s1375_s19 + $0xf8] sm:$0xff] }
  0x2a   : > { %695 = vmatpush.msra.mxu2 %v553_v28  ;;  %v516_v15 = vld [vmem:[%s1375_s19 + $0xf0] sm:$0xff]  ;;  %v503_v16 = vld [vmem:[%s1375_s19 + $0x88] sm:$0xff]  ;;  %v493_v19 = vld [vmem:[%s1375_s19 + $0x38] sm:$0xff] }
  0x2b   : > { %1198 = vmatpush.msra.mxu1 %v520_v29  ;;  %614 = vmatpush.msra.mxu0 %v520_v29  ;;  %v507_v18 = vld [vmem:[%s1375_s19 + $0xa8] sm:$0xff]  ;;  %v801_v23 = vld [vmem:[%s464_s23 + $0x20] sm:$0xff] }
  0x2c   : > { %696 = vmatpush.msra.mxu2 %v552_v30  ;;  %v511_v20 = vld [vmem:[%s1375_s19 + $0xc8] sm:$0xff] }
  0x2d   : > { %1199 = vmatpush.msra.mxu1 %v519_v31  ;;  %615 = vmatpush.msra.mxu0 %v519_v31  ;;  %v515_v21 = vld [vmem:[%s1375_s19 + $0xe8] sm:$0xff]  ;;  %v799_v31 = vld [vmem:[%s464_s23 + $0x10] sm:$0xff] }
  0x2e   : > { %697 = vmatpush.msra.mxu2 %v551_v32  ;;  %1158 = vmatmul.msk.f32.gmra.mxu3 %vm576_vm0, %v501_v59  ;;  %v802_v22 = vld [vmem:[%s464_s23 + $0x28] sm:$0xff] }
  0x2f   : > { %1200 = vmatpush.msra.mxu1 %v518_v33  ;;  %616 = vmatpush.msra.mxu0 %v518_v33  ;;  %v798_v33 = vld [vmem:[%s464_s23 + $0x8] sm:$0xff] }
  0x30   : > { %698 = vmatpush.msra.mxu2 %v550_v34  ;;  %629 = vmatmul.f32.vlgmr.msra.gmra.mxu1 %v502_v35 }
  0x31   : > { %699 = vmatmul.f32.vlgmr.msra.gmra.mxu2 %v488_v36  ;;  %642 = vmatpush.msrb.mxu1 %v549_v37  ;;  %v797_v36 = vld [vmem:[%s464_s23] sm:$0xff] }
  0x32   : > { %734 = vmatpush.msrb.mxu2 %v1350_v14  ;;  %617 = vmatmul.f32.vlgmr.msra.gmra.mxu0 %v486_v40  ;;  %v499_v14 = vld [vmem:[%s1375_s19 + $0x68] sm:$0xff] }
  0x33   : > { %643 = vmatpush.msrb.mxu1 %v548_v38  ;;  %837 = vmatpush.msrb.mxu3 %v802_v22 }
  0x34   : > { %735 = vmatpush.msrb.mxu2 %v570_v17  ;;  %v489_v17 = vld [vmem:[%s1375_s19 + $0x18] sm:$0xff] }
  0x35   : > { %644 = vmatpush.msrb.mxu1 %v547_v41  ;;  %838 = vmatpush.msrb.mxu3 %v801_v23  ;;  %v889_v23 = vld [vmem:[%s472_s14 + $0x8] sm:$0xff] }
  0x36   : > { %736 = vmatpush.msrb.mxu2 %v569_v26  ;;  %1159 = vmatmul.msk.f32.gmra.mxu3 %vm576_vm0, %v505_v3  ;;  %v800_v26 = vld [vmem:[%s464_s23 + $0x18] sm:$0xff] }
  0x37   : > { %645 = vmatpush.msrb.mxu1 %v546_v42  ;;  %839 = vmatpush.msrb.mxu3 %v800_v26 }
  0x38   : > { %737 = vmatpush.msrb.mxu2 %v568_v39  ;;  %632 = vmatmul.f32.gmra.mxu1 %v506_v43  ;;  %v1462_v43 = vld [vmem:[%s449_s12] ss:$0 sm:$0xff] }
  0x39   : > { %702 = vmatmul.f32.gmra.mxu2 %v492_v44  ;;  %646 = vmatpush.msrb.mxu1 %v545_v45 }
  0x3a   : > { %738 = vmatpush.msrb.mxu2 %v567_v47  ;;  %620 = vmatmul.f32.gmra.mxu0 %v490_v48 }
  0x3b   : > { %647 = vmatpush.msrb.mxu1 %v544_v46  ;;  %840 = vmatpush.msrb.mxu3 %v799_v31 }
  0x3c   : > { %739 = vmatpush.msrb.mxu2 %v566_v49  ;;  %933 = vmatpush.msrb.mxu0 %v889_v23 }
  0x3d   : > { %648 = vmatpush.msrb.mxu1 %v543_v50  ;;  %841 = vmatpush.msrb.mxu3 %v798_v33 }
  0x3e   : > { %1160 = vmatmul.msk.f32.gmra.mxu3 %vm576_vm0, %v509_v7 }
  0x3f   : > { %649 = vmatpush.msrb.mxu1 %v542_v52  ;;  %842 = vmatpush.msrb.mxu3 %v797_v36 }
  0x40   : > { %635 = vmatmul.f32.gmra.mxu1 %v510_v53 }
  0x41   : > { %705 = vmatmul.f32.gmra.mxu2 %v496_v54  ;;  %650 = vmatpush.msrb.mxu1 %v541_v55 }
  0x42   : > { %623 = vmatmul.f32.gmra.mxu0 %v494_v57 }
  0x43   : > { %651 = vmatpush.msrb.mxu1 %v540_v56 }
  0x45   : > { %652 = vmatpush.msrb.mxu1 %v539_v58 }
  0x46   : > { %1161 = vmatmul.msk.f32.gmra.mxu3 %vm576_vm0, %v513_v10 }
  0x47   : > { %653 = vmatpush.msrb.mxu1 %v538_v60 }
  0x48   : > { %638 = vmatmul.f32.gmra.mxu1 %v514_v61 }
  0x49   : > { %708 = vmatmul.f32.gmra.mxu2 %v500_v62  ;;  %654 = vmatpush.msrb.mxu1 %v537_v63 }
  0x4a   : > { %626 = vmatmul.f32.gmra.mxu0 %v498_v1 }
  0x4b   : > { %655 = vmatpush.msrb.mxu1 %v536_v0 }
  0x4d   : > { %656 = vmatpush.msrb.mxu1 %v535_v2 }
  0x4e   : > { %1162 = vmatmul.msk.f32.gmra.mxu3 %vm576_vm0, %v517_v13 }
  0x4f   : > { %657 = vmatpush.msrb.mxu1 %v534_v4 }
  0x50   : > { %658 = vmatmul.f32.vlgmr.msrb.gmra.mxu1 %v487_v5 }
  0x51   : > { %711 = vmatmul.f32.gmra.mxu2 %v504_v6 }
  0x58   : > { %661 = vmatmul.f32.gmra.mxu1 %v491_v8 }
  0x59   : > { %714 = vmatmul.f32.gmra.mxu2 %v508_v9 }
  0x60   : > { %664 = vmatmul.f32.gmra.mxu1 %v495_v11 }
  0x61   : > { %717 = vmatmul.f32.gmra.mxu2 %v512_v12 }
  0x68   : > { %667 = vmatmul.f32.gmra.mxu1 %v499_v14 }
  0x69   : > { %720 = vmatmul.f32.gmra.mxu2 %v516_v15 }
  0x70   : > { %670 = vmatmul.f32.gmra.mxu1 %v503_v16 }
  0x71   : > { %1155 = vmatmul.msk.f32.vlgmr.msrb.gmra.mxu2 %vm576_vm0, %v489_v17 }
  0x78   : > { %673 = vmatmul.f32.gmra.mxu1 %v507_v18 }
  0x79   : > { %1156 = vmatmul.msk.f32.gmra.mxu2 %vm576_vm0, %v493_v19 }
  0x80   : > { %676 = vmatmul.f32.gmra.mxu1 %v511_v20 }
  0x88   : > { %679 = vmatmul.f32.gmra.mxu1 %v515_v21 }
  0xa9   : > { %v747_v51 = vpop.f32.mrf.mxu3 }
  0xad   : > { %v630_v24 = vpop.f32.mrf.mxu1 }
  0xae   : > { %v631_v10 = vadd.f32 %v1462_v43, %v630_v24  ;;  %v888_v24 = vld [vmem:[%s472_s14] sm:$0xff] }
  0xaf   : > { %v618_v38 = vpop.f32.mrf.mxu0  ;;  %934 = vmatpush.msrb.mxu0 %v888_v24 }
  0xb0   : > { %v619_v44 = vadd.f32 %v1462_v43, %v618_v38 }
  0xb1   : > { %v750_v2 = vpop.f32.mrf.mxu3 }
  0xb4   : > { %v700_v25 = vpop.f32.mrf.mxu2 }
  0xb5   : > { %v1447_v27 = vpop.f32.mrf.mxu1 }
  0xb6   : > { %v634_v18 = vadd.f32 %v1462_v43, %v1447_v27 }
  0xb7   : > { %v621_v42 = vpop.f32.mrf.mxu0 }
  0xb8   : > { %v622_v49 = vadd.f32 %v1462_v43, %v621_v42 }
  0xb9   : > { %v753_v11 = vpop.f32.mrf.mxu3 }
  0xbc   : > { %v703_v28 = vpop.f32.mrf.mxu2 }
  0xbd   : > { %v1449_v29 = vpop.f32.mrf.mxu1 }
  0xbe   : > { %v637_v27 = vadd.f32 %v1462_v43, %v1449_v29 }
  0xbf   : > { %v624_v48 = vpop.f32.mrf.mxu0 }
  0xc0   : > { %v625_v53 = vadd.f32 %v1462_v43, %v624_v48 }
  0xc1   : > { %v756_v22 = vpop.f32.mrf.mxu3 }
  0xc4   : > { %v706_v30 = vpop.f32.mrf.mxu2 }
  0xc5   : > { %v1451_v34 = vpop.f32.mrf.mxu1 }
  0xc6   : > { %v640_v38 = vadd.f32 %v1462_v43, %v1451_v34 }
  0xc7   : > { %v627_v60 = vpop.f32.mrf.mxu0 }
  0xc8   : > { %v628_v0 = vadd.f32 %v1462_v43, %v627_v60  ;;  %v789_v43 = vld [vmem:[%s1502_s21] sm:$0xff]  ;;  %v792_v60 = vld [vmem:[%s1502_s21 + $0x18] sm:$0xff] }
  0xc9   : > { %v759_v33 = vpop.f32.mrf.mxu3 }
  0xcc   : > { %v709_v32 = vpop.f32.mrf.mxu2 }
  0xcd   : > { %v659_v37 = vpop.f32.mrf.mxu1 }
  0xce   : > { %v660_v47 = vadd.f32 %v659_v37, %v619_v44 }
  0xd0   : > { %v701_v50 = vadd.f32 %v700_v25, %v660_v47 }
  0xd4   : > { %v712_v35 = vpop.f32.mrf.mxu2 }
  0xd5   : > { %v662_v40 = vpop.f32.mrf.mxu1 }
  0xd6   : > { %v663_v56 = vadd.f32 %v662_v40, %v622_v49 }
  0xd8   : > { %v704_v61 = vadd.f32 %v703_v28, %v663_v56  ;;  %v791_v56 = vld [vmem:[%s1502_s21 + $0x10] sm:$0xff] }
  0xdc   : > { %v1453_v39 = vpop.f32.mrf.mxu2 }
  0xdd   : > { %v665_v45 = vpop.f32.mrf.mxu1 }
  0xde   : > { %v666_v58 = vadd.f32 %v665_v45, %v625_v53  ;;  %v762_v45 = vpop.f32.mrf.mxu3 }
  0xe0   : > { %v707_v63 = vadd.f32 %v706_v30, %v666_v58 }
  0xe2   : > { %v748_v5 = vadd.f32 %v747_v51, %v707_v63 }
  0xe4   : > { %v1455_v41 = vpop.f32.mrf.mxu2  ;;  %v775_v8 = vmul.f32 0.1, %v748_v5  ;;  %vm767_vm3 = vcmp.ge.f32.partialorder %v748_v5, 0.0 }
  0xe5   : > { %v668_v55 = vpop.f32.mrf.mxu1 }
  0xe6   : > { %v669_v6 = vadd.f32 %v668_v55, %v628_v0  ;;  %v783_v14 = vsel %vm767_vm3, %v748_v5, %v775_v8  ;;  %v793_v0 = vld [vmem:[%s1502_s21 + $0x20] sm:$0xff]  ;;  %v795_v8 = vld [vmem:[%s1502_s21 + $0x30] sm:$0xff] }
  0xe8   : > { %v710_v9 = vadd.f32 %v709_v32, %v669_v6 }
  0xea   : > { %v751_v12 = vadd.f32 %v750_v2, %v710_v9 }
  0xec   : > { %v1465_v46 = vpop.f32.mrf.mxu2  ;;  %v776_v16 = vmul.f32 0.1, %v751_v12  ;;  %vm768_vm4 = vcmp.ge.f32.partialorder %v751_v12, 0.0 }
  0xed   : > { %v671_v4 = vpop.f32.mrf.mxu1 }
  0xee   : > { %v672_v13 = vadd.f32 %v671_v4, %v631_v10  ;;  %v784_v21 = vsel %vm768_vm4, %v751_v12, %v776_v16  ;;  %v794_v4 = vld [vmem:[%s1502_s21 + $0x28] sm:$0xff]  ;;  %v796_v12 = vld [vmem:[%s1502_s21 + $0x38] sm:$0xff]  ;;  %v1235_v16 = vld [vmem:[%s475_s17] ss:$0 sm:$0xff] }
  0xf0   : > { %v713_v17 = vadd.f32 %v712_v35, %v672_v13 }
  0xf2   : > { %v754_v19 = vadd.f32 %v753_v11, %v713_v17 }
  0xf4   : > { %v741_v52 = vpop.f32.mrf.mxu2  ;;  %v777_v26 = vmul.f32 0.1, %v754_v19  ;;  %vm769_vm5 = vcmp.ge.f32.partialorder %v754_v19, 0.0 }
  0xf5   : > { %v742_v54 = vadd.f32 %v741_v52, %v701_v50  ;;  %v674_v15 = vpop.f32.mrf.mxu1  ;;  %v790_v52 = vld [vmem:[%s1502_s21 + $0x8] sm:$0xff] }
  0xf6   : > { %v675_v20 = vadd.f32 %v674_v15, %v634_v18  ;;  %v785_v32 = vsel %vm769_vm5, %v754_v19, %v777_v26 }
  0xf7   : > { %vm765_vm1 = vcmp.ge.f32.partialorder %v742_v54, 0.0  ;;  %v773_v57 = vmul.f32 0.1, %v742_v54 }
  0xf8   : > { %v716_v28 = vadd.f32 %v1453_v39, %v675_v20 }
  0xf9   : > { %v781_v59 = vsel %vm765_vm1, %v742_v54, %v773_v57 }
  0xfa   : > { %1163 = vmatmul.msk.f32.vlgmr.msrb.gmra.mxu3 %vm576_vm0, %v781_v59  ;;  %v757_v30 = vadd.f32 %v756_v22, %v716_v28 }
  0xfc   : > { %v744_v62 = vpop.f32.mrf.mxu2  ;;  %v778_v35 = vmul.f32 0.1, %v757_v30  ;;  %vm770_vm6 = vcmp.ge.f32.partialorder %v757_v30, 0.0 }
  0xfd   : > { %v745_v1 = vadd.f32 %v744_v62, %v704_v61  ;;  %v677_v25 = vpop.f32.mrf.mxu1 }
  0xfe   : > { %v678_v31 = vadd.f32 %v677_v25, %v637_v27  ;;  %v786_v29 = vsel %vm770_vm6, %v757_v30, %v778_v35 }
  0xff   : > { %v774_v3 = vmul.f32 0.1, %v745_v1  ;;  %vm766_vm2 = vcmp.ge.f32.partialorder %v745_v1, 0.0 }
 0x100   : > { %v719_v36 = vadd.f32 %v1455_v41, %v678_v31 }
 0x101   : > { %v782_v7 = vsel %vm766_vm2, %v745_v1, %v774_v3 }
 0x102   : > { %1164 = vmatmul.msk.f32.gmra.mxu3 %vm576_vm0, %v782_v7  ;;  %v760_v39 = vadd.f32 %v759_v33, %v719_v36 }
 0x104   : > { %v779_v42 = vmul.f32 0.1, %v760_v39  ;;  %vm771_vm7 = vcmp.ge.f32.partialorder %v760_v39, 0.0 }
 0x105   : > { %v680_v37 = vpop.f32.mrf.mxu1 }
 0x106   : > { %v681_v40 = vadd.f32 %v680_v37, %v640_v38  ;;  %v787_v47 = vsel %vm771_vm7, %v760_v39, %v779_v42 }
 0x108   : > { %v722_v44 = vadd.f32 %v1465_v46, %v681_v40  ;;  %v1234_v46 = vld [vmem:[%s467_s26] ss:$0 sm:$0xff] }
 0x10a   : > { %1165 = vmatmul.msk.f32.gmra.mxu3 %vm576_vm0, %v783_v14  ;;  %v763_v41 = vadd.f32 %v762_v45, %v722_v44 }
 0x10c   : > { %v780_v48 = vmul.f32 0.1, %v763_v41  ;;  %vm772_vm8 = vcmp.ge.f32.partialorder %v763_v41, 0.0 }
 0x10e   : > { %v788_v34 = vsel %vm772_vm8, %v763_v41, %v780_v48 }
 0x112   : > { %1166 = vmatmul.msk.f32.gmra.mxu3 %vm576_vm0, %v784_v21 }
 0x11a   : > { %1167 = vmatmul.msk.f32.gmra.mxu3 %vm576_vm0, %v785_v32 }
 0x122   : > { %1168 = vmatmul.msk.f32.gmra.mxu3 %vm576_vm0, %v786_v29 }
 0x12a   : > { %1169 = vmatmul.msk.f32.gmra.mxu3 %vm576_vm0, %v787_v47 }
 0x132   : > { %1170 = vmatmul.msk.f32.gmra.mxu3 %vm576_vm0, %v788_v34 }
 0x17d   : > { %v844_v49 = vpop.f32.mrf.mxu3 }
 0x17e   : > { %v868_v50 = vadd.f32 %v844_v49, %v789_v43 }
 0x180   : > { %v880_v51 = vadd.f32 %v1234_v46, %v868_v50 }
 0x182   : > { %1171 = vmatmul.msk.f32.vlgmr.msrb.gmra.mxu0 %vm894_vm9, %v880_v51 }
 0x185   : > { %v847_v53 = vpop.f32.mrf.mxu3 }
 0x186   : > { %v869_v54 = vadd.f32 %v847_v53, %v790_v52 }
 0x188   : > { %v881_v55 = vadd.f32 %v1234_v46, %v869_v54 }
 0x18a   : > { %1172 = vmatmul.msk.f32.gmra.mxu0 %vm894_vm9, %v881_v55 }
 0x18d   : > { %v850_v57 = vpop.f32.mrf.mxu3 }
 0x18e   : > { %v870_v58 = vadd.f32 %v850_v57, %v791_v56 }
 0x190   : > { %v882_v59 = vadd.f32 %v1234_v46, %v870_v58 }
 0x192   : > { %1173 = vmatmul.msk.f32.gmra.mxu0 %vm894_vm9, %v882_v59 }
 0x195   : > { %v853_v61 = vpop.f32.mrf.mxu3 }
 0x196   : > { %v871_v62 = vadd.f32 %v853_v61, %v792_v60 }
 0x198   : > { %v883_v63 = vadd.f32 %v1234_v46, %v871_v62 }
 0x19a   : > { %1174 = vmatmul.msk.f32.gmra.mxu0 %vm894_vm9, %v883_v63 }
 0x19d   : > { %v856_v1 = vpop.f32.mrf.mxu3 }
 0x19e   : > { %v872_v2 = vadd.f32 %v856_v1, %v793_v0 }
 0x1a0   : > { %v884_v3 = vadd.f32 %v1234_v46, %v872_v2 }
 0x1a2   : > { %1175 = vmatmul.msk.f32.gmra.mxu0 %vm894_vm9, %v884_v3 }
 0x1a5   : > { %v859_v5 = vpop.f32.mrf.mxu3 }
 0x1a6   : > { %v873_v6 = vadd.f32 %v859_v5, %v794_v4 }
 0x1a8   : > { %v885_v7 = vadd.f32 %v1234_v46, %v873_v6 }
 0x1aa   : > { %1176 = vmatmul.msk.f32.gmra.mxu0 %vm894_vm9, %v885_v7 }
 0x1ad   : > { %v862_v9 = vpop.f32.mrf.mxu3 }
 0x1ae   : > { %v874_v10 = vadd.f32 %v862_v9, %v795_v8 }
 0x1b0   : > { %v886_v11 = vadd.f32 %v1234_v46, %v874_v10 }
 0x1b2   : > { %1177 = vmatmul.msk.f32.gmra.mxu0 %vm894_vm9, %v886_v11 }
 0x1b5   : > { %v865_v13 = vpop.f32.mrf.mxu3 }
 0x1b6   : > { %v875_v14 = vadd.f32 %v865_v13, %v796_v12 }
 0x1b8   : > { %v887_v15 = vadd.f32 %v1234_v46, %v875_v14 }
 0x1ba   : > { %1178 = vmatmul.msk.f32.gmra.mxu0 %vm894_vm9, %v887_v15 }
 0x1ff   : > { %v936_v17 = vpop.f32.mrf.mxu0 }
 0x200   : > { %v937_v18 = vadd.f32 %v1235_v16, %v936_v17 }
 0x202   : > { %961 = vst.msk [vmem:[%s484_s10] sm:$0xff] %vm960_vm10, %v937_v18 }
 0x207   : > { %v939_v19 = vpop.f32.mrf.mxu0 }
 0x208   : > { %v940_v20 = vadd.f32 %v1235_v16, %v939_v19 }
 0x20a   : > { %962 = vst.msk [vmem:[%s484_s10 + $0x8] sm:$0xff] %vm960_vm10, %v940_v20 }
 0x20f   : > { %v942_v21 = vpop.f32.mrf.mxu0 }
 0x210   : > { %v943_v22 = vadd.f32 %v1235_v16, %v942_v21 }
 0x212   : > { %963 = vst.msk [vmem:[%s484_s10 + $0x10] sm:$0xff] %vm960_vm10, %v943_v22 }
 0x217   : > { %v945_v23 = vpop.f32.mrf.mxu0 }
 0x218   : > { %v946_v24 = vadd.f32 %v1235_v16, %v945_v23 }
 0x21a   : > { %964 = vst.msk [vmem:[%s484_s10 + $0x18] sm:$0xff] %vm960_vm10, %v946_v24 }
 0x21f   : > { %v948_v25 = vpop.f32.mrf.mxu0 }
 0x220   : > { %v949_v26 = vadd.f32 %v1235_v16, %v948_v25 }
 0x222   : > { %965 = vst.msk [vmem:[%s484_s10 + $0x20] sm:$0xff] %vm960_vm10, %v949_v26 }
 0x227   : > { %v951_v28 = vpop.f32.mrf.mxu0 }
 0x228   : > { %v952_v27 = vadd.f32 %v1235_v16, %v951_v28 }
 0x22a   : > { %966 = vst.msk [vmem:[%s484_s10 + $0x28] sm:$0xff] %vm960_vm10, %v952_v27 }
 0x22f   : > { %v954_v30 = vpop.f32.mrf.mxu0 }
 0x230   : > { %v955_v31 = vadd.f32 %v1235_v16, %v954_v30 }
 0x232   : > { %967 = vst.msk [vmem:[%s484_s10 + $0x30] sm:$0xff] %vm960_vm10, %v955_v31 }
 0x237   : > { %v957_v32 = vpop.f32.mrf.mxu0 }
 0x238   : > { %v958_v33 = vadd.f32 %v1235_v16, %v957_v32 }
 0x23a   : > { %968 = vst.msk [vmem:[%s484_s10 + $0x38] sm:$0xff] %vm960_vm10, %v958_v33 }
 0x23b PF: > { %s18_s29 = sadd.s32 1, %s1258_s29   ;;  %s1561_s27 = smov %s1254_s28 }
 0x23c   : > { %p15_p5 = scmp.ge.s32.totalorder %s18_s29, 4   ;;  %s1562_s28 = smov %s1564_s30 }
 0x23e   :  { %17 = sbr.rel (!%p15_p5) target bundleno = 2 (0x2), region = 103 }

// kernel: main_encoder.31
= control target key start
LH: loop header
LB: loop body
LE: loop exit
PB: predicated region body
PF: predicated region fallthrough
CT: control target
= control target key end

     0   :  { %s661_s12 = smov 0   ;;  %s663_s13 = smov 0   ;;  %s783_s0 = inlined_call_operand.vmem [shape: f32[2,64,144], index: 0, kind: input, shape index: {}]   ;;  %s784_s1 = inlined_call_operand.vmem [shape: f32[2,144,16], index: 1, kind: input, shape index: {}]   ;;  %s785_s2 = inlined_call_operand.vmem [shape: f32[2,1,16], index: 2, kind: input, shape index: {}]   ;;  %s786_s3 = inlined_call_operand.vmem [shape: f32[2,64,16], index: 3, kind: output, shape index: {}]  }
   0x1   :  { %s665_s14 = smov 0  }
   0x2 LB: > { %s25_s15 = sadd.s32 1, %s635_s13  ;;  %p539_p0 = scmp.ge.s32.totalorder %s639_s14, 1  ;;  %s639_s14 = sphi %s665_s14, %s13_s14   ;;  %s635_s13 = sphi %s663_s13, %s788_s13   ;;  %s631_s12 = sphi %s661_s12, %s787_s12  }
   0x3   : > { %p27_p1 = scmp.ge.s32.totalorder %s25_s15, 2  ;;  %p177_p2 = scmp.lt.s32.totalorder %s639_s14, 3 }
   0x5   : > { %s790_s15 = smov (%p27_p1, %s25_s15), 0  ;;  %p178_p3 = pnand %p539_p0, %p177_p2 }
   0x6   : > { %p219_p4 = scmp.lt.s32.totalorder (!%p178_p3), %s631_s12, 1 }
   0x7   : > { %181 = sbr.rel (%p178_p3) target bundleno = 213 (0xd5), region = 32 }
   0xc   : > { %s792_s12 = smov (!%p219_p4, %s631_s12), 1  ;;  %vm285_vm0 = vcmask 130048  }
   0xd   : > { %s591_s16 = smul.u32 144, %s792_s12  ;;  %s555_s17 = sshll.u32 %s792_s12, 7 }
   0xe   : > { %s693_s23 = scalar_lea.vmem %s783_s0, %s555_s17  ;;  %s236_s26 = scalar_lea.vmem %s785_s2, %s792_s12 }
   0xf   : > { %s686_s20 = scalar_lea.vmem %s784_s1, %s591_s16  ;;  %v248_v5 = vld [vmem:[%s693_s23 + $0x8] sm:$0xff]  ;;  %v250_v10 = vld [vmem:[%s693_s23 + $0x18] sm:$0xff]  ;;  %v247_v22 = vld [vmem:[%s693_s23] sm:$0xff]  ;;  %s556_s29 = sshll.u32 %s792_s12, 6 }
  0x10   : > { %v278_v0 = vld [vmem:[%s686_s20 + $0x78] sm:$0xff]  ;;  %v277_v1 = vld [vmem:[%s686_s20 + $0x70] sm:$0xff]  ;;  %v696_v2 = vld [vmem:[%s686_s20 + $0x88] sm:$0xff]  ;;  %s756_s5 = scalar_lea.vmem %s786_s3, %s556_s29 }
  0x11   : > { %310 = vmatpush.msra.mxu0 %v278_v0  ;;  %557 = vmatpush.msra.mxu2 %v278_v0  ;;  %v699_v3 = vld [vmem:[%s686_s20 + $0x80] sm:$0xff]  ;;  %v276_v4 = vld [vmem:[%s686_s20 + $0x68] sm:$0xff]  ;;  %v274_v7 = vld [vmem:[%s686_s20 + $0x58] sm:$0xff] }
  0x12   : > { %558 = vmatpush.msra.mxu3 %v278_v0  ;;  %365 = vmatpush.msra.mxu1 %v696_v2  ;;  %v275_v6 = vld [vmem:[%s686_s20 + $0x60] sm:$0xff]  ;;  %v273_v8 = vld [vmem:[%s686_s20 + $0x50] sm:$0xff]  ;;  %v272_v9 = vld [vmem:[%s686_s20 + $0x48] sm:$0xff] }
  0x13   : > { %311 = vmatpush.msra.mxu0 %v277_v1  ;;  %559 = vmatpush.msra.mxu2 %v277_v1  ;;  %v271_v11 = vld [vmem:[%s686_s20 + $0x40] sm:$0xff]  ;;  %v270_v12 = vld [vmem:[%s686_s20 + $0x38] sm:$0xff]  ;;  %v269_v13 = vld [vmem:[%s686_s20 + $0x30] sm:$0xff] }
  0x14   : > { %560 = vmatpush.msra.mxu3 %v277_v1  ;;  %366 = vmatpush.msra.mxu1 %v699_v3  ;;  %v268_v14 = vld [vmem:[%s686_s20 + $0x28] sm:$0xff]  ;;  %v267_v16 = vld [vmem:[%s686_s20 + $0x20] sm:$0xff]  ;;  %v266_v17 = vld [vmem:[%s686_s20 + $0x18] sm:$0xff] }
  0x15   : > { %312 = vmatpush.msra.mxu0 %v276_v4  ;;  %561 = vmatpush.msra.mxu2 %v276_v4  ;;  %v252_v15 = vld [vmem:[%s693_s23 + $0x28] sm:$0xff]  ;;  %v265_v18 = vld [vmem:[%s686_s20 + $0x10] sm:$0xff]  ;;  %v254_v20 = vld [vmem:[%s693_s23 + $0x38] sm:$0xff] }
  0x16   : > { %562 = vmatpush.msra.mxu3 %v276_v4  ;;  %545 = vmatmul.msk.f32.vlgmr.msra.gmra.mxu1 %vm285_vm0, %v248_v5  ;;  %v264_v19 = vld [vmem:[%s686_s20 + $0x8] sm:$0xff]  ;;  %v263_v21 = vld [vmem:[%s686_s20] sm:$0xff]  ;;  %v253_v23 = vld [vmem:[%s693_s23 + $0x30] sm:$0xff] }
  0x17   : > { %313 = vmatpush.msra.mxu0 %v275_v6  ;;  %563 = vmatpush.msra.mxu2 %v275_v6  ;;  %v255_v24 = vld [vmem:[%s693_s23 + $0x40] sm:$0xff]  ;;  %v256_v25 = vld [vmem:[%s693_s23 + $0x48] sm:$0xff]  ;;  %v249_v26 = vld [vmem:[%s693_s23 + $0x10] sm:$0xff] }
  0x18   : > { %564 = vmatpush.msra.mxu3 %v275_v6  ;;  %v257_v27 = vld [vmem:[%s693_s23 + $0x50] sm:$0xff]  ;;  %v262_v28 = vld [vmem:[%s693_s23 + $0x78] sm:$0xff]  ;;  %v251_v30 = vld [vmem:[%s693_s23 + $0x20] sm:$0xff] }
  0x19   : > { %314 = vmatpush.msra.mxu0 %v274_v7  ;;  %565 = vmatpush.msra.mxu2 %v274_v7  ;;  %v258_v29 = vld [vmem:[%s693_s23 + $0x58] sm:$0xff]  ;;  %v259_v31 = vld [vmem:[%s693_s23 + $0x60] sm:$0xff]  ;;  %v260_v32 = vld [vmem:[%s693_s23 + $0x68] sm:$0xff] }
  0x1a   : > { %566 = vmatpush.msra.mxu3 %v274_v7  ;;  %v261_v33 = vld [vmem:[%s693_s23 + $0x70] sm:$0xff]  ;;  %v616_v37 = vld [vmem:[%s236_s26] ss:$0 sm:$0xff] }
  0x1b   : > { %315 = vmatpush.msra.mxu0 %v273_v8  ;;  %567 = vmatpush.msra.mxu2 %v273_v8 }
  0x1c   : > { %568 = vmatpush.msra.mxu3 %v273_v8 }
  0x1d   : > { %316 = vmatpush.msra.mxu0 %v272_v9  ;;  %569 = vmatpush.msra.mxu2 %v272_v9 }
  0x1e   : > { %570 = vmatpush.msra.mxu3 %v272_v9  ;;  %546 = vmatmul.msk.f32.gmra.mxu1 %vm285_vm0, %v250_v10 }
  0x1f   : > { %317 = vmatpush.msra.mxu0 %v271_v11  ;;  %571 = vmatpush.msra.mxu2 %v271_v11 }
  0x20   : > { %572 = vmatpush.msra.mxu3 %v271_v11 }
  0x21   : > { %318 = vmatpush.msra.mxu0 %v270_v12  ;;  %573 = vmatpush.msra.mxu2 %v270_v12 }
  0x22   : > { %574 = vmatpush.msra.mxu3 %v270_v12 }
  0x23   : > { %319 = vmatpush.msra.mxu0 %v269_v13  ;;  %575 = vmatpush.msra.mxu2 %v269_v13 }
  0x24   : > { %576 = vmatpush.msra.mxu3 %v269_v13 }
  0x25   : > { %320 = vmatpush.msra.mxu0 %v268_v14  ;;  %577 = vmatpush.msra.mxu2 %v268_v14 }
  0x26   : > { %578 = vmatpush.msra.mxu3 %v268_v14  ;;  %547 = vmatmul.msk.f32.gmra.mxu1 %vm285_vm0, %v252_v15 }
  0x27   : > { %321 = vmatpush.msra.mxu0 %v267_v16  ;;  %579 = vmatpush.msra.mxu2 %v267_v16 }
  0x28   : > { %580 = vmatpush.msra.mxu3 %v267_v16 }
  0x29   : > { %322 = vmatpush.msra.mxu0 %v266_v17  ;;  %581 = vmatpush.msra.mxu2 %v266_v17 }
  0x2a   : > { %582 = vmatpush.msra.mxu3 %v266_v17 }
  0x2b   : > { %323 = vmatpush.msra.mxu0 %v265_v18  ;;  %583 = vmatpush.msra.mxu2 %v265_v18 }
  0x2c   : > { %584 = vmatpush.msra.mxu3 %v265_v18 }
  0x2d   : > { %324 = vmatpush.msra.mxu0 %v264_v19  ;;  %585 = vmatpush.msra.mxu2 %v264_v19 }
  0x2e   : > { %586 = vmatpush.msra.mxu3 %v264_v19  ;;  %548 = vmatmul.msk.f32.gmra.mxu1 %vm285_vm0, %v254_v20 }
  0x2f   : > { %325 = vmatpush.msra.mxu0 %v263_v21  ;;  %587 = vmatpush.msra.mxu2 %v263_v21 }
  0x30   : > { %588 = vmatpush.msra.mxu3 %v263_v21  ;;  %326 = vmatmul.f32.vlgmr.msra.gmra.mxu0 %v247_v22 }
  0x31   : > { %335 = vmatmul.f32.vlgmr.msra.gmra.mxu2 %v253_v23  ;;  %338 = vmatmul.f32.vlgmr.msra.gmra.mxu3 %v255_v24 }
  0x32   : > { %589 = vmatpush.msrb.mxu2 %v696_v2 }
  0x34   : > { %590 = vmatpush.msrb.mxu2 %v699_v3 }
  0x36   : > { %549 = vmatmul.msk.f32.gmra.mxu1 %vm285_vm0, %v256_v25 }
  0x38   : > { %329 = vmatmul.f32.gmra.mxu0 %v249_v26 }
  0x39   : > { %341 = vmatmul.f32.gmra.mxu3 %v257_v27  ;;  %552 = vmatmul.msk.f32.vlgmr.msrb.gmra.mxu2 %vm285_vm0, %v262_v28 }
  0x3e   : > { %550 = vmatmul.msk.f32.gmra.mxu1 %vm285_vm0, %v258_v29 }
  0x40   : > { %332 = vmatmul.f32.gmra.mxu0 %v251_v30 }
  0x41   : > { %344 = vmatmul.f32.gmra.mxu3 %v259_v31 }
  0x46   : > { %551 = vmatmul.msk.f32.gmra.mxu1 %vm285_vm0, %v260_v32 }
  0x49   : > { %347 = vmatmul.f32.gmra.mxu3 %v261_v33 }
  0x93   : > { %v368_v34 = vpop.f32.mrf.mxu1 }
  0x9b   : > { %v371_v35 = vpop.f32.mrf.mxu1 }
  0xa3   : > { %v374_v36 = vpop.f32.mrf.mxu1 }
  0xab   : > { %v377_v38 = vpop.f32.mrf.mxu1 }
  0xad   : > { %v327_v39 = vpop.f32.mrf.mxu0 }
  0xae   : > { %v328_v40 = vadd.f32 %v616_v37, %v327_v39 }
  0xb0   : > { %v369_v41 = vadd.f32 %v368_v34, %v328_v40 }
  0xb2   : > { %vm392_vm1 = vcmp.ge.f32.partialorder %v369_v41, 0.0  ;;  %v400_v42 = vmul.f32 0.1, %v369_v41 }
  0xb3   : > { %v380_v43 = vpop.f32.mrf.mxu1 }
  0xb4   : > { %v408_v44 = vsel %vm392_vm1, %v369_v41, %v400_v42  ;;  %v336_v45 = vpop.f32.mrf.mxu2  ;;  %v339_v46 = vpop.f32.mrf.mxu3 }
  0xb5   : > { %416 = vst.msk [vmem:[%s756_s5] sm:$0xff] %vm285_vm0, %v408_v44  ;;  %v337_v47 = vadd.f32 %v616_v37, %v336_v45  ;;  %v340_v48 = vadd.f32 %v616_v37, %v339_v46  ;;  %v330_v49 = vpop.f32.mrf.mxu0 }
  0xb6   : > { %v331_v50 = vadd.f32 %v616_v37, %v330_v49 }
  0xb7   : > { %v378_v51 = vadd.f32 %v377_v38, %v337_v47  ;;  %v381_v52 = vadd.f32 %v380_v43, %v340_v48 }
  0xb8   : > { %v372_v53 = vadd.f32 %v371_v35, %v331_v50 }
  0xb9   : > { %vm395_vm2 = vcmp.ge.f32.partialorder %v378_v51, 0.0  ;;  %v403_v54 = vmul.f32 0.1, %v378_v51  ;;  %vm396_vm3 = vcmp.ge.f32.partialorder %v381_v52, 0.0  ;;  %v404_v55 = vmul.f32 0.1, %v381_v52 }
  0xba   : > { %vm393_vm4 = vcmp.ge.f32.partialorder %v372_v53, 0.0  ;;  %v401_v56 = vmul.f32 0.1, %v372_v53 }
  0xbb   : > { %v411_v57 = vsel %vm395_vm2, %v378_v51, %v403_v54  ;;  %v412_v58 = vsel %vm396_vm3, %v381_v52, %v404_v55  ;;  %v383_v59 = vpop.f32.mrf.mxu1 }
  0xbc   : > { %419 = vst.msk [vmem:[%s756_s5 + $0x18] sm:$0xff] %vm285_vm0, %v411_v57  ;;  %v409_v60 = vsel %vm393_vm4, %v372_v53, %v401_v56  ;;  %v342_v61 = vpop.f32.mrf.mxu3  ;;  %v389_v14 = vpop.f32.mrf.mxu2 }
  0xbd   : > { %417 = vst.msk [vmem:[%s756_s5 + $0x8] sm:$0xff] %vm285_vm0, %v409_v60  ;;  %v343_v62 = vadd.f32 %v616_v37, %v342_v61  ;;  %v333_v63 = vpop.f32.mrf.mxu0 }
  0xbe   : > { %420 = vst.msk [vmem:[%s756_s5 + $0x20] sm:$0xff] %vm285_vm0, %v412_v58  ;;  %v334_v0 = vadd.f32 %v616_v37, %v333_v63 }
  0xbf   : > { %v384_v1 = vadd.f32 %v383_v59, %v343_v62 }
  0xc0   : > { %v375_v2 = vadd.f32 %v374_v36, %v334_v0 }
  0xc1   : > { %vm397_vm5 = vcmp.ge.f32.partialorder %v384_v1, 0.0  ;;  %v405_v3 = vmul.f32 0.1, %v384_v1 }
  0xc2   : > { %vm394_vm6 = vcmp.ge.f32.partialorder %v375_v2, 0.0  ;;  %v402_v4 = vmul.f32 0.1, %v375_v2 }
  0xc3   : > { %v413_v5 = vsel %vm397_vm5, %v384_v1, %v405_v3  ;;  %v386_v8 = vpop.f32.mrf.mxu1 }
  0xc4   : > { %v410_v6 = vsel %vm394_vm6, %v375_v2, %v402_v4  ;;  %421 = vst.msk [vmem:[%s756_s5 + $0x28] sm:$0xff] %vm285_vm0, %v413_v5  ;;  %v345_v7 = vpop.f32.mrf.mxu3 }
  0xc5   : > { %418 = vst.msk [vmem:[%s756_s5 + $0x10] sm:$0xff] %vm285_vm0, %v410_v6  ;;  %v346_v9 = vadd.f32 %v616_v37, %v345_v7 }
  0xc7   : > { %v387_v10 = vadd.f32 %v386_v8, %v346_v9 }
  0xc9   : > { %vm398_vm7 = vcmp.ge.f32.partialorder %v387_v10, 0.0  ;;  %v406_v11 = vmul.f32 0.1, %v387_v10 }
  0xcb   : > { %v414_v12 = vsel %vm398_vm7, %v387_v10, %v406_v11 }
  0xcc   : > { %422 = vst.msk [vmem:[%s756_s5 + $0x30] sm:$0xff] %vm285_vm0, %v414_v12  ;;  %v348_v13 = vpop.f32.mrf.mxu3 }
  0xcd   : > { %v349_v15 = vadd.f32 %v616_v37, %v348_v13 }
  0xcf   : > { %v390_v16 = vadd.f32 %v389_v14, %v349_v15 }
  0xd1   : > { %vm399_vm8 = vcmp.ge.f32.partialorder %v390_v16, 0.0  ;;  %v407_v17 = vmul.f32 0.1, %v390_v16 }
  0xd3   : > { %v415_v18 = vsel %vm399_vm8, %v390_v16, %v407_v17 }
  0xd4   : > { %423 = vst.msk [vmem:[%s756_s5 + $0x38] sm:$0xff] %vm285_vm0, %v415_v18 }
  0xd5 PF: > { %s13_s14 = sadd.s32 1, %s639_s14   ;;  %s787_s12 = smov %s635_s13 }
  0xd6   : > { %p10_p5 = scmp.ge.s32.totalorder %s13_s14, 4   ;;  %s788_s13 = smov %s790_s15 }
  0xd8   :  { %12 = sbr.rel (!%p10_p5) target bundleno = 2 (0x2), region = 68 }

// kernel: main_encoder.32
= control target key start
LH: loop header
LB: loop body
LE: loop exit
PB: predicated region body
PF: predicated region fallthrough
CT: control target
= control target key end

     0   :  { %vm32_vm0 = vcmask 392192   ;;  %vm98_vm1 = vcmask 130048   ;;  %s243_s1 = inlined_call_operand.vmem [shape: f32[1,48,16], index: 1, kind: input, shape index: {}]   ;;  %s244_s2 = inlined_call_operand.vmem [shape: f32[1,1,16], index: 2, kind: input, shape index: {}]   ;;  %s245_s0 = inlined_call_operand.vmem [shape: f32[1,64,48], index: 0, kind: input, shape index: {}]   ;;  %s246_s3 = inlined_call_operand.vmem [shape: f32[1,64,16], index: 3, kind: output, shape index: {}]  }
   0x1   :  { %v27_v0 = vld [vmem:[%s243_s1 + $0x28] sm:$0xff]  ;;  %v26_v1 = vld [vmem:[%s243_s1 + $0x20] sm:$0xff]  ;;  %v25_v2 = vld [vmem:[%s243_s1 + $0x18] sm:$0xff] }
   0x2   :  { %120 = vmatpush.msra.mxu2 %v27_v0  ;;  %121 = vmatpush.msra.mxu3 %v27_v0  ;;  %v24_v3 = vld [vmem:[%s243_s1 + $0x10] sm:$0xff]  ;;  %v23_v4 = vld [vmem:[%s243_s1 + $0x8] sm:$0xff]  ;;  %v22_v5 = vld [vmem:[%s243_s1] sm:$0xff] }
   0x3   :  { %67 = vmatpush.msra.mxu0 %v27_v0  ;;  %119 = vmatpush.msra.mxu1 %v27_v0  ;;  %v18_v6 = vld [vmem:[%s245_s0 + $0x20] sm:$0xff]  ;;  %v20_v7 = vld [vmem:[%s245_s0 + $0x30] sm:$0xff]  ;;  %v19_v10 = vld [vmem:[%s245_s0 + $0x28] sm:$0xff] }
   0x4   :  { %123 = vmatpush.msra.mxu2 %v26_v1  ;;  %124 = vmatpush.msra.mxu3 %v26_v1  ;;  %v14_v8 = vld [vmem:[%s245_s0] sm:$0xff]  ;;  %v16_v9 = vld [vmem:[%s245_s0 + $0x10] sm:$0xff]  ;;  %v21_v11 = vld [vmem:[%s245_s0 + $0x38] sm:$0xff] }
   0x5   :  { %68 = vmatpush.msra.mxu0 %v26_v1  ;;  %122 = vmatpush.msra.mxu1 %v26_v1  ;;  %v15_v12 = vld [vmem:[%s245_s0 + $0x8] sm:$0xff]  ;;  %v17_v13 = vld [vmem:[%s245_s0 + $0x18] sm:$0xff]  ;;  %v137_v14 = vld [vmem:[%s244_s2] ss:$0 sm:$0xff] }
   0x6   :  { %126 = vmatpush.msra.mxu2 %v25_v2  ;;  %127 = vmatpush.msra.mxu3 %v25_v2 }
   0x7   :  { %69 = vmatpush.msra.mxu0 %v25_v2  ;;  %125 = vmatpush.msra.mxu1 %v25_v2 }
   0x8   :  { %129 = vmatpush.msra.mxu2 %v24_v3  ;;  %130 = vmatpush.msra.mxu3 %v24_v3 }
   0x9   :  { %70 = vmatpush.msra.mxu0 %v24_v3  ;;  %128 = vmatpush.msra.mxu1 %v24_v3 }
   0xa   :  { %132 = vmatpush.msra.mxu2 %v23_v4  ;;  %133 = vmatpush.msra.mxu3 %v23_v4 }
   0xb   :  { %71 = vmatpush.msra.mxu0 %v23_v4  ;;  %131 = vmatpush.msra.mxu1 %v23_v4 }
   0xc   :  { %135 = vmatpush.msra.mxu2 %v22_v5  ;;  %136 = vmatpush.msra.mxu3 %v22_v5 }
   0xd   :  { %115 = vmatmul.msk.f32.vlgmr.msra.gmra.mxu2 %vm32_vm0, %v18_v6  ;;  %117 = vmatmul.msk.f32.vlgmr.msra.gmra.mxu3 %vm32_vm0, %v20_v7 }
   0xe   :  { %72 = vmatpush.msra.mxu0 %v22_v5  ;;  %134 = vmatpush.msra.mxu1 %v22_v5 }
   0xf   :  { %111 = vmatmul.msk.f32.vlgmr.msra.gmra.mxu0 %vm32_vm0, %v14_v8  ;;  %113 = vmatmul.msk.f32.vlgmr.msra.gmra.mxu1 %vm32_vm0, %v16_v9 }
  0x15   :  { %116 = vmatmul.msk.f32.gmra.mxu2 %vm32_vm0, %v19_v10  ;;  %118 = vmatmul.msk.f32.gmra.mxu3 %vm32_vm0, %v21_v11 }
  0x17   :  { %112 = vmatmul.msk.f32.gmra.mxu0 %vm32_vm0, %v15_v12  ;;  %114 = vmatmul.msk.f32.gmra.mxu1 %vm32_vm0, %v17_v13 }
  0x8c   :  { %v74_v15 = vpop.f32.mrf.mxu0  ;;  %v80_v16 = vpop.f32.mrf.mxu1 }
  0x8d   :  { %v75_v17 = vadd.f32 %v137_v14, %v74_v15  ;;  %v81_v18 = vadd.f32 %v137_v14, %v80_v16 }
  0x8f   :  { %99 = vst.msk [vmem:[%s246_s3] sm:$0xff] %vm98_vm1, %v75_v17 }
  0x90   :  { %101 = vst.msk [vmem:[%s246_s3 + $0x10] sm:$0xff] %vm98_vm1, %v81_v18  ;;  %v86_v19 = vpop.f32.mrf.mxu2  ;;  %v92_v20 = vpop.f32.mrf.mxu3 }
  0x91   :  { %v87_v21 = vadd.f32 %v137_v14, %v86_v19  ;;  %v93_v22 = vadd.f32 %v137_v14, %v92_v20 }
  0x93   :  { %103 = vst.msk [vmem:[%s246_s3 + $0x20] sm:$0xff] %vm98_vm1, %v87_v21 }
  0x94   :  { %105 = vst.msk [vmem:[%s246_s3 + $0x30] sm:$0xff] %vm98_vm1, %v93_v22  ;;  %v77_v23 = vpop.f32.mrf.mxu0  ;;  %v83_v24 = vpop.f32.mrf.mxu1 }
  0x95   :  { %v78_v25 = vadd.f32 %v137_v14, %v77_v23  ;;  %v84_v26 = vadd.f32 %v137_v14, %v83_v24 }
  0x97   :  { %100 = vst.msk [vmem:[%s246_s3 + $0x8] sm:$0xff] %vm98_vm1, %v78_v25 }
  0x98   :  { %102 = vst.msk [vmem:[%s246_s3 + $0x18] sm:$0xff] %vm98_vm1, %v84_v26  ;;  %v89_v27 = vpop.f32.mrf.mxu2  ;;  %v95_v28 = vpop.f32.mrf.mxu3 }
  0x99   :  { %v90_v29 = vadd.f32 %v137_v14, %v89_v27  ;;  %v96_v30 = vadd.f32 %v137_v14, %v95_v28 }
  0x9b   :  { %104 = vst.msk [vmem:[%s246_s3 + $0x28] sm:$0xff] %vm98_vm1, %v90_v29 }
  0x9c   :  { %106 = vst.msk [vmem:[%s246_s3 + $0x38] sm:$0xff] %vm98_vm1, %v96_v30 }

// kernel: main_encoder.33
= control target key start
LH: loop header
LB: loop body
LE: loop exit
PB: predicated region body
PF: predicated region fallthrough
CT: control target
= control target key end

     0   :  { %vm39_vm0 = vcmask 523264   ;;  %vm77_vm2 = vcmask 130048   ;;  %s499_s1 = inlined_call_operand.vmem [shape: f32[3,64,16], index: 1, kind: input, shape index: {}]   ;;  %s500_s2 = inlined_call_operand.vmem [shape: f32[3,1,16], index: 2, kind: input, shape index: {}]   ;;  %s501_s0 = inlined_call_operand.vmem [shape: f32[3,16,64], index: 0, kind: input, shape index: {}]   ;;  %s502_s4 = inlined_call_operand.vmem [shape: f32[1,16], index: 4, kind: input, shape index: {}]   ;;  %s503_s3 = inlined_call_operand.vmem [shape: f32[3,16,16], index: 3, kind: input, shape index: {}]   ;;  %s504_s5 = inlined_call_operand.vmem [shape: f32[16,16], index: 5, kind: output, shape index: {}]  }
   0x1   :  { %v34_v0 = vld [vmem:[%s499_s1 + $0x38] sm:$0xff]  ;;  %v33_v2 = vld [vmem:[%s499_s1 + $0x30] sm:$0xff]  ;;  %v32_v4 = vld [vmem:[%s499_s1 + $0x28] sm:$0xff] }
   0x2   :  { %v300_v1 = vld [vmem:[%s499_s1 + $0x78] sm:$0xff]  ;;  %54 = vmatpush.msra.mxu0 %v34_v0  ;;  %v299_v3 = vld [vmem:[%s499_s1 + $0x70] sm:$0xff]  ;;  %v298_v5 = vld [vmem:[%s499_s1 + $0x68] sm:$0xff] }
   0x3   :  { %140 = vmatpush.msra.mxu2 %v300_v1  ;;  %v31_v6 = vld [vmem:[%s499_s1 + $0x20] sm:$0xff]  ;;  %v30_v8 = vld [vmem:[%s499_s1 + $0x18] sm:$0xff]  ;;  %v29_v10 = vld [vmem:[%s499_s1 + $0x10] sm:$0xff] }
   0x4   :  { %55 = vmatpush.msra.mxu0 %v33_v2  ;;  %v297_v7 = vld [vmem:[%s499_s1 + $0x60] sm:$0xff]  ;;  %v296_v9 = vld [vmem:[%s499_s1 + $0x58] sm:$0xff]  ;;  %v295_v11 = vld [vmem:[%s499_s1 + $0x50] sm:$0xff] }
   0x5   :  { %141 = vmatpush.msra.mxu2 %v299_v3  ;;  %v28_v12 = vld [vmem:[%s499_s1 + $0x8] sm:$0xff]  ;;  %v27_v14 = vld [vmem:[%s499_s1] sm:$0xff]  ;;  %v291_v17 = vld [vmem:[%s501_s0 + $0x10] sm:$0xff] }
   0x6   :  { %56 = vmatpush.msra.mxu0 %v32_v4  ;;  %v294_v13 = vld [vmem:[%s499_s1 + $0x48] sm:$0xff]  ;;  %v293_v15 = vld [vmem:[%s499_s1 + $0x40] sm:$0xff]  ;;  %v292_v19 = vld [vmem:[%s501_s0 + $0x18] sm:$0xff] }
   0x7   :  { %142 = vmatpush.msra.mxu2 %v298_v5  ;;  %v25_v16 = vld [vmem:[%s501_s0] sm:$0xff]  ;;  %v26_v18 = vld [vmem:[%s501_s0 + $0x8] sm:$0xff]  ;;  %v317_v22 = vld [vmem:[%s499_s1 + $0xb8] sm:$0xff] }
   0x8   :  { %57 = vmatpush.msra.mxu0 %v31_v6  ;;  %v76_v20 = vld [vmem:[%s503_s3 + $0x8] sm:$0xff]  ;;  %v75_v21 = vld [vmem:[%s503_s3] sm:$0xff]  ;;  %v316_v23 = vld [vmem:[%s499_s1 + $0xb0] sm:$0xff] }
   0x9   :  { %143 = vmatpush.msra.mxu2 %v297_v7  ;;  %98 = vmatpush.msra.mxu1 %v76_v20  ;;  %v305_v24 = vld [vmem:[%s503_s3 + $0x18] sm:$0xff]  ;;  %v315_v25 = vld [vmem:[%s499_s1 + $0xa8] sm:$0xff]  ;;  %v304_v26 = vld [vmem:[%s503_s3 + $0x10] sm:$0xff] }
   0xa   :  { %58 = vmatpush.msra.mxu0 %v30_v8  ;;  %184 = vmatpush.msra.mxu3 %v305_v24  ;;  %v314_v27 = vld [vmem:[%s499_s1 + $0xa0] sm:$0xff]  ;;  %v313_v28 = vld [vmem:[%s499_s1 + $0x98] sm:$0xff]  ;;  %v312_v29 = vld [vmem:[%s499_s1 + $0x90] sm:$0xff] }
   0xb   :  { %144 = vmatpush.msra.mxu2 %v296_v9  ;;  %99 = vmatpush.msra.mxu1 %v75_v21  ;;  %v311_v30 = vld [vmem:[%s499_s1 + $0x88] sm:$0xff]  ;;  %v310_v31 = vld [vmem:[%s499_s1 + $0x80] sm:$0xff] }
   0xc   :  { %59 = vmatpush.msra.mxu0 %v29_v10  ;;  %185 = vmatpush.msra.mxu3 %v304_v26  ;;  %v325_v32 = vld [vmem:[%s500_s2] ss:$0 sm:$0xff]  ;;  %v326_v36 = vld [vmem:[%s500_s2 + $0x1] ss:$0 sm:$0xff]  ;;  %v309_v51 = vld [vmem:[%s501_s0 + $0x28] sm:$0xff] }
   0xd   :  { %145 = vmatpush.msra.mxu2 %v295_v11  ;;  %226 = vmatpush.msrb.mxu1 %v317_v22  ;;  %v308_v50 = vld [vmem:[%s501_s0 + $0x20] sm:$0xff]  ;;  %v322_v52 = vld [vmem:[%s503_s3 + $0x28] sm:$0xff] }
   0xe   :  { %60 = vmatpush.msra.mxu0 %v28_v12  ;;  %270 = vmatpush.msrb.mxu3 %v322_v52  ;;  %v321_v53 = vld [vmem:[%s503_s3 + $0x20] sm:$0xff] }
   0xf   :  { %146 = vmatpush.msra.mxu2 %v294_v13  ;;  %227 = vmatpush.msrb.mxu1 %v316_v23  ;;  %v328_v56 = vld [vmem:[%s500_s2 + $0x2] ss:$0 sm:$0xff]  ;;  %v327_v3 = vld [vmem:[%s502_s4] ss:$0 sm:$0xff] }
  0x10   :  { %61 = vmatpush.msra.mxu0 %v27_v14  ;;  %271 = vmatpush.msrb.mxu3 %v321_v53 }
  0x11   :  { %147 = vmatpush.msra.mxu2 %v293_v15  ;;  %287 = vmatmul.msk.f32.vlgmr.msra.gmra.mxu0 %vm39_vm0, %v25_v16 }
  0x12   :  { %302 = vmatmul.msk.f32.vlgmr.msra.gmra.mxu2 %vm39_vm0, %v291_v17  ;;  %228 = vmatpush.msrb.mxu1 %v315_v25 }
  0x14   :  { %229 = vmatpush.msrb.mxu1 %v314_v27 }
  0x16   :  { %230 = vmatpush.msrb.mxu1 %v313_v28 }
  0x18   :  { %231 = vmatpush.msrb.mxu1 %v312_v29 }
  0x19   :  { %288 = vmatmul.msk.f32.gmra.mxu0 %vm39_vm0, %v26_v18 }
  0x1a   :  { %303 = vmatmul.msk.f32.gmra.mxu2 %vm39_vm0, %v292_v19  ;;  %232 = vmatpush.msrb.mxu1 %v311_v30 }
  0x1c   :  { %233 = vmatpush.msrb.mxu1 %v310_v31 }
  0x8e   :  { %v63_v33 = vpop.f32.mrf.mxu0 }
  0x8f   :  { %v64_v34 = vadd.f32 %v325_v32, %v63_v33 }
  0x91   :  { %v71_v35 = vmul.f32 0.1, %v64_v34  ;;  %vm69_vm1 = vcmp.ge.f32.partialorder %v64_v34, 0.0 }
  0x93   :  { %v73_v37 = vsel %vm69_vm1, %v64_v34, %v71_v35 }
  0x94   :  { %289 = vmatmul.msk.f32.vlgmr.msra.gmra.mxu1 %vm77_vm2, %v73_v37 }
  0x95   :  { %v149_v38 = vpop.f32.mrf.mxu2 }
  0x96   :  { %v150_v39 = vadd.f32 %v326_v36, %v149_v38  ;;  %v66_v40 = vpop.f32.mrf.mxu0 }
  0x97   :  { %v67_v42 = vadd.f32 %v325_v32, %v66_v40 }
  0x98   :  { %v157_v41 = vmul.f32 0.1, %v150_v39  ;;  %vm155_vm3 = vcmp.ge.f32.partialorder %v150_v39, 0.0 }
  0x99   :  { %v72_v43 = vmul.f32 0.1, %v67_v42  ;;  %vm70_vm4 = vcmp.ge.f32.partialorder %v67_v42, 0.0 }
  0x9a   :  { %v159_v44 = vsel %vm155_vm3, %v150_v39, %v157_v41 }
  0x9b   :  { %306 = vmatmul.msk.f32.vlgmr.msra.gmra.mxu3 %vm77_vm2, %v159_v44  ;;  %v74_v45 = vsel %vm70_vm4, %v67_v42, %v72_v43 }
  0x9c   :  { %290 = vmatmul.msk.f32.gmra.mxu1 %vm77_vm2, %v74_v45 }
  0x9d   :  { %v152_v46 = vpop.f32.mrf.mxu2 }
  0x9e   :  { %v153_v47 = vadd.f32 %v326_v36, %v152_v46 }
  0xa0   :  { %v158_v48 = vmul.f32 0.1, %v153_v47  ;;  %vm156_vm5 = vcmp.ge.f32.partialorder %v153_v47, 0.0 }
  0xa2   :  { %v160_v49 = vsel %vm156_vm5, %v153_v47, %v158_v48 }
  0xa3   :  { %307 = vmatmul.msk.f32.gmra.mxu3 %vm77_vm2, %v160_v49 }
  0xa4   :  { %319 = vmatmul.msk.f32.vlgmr.msrb.gmra.mxu1 %vm39_vm0, %v308_v50 }
  0xac   :  { %320 = vmatmul.msk.f32.gmra.mxu1 %vm39_vm0, %v309_v51 }
 0x111   :  { %v101_v54 = vpop.f32.mrf.mxu1 }
 0x112   :  { %v107_v4 = vadd.f32 %v327_v3, %v101_v54 }
 0x119   :  { %v104_v55 = vpop.f32.mrf.mxu1 }
 0x11a   :  { %v108_v8 = vadd.f32 %v327_v3, %v104_v55 }
 0x11e   :  { %v187_v1 = vpop.f32.mrf.mxu3 }
 0x11f   :  { %v193_v5 = vadd.f32 %v187_v1, %v107_v4 }
 0x121   :  { %v235_v57 = vpop.f32.mrf.mxu1 }
 0x122   :  { %v236_v58 = vadd.f32 %v328_v56, %v235_v57 }
 0x124   :  { %vm241_vm6 = vcmp.ge.f32.partialorder %v236_v58, 0.0  ;;  %v243_v59 = vmul.f32 0.1, %v236_v58 }
 0x126   :  { %v245_v60 = vsel %vm241_vm6, %v236_v58, %v243_v59  ;;  %v190_v2 = vpop.f32.mrf.mxu3 }
 0x127   :  { %323 = vmatmul.msk.f32.vlgmr.msrb.gmra.mxu3 %vm77_vm2, %v245_v60  ;;  %v194_v9 = vadd.f32 %v190_v2, %v108_v8 }
 0x129   :  { %v238_v61 = vpop.f32.mrf.mxu1 }
 0x12a   :  { %v239_v62 = vadd.f32 %v328_v56, %v238_v61 }
 0x12c   :  { %v244_v63 = vmul.f32 0.1, %v239_v62  ;;  %vm242_vm7 = vcmp.ge.f32.partialorder %v239_v62, 0.0 }
 0x12e   :  { %v246_v0 = vsel %vm242_vm7, %v239_v62, %v244_v63 }
 0x12f   :  { %324 = vmatmul.msk.f32.gmra.mxu3 %vm77_vm2, %v246_v0 }
 0x1aa   :  { %v273_v6 = vpop.f32.mrf.mxu3 }
 0x1ab   :  { %v279_v7 = vadd.f32 %v273_v6, %v193_v5 }
 0x1ad   :  { %281 = vst.msk [vmem:[%s504_s5] sm:$0xff] %vm77_vm2, %v279_v7 }
 0x1b2   :  { %v276_v10 = vpop.f32.mrf.mxu3 }
 0x1b3   :  { %v280_v11 = vadd.f32 %v276_v10, %v194_v9 }
 0x1b5   :  { %282 = vst.msk [vmem:[%s504_s5 + $0x8] sm:$0xff] %vm77_vm2, %v280_v11 }

// kernel: main_encoder.34
= control target key start
LH: loop header
LB: loop body
LE: loop exit
PB: predicated region body
PF: predicated region fallthrough
CT: control target
= control target key end

     0   :  { %vm40_vm0 = vcmask 130048   ;;  %vm93_vm1 = vcmask 261120   ;;  %s216_s1 = inlined_call_operand.vmem [shape: f32[1,144,32], index: 1, kind: input, shape index: {}]   ;;  %s217_s0 = inlined_call_operand.vmem [shape: f32[1,16,144], index: 0, kind: input, shape index: {}]   ;;  %s218_s2 = inlined_call_operand.vmem [shape: f32[1,1,32], index: 2, kind: input, shape index: {}]   ;;  %s219_s3 = inlined_call_operand.vmem [shape: f32[1,16,32], index: 3, kind: output, shape index: {}]  }
   0x1   :  { %v33_v0 = vld [vmem:[%s216_s1 + $0x78] sm:$0xff]  ;;  %v32_v1 = vld [vmem:[%s216_s1 + $0x70] sm:$0xff]  ;;  %v31_v2 = vld [vmem:[%s216_s1 + $0x68] sm:$0xff] }
   0x2   :  { %47 = vmatpush.msra.mxu0 %v33_v0  ;;  %102 = vmatpush.msra.mxu2 %v33_v0  ;;  %v30_v3 = vld [vmem:[%s216_s1 + $0x60] sm:$0xff]  ;;  %v35_v4 = vld [vmem:[%s216_s1 + $0x88] sm:$0xff]  ;;  %v29_v6 = vld [vmem:[%s216_s1 + $0x58] sm:$0xff] }
   0x3   :  { %v34_v5 = vld [vmem:[%s216_s1 + $0x80] sm:$0xff]  ;;  %84 = vmatpush.msra.mxu1 %v35_v4  ;;  %v15_v7 = vld [vmem:[%s217_s0 + $0x8] sm:$0xff]  ;;  %v28_v8 = vld [vmem:[%s216_s1 + $0x50] sm:$0xff] }
   0x4   :  { %48 = vmatpush.msra.mxu0 %v32_v1  ;;  %103 = vmatpush.msra.mxu2 %v32_v1  ;;  %v27_v9 = vld [vmem:[%s216_s1 + $0x48] sm:$0xff]  ;;  %v26_v10 = vld [vmem:[%s216_s1 + $0x40] sm:$0xff]  ;;  %v25_v11 = vld [vmem:[%s216_s1 + $0x38] sm:$0xff] }
   0x5   :  { %85 = vmatpush.msra.mxu1 %v34_v5  ;;  %v17_v12 = vld [vmem:[%s217_s0 + $0x18] sm:$0xff]  ;;  %v24_v13 = vld [vmem:[%s216_s1 + $0x30] sm:$0xff]  ;;  %v23_v14 = vld [vmem:[%s216_s1 + $0x28] sm:$0xff] }
   0x6   :  { %49 = vmatpush.msra.mxu0 %v31_v2  ;;  %104 = vmatpush.msra.mxu2 %v31_v2  ;;  %v22_v15 = vld [vmem:[%s216_s1 + $0x20] sm:$0xff]  ;;  %v21_v16 = vld [vmem:[%s216_s1 + $0x18] sm:$0xff]  ;;  %v20_v17 = vld [vmem:[%s216_s1 + $0x10] sm:$0xff] }
   0x7   :  { %100 = vmatmul.msk.f32.vlgmr.msra.gmra.mxu1 %vm40_vm0, %v15_v7  ;;  %v19_v18 = vld [vmem:[%s216_s1 + $0x8] sm:$0xff]  ;;  %v18_v19 = vld [vmem:[%s216_s1] sm:$0xff]  ;;  %v16_v21 = vld [vmem:[%s217_s0 + $0x10] sm:$0xff] }
   0x8   :  { %50 = vmatpush.msra.mxu0 %v30_v3  ;;  %105 = vmatpush.msra.mxu2 %v30_v3  ;;  %v14_v20 = vld [vmem:[%s217_s0] sm:$0xff] }
   0x9   :  { %v118_v23 = vld [vmem:[%s218_s2] ss:$0 sm:$0xff] }
   0xa   :  { %51 = vmatpush.msra.mxu0 %v29_v6  ;;  %106 = vmatpush.msra.mxu2 %v29_v6 }
   0xc   :  { %52 = vmatpush.msra.mxu0 %v28_v8  ;;  %107 = vmatpush.msra.mxu2 %v28_v8 }
   0xe   :  { %53 = vmatpush.msra.mxu0 %v27_v9  ;;  %108 = vmatpush.msra.mxu2 %v27_v9 }
   0xf   :  { %101 = vmatmul.msk.f32.gmra.mxu1 %vm40_vm0, %v17_v12 }
  0x10   :  { %54 = vmatpush.msra.mxu0 %v26_v10  ;;  %109 = vmatpush.msra.mxu2 %v26_v10 }
  0x12   :  { %55 = vmatpush.msra.mxu0 %v25_v11  ;;  %110 = vmatpush.msra.mxu2 %v25_v11 }
  0x14   :  { %56 = vmatpush.msra.mxu0 %v24_v13  ;;  %111 = vmatpush.msra.mxu2 %v24_v13 }
  0x16   :  { %57 = vmatpush.msra.mxu0 %v23_v14  ;;  %112 = vmatpush.msra.mxu2 %v23_v14 }
  0x18   :  { %58 = vmatpush.msra.mxu0 %v22_v15  ;;  %113 = vmatpush.msra.mxu2 %v22_v15 }
  0x1a   :  { %59 = vmatpush.msra.mxu0 %v21_v16  ;;  %114 = vmatpush.msra.mxu2 %v21_v16 }
  0x1c   :  { %60 = vmatpush.msra.mxu0 %v20_v17  ;;  %115 = vmatpush.msra.mxu2 %v20_v17 }
  0x1e   :  { %61 = vmatpush.msra.mxu0 %v19_v18  ;;  %116 = vmatpush.msra.mxu2 %v19_v18 }
  0x20   :  { %62 = vmatpush.msra.mxu0 %v18_v19  ;;  %117 = vmatpush.msra.mxu2 %v18_v19 }
  0x21   :  { %63 = vmatmul.f32.vlgmr.msra.gmra.mxu0 %v14_v20  ;;  %66 = vmatmul.f32.vlgmr.msra.gmra.mxu2 %v16_v21 }
  0x84   :  { %v87_v22 = vpop.f32.mrf.mxu1 }
  0x8c   :  { %v90_v28 = vpop.f32.mrf.mxu1 }
  0x9e   :  { %v64_v24 = vpop.f32.mrf.mxu0 }
  0x9f   :  { %v65_v25 = vadd.f32 %v118_v23, %v64_v24 }
  0xa1   :  { %v88_v26 = vadd.f32 %v87_v22, %v65_v25 }
  0xa3   :  { %94 = vst.msk [vmem:[%s219_s3] sm:$0xff] %vm93_vm1, %v88_v26 }
  0xa4   :  { %v67_v27 = vpop.f32.mrf.mxu2 }
  0xa5   :  { %v68_v29 = vadd.f32 %v118_v23, %v67_v27 }
  0xa7   :  { %v91_v30 = vadd.f32 %v90_v28, %v68_v29 }
  0xa9   :  { %95 = vst.msk [vmem:[%s219_s3 + $0x8] sm:$0xff] %vm93_vm1, %v91_v30 }

// kernel: main_encoder.35
= control target key start
LH: loop header
LB: loop body
LE: loop exit
PB: predicated region body
PF: predicated region fallthrough
CT: control target
= control target key end

     0   :  { %vm40_vm0 = vcmask 130048   ;;  %vm99_vm2 = vcmask 261120   ;;  %s222_s1 = inlined_call_operand.vmem [shape: f32[1,144,32], index: 1, kind: input, shape index: {}]   ;;  %s223_s0 = inlined_call_operand.vmem [shape: f32[1,16,144], index: 0, kind: input, shape index: {}]   ;;  %s224_s2 = inlined_call_operand.vmem [shape: f32[1,1,32], index: 2, kind: input, shape index: {}]   ;;  %s225_s3 = inlined_call_operand.vmem [shape: f32[1,16,32], index: 3, kind: output, shape index: {}]  }
   0x1   :  { %v33_v0 = vld [vmem:[%s222_s1 + $0x78] sm:$0xff]  ;;  %v32_v1 = vld [vmem:[%s222_s1 + $0x70] sm:$0xff]  ;;  %v31_v2 = vld [vmem:[%s222_s1 + $0x68] sm:$0xff] }
   0x2   :  { %47 = vmatpush.msra.mxu0 %v33_v0  ;;  %108 = vmatpush.msra.mxu2 %v33_v0  ;;  %v30_v3 = vld [vmem:[%s222_s1 + $0x60] sm:$0xff]  ;;  %v35_v4 = vld [vmem:[%s222_s1 + $0x88] sm:$0xff]  ;;  %v29_v6 = vld [vmem:[%s222_s1 + $0x58] sm:$0xff] }
   0x3   :  { %v34_v5 = vld [vmem:[%s222_s1 + $0x80] sm:$0xff]  ;;  %84 = vmatpush.msra.mxu1 %v35_v4  ;;  %v15_v7 = vld [vmem:[%s223_s0 + $0x8] sm:$0xff]  ;;  %v28_v8 = vld [vmem:[%s222_s1 + $0x50] sm:$0xff] }
   0x4   :  { %48 = vmatpush.msra.mxu0 %v32_v1  ;;  %109 = vmatpush.msra.mxu2 %v32_v1  ;;  %v27_v9 = vld [vmem:[%s222_s1 + $0x48] sm:$0xff]  ;;  %v26_v10 = vld [vmem:[%s222_s1 + $0x40] sm:$0xff]  ;;  %v25_v11 = vld [vmem:[%s222_s1 + $0x38] sm:$0xff] }
   0x5   :  { %85 = vmatpush.msra.mxu1 %v34_v5  ;;  %v17_v12 = vld [vmem:[%s223_s0 + $0x18] sm:$0xff]  ;;  %v24_v13 = vld [vmem:[%s222_s1 + $0x30] sm:$0xff]  ;;  %v23_v14 = vld [vmem:[%s222_s1 + $0x28] sm:$0xff] }
   0x6   :  { %49 = vmatpush.msra.mxu0 %v31_v2  ;;  %110 = vmatpush.msra.mxu2 %v31_v2  ;;  %v22_v15 = vld [vmem:[%s222_s1 + $0x20] sm:$0xff]  ;;  %v21_v16 = vld [vmem:[%s222_s1 + $0x18] sm:$0xff]  ;;  %v20_v17 = vld [vmem:[%s222_s1 + $0x10] sm:$0xff] }
   0x7   :  { %106 = vmatmul.msk.f32.vlgmr.msra.gmra.mxu1 %vm40_vm0, %v15_v7  ;;  %v19_v18 = vld [vmem:[%s222_s1 + $0x8] sm:$0xff]  ;;  %v18_v19 = vld [vmem:[%s222_s1] sm:$0xff]  ;;  %v16_v21 = vld [vmem:[%s223_s0 + $0x10] sm:$0xff] }
   0x8   :  { %50 = vmatpush.msra.mxu0 %v30_v3  ;;  %111 = vmatpush.msra.mxu2 %v30_v3  ;;  %v14_v20 = vld [vmem:[%s223_s0] sm:$0xff] }
   0x9   :  { %v124_v23 = vld [vmem:[%s224_s2] ss:$0 sm:$0xff] }
   0xa   :  { %51 = vmatpush.msra.mxu0 %v29_v6  ;;  %112 = vmatpush.msra.mxu2 %v29_v6 }
   0xc   :  { %52 = vmatpush.msra.mxu0 %v28_v8  ;;  %113 = vmatpush.msra.mxu2 %v28_v8 }
   0xe   :  { %53 = vmatpush.msra.mxu0 %v27_v9  ;;  %114 = vmatpush.msra.mxu2 %v27_v9 }
   0xf   :  { %107 = vmatmul.msk.f32.gmra.mxu1 %vm40_vm0, %v17_v12 }
  0x10   :  { %54 = vmatpush.msra.mxu0 %v26_v10  ;;  %115 = vmatpush.msra.mxu2 %v26_v10 }
  0x12   :  { %55 = vmatpush.msra.mxu0 %v25_v11  ;;  %116 = vmatpush.msra.mxu2 %v25_v11 }
  0x14   :  { %56 = vmatpush.msra.mxu0 %v24_v13  ;;  %117 = vmatpush.msra.mxu2 %v24_v13 }
  0x16   :  { %57 = vmatpush.msra.mxu0 %v23_v14  ;;  %118 = vmatpush.msra.mxu2 %v23_v14 }
  0x18   :  { %58 = vmatpush.msra.mxu0 %v22_v15  ;;  %119 = vmatpush.msra.mxu2 %v22_v15 }
  0x1a   :  { %59 = vmatpush.msra.mxu0 %v21_v16  ;;  %120 = vmatpush.msra.mxu2 %v21_v16 }
  0x1c   :  { %60 = vmatpush.msra.mxu0 %v20_v17  ;;  %121 = vmatpush.msra.mxu2 %v20_v17 }
  0x1e   :  { %61 = vmatpush.msra.mxu0 %v19_v18  ;;  %122 = vmatpush.msra.mxu2 %v19_v18 }
  0x20   :  { %62 = vmatpush.msra.mxu0 %v18_v19  ;;  %123 = vmatpush.msra.mxu2 %v18_v19 }
  0x21   :  { %63 = vmatmul.f32.vlgmr.msra.gmra.mxu0 %v14_v20  ;;  %66 = vmatmul.f32.vlgmr.msra.gmra.mxu2 %v16_v21 }
  0x84   :  { %v87_v22 = vpop.f32.mrf.mxu1 }
  0x8c   :  { %v90_v29 = vpop.f32.mrf.mxu1 }
  0x9e   :  { %v64_v24 = vpop.f32.mrf.mxu0 }
  0x9f   :  { %v65_v25 = vadd.f32 %v124_v23, %v64_v24 }
  0xa1   :  { %v88_v26 = vadd.f32 %v87_v22, %v65_v25 }
  0xa3   :  { %vm93_vm1 = vcmp.ge.f32.partialorder %v88_v26, 0.0  ;;  %v95_v27 = vmul.f32 0.1, %v88_v26 }
  0xa4   :  { %v67_v28 = vpop.f32.mrf.mxu2 }
  0xa5   :  { %v97_v30 = vsel %vm93_vm1, %v88_v26, %v95_v27  ;;  %v68_v31 = vadd.f32 %v124_v23, %v67_v28 }
  0xa6   :  { %100 = vst.msk [vmem:[%s225_s3] sm:$0xff] %vm99_vm2, %v97_v30 }
  0xa7   :  { %v91_v32 = vadd.f32 %v90_v29, %v68_v31 }
  0xa9   :  { %vm94_vm3 = vcmp.ge.f32.partialorder %v91_v32, 0.0  ;;  %v96_v33 = vmul.f32 0.1, %v91_v32 }
  0xab   :  { %v98_v34 = vsel %vm94_vm3, %v91_v32, %v96_v33 }
  0xac   :  { %101 = vst.msk [vmem:[%s225_s3 + $0x8] sm:$0xff] %vm99_vm2, %v98_v34 }

// kernel: main_encoder.36
= control target key start
LH: loop header
LB: loop body
LE: loop exit
PB: predicated region body
PF: predicated region fallthrough
CT: control target
= control target key end

     0   :  { %s500_s12 = smov 0   ;;  %s502_s13 = smov 0   ;;  %s544_s0 = inlined_call_operand.vmem [shape: f32[2,16,64], index: 0, kind: input, shape index: {}]   ;;  %s545_s1 = inlined_call_operand.vmem [shape: f32[2,64,32], index: 1, kind: input, shape index: {}]   ;;  %s546_s2 = inlined_call_operand.vmem [shape: f32[2,1,32], index: 2, kind: input, shape index: {}]   ;;  %s547_s3 = inlined_call_operand.vmem [shape: f32[2,16,32], index: 3, kind: output, shape index: {}]  }
   0x1   :  { %s504_s14 = smov 0  }
   0x2 LB: > { %s25_s15 = sadd.s32 1, %s474_s13  ;;  %p409_p0 = scmp.ge.s32.totalorder %s478_s14, 1  ;;  %s478_s14 = sphi %s504_s14, %s13_s14   ;;  %s474_s13 = sphi %s502_s13, %s549_s13   ;;  %s470_s12 = sphi %s500_s12, %s548_s12  }
   0x3   : > { %p27_p1 = scmp.ge.s32.totalorder %s25_s15, 2  ;;  %p176_p2 = scmp.lt.s32.totalorder %s478_s14, 3 }
   0x5   : > { %s551_s15 = smov (%p27_p1, %s25_s15), 0  ;;  %p177_p3 = pnand %p409_p0, %p176_p2 }
   0x6   : > { %p217_p4 = scmp.lt.s32.totalorder (!%p177_p3), %s470_s12, 1 }
   0x7   : > { %180 = sbr.rel (%p177_p3) target bundleno = 164 (0xa4), region = 32 }
   0xc   : > { %s553_s12 = smov (!%p217_p4, %s470_s12), 1  ;;  %vm258_vm0 = vcmask 523264   ;;  %vm294_vm1 = vcmask 261120  }
   0xd   : > { %s421_s16 = sshll.u32 %s553_s12, 6  ;;  %s233_s22 = scalar_lea.vmem %s546_s2, %s553_s12 }
   0xe   : > { %s230_s19 = scalar_lea.vmem %s545_s1, %s421_s16  ;;  %s420_s23 = sshll.u32 %s553_s12, 4  ;;  %v455_v10 = vld [vmem:[%s233_s22] ss:$0 sm:$0xff] }
   0xf   : > { %v253_v0 = vld [vmem:[%s230_s19 + $0x38] sm:$0xff]  ;;  %v252_v1 = vld [vmem:[%s230_s19 + $0x30] sm:$0xff]  ;;  %v251_v2 = vld [vmem:[%s230_s19 + $0x28] sm:$0xff]  ;;  %s224_s26 = scalar_lea.vmem %s544_s0, %s420_s23  ;;  %s242_s29 = scalar_lea.vmem %s547_s3, %s420_s23 }
  0x10   : > { %273 = vmatpush.msra.mxu0 %v253_v0  ;;  %423 = vmatpush.msra.mxu1 %v253_v0  ;;  %v250_v3 = vld [vmem:[%s230_s19 + $0x20] sm:$0xff]  ;;  %v249_v4 = vld [vmem:[%s230_s19 + $0x18] sm:$0xff]  ;;  %v248_v5 = vld [vmem:[%s230_s19 + $0x10] sm:$0xff] }
  0x11   : > { %v247_v6 = vld [vmem:[%s230_s19 + $0x8] sm:$0xff]  ;;  %v246_v7 = vld [vmem:[%s230_s19] sm:$0xff] }
  0x12   : > { %274 = vmatpush.msra.mxu0 %v252_v1  ;;  %424 = vmatpush.msra.mxu1 %v252_v1  ;;  %v244_v8 = vld [vmem:[%s224_s26] sm:$0xff]  ;;  %v245_v9 = vld [vmem:[%s224_s26 + $0x8] sm:$0xff] }
  0x14   : > { %275 = vmatpush.msra.mxu0 %v251_v2  ;;  %425 = vmatpush.msra.mxu1 %v251_v2 }
  0x16   : > { %276 = vmatpush.msra.mxu0 %v250_v3  ;;  %426 = vmatpush.msra.mxu1 %v250_v3 }
  0x18   : > { %277 = vmatpush.msra.mxu0 %v249_v4  ;;  %427 = vmatpush.msra.mxu1 %v249_v4 }
  0x1a   : > { %278 = vmatpush.msra.mxu0 %v248_v5  ;;  %428 = vmatpush.msra.mxu1 %v248_v5 }
  0x1c   : > { %279 = vmatpush.msra.mxu0 %v247_v6  ;;  %429 = vmatpush.msra.mxu1 %v247_v6 }
  0x1e   : > { %280 = vmatpush.msra.mxu0 %v246_v7  ;;  %430 = vmatpush.msra.mxu1 %v246_v7 }
  0x1f   : > { %416 = vmatmul.msk.f32.vlgmr.msra.gmra.mxu0 %vm258_vm0, %v244_v8  ;;  %417 = vmatmul.msk.f32.vlgmr.msra.gmra.mxu1 %vm258_vm0, %v245_v9 }
  0x9c   : > { %v282_v11 = vpop.f32.mrf.mxu0  ;;  %v285_v12 = vpop.f32.mrf.mxu1 }
  0x9d   : > { %v283_v13 = vadd.f32 %v455_v10, %v282_v11  ;;  %v286_v14 = vadd.f32 %v455_v10, %v285_v12 }
  0x9f   : > { %vm288_vm2 = vcmp.ge.f32.partialorder %v283_v13, 0.0  ;;  %v290_v15 = vmul.f32 0.1, %v283_v13  ;;  %vm289_vm3 = vcmp.ge.f32.partialorder %v286_v14, 0.0  ;;  %v291_v16 = vmul.f32 0.1, %v286_v14 }
  0xa1   : > { %v292_v17 = vsel %vm288_vm2, %v283_v13, %v290_v15  ;;  %v293_v18 = vsel %vm289_vm3, %v286_v14, %v291_v16 }
  0xa2   : > { %295 = vst.msk [vmem:[%s242_s29] sm:$0xff] %vm294_vm1, %v292_v17 }
  0xa3   : > { %296 = vst.msk [vmem:[%s242_s29 + $0x8] sm:$0xff] %vm294_vm1, %v293_v18 }
  0xa4 PF: > { %s13_s14 = sadd.s32 1, %s478_s14   ;;  %s548_s12 = smov %s474_s13 }
  0xa5   : > { %p10_p5 = scmp.ge.s32.totalorder %s13_s14, 4   ;;  %s549_s13 = smov %s551_s15 }
  0xa7   :  { %12 = sbr.rel (!%p10_p5) target bundleno = 2 (0x2), region = 68 }

// kernel: main_encoder.37
= control target key start
LH: loop header
LB: loop body
LE: loop exit
PB: predicated region body
PF: predicated region fallthrough
CT: control target
= control target key end

     0   :  { %s1177_s27 = smov 0   ;;  %s1179_s28 = smov 0   ;;  %s1387_s0 = inlined_call_operand.vmem [shape: f32[2,16,864], index: 0, kind: input, shape index: {}]   ;;  %s1388_s1 = inlined_call_operand.vmem [shape: f32[2,864,96], index: 1, kind: input, shape index: {}]   ;;  %s1389_s2 = inlined_call_operand.vmem [shape: f32[2,1,96], index: 2, kind: input, shape index: {}]   ;;  %s1390_s3 = inlined_call_operand.vmem [shape: f32[2,16,32], index: 3, kind: input, shape index: {}]   ;;  %s1391_s4 = inlined_call_operand.vmem [shape: f32[2,96,32], index: 4, kind: input, shape index: {}]   ;;  %s1392_s5 = inlined_call_operand.vmem [shape: f32[2,1,32], index: 5, kind: input, shape index: {}]   ;;  %s1393_s6 = inlined_call_operand.vmem [shape: f32[2,32,18], index: 6, kind: input, shape index: {}]   ;;  %s1394_s7 = inlined_call_operand.vmem [shape: f32[2,1,18], index: 7, kind: input, shape index: {}]   ;;  %s1395_s8 = inlined_call_operand.vmem [shape: f32[2,16,18], index: 8, kind: output, shape index: {}]  }
   0x1   :  { %s1181_s29 = smov 0  }
   0x2 LB: > { %s30_s30 = sadd.s32 1, %s1126_s28  ;;  %p1053_p0 = scmp.ge.s32.totalorder %s1130_s29, 1  ;;  %s1130_s29 = sphi %s1181_s29, %s18_s29   ;;  %s1126_s28 = sphi %s1179_s28, %s1397_s28   ;;  %s1122_s27 = sphi %s1177_s27, %s1396_s27  }
   0x3   : > { %p32_p1 = scmp.ge.s32.totalorder %s30_s30, 2  ;;  %p355_p2 = scmp.lt.s32.totalorder %s1130_s29, 3 }
   0x5   : > { %s1399_s30 = smov (%p32_p1, %s30_s30), 0  ;;  %p356_p3 = pnand %p1053_p0, %p355_p2 }
   0x6   : > { %p432_p4 = scmp.lt.s32.totalorder (!%p356_p3), %s1122_s27, 1 }
   0x7   : > { %359 = sbr.rel (%p356_p3) target bundleno = 494 (0x1ee), region = 52 }
   0xc   : > { %s1401_s27 = smov (!%p432_p4, %s1122_s27), 1  ;;  %vm612_vm0 = vcmask 785408   ;;  %vm845_vm3 = vcmask 261120   ;;  %vm875_vm4 = vcmask 146432  }
   0xd   : > { %s1079_s9 = smul.u32 864, %s1401_s27  ;;  %s449_s12 = scalar_lea.vmem %s1389_s2, %s1401_s27 }
   0xe   : > { %s1078_s16 = smul.u32 112, %s1401_s27  ;;  %s467_s22 = scalar_lea.vmem %s1392_s5, %s1401_s27 }
   0xf   : > { %s1205_s15 = scalar_lea.vmem %s1388_s1, %s1079_s9  ;;  %s1080_s23 = smul.u32 96, %s1401_s27 }
  0x10   : > { %v515_v0 = vld [vmem:[%s1205_s15 + $0x78] sm:$0xff]  ;;  %v514_v1 = vld [vmem:[%s1205_s15 + $0x70] sm:$0xff]  ;;  %v513_v4 = vld [vmem:[%s1205_s15 + $0x68] sm:$0xff]  ;;  %s1287_s19 = scalar_lea.vmem %s1387_s0, %s1078_s16  ;;  %s1072_s9 = sshll.u32 %s1401_s27, 5 }
  0x11   : > { %v531_v2 = vld [vmem:[%s1205_s15 + $0xf8] sm:$0xff]  ;;  %619 = vmatpush.msra.mxu0 %v515_v0  ;;  %v530_v3 = vld [vmem:[%s1205_s15 + $0xf0] sm:$0xff]  ;;  %v529_v5 = vld [vmem:[%s1205_s15 + $0xe8] sm:$0xff]  ;;  %s464_s26 = scalar_lea.vmem %s1391_s4, %s1080_s23  ;;  %s475_s17 = scalar_lea.vmem %s1394_s7, %s1401_s27 }
  0x12   : > { %642 = vmatpush.msra.mxu1 %v531_v2  ;;  %v547_v6 = vld [vmem:[%s1205_s15 + $0x178] sm:$0xff]  ;;  %v546_v7 = vld [vmem:[%s1205_s15 + $0x170] sm:$0xff]  ;;  %v512_v8 = vld [vmem:[%s1205_s15 + $0x60] sm:$0xff]  ;;  %s1071_s18 = sshll.u32 %s1401_s27, 4 }
  0x13   : > { %620 = vmatpush.msra.mxu0 %v514_v1  ;;  %665 = vmatpush.msra.mxu2 %v547_v6  ;;  %v528_v9 = vld [vmem:[%s1205_s15 + $0xe0] sm:$0xff]  ;;  %v545_v10 = vld [vmem:[%s1205_s15 + $0x168] sm:$0xff]  ;;  %v511_v11 = vld [vmem:[%s1205_s15 + $0x58] sm:$0xff]  ;;  %s458_s21 = scalar_lea.vmem %s1390_s3, %s1071_s18 }
  0x14   : > { %643 = vmatpush.msra.mxu1 %v530_v3  ;;  %v527_v12 = vld [vmem:[%s1205_s15 + $0xd8] sm:$0xff]  ;;  %v544_v14 = vld [vmem:[%s1205_s15 + $0x160] sm:$0xff]  ;;  %v510_v15 = vld [vmem:[%s1205_s15 + $0x50] sm:$0xff] }
  0x15   : > { %621 = vmatpush.msra.mxu0 %v513_v4  ;;  %666 = vmatpush.msra.mxu2 %v546_v7  ;;  %v563_v13 = vld [vmem:[%s1205_s15 + $0x1f8] sm:$0xff]  ;;  %v526_v16 = vld [vmem:[%s1205_s15 + $0xd0] sm:$0xff]  ;;  %v561_v19 = vld [vmem:[%s1205_s15 + $0x1e8] sm:$0xff] }
  0x16   : > { %644 = vmatpush.msra.mxu1 %v529_v5  ;;  %688 = vmatpush.msra.mxu3 %v563_v13  ;;  %v562_v17 = vld [vmem:[%s1205_s15 + $0x1f0] sm:$0xff]  ;;  %v543_v18 = vld [vmem:[%s1205_s15 + $0x158] sm:$0xff]  ;;  %v509_v20 = vld [vmem:[%s1205_s15 + $0x48] sm:$0xff] }
  0x17   : > { %622 = vmatpush.msra.mxu0 %v512_v8  ;;  %667 = vmatpush.msra.mxu2 %v545_v10  ;;  %v525_v21 = vld [vmem:[%s1205_s15 + $0xc8] sm:$0xff]  ;;  %v542_v22 = vld [vmem:[%s1205_s15 + $0x150] sm:$0xff]  ;;  %v560_v23 = vld [vmem:[%s1205_s15 + $0x1e0] sm:$0xff] }
  0x18   : > { %645 = vmatpush.msra.mxu1 %v528_v9  ;;  %689 = vmatpush.msra.mxu3 %v562_v17  ;;  %v508_v24 = vld [vmem:[%s1205_s15 + $0x40] sm:$0xff]  ;;  %v541_v26 = vld [vmem:[%s1205_s15 + $0x148] sm:$0xff]  ;;  %v559_v27 = vld [vmem:[%s1205_s15 + $0x1d8] sm:$0xff] }
  0x19   : > { %623 = vmatpush.msra.mxu0 %v511_v11  ;;  %668 = vmatpush.msra.mxu2 %v544_v14  ;;  %v524_v25 = vld [vmem:[%s1205_s15 + $0xc0] sm:$0xff]  ;;  %v507_v28 = vld [vmem:[%s1205_s15 + $0x38] sm:$0xff]  ;;  %v558_v31 = vld [vmem:[%s1205_s15 + $0x1d0] sm:$0xff] }
  0x1a   : > { %646 = vmatpush.msra.mxu1 %v527_v12  ;;  %690 = vmatpush.msra.mxu3 %v561_v19  ;;  %v523_v29 = vld [vmem:[%s1205_s15 + $0xb8] sm:$0xff]  ;;  %v540_v30 = vld [vmem:[%s1205_s15 + $0x140] sm:$0xff]  ;;  %v506_v32 = vld [vmem:[%s1205_s15 + $0x30] sm:$0xff] }
  0x1b   : > { %624 = vmatpush.msra.mxu0 %v510_v15  ;;  %669 = vmatpush.msra.mxu2 %v543_v18  ;;  %v522_v33 = vld [vmem:[%s1205_s15 + $0xb0] sm:$0xff]  ;;  %v539_v34 = vld [vmem:[%s1205_s15 + $0x138] sm:$0xff]  ;;  %v557_v35 = vld [vmem:[%s1205_s15 + $0x1c8] sm:$0xff] }
  0x1c   : > { %647 = vmatpush.msra.mxu1 %v526_v16  ;;  %691 = vmatpush.msra.mxu3 %v560_v23  ;;  %v505_v36 = vld [vmem:[%s1205_s15 + $0x28] sm:$0xff]  ;;  %v538_v38 = vld [vmem:[%s1205_s15 + $0x130] sm:$0xff]  ;;  %v556_v39 = vld [vmem:[%s1205_s15 + $0x1c0] sm:$0xff] }
  0x1d   : > { %625 = vmatpush.msra.mxu0 %v509_v20  ;;  %670 = vmatpush.msra.mxu2 %v542_v22  ;;  %v521_v37 = vld [vmem:[%s1205_s15 + $0xa8] sm:$0xff]  ;;  %v504_v40 = vld [vmem:[%s1205_s15 + $0x20] sm:$0xff]  ;;  %v555_v43 = vld [vmem:[%s1205_s15 + $0x1b8] sm:$0xff] }
  0x1e   : > { %648 = vmatpush.msra.mxu1 %v525_v21  ;;  %692 = vmatpush.msra.mxu3 %v559_v27  ;;  %v520_v41 = vld [vmem:[%s1205_s15 + $0xa0] sm:$0xff]  ;;  %v537_v42 = vld [vmem:[%s1205_s15 + $0x128] sm:$0xff]  ;;  %v503_v44 = vld [vmem:[%s1205_s15 + $0x18] sm:$0xff] }
  0x1f   : > { %626 = vmatpush.msra.mxu0 %v508_v24  ;;  %671 = vmatpush.msra.mxu2 %v541_v26  ;;  %v519_v45 = vld [vmem:[%s1205_s15 + $0x98] sm:$0xff]  ;;  %v536_v46 = vld [vmem:[%s1205_s15 + $0x120] sm:$0xff]  ;;  %v554_v47 = vld [vmem:[%s1205_s15 + $0x1b0] sm:$0xff] }
  0x20   : > { %649 = vmatpush.msra.mxu1 %v524_v25  ;;  %693 = vmatpush.msra.mxu3 %v558_v31  ;;  %v502_v48 = vld [vmem:[%s1205_s15 + $0x10] sm:$0xff]  ;;  %v535_v50 = vld [vmem:[%s1205_s15 + $0x118] sm:$0xff]  ;;  %v553_v51 = vld [vmem:[%s1205_s15 + $0x1a8] sm:$0xff] }
  0x21   : > { %627 = vmatpush.msra.mxu0 %v507_v28  ;;  %672 = vmatpush.msra.mxu2 %v540_v30  ;;  %v518_v49 = vld [vmem:[%s1205_s15 + $0x90] sm:$0xff]  ;;  %v501_v52 = vld [vmem:[%s1205_s15 + $0x8] sm:$0xff]  ;;  %v552_v55 = vld [vmem:[%s1205_s15 + $0x1a0] sm:$0xff] }
  0x22   : > { %650 = vmatpush.msra.mxu1 %v523_v29  ;;  %694 = vmatpush.msra.mxu3 %v557_v35  ;;  %v517_v53 = vld [vmem:[%s1205_s15 + $0x88] sm:$0xff]  ;;  %v534_v54 = vld [vmem:[%s1205_s15 + $0x110] sm:$0xff]  ;;  %v500_v56 = vld [vmem:[%s1205_s15] sm:$0xff] }
  0x23   : > { %628 = vmatpush.msra.mxu0 %v506_v32  ;;  %673 = vmatpush.msra.mxu2 %v539_v34  ;;  %v516_v57 = vld [vmem:[%s1205_s15 + $0x80] sm:$0xff]  ;;  %v579_v58 = vld [vmem:[%s1205_s15 + $0x278] sm:$0xff]  ;;  %v533_v60 = vld [vmem:[%s1205_s15 + $0x108] sm:$0xff] }
  0x24   : > { %651 = vmatpush.msra.mxu1 %v522_v33  ;;  %695 = vmatpush.msra.mxu3 %v556_v39  ;;  %v595_v59 = vld [vmem:[%s1205_s15 + $0x2f8] sm:$0xff]  ;;  %v578_v62 = vld [vmem:[%s1205_s15 + $0x270] sm:$0xff]  ;;  %v532_v0 = vld [vmem:[%s1205_s15 + $0x100] sm:$0xff] }
  0x25   : > { %629 = vmatpush.msra.mxu0 %v505_v36  ;;  %674 = vmatpush.msra.mxu2 %v538_v38  ;;  %v551_v61 = vld [vmem:[%s1205_s15 + $0x198] sm:$0xff]  ;;  %v594_v63 = vld [vmem:[%s1205_s15 + $0x2f0] sm:$0xff]  ;;  %v577_v2 = vld [vmem:[%s1205_s15 + $0x268] sm:$0xff] }
  0x26   : > { %652 = vmatpush.msra.mxu1 %v521_v37  ;;  %696 = vmatpush.msra.mxu3 %v555_v43  ;;  %v550_v1 = vld [vmem:[%s1205_s15 + $0x190] sm:$0xff]  ;;  %v593_v3 = vld [vmem:[%s1205_s15 + $0x2e8] sm:$0xff]  ;;  %v607_v4 = vld [vmem:[%s1205_s15 + $0x358] sm:$0xff] }
  0x27   : > { %630 = vmatpush.msra.mxu0 %v504_v40  ;;  %675 = vmatpush.msra.mxu2 %v537_v42  ;;  %v549_v5 = vld [vmem:[%s1205_s15 + $0x188] sm:$0xff]  ;;  %v576_v6 = vld [vmem:[%s1205_s15 + $0x260] sm:$0xff]  ;;  %v606_v8 = vld [vmem:[%s1205_s15 + $0x350] sm:$0xff] }
  0x28   : > { %653 = vmatpush.msra.mxu1 %v520_v41  ;;  %697 = vmatpush.msra.mxu3 %v554_v47  ;;  %v592_v7 = vld [vmem:[%s1205_s15 + $0x2e0] sm:$0xff]  ;;  %v575_v10 = vld [vmem:[%s1205_s15 + $0x258] sm:$0xff]  ;;  %v605_v12 = vld [vmem:[%s1205_s15 + $0x348] sm:$0xff] }
  0x29   : > { %631 = vmatpush.msra.mxu0 %v503_v44  ;;  %676 = vmatpush.msra.mxu2 %v536_v46  ;;  %v548_v9 = vld [vmem:[%s1205_s15 + $0x180] sm:$0xff]  ;;  %v591_v11 = vld [vmem:[%s1205_s15 + $0x2d8] sm:$0xff]  ;;  %v574_v14 = vld [vmem:[%s1205_s15 + $0x250] sm:$0xff] }
  0x2a   : > { %654 = vmatpush.msra.mxu1 %v519_v45  ;;  %698 = vmatpush.msra.mxu3 %v553_v51  ;;  %v486_v13 = vld [vmem:[%s1287_s19] sm:$0xff]  ;;  %v590_v15 = vld [vmem:[%s1205_s15 + $0x2d0] sm:$0xff]  ;;  %v489_v17 = vld [vmem:[%s1287_s19 + $0x18] sm:$0xff] }
  0x2b   : > { %632 = vmatpush.msra.mxu0 %v502_v48  ;;  %677 = vmatpush.msra.mxu2 %v535_v50  ;;  %v604_v16 = vld [vmem:[%s1205_s15 + $0x340] sm:$0xff]  ;;  %v573_v18 = vld [vmem:[%s1205_s15 + $0x248] sm:$0xff]  ;;  %v488_v19 = vld [vmem:[%s1287_s19 + $0x10] sm:$0xff] }
  0x2c   : > { %655 = vmatpush.msra.mxu1 %v518_v49  ;;  %699 = vmatpush.msra.mxu3 %v552_v55  ;;  %v589_v20 = vld [vmem:[%s1205_s15 + $0x2c8] sm:$0xff]  ;;  %v603_v21 = vld [vmem:[%s1205_s15 + $0x338] sm:$0xff]  ;;  %v572_v22 = vld [vmem:[%s1205_s15 + $0x240] sm:$0xff] }
  0x2d   : > { %633 = vmatpush.msra.mxu0 %v501_v52  ;;  %678 = vmatpush.msra.mxu2 %v534_v54  ;;  %v487_v23 = vld [vmem:[%s1287_s19 + $0x8] sm:$0xff]  ;;  %v588_v24 = vld [vmem:[%s1205_s15 + $0x2c0] sm:$0xff]  ;;  %v602_v25 = vld [vmem:[%s1205_s15 + $0x330] sm:$0xff] }
  0x2e   : > { %656 = vmatpush.msra.mxu1 %v517_v53  ;;  %700 = vmatpush.msra.mxu3 %v551_v61  ;;  %v571_v26 = vld [vmem:[%s1205_s15 + $0x238] sm:$0xff]  ;;  %v601_v28 = vld [vmem:[%s1205_s15 + $0x328] sm:$0xff]  ;;  %v570_v29 = vld [vmem:[%s1205_s15 + $0x230] sm:$0xff] }
  0x2f   : > { %634 = vmatpush.msra.mxu0 %v500_v56  ;;  %679 = vmatpush.msra.mxu2 %v533_v60  ;;  %v587_v27 = vld [vmem:[%s1205_s15 + $0x2b8] sm:$0xff]  ;;  %v586_v30 = vld [vmem:[%s1205_s15 + $0x2b0] sm:$0xff]  ;;  %v600_v31 = vld [vmem:[%s1205_s15 + $0x320] sm:$0xff] }
  0x30   : > { %657 = vmatpush.msra.mxu1 %v516_v57  ;;  %701 = vmatpush.msra.mxu3 %v550_v1  ;;  %v569_v32 = vld [vmem:[%s1205_s15 + $0x228] sm:$0xff]  ;;  %v599_v35 = vld [vmem:[%s1205_s15 + $0x318] sm:$0xff]  ;;  %v568_v36 = vld [vmem:[%s1205_s15 + $0x220] sm:$0xff] }
  0x31   : > { %711 = vmatpush.msrb.mxu0 %v579_v58  ;;  %680 = vmatpush.msra.mxu2 %v532_v0  ;;  %v495_v33 = vld [vmem:[%s1287_s19 + $0x48] sm:$0xff]  ;;  %v496_v37 = vld [vmem:[%s1287_s19 + $0x50] sm:$0xff]  ;;  %v493_v38 = vld [vmem:[%s1287_s19 + $0x38] sm:$0xff] }
  0x32   : > { %734 = vmatpush.msrb.mxu1 %v595_v59  ;;  %702 = vmatpush.msra.mxu3 %v549_v5  ;;  %v585_v34 = vld [vmem:[%s1205_s15 + $0x2a8] sm:$0xff]  ;;  %v584_v39 = vld [vmem:[%s1205_s15 + $0x2a0] sm:$0xff]  ;;  %v567_v40 = vld [vmem:[%s1205_s15 + $0x218] sm:$0xff] }
  0x33   : > { %712 = vmatpush.msrb.mxu0 %v578_v62  ;;  %761 = vmatpush.msrb.mxu2 %v607_v4  ;;  %v598_v41 = vld [vmem:[%s1205_s15 + $0x310] sm:$0xff]  ;;  %v494_v42 = vld [vmem:[%s1287_s19 + $0x40] sm:$0xff]  ;;  %v583_v44 = vld [vmem:[%s1205_s15 + $0x298] sm:$0xff] }
  0x34   : > { %735 = vmatpush.msrb.mxu1 %v594_v63  ;;  %703 = vmatpush.msra.mxu3 %v548_v9  ;;  %v566_v43 = vld [vmem:[%s1205_s15 + $0x210] sm:$0xff]  ;;  %v597_v45 = vld [vmem:[%s1205_s15 + $0x308] sm:$0xff]  ;;  %v596_v48 = vld [vmem:[%s1205_s15 + $0x300] sm:$0xff] }
  0x35   : > { %713 = vmatpush.msrb.mxu0 %v577_v2  ;;  %762 = vmatpush.msrb.mxu2 %v606_v8  ;;  %v565_v46 = vld [vmem:[%s1205_s15 + $0x208] sm:$0xff]  ;;  %v582_v47 = vld [vmem:[%s1205_s15 + $0x290] sm:$0xff]  ;;  %v564_v50 = vld [vmem:[%s1205_s15 + $0x200] sm:$0xff] }
  0x36   : > { %736 = vmatpush.msrb.mxu1 %v593_v3  ;;  %635 = vmatmul.f32.vlgmr.msra.gmra.mxu0 %v486_v13  ;;  %v492_v49 = vld [vmem:[%s1287_s19 + $0x30] sm:$0xff]  ;;  %v581_v51 = vld [vmem:[%s1205_s15 + $0x288] sm:$0xff]  ;;  %v490_v52 = vld [vmem:[%s1287_s19 + $0x20] sm:$0xff] }
  0x37   : > { %714 = vmatpush.msrb.mxu0 %v576_v6  ;;  %763 = vmatpush.msrb.mxu2 %v605_v12  ;;  %v580_v53 = vld [vmem:[%s1205_s15 + $0x280] sm:$0xff]  ;;  %v491_v54 = vld [vmem:[%s1287_s19 + $0x28] sm:$0xff]  ;;  %v497_v56 = vld [vmem:[%s1287_s19 + $0x58] sm:$0xff]  ;;  %s1354_s15 = scalar_lea.vmem %s1393_s6, %s1072_s9  ;;  %s484_s9 = scalar_lea.vmem %s1395_s8, %s1071_s18 }
  0x38   : > { %737 = vmatpush.msrb.mxu1 %v592_v7  ;;  %704 = vmatmul.f32.vlgmr.msra.gmra.mxu3 %v489_v17  ;;  %v499_v55 = vld [vmem:[%s1287_s19 + $0x68] sm:$0xff]  ;;  %v498_v57 = vld [vmem:[%s1287_s19 + $0x60] sm:$0xff]  ;;  %v799_v58 = vld [vmem:[%s464_s26 + $0x58] sm:$0xff] }
  0x39   : > { %715 = vmatpush.msrb.mxu0 %v575_v10  ;;  %764 = vmatpush.msrb.mxu2 %v604_v16  ;;  %v798_v59 = vld [vmem:[%s464_s26 + $0x50] sm:$0xff]  ;;  %v797_v60 = vld [vmem:[%s464_s26 + $0x48] sm:$0xff]  ;;  %v796_v61 = vld [vmem:[%s464_s26 + $0x40] sm:$0xff] }
  0x3a   : > { %738 = vmatpush.msrb.mxu1 %v591_v11  ;;  %681 = vmatmul.f32.vlgmr.msra.gmra.mxu2 %v488_v19  ;;  %v795_v62 = vld [vmem:[%s464_s26 + $0x38] sm:$0xff]  ;;  %v794_v63 = vld [vmem:[%s464_s26 + $0x30] sm:$0xff]  ;;  %v793_v0 = vld [vmem:[%s464_s26 + $0x28] sm:$0xff] }
  0x3b   : > { %716 = vmatpush.msrb.mxu0 %v574_v14  ;;  %765 = vmatpush.msrb.mxu2 %v603_v21  ;;  %v792_v1 = vld [vmem:[%s464_s26 + $0x20] sm:$0xff]  ;;  %v791_v2 = vld [vmem:[%s464_s26 + $0x18] sm:$0xff]  ;;  %v790_v3 = vld [vmem:[%s464_s26 + $0x10] sm:$0xff] }
  0x3c   : > { %739 = vmatpush.msrb.mxu1 %v590_v15  ;;  %810 = vmatpush.msrb.mxu3 %v799_v58  ;;  %v789_v4 = vld [vmem:[%s464_s26 + $0x8] sm:$0xff]  ;;  %v788_v5 = vld [vmem:[%s464_s26] sm:$0xff]  ;;  %v840_v11 = vld [vmem:[%s1354_s15 + $0x18] sm:$0xff] }
  0x3d   : > { %717 = vmatpush.msrb.mxu0 %v573_v18  ;;  %658 = vmatmul.f32.vlgmr.msra.gmra.mxu1 %v487_v23  ;;  %v1105_v7 = vld [vmem:[%s449_s12] ss:$0 sm:$0xff] }
  0x3e   : > { %740 = vmatpush.msrb.mxu1 %v589_v20  ;;  %766 = vmatpush.msrb.mxu2 %v602_v25 }
  0x3f   : > { %718 = vmatpush.msrb.mxu0 %v572_v22  ;;  %811 = vmatpush.msrb.mxu3 %v798_v59 }
  0x40   : > { %741 = vmatpush.msrb.mxu1 %v588_v24  ;;  %767 = vmatpush.msrb.mxu2 %v601_v28 }
  0x41   : > { %719 = vmatpush.msrb.mxu0 %v571_v26  ;;  %707 = vmatmul.f32.gmra.mxu3 %v496_v37 }
  0x42   : > { %742 = vmatpush.msrb.mxu1 %v587_v27  ;;  %768 = vmatpush.msrb.mxu2 %v600_v31 }
  0x43   : > { %720 = vmatpush.msrb.mxu0 %v570_v29  ;;  %684 = vmatmul.f32.gmra.mxu2 %v495_v33 }
  0x44   : > { %743 = vmatpush.msrb.mxu1 %v586_v30  ;;  %769 = vmatpush.msrb.mxu2 %v599_v35 }
  0x45   : > { %721 = vmatpush.msrb.mxu0 %v569_v32  ;;  %661 = vmatmul.f32.gmra.mxu1 %v494_v42  ;;  %v837_v42 = vld [vmem:[%s1354_s15] sm:$0xff] }
  0x46   : > { %744 = vmatpush.msrb.mxu1 %v585_v34  ;;  %638 = vmatmul.f32.gmra.mxu0 %v493_v38 }
  0x47   : > { %722 = vmatpush.msrb.mxu0 %v568_v36  ;;  %770 = vmatpush.msrb.mxu2 %v598_v41  ;;  %v838_v41 = vld [vmem:[%s1354_s15 + $0x8] sm:$0xff] }
  0x48   : > { %745 = vmatpush.msrb.mxu1 %v584_v39  ;;  %812 = vmatpush.msrb.mxu3 %v797_v60 }
  0x49   : > { %723 = vmatpush.msrb.mxu0 %v567_v40  ;;  %771 = vmatpush.msrb.mxu2 %v597_v45  ;;  %v839_v40 = vld [vmem:[%s1354_s15 + $0x10] sm:$0xff] }
  0x4a   : > { %746 = vmatpush.msrb.mxu1 %v583_v44  ;;  %813 = vmatpush.msrb.mxu3 %v796_v61  ;;  %v1106_v44 = vld [vmem:[%s467_s22] ss:$0 sm:$0xff] }
  0x4b   : > { %724 = vmatpush.msrb.mxu0 %v566_v43  ;;  %772 = vmatpush.msrb.mxu2 %v596_v48  ;;  %v786_v43 = vld [vmem:[%s458_s21] sm:$0xff]  ;;  %v787_v48 = vld [vmem:[%s458_s21 + $0x8] sm:$0xff] }
  0x4c   : > { %747 = vmatpush.msrb.mxu1 %v582_v47  ;;  %1063 = vmatmul.msk.f32.vlgmr.msrb.gmra.mxu2 %vm612_vm0, %v492_v49 }
  0x4d   : > { %725 = vmatpush.msrb.mxu0 %v565_v46  ;;  %814 = vmatpush.msrb.mxu3 %v795_v62 }
  0x4e   : > { %748 = vmatpush.msrb.mxu1 %v581_v51  ;;  %864 = vmatpush.msra.mxu2 %v840_v11 }
  0x4f   : > { %726 = vmatpush.msrb.mxu0 %v564_v50  ;;  %815 = vmatpush.msrb.mxu3 %v794_v63 }
  0x50   : > { %727 = vmatmul.f32.vlgmr.msrb.gmra.mxu0 %v490_v52  ;;  %749 = vmatpush.msrb.mxu1 %v580_v53  ;;  %v1107_v52 = vld [vmem:[%s475_s17] ss:$0 sm:$0xff] }
  0x51   : > { %750 = vmatmul.f32.vlgmr.msrb.gmra.mxu1 %v491_v54  ;;  %816 = vmatpush.msrb.mxu3 %v793_v0 }
  0x52   : > { %865 = vmatpush.msra.mxu2 %v839_v40 }
  0x53   : > { %817 = vmatpush.msrb.mxu3 %v792_v1 }
  0x54   : > { %1064 = vmatmul.msk.f32.gmra.mxu2 %vm612_vm0, %v499_v55 }
  0x55   : > { %818 = vmatpush.msrb.mxu3 %v791_v2  ;;  %866 = vmatpush.msra.mxu2 %v838_v41 }
  0x57   : > { %819 = vmatpush.msrb.mxu3 %v790_v3  ;;  %867 = vmatpush.msra.mxu2 %v837_v42 }
  0x58   : > { %730 = vmatmul.f32.gmra.mxu0 %v497_v56 }
  0x59   : > { %753 = vmatmul.f32.gmra.mxu1 %v498_v57  ;;  %820 = vmatpush.msrb.mxu3 %v789_v4 }
  0x5b   : > { %821 = vmatpush.msrb.mxu3 %v788_v5 }
  0x5d   : > { %1074 = vmatpush.msra.mxu3 %v840_v11 }
  0x5f   : > { %1075 = vmatpush.msra.mxu3 %v839_v40 }
  0x61   : > { %1076 = vmatpush.msra.mxu3 %v838_v41 }
  0x63   : > { %1077 = vmatpush.msra.mxu3 %v837_v42 }
  0xb3   : > { %v636_v6 = vpop.f32.mrf.mxu0 }
  0xb4   : > { %v637_v9 = vadd.f32 %v1105_v7, %v636_v6 }
  0xba   : > { %v659_v8 = vpop.f32.mrf.mxu1 }
  0xbb   : > { %v660_v12 = vadd.f32 %v659_v8, %v637_v9  ;;  %v705_v14 = vpop.f32.mrf.mxu3 }
  0xbd   : > { %v682_v10 = vpop.f32.mrf.mxu2 }
  0xbe   : > { %v683_v16 = vadd.f32 %v682_v10, %v660_v12 }
  0xc0   : > { %v706_v19 = vadd.f32 %v705_v14, %v683_v16 }
  0xc2   : > { %v662_v15 = vpop.f32.mrf.mxu1 }
  0xc3   : > { %v639_v13 = vpop.f32.mrf.mxu0 }
  0xc4   : > { %v640_v17 = vadd.f32 %v1105_v7, %v639_v13  ;;  %v708_v25 = vpop.f32.mrf.mxu3 }
  0xc6   : > { %v685_v18 = vpop.f32.mrf.mxu2  ;;  %v663_v20 = vadd.f32 %v662_v15, %v640_v17 }
  0xc8   : > { %v686_v23 = vadd.f32 %v685_v18, %v663_v20 }
  0xca   : > { %v709_v29 = vadd.f32 %v708_v25, %v686_v23 }
  0xcd   : > { %v728_v21 = vpop.f32.mrf.mxu0 }
  0xce   : > { %v729_v22 = vadd.f32 %v728_v21, %v706_v19  ;;  %v751_v24 = vpop.f32.mrf.mxu1 }
  0xcf   : > { %v774_v27 = vpop.f32.mrf.mxu2 }
  0xd0   : > { %v752_v26 = vadd.f32 %v751_v24, %v729_v22 }
  0xd2   : > { %v775_v28 = vadd.f32 %v774_v27, %v752_v26 }
  0xd4   : > { %vm780_vm1 = vcmp.ge.f32.partialorder %v775_v28, 0.0  ;;  %v782_v30 = vmul.f32 0.1, %v775_v28 }
  0xd5   : > { %v731_v31 = vpop.f32.mrf.mxu0 }
  0xd6   : > { %v732_v32 = vadd.f32 %v731_v31, %v709_v29  ;;  %v784_v33 = vsel %vm780_vm1, %v775_v28, %v782_v30  ;;  %v754_v34 = vpop.f32.mrf.mxu1 }
  0xd7   : > { %1065 = vmatmul.msk.f32.vlgmr.msrb.gmra.mxu3 %vm612_vm0, %v784_v33  ;;  %v777_v36 = vpop.f32.mrf.mxu2 }
  0xd8   : > { %v755_v35 = vadd.f32 %v754_v34, %v732_v32 }
  0xda   : > { %v778_v37 = vadd.f32 %v777_v36, %v755_v35 }
  0xdc   : > { %v783_v38 = vmul.f32 0.1, %v778_v37  ;;  %vm781_vm2 = vcmp.ge.f32.partialorder %v778_v37, 0.0 }
  0xde   : > { %v785_v39 = vsel %vm781_vm2, %v778_v37, %v783_v38 }
  0xdf   : > { %1066 = vmatmul.msk.f32.gmra.mxu3 %vm612_vm0, %v785_v39 }
 0x15a   : > { %v823_v45 = vpop.f32.mrf.mxu3 }
 0x15b   : > { %v829_v46 = vadd.f32 %v823_v45, %v786_v43 }
 0x15d   : > { %v835_v47 = vadd.f32 %v1106_v44, %v829_v46 }
 0x15f   : > { %1067 = vmatmul.msk.f32.vlgmr.msra.gmra.mxu2 %vm845_vm3, %v835_v47 }
 0x162   : > { %v826_v49 = vpop.f32.mrf.mxu3 }
 0x163   : > { %v830_v50 = vadd.f32 %v826_v49, %v787_v48 }
 0x165   : > { %v836_v51 = vadd.f32 %v1106_v44, %v830_v50 }
 0x167   : > { %1068 = vmatmul.msk.f32.vlgmr.msra.gmra.mxu3 %vm845_vm3, %v836_v51 }
 0x1e2   : > { %v869_v53 = vpop.f32.mrf.mxu2 }
 0x1e3   : > { %v870_v54 = vadd.f32 %v1107_v52, %v869_v53 }
 0x1e5   : > { %876 = vst.msk [vmem:[%s484_s9] sm:$0xff] %vm875_vm4, %v870_v54 }
 0x1ea   : > { %v872_v55 = vpop.f32.mrf.mxu3 }
 0x1eb   : > { %v873_v56 = vadd.f32 %v1107_v52, %v872_v55 }
 0x1ed   : > { %877 = vst.msk [vmem:[%s484_s9 + $0x8] sm:$0xff] %vm875_vm4, %v873_v56 }
 0x1ee PF: > { %s18_s29 = sadd.s32 1, %s1130_s29   ;;  %s1396_s27 = smov %s1126_s28 }
 0x1ef   : > { %p15_p5 = scmp.ge.s32.totalorder %s18_s29, 4   ;;  %s1397_s28 = smov %s1399_s30 }
 0x1f1   :  { %17 = sbr.rel (!%p15_p5) target bundleno = 2 (0x2), region = 103 }

// kernel: main_encoder.38
= control target key start
LH: loop header
LB: loop body
LE: loop exit
PB: predicated region body
PF: predicated region fallthrough
CT: control target
= control target key end

     0   :  { %s589_s12 = smov 0   ;;  %s591_s13 = smov 0   ;;  %s689_s0 = inlined_call_operand.vmem [shape: f32[2,16,288], index: 0, kind: input, shape index: {}]   ;;  %s690_s1 = inlined_call_operand.vmem [shape: f32[2,288,32], index: 1, kind: input, shape index: {}]   ;;  %s691_s2 = inlined_call_operand.vmem [shape: f32[2,1,32], index: 2, kind: input, shape index: {}]   ;;  %s692_s3 = inlined_call_operand.vmem [shape: f32[2,16,32], index: 3, kind: output, shape index: {}]  }
   0x1   :  { %s593_s14 = smov 0  }
   0x2 LB: > { %s25_s15 = sadd.s32 1, %s563_s13  ;;  %p492_p0 = scmp.ge.s32.totalorder %s567_s14, 1  ;;  %s567_s14 = sphi %s593_s14, %s13_s14   ;;  %s563_s13 = sphi %s591_s13, %s694_s13   ;;  %s559_s12 = sphi %s589_s12, %s693_s12  }
   0x3   : > { %p27_p1 = scmp.ge.s32.totalorder %s25_s15, 2  ;;  %p177_p2 = scmp.lt.s32.totalorder %s567_s14, 3 }
   0x5   : > { %s696_s15 = smov (%p27_p1, %s25_s15), 0  ;;  %p178_p3 = pnand %p492_p0, %p177_p2 }
   0x6   : > { %p219_p4 = scmp.lt.s32.totalorder (!%p178_p3), %s559_s12, 1 }
   0x7   : > { %181 = sbr.rel (%p178_p3) target bundleno = 191 (0xbf), region = 32 }
   0xc   : > { %s698_s12 = smov (!%p219_p4, %s559_s12), 1  ;;  %vm293_vm0 = vcmask 261120  }
   0xd   : > { %s519_s16 = smul.u32 288, %s698_s12  ;;  %s236_s19 = scalar_lea.vmem %s691_s2, %s698_s12 }
   0xe   : > { %s518_s23 = smul.u32 48, %s698_s12  ;;  %v544_v42 = vld [vmem:[%s236_s19] ss:$0 sm:$0xff]  ;;  %s501_s29 = sshll.u32 %s698_s12, 4 }
   0xf   : > { %s617_s22 = scalar_lea.vmem %s690_s1, %s519_s16  ;;  %s245_s5 = scalar_lea.vmem %s692_s3, %s501_s29 }
  0x10   : > { %v268_v0 = vld [vmem:[%s617_s22 + $0x78] sm:$0xff]  ;;  %v267_v2 = vld [vmem:[%s617_s22 + $0x70] sm:$0xff]  ;;  %v266_v4 = vld [vmem:[%s617_s22 + $0x68] sm:$0xff]  ;;  %s639_s26 = scalar_lea.vmem %s689_s0, %s518_s23 }
  0x11   : > { %v284_v1 = vld [vmem:[%s617_s22 + $0xf8] sm:$0xff]  ;;  %300 = vmatpush.msra.mxu0 %v268_v0  ;;  %502 = vmatpush.msra.mxu3 %v268_v0  ;;  %v283_v3 = vld [vmem:[%s617_s22 + $0xf0] sm:$0xff]  ;;  %v282_v5 = vld [vmem:[%s617_s22 + $0xe8] sm:$0xff] }
  0x12   : > { %323 = vmatpush.msra.mxu1 %v284_v1  ;;  %v265_v6 = vld [vmem:[%s617_s22 + $0x60] sm:$0xff]  ;;  %v264_v8 = vld [vmem:[%s617_s22 + $0x58] sm:$0xff]  ;;  %v263_v11 = vld [vmem:[%s617_s22 + $0x50] sm:$0xff] }
  0x13   : > { %301 = vmatpush.msra.mxu0 %v267_v2  ;;  %503 = vmatpush.msra.mxu3 %v267_v2  ;;  %v281_v7 = vld [vmem:[%s617_s22 + $0xe0] sm:$0xff]  ;;  %v280_v9 = vld [vmem:[%s617_s22 + $0xd8] sm:$0xff]  ;;  %v287_v12 = vld [vmem:[%s617_s22 + $0x110] sm:$0xff] }
  0x14   : > { %324 = vmatpush.msra.mxu1 %v283_v3  ;;  %v288_v10 = vld [vmem:[%s617_s22 + $0x118] sm:$0xff]  ;;  %v279_v13 = vld [vmem:[%s617_s22 + $0xd0] sm:$0xff]  ;;  %v286_v14 = vld [vmem:[%s617_s22 + $0x108] sm:$0xff] }
  0x15   : > { %302 = vmatpush.msra.mxu0 %v266_v4  ;;  %504 = vmatpush.msra.mxu3 %v266_v4  ;;  %v262_v15 = vld [vmem:[%s617_s22 + $0x48] sm:$0xff]  ;;  %v285_v17 = vld [vmem:[%s617_s22 + $0x100] sm:$0xff]  ;;  %v249_v20 = vld [vmem:[%s639_s26 + $0x10] sm:$0xff] }
  0x16   : > { %325 = vmatpush.msra.mxu1 %v282_v5  ;;  %358 = vmatpush.msra.mxu2 %v288_v10  ;;  %v278_v16 = vld [vmem:[%s617_s22 + $0xc8] sm:$0xff]  ;;  %v261_v18 = vld [vmem:[%s617_s22 + $0x40] sm:$0xff]  ;;  %v260_v21 = vld [vmem:[%s617_s22 + $0x38] sm:$0xff] }
  0x17   : > { %303 = vmatpush.msra.mxu0 %v265_v6  ;;  %505 = vmatpush.msra.mxu3 %v265_v6  ;;  %v277_v19 = vld [vmem:[%s617_s22 + $0xc0] sm:$0xff]  ;;  %v276_v22 = vld [vmem:[%s617_s22 + $0xb8] sm:$0xff]  ;;  %v259_v23 = vld [vmem:[%s617_s22 + $0x30] sm:$0xff] }
  0x18   : > { %326 = vmatpush.msra.mxu1 %v281_v7  ;;  %359 = vmatpush.msra.mxu2 %v287_v12  ;;  %v275_v24 = vld [vmem:[%s617_s22 + $0xb0] sm:$0xff]  ;;  %v258_v25 = vld [vmem:[%s617_s22 + $0x28] sm:$0xff]  ;;  %v257_v27 = vld [vmem:[%s617_s22 + $0x20] sm:$0xff] }
  0x19   : > { %304 = vmatpush.msra.mxu0 %v264_v8  ;;  %506 = vmatpush.msra.mxu3 %v264_v8  ;;  %v274_v26 = vld [vmem:[%s617_s22 + $0xa8] sm:$0xff]  ;;  %v273_v28 = vld [vmem:[%s617_s22 + $0xa0] sm:$0xff]  ;;  %v256_v30 = vld [vmem:[%s617_s22 + $0x18] sm:$0xff] }
  0x1a   : > { %327 = vmatpush.msra.mxu1 %v280_v9  ;;  %360 = vmatpush.msra.mxu2 %v286_v14  ;;  %v252_v29 = vld [vmem:[%s639_s26 + $0x28] sm:$0xff]  ;;  %v272_v31 = vld [vmem:[%s617_s22 + $0x98] sm:$0xff]  ;;  %v255_v32 = vld [vmem:[%s617_s22 + $0x10] sm:$0xff] }
  0x1b   : > { %305 = vmatpush.msra.mxu0 %v263_v11  ;;  %507 = vmatpush.msra.mxu3 %v263_v11  ;;  %v271_v33 = vld [vmem:[%s617_s22 + $0x90] sm:$0xff]  ;;  %v254_v34 = vld [vmem:[%s617_s22 + $0x8] sm:$0xff]  ;;  %v253_v36 = vld [vmem:[%s617_s22] sm:$0xff] }
  0x1c   : > { %328 = vmatpush.msra.mxu1 %v279_v13  ;;  %361 = vmatpush.msra.mxu2 %v285_v17  ;;  %v270_v35 = vld [vmem:[%s617_s22 + $0x88] sm:$0xff]  ;;  %v269_v37 = vld [vmem:[%s617_s22 + $0x80] sm:$0xff]  ;;  %v250_v39 = vld [vmem:[%s639_s26 + $0x18] sm:$0xff] }
  0x1d   : > { %306 = vmatpush.msra.mxu0 %v262_v15  ;;  %508 = vmatpush.msra.mxu3 %v262_v15  ;;  %v247_v38 = vld [vmem:[%s639_s26] sm:$0xff]  ;;  %v248_v40 = vld [vmem:[%s639_s26 + $0x8] sm:$0xff] }
  0x1e   : > { %329 = vmatpush.msra.mxu1 %v278_v16  ;;  %497 = vmatmul.msk.f32.vlgmr.msra.gmra.mxu2 %vm293_vm0, %v249_v20  ;;  %v251_v41 = vld [vmem:[%s639_s26 + $0x20] sm:$0xff] }
  0x1f   : > { %307 = vmatpush.msra.mxu0 %v261_v18  ;;  %509 = vmatpush.msra.mxu3 %v261_v18 }
  0x20   : > { %330 = vmatpush.msra.mxu1 %v277_v19 }
  0x21   : > { %308 = vmatpush.msra.mxu0 %v260_v21  ;;  %510 = vmatpush.msra.mxu3 %v260_v21 }
  0x22   : > { %331 = vmatpush.msra.mxu1 %v276_v22 }
  0x23   : > { %309 = vmatpush.msra.mxu0 %v259_v23  ;;  %511 = vmatpush.msra.mxu3 %v259_v23 }
  0x24   : > { %332 = vmatpush.msra.mxu1 %v275_v24 }
  0x25   : > { %310 = vmatpush.msra.mxu0 %v258_v25  ;;  %512 = vmatpush.msra.mxu3 %v258_v25 }
  0x26   : > { %333 = vmatpush.msra.mxu1 %v274_v26  ;;  %498 = vmatmul.msk.f32.gmra.mxu2 %vm293_vm0, %v252_v29 }
  0x27   : > { %311 = vmatpush.msra.mxu0 %v257_v27  ;;  %513 = vmatpush.msra.mxu3 %v257_v27 }
  0x28   : > { %334 = vmatpush.msra.mxu1 %v273_v28 }
  0x29   : > { %312 = vmatpush.msra.mxu0 %v256_v30  ;;  %514 = vmatpush.msra.mxu3 %v256_v30 }
  0x2a   : > { %335 = vmatpush.msra.mxu1 %v272_v31 }
  0x2b   : > { %313 = vmatpush.msra.mxu0 %v255_v32  ;;  %515 = vmatpush.msra.mxu3 %v255_v32 }
  0x2c   : > { %336 = vmatpush.msra.mxu1 %v271_v33 }
  0x2d   : > { %314 = vmatpush.msra.mxu0 %v254_v34  ;;  %516 = vmatpush.msra.mxu3 %v254_v34 }
  0x2e   : > { %337 = vmatpush.msra.mxu1 %v270_v35 }
  0x2f   : > { %315 = vmatpush.msra.mxu0 %v253_v36  ;;  %517 = vmatpush.msra.mxu3 %v253_v36 }
  0x30   : > { %338 = vmatpush.msra.mxu1 %v269_v37  ;;  %316 = vmatmul.f32.vlgmr.msra.gmra.mxu0 %v247_v38 }
  0x31   : > { %319 = vmatmul.f32.vlgmr.msra.gmra.mxu3 %v250_v39  ;;  %339 = vmatmul.f32.vlgmr.msra.gmra.mxu1 %v248_v40 }
  0x39   : > { %342 = vmatmul.f32.gmra.mxu1 %v251_v41 }
  0xa1   : > { %v363_v43 = vpop.f32.mrf.mxu2 }
  0xa9   : > { %v366_v54 = vpop.f32.mrf.mxu2 }
  0xad   : > { %v317_v44 = vpop.f32.mrf.mxu0 }
  0xae   : > { %v318_v45 = vadd.f32 %v544_v42, %v317_v44  ;;  %v340_v46 = vpop.f32.mrf.mxu1 }
  0xb0   : > { %v341_v47 = vadd.f32 %v340_v46, %v318_v45 }
  0xb2   : > { %v364_v48 = vadd.f32 %v363_v43, %v341_v47 }
  0xb4   : > { %vm369_vm1 = vcmp.ge.f32.partialorder %v364_v48, 0.0  ;;  %v371_v49 = vmul.f32 0.1, %v364_v48  ;;  %v320_v50 = vpop.f32.mrf.mxu3 }
  0xb5   : > { %v321_v51 = vadd.f32 %v544_v42, %v320_v50 }
  0xb6   : > { %v373_v52 = vsel %vm369_vm1, %v364_v48, %v371_v49  ;;  %v343_v53 = vpop.f32.mrf.mxu1 }
  0xb7   : > { %375 = vst.msk [vmem:[%s245_s5] sm:$0xff] %vm293_vm0, %v373_v52  ;;  %v344_v55 = vadd.f32 %v343_v53, %v321_v51 }
  0xb9   : > { %v367_v56 = vadd.f32 %v366_v54, %v344_v55 }
  0xbb   : > { %vm370_vm2 = vcmp.ge.f32.partialorder %v367_v56, 0.0  ;;  %v372_v57 = vmul.f32 0.1, %v367_v56 }
  0xbd   : > { %v374_v58 = vsel %vm370_vm2, %v367_v56, %v372_v57 }
  0xbe   : > { %376 = vst.msk [vmem:[%s245_s5 + $0x8] sm:$0xff] %vm293_vm0, %v374_v58 }
  0xbf PF: > { %s13_s14 = sadd.s32 1, %s567_s14   ;;  %s693_s12 = smov %s563_s13 }
  0xc0   : > { %p10_p5 = scmp.ge.s32.totalorder %s13_s14, 4   ;;  %s694_s13 = smov %s696_s15 }
  0xc2   :  { %12 = sbr.rel (!%p10_p5) target bundleno = 2 (0x2), region = 68 }

// kernel: main_encoder.39
= control target key start
LH: loop header
LB: loop body
LE: loop exit
PB: predicated region body
PF: predicated region fallthrough
CT: control target
= control target key end

     0   :  { %vm32_vm0 = vcmask 785408   ;;  %vm62_vm1 = vcmask 261120   ;;  %s155_s1 = inlined_call_operand.vmem [shape: f32[1,96,32], index: 1, kind: input, shape index: {}]   ;;  %s156_s2 = inlined_call_operand.vmem [shape: f32[1,1,32], index: 2, kind: input, shape index: {}]   ;;  %s157_s0 = inlined_call_operand.vmem [shape: f32[1,16,96], index: 0, kind: input, shape index: {}]   ;;  %s158_s3 = inlined_call_operand.vmem [shape: f32[1,16,32], index: 3, kind: output, shape index: {}]  }
   0x1   :  { %v27_v0 = vld [vmem:[%s155_s1 + $0x58] sm:$0xff]  ;;  %v26_v1 = vld [vmem:[%s155_s1 + $0x50] sm:$0xff]  ;;  %v25_v2 = vld [vmem:[%s155_s1 + $0x48] sm:$0xff] }
   0x2   :  { %43 = vmatpush.msra.mxu0 %v27_v0  ;;  %71 = vmatpush.msra.mxu1 %v27_v0  ;;  %v24_v3 = vld [vmem:[%s155_s1 + $0x40] sm:$0xff]  ;;  %v23_v4 = vld [vmem:[%s155_s1 + $0x38] sm:$0xff]  ;;  %v22_v5 = vld [vmem:[%s155_s1 + $0x30] sm:$0xff] }
   0x3   :  { %v21_v6 = vld [vmem:[%s155_s1 + $0x28] sm:$0xff]  ;;  %v20_v7 = vld [vmem:[%s155_s1 + $0x20] sm:$0xff]  ;;  %v19_v8 = vld [vmem:[%s155_s1 + $0x18] sm:$0xff] }
   0x4   :  { %44 = vmatpush.msra.mxu0 %v26_v1  ;;  %72 = vmatpush.msra.mxu1 %v26_v1  ;;  %v18_v9 = vld [vmem:[%s155_s1 + $0x10] sm:$0xff]  ;;  %v17_v10 = vld [vmem:[%s155_s1 + $0x8] sm:$0xff]  ;;  %v16_v11 = vld [vmem:[%s155_s1] sm:$0xff] }
   0x5   :  { %v14_v12 = vld [vmem:[%s157_s0] sm:$0xff]  ;;  %v15_v13 = vld [vmem:[%s157_s0 + $0x8] sm:$0xff] }
   0x6   :  { %45 = vmatpush.msra.mxu0 %v25_v2  ;;  %73 = vmatpush.msra.mxu1 %v25_v2  ;;  %v83_v14 = vld [vmem:[%s156_s2] ss:$0 sm:$0xff] }
   0x8   :  { %46 = vmatpush.msra.mxu0 %v24_v3  ;;  %74 = vmatpush.msra.mxu1 %v24_v3 }
   0xa   :  { %47 = vmatpush.msra.mxu0 %v23_v4  ;;  %75 = vmatpush.msra.mxu1 %v23_v4 }
   0xc   :  { %48 = vmatpush.msra.mxu0 %v22_v5  ;;  %76 = vmatpush.msra.mxu1 %v22_v5 }
   0xe   :  { %49 = vmatpush.msra.mxu0 %v21_v6  ;;  %77 = vmatpush.msra.mxu1 %v21_v6 }
  0x10   :  { %50 = vmatpush.msra.mxu0 %v20_v7  ;;  %78 = vmatpush.msra.mxu1 %v20_v7 }
  0x12   :  { %51 = vmatpush.msra.mxu0 %v19_v8  ;;  %79 = vmatpush.msra.mxu1 %v19_v8 }
  0x14   :  { %52 = vmatpush.msra.mxu0 %v18_v9  ;;  %80 = vmatpush.msra.mxu1 %v18_v9 }
  0x16   :  { %53 = vmatpush.msra.mxu0 %v17_v10  ;;  %81 = vmatpush.msra.mxu1 %v17_v10 }
  0x18   :  { %54 = vmatpush.msra.mxu0 %v16_v11  ;;  %82 = vmatpush.msra.mxu1 %v16_v11 }
  0x19   :  { %69 = vmatmul.msk.f32.vlgmr.msra.gmra.mxu0 %vm32_vm0, %v14_v12  ;;  %70 = vmatmul.msk.f32.vlgmr.msra.gmra.mxu1 %vm32_vm0, %v15_v13 }
  0x96   :  { %v56_v15 = vpop.f32.mrf.mxu0  ;;  %v59_v16 = vpop.f32.mrf.mxu1 }
  0x97   :  { %v57_v17 = vadd.f32 %v83_v14, %v56_v15  ;;  %v60_v18 = vadd.f32 %v83_v14, %v59_v16 }
  0x99   :  { %63 = vst.msk [vmem:[%s158_s3] sm:$0xff] %vm62_vm1, %v57_v17 }
  0x9a   :  { %64 = vst.msk [vmem:[%s158_s3 + $0x8] sm:$0xff] %vm62_vm1, %v60_v18 }

// kernel: main_encoder.40
= control target key start
LH: loop header
LB: loop body
LE: loop exit
PB: predicated region body
PF: predicated region fallthrough
CT: control target
= control target key end

     0   :  { %vm73_vm1 = vcmask 261120   ;;  %vm250_vm4 = vcmask 257024   ;;  %s544_s1 = inlined_call_operand.vmem [shape: f32[3,128,32], index: 1, kind: input, shape index: {}]   ;;  %s545_s3 = inlined_call_operand.vmem [shape: f32[3,32,32], index: 3, kind: input, shape index: {}]   ;;  %s546_s2 = inlined_call_operand.vmem [shape: f32[3,1,32], index: 2, kind: input, shape index: {}]   ;;  %s547_s0 = inlined_call_operand.vmem [shape: f32[3,4,128], index: 0, kind: input, shape index: {}]   ;;  %s548_s4 = inlined_call_operand.vmem [shape: f32[1,32], index: 4, kind: input, shape index: {}]   ;;  %s549_s5 = inlined_call_operand.vmem [shape: f32[4,32], index: 5, kind: output, shape index: {}]  }
   0x1   :  { %v41_v0 = vld [vmem:[%s544_s1 + $0x78] sm:$0xff]  ;;  %v40_v2 = vld [vmem:[%s544_s1 + $0x70] sm:$0xff]  ;;  %v39_v4 = vld [vmem:[%s544_s1 + $0x68] sm:$0xff] }
   0x2   :  { %v273_v1 = vld [vmem:[%s544_s1 + $0xf8] sm:$0xff]  ;;  %46 = vmatpush.msra.mxu0 %v41_v0  ;;  %v272_v3 = vld [vmem:[%s544_s1 + $0xf0] sm:$0xff]  ;;  %v271_v5 = vld [vmem:[%s544_s1 + $0xe8] sm:$0xff] }
   0x3   :  { %122 = vmatpush.msra.mxu2 %v273_v1  ;;  %v38_v6 = vld [vmem:[%s544_s1 + $0x60] sm:$0xff]  ;;  %v296_v8 = vld [vmem:[%s544_s1 + $0x178] sm:$0xff]  ;;  %v295_v11 = vld [vmem:[%s544_s1 + $0x170] sm:$0xff] }
   0x4   :  { %47 = vmatpush.msra.mxu0 %v40_v2  ;;  %v270_v7 = vld [vmem:[%s544_s1 + $0xe0] sm:$0xff]  ;;  %v37_v9 = vld [vmem:[%s544_s1 + $0x58] sm:$0xff]  ;;  %198 = vmatpush.msra.mxu1 %v296_v8  ;;  %v294_v12 = vld [vmem:[%s544_s1 + $0x168] sm:$0xff] }
   0x5   :  { %123 = vmatpush.msra.mxu2 %v272_v3  ;;  %v269_v10 = vld [vmem:[%s544_s1 + $0xd8] sm:$0xff]  ;;  %v36_v13 = vld [vmem:[%s544_s1 + $0x50] sm:$0xff]  ;;  %v293_v15 = vld [vmem:[%s544_s1 + $0x160] sm:$0xff] }
   0x6   :  { %48 = vmatpush.msra.mxu0 %v39_v4  ;;  %v268_v14 = vld [vmem:[%s544_s1 + $0xd0] sm:$0xff]  ;;  %199 = vmatpush.msra.mxu1 %v295_v11  ;;  %v35_v16 = vld [vmem:[%s544_s1 + $0x48] sm:$0xff]  ;;  %v292_v18 = vld [vmem:[%s544_s1 + $0x158] sm:$0xff] }
   0x7   :  { %124 = vmatpush.msra.mxu2 %v271_v5  ;;  %v267_v17 = vld [vmem:[%s544_s1 + $0xc8] sm:$0xff]  ;;  %v34_v19 = vld [vmem:[%s544_s1 + $0x40] sm:$0xff]  ;;  %v291_v21 = vld [vmem:[%s544_s1 + $0x150] sm:$0xff] }
   0x8   :  { %49 = vmatpush.msra.mxu0 %v38_v6  ;;  %200 = vmatpush.msra.mxu1 %v294_v12  ;;  %v266_v20 = vld [vmem:[%s544_s1 + $0xc0] sm:$0xff]  ;;  %v33_v22 = vld [vmem:[%s544_s1 + $0x38] sm:$0xff]  ;;  %v290_v24 = vld [vmem:[%s544_s1 + $0x148] sm:$0xff] }
   0x9   :  { %125 = vmatpush.msra.mxu2 %v270_v7  ;;  %v265_v23 = vld [vmem:[%s544_s1 + $0xb8] sm:$0xff]  ;;  %v32_v25 = vld [vmem:[%s544_s1 + $0x30] sm:$0xff]  ;;  %v31_v27 = vld [vmem:[%s544_s1 + $0x28] sm:$0xff] }
   0xa   :  { %50 = vmatpush.msra.mxu0 %v37_v9  ;;  %201 = vmatpush.msra.mxu1 %v293_v15  ;;  %v264_v26 = vld [vmem:[%s544_s1 + $0xb0] sm:$0xff]  ;;  %v289_v28 = vld [vmem:[%s544_s1 + $0x140] sm:$0xff]  ;;  %v72_v29 = vld [vmem:[%s545_s3 + $0x18] sm:$0xff] }
   0xb   :  { %126 = vmatpush.msra.mxu2 %v269_v10  ;;  %v263_v30 = vld [vmem:[%s544_s1 + $0xa8] sm:$0xff]  ;;  %89 = vmatpush.msra.mxu3 %v72_v29  ;;  %v288_v31 = vld [vmem:[%s544_s1 + $0x138] sm:$0xff]  ;;  %v30_v32 = vld [vmem:[%s544_s1 + $0x20] sm:$0xff] }
   0xc   :  { %51 = vmatpush.msra.mxu0 %v36_v13  ;;  %202 = vmatpush.msra.mxu1 %v292_v18  ;;  %v262_v33 = vld [vmem:[%s544_s1 + $0xa0] sm:$0xff]  ;;  %v287_v34 = vld [vmem:[%s544_s1 + $0x130] sm:$0xff]  ;;  %v29_v35 = vld [vmem:[%s544_s1 + $0x18] sm:$0xff] }
   0xd   :  { %127 = vmatpush.msra.mxu2 %v268_v14  ;;  %v261_v36 = vld [vmem:[%s544_s1 + $0x98] sm:$0xff]  ;;  %v286_v37 = vld [vmem:[%s544_s1 + $0x128] sm:$0xff]  ;;  %v28_v38 = vld [vmem:[%s544_s1 + $0x10] sm:$0xff] }
   0xe   :  { %52 = vmatpush.msra.mxu0 %v35_v16  ;;  %203 = vmatpush.msra.mxu1 %v291_v21  ;;  %v260_v39 = vld [vmem:[%s544_s1 + $0x90] sm:$0xff]  ;;  %v285_v40 = vld [vmem:[%s544_s1 + $0x120] sm:$0xff]  ;;  %v27_v41 = vld [vmem:[%s544_s1 + $0x8] sm:$0xff] }
   0xf   :  { %128 = vmatpush.msra.mxu2 %v267_v17  ;;  %v259_v42 = vld [vmem:[%s544_s1 + $0x88] sm:$0xff]  ;;  %v284_v43 = vld [vmem:[%s544_s1 + $0x118] sm:$0xff]  ;;  %v26_v44 = vld [vmem:[%s544_s1] sm:$0xff] }
  0x10   :  { %53 = vmatpush.msra.mxu0 %v34_v19  ;;  %204 = vmatpush.msra.mxu1 %v290_v24  ;;  %v258_v45 = vld [vmem:[%s544_s1 + $0x80] sm:$0xff]  ;;  %v283_v48 = vld [vmem:[%s544_s1 + $0x110] sm:$0xff]  ;;  %v282_v49 = vld [vmem:[%s544_s1 + $0x108] sm:$0xff] }
  0x11   :  { %129 = vmatpush.msra.mxu2 %v266_v20  ;;  %v25_v46 = vld [vmem:[%s547_s0] sm:$0xf]  ;;  %v257_v47 = vld [vmem:[%s547_s0 + $0x4] sm:$0xf]  ;;  %v280_v51 = vld [vmem:[%s547_s0 + $0x8] sm:$0xf] }
  0x12   :  { %54 = vmatpush.msra.mxu0 %v33_v22  ;;  %205 = vmatpush.msra.mxu1 %v289_v28  ;;  %v281_v50 = vld [vmem:[%s544_s1 + $0x100] sm:$0xff]  ;;  %v71_v52 = vld [vmem:[%s545_s3 + $0x10] sm:$0xff]  ;;  %v70_v53 = vld [vmem:[%s545_s3 + $0x8] sm:$0xff] }
  0x13   :  { %130 = vmatpush.msra.mxu2 %v265_v23  ;;  %90 = vmatpush.msra.mxu3 %v71_v52  ;;  %v69_v54 = vld [vmem:[%s545_s3] sm:$0xff]  ;;  %v278_v55 = vld [vmem:[%s545_s3 + $0x38] sm:$0xff]  ;;  %v277_v56 = vld [vmem:[%s545_s3 + $0x30] sm:$0xff] }
  0x14   :  { %55 = vmatpush.msra.mxu0 %v32_v25  ;;  %206 = vmatpush.msra.mxu1 %v288_v31  ;;  %v276_v57 = vld [vmem:[%s545_s3 + $0x28] sm:$0xff]  ;;  %v275_v58 = vld [vmem:[%s545_s3 + $0x20] sm:$0xff]  ;;  %v301_v0 = vld [vmem:[%s545_s3 + $0x58] sm:$0xff] }
  0x15   :  { %131 = vmatpush.msra.mxu2 %v264_v26  ;;  %91 = vmatpush.msra.mxu3 %v70_v53  ;;  %v303_v59 = vld [vmem:[%s546_s2] ss:$0 sm:$0xff]  ;;  %v304_v63 = vld [vmem:[%s546_s2 + $0x1] ss:$0 sm:$0xff]  ;;  %v300_v3 = vld [vmem:[%s545_s3 + $0x50] sm:$0xff] }
  0x16   :  { %56 = vmatpush.msra.mxu0 %v31_v27  ;;  %207 = vmatpush.msra.mxu1 %v287_v34  ;;  %v299_v5 = vld [vmem:[%s545_s3 + $0x48] sm:$0xff]  ;;  %v305_v7 = vld [vmem:[%s546_s2 + $0x2] ss:$0 sm:$0xff]  ;;  %v306_v16 = vld [vmem:[%s548_s4] ss:$0 sm:$0xff] }
  0x17   :  { %132 = vmatpush.msra.mxu2 %v263_v30  ;;  %92 = vmatpush.msra.mxu3 %v69_v54  ;;  %v298_v9 = vld [vmem:[%s545_s3 + $0x40] sm:$0xff] }
  0x18   :  { %57 = vmatpush.msra.mxu0 %v30_v32  ;;  %208 = vmatpush.msra.mxu1 %v286_v37 }
  0x19   :  { %133 = vmatpush.msra.mxu2 %v262_v33  ;;  %165 = vmatpush.msrb.mxu3 %v278_v55 }
  0x1a   :  { %58 = vmatpush.msra.mxu0 %v29_v35  ;;  %209 = vmatpush.msra.mxu1 %v285_v40 }
  0x1b   :  { %134 = vmatpush.msra.mxu2 %v261_v36  ;;  %166 = vmatpush.msrb.mxu3 %v277_v56 }
  0x1c   :  { %59 = vmatpush.msra.mxu0 %v28_v38  ;;  %210 = vmatpush.msra.mxu1 %v284_v43 }
  0x1d   :  { %135 = vmatpush.msra.mxu2 %v260_v39  ;;  %167 = vmatpush.msrb.mxu3 %v276_v57 }
  0x1e   :  { %60 = vmatpush.msra.mxu0 %v27_v41  ;;  %211 = vmatpush.msra.mxu1 %v283_v48 }
  0x1f   :  { %136 = vmatpush.msra.mxu2 %v259_v42  ;;  %168 = vmatpush.msrb.mxu3 %v275_v58 }
  0x20   :  { %61 = vmatpush.msra.mxu0 %v26_v44  ;;  %212 = vmatpush.msra.mxu1 %v282_v49 }
  0x21   :  { %137 = vmatpush.msra.mxu2 %v258_v45  ;;  %62 = vmatmul.f32.vlgmr.msra.gmra.mxu0 %v25_v46 }
  0x22   :  { %138 = vmatmul.f32.vlgmr.msra.gmra.mxu2 %v257_v47  ;;  %213 = vmatpush.msra.mxu1 %v281_v50 }
  0x23   :  { %214 = vmatmul.f32.vlgmr.msra.gmra.mxu1 %v280_v51 }
  0x9e   :  { %v63_v60 = vpop.f32.mrf.mxu0 }
  0x9f   :  { %v64_v61 = vadd.f32 %v303_v59, %v63_v60 }
  0xa0   :  { %v215_v8 = vpop.f32.mrf.mxu1 }
  0xa1   :  { %v67_v62 = vmul.f32 0.1, %v64_v61  ;;  %vm66_vm0 = vcmp.ge.f32.partialorder %v64_v61, 0.0  ;;  %v216_v11 = vadd.f32 %v305_v7, %v215_v8 }
  0xa3   :  { %v68_v1 = vsel %vm66_vm0, %v64_v61, %v67_v62  ;;  %v219_v12 = vmul.f32 0.1, %v216_v11  ;;  %vm218_vm3 = vcmp.ge.f32.partialorder %v216_v11, 0.0 }
  0xa4   :  { %256 = vmatmul.msk.f32.vlgmr.msra.gmra.mxu3 %vm73_vm1, %v68_v1 }
  0xa5   :  { %v139_v2 = vpop.f32.mrf.mxu2  ;;  %241 = vmatpush.msra.mxu3 %v301_v0  ;;  %v220_v13 = vsel %vm218_vm3, %v216_v11, %v219_v12 }
  0xa6   :  { %v140_v4 = vadd.f32 %v304_v63, %v139_v2 }
  0xa7   :  { %242 = vmatpush.msra.mxu3 %v300_v3 }
  0xa8   :  { %v143_v6 = vmul.f32 0.1, %v140_v4  ;;  %vm142_vm2 = vcmp.ge.f32.partialorder %v140_v4, 0.0 }
  0xa9   :  { %243 = vmatpush.msra.mxu3 %v299_v5 }
  0xaa   :  { %v144_v10 = vsel %vm142_vm2, %v140_v4, %v143_v6 }
  0xab   :  { %244 = vmatpush.msra.mxu3 %v298_v9 }
  0xac   :  { %279 = vmatmul.msk.f32.vlgmr.msrb.gmra.mxu3 %vm73_vm1, %v144_v10 }
  0xb4   :  { %302 = vmatmul.msk.f32.vlgmr.msra.gmra.mxu3 %vm73_vm1, %v220_v13 }
 0x127   :  { %v94_v14 = vpop.f32.mrf.mxu3 }
 0x128   :  { %v97_v17 = vadd.f32 %v306_v16, %v94_v14 }
 0x12f   :  { %v170_v15 = vpop.f32.mrf.mxu3 }
 0x130   :  { %v173_v18 = vadd.f32 %v170_v15, %v97_v17 }
 0x137   :  { %v246_v19 = vpop.f32.mrf.mxu3 }
 0x138   :  { %v249_v20 = vadd.f32 %v246_v19, %v173_v18 }
 0x13a   :  { %251 = vst.msk [vmem:[%s549_s5] sm:$0xf] %vm250_vm4, %v249_v20 }

// kernel: main_encoder.41
= control target key start
LH: loop header
LB: loop body
LE: loop exit
PB: predicated region body
PF: predicated region fallthrough
CT: control target
= control target key end

     0   :  { %vm66_vm0 = vcmask 261120   ;;  %vm129_vm1 = vcmask 519168   ;;  %s277_s1 = inlined_call_operand.vmem [shape: f32[1,288,64], index: 1, kind: input, shape index: {}]   ;;  %s278_s0 = inlined_call_operand.vmem [shape: f32[1,4,288], index: 0, kind: input, shape index: {}]   ;;  %s279_s2 = inlined_call_operand.vmem [shape: f32[1,1,64], index: 2, kind: input, shape index: {}]   ;;  %s280_s3 = inlined_call_operand.vmem [shape: f32[1,4,64], index: 3, kind: output, shape index: {}]  }
   0x1   :  { %v31_v0 = vld [vmem:[%s277_s1 + $0x78] sm:$0xff]  ;;  %v30_v1 = vld [vmem:[%s277_s1 + $0x70] sm:$0xff]  ;;  %v29_v4 = vld [vmem:[%s277_s1 + $0x68] sm:$0xff] }
   0x2   :  { %v47_v2 = vld [vmem:[%s277_s1 + $0xf8] sm:$0xff]  ;;  %69 = vmatpush.msra.mxu0 %v31_v0  ;;  %v46_v3 = vld [vmem:[%s277_s1 + $0xf0] sm:$0xff]  ;;  %v45_v5 = vld [vmem:[%s277_s1 + $0xe8] sm:$0xff] }
   0x3   :  { %89 = vmatpush.msra.mxu1 %v47_v2  ;;  %v28_v6 = vld [vmem:[%s277_s1 + $0x60] sm:$0xff]  ;;  %v27_v8 = vld [vmem:[%s277_s1 + $0x58] sm:$0xff]  ;;  %v26_v11 = vld [vmem:[%s277_s1 + $0x50] sm:$0xff] }
   0x4   :  { %70 = vmatpush.msra.mxu0 %v30_v1  ;;  %v44_v7 = vld [vmem:[%s277_s1 + $0xe0] sm:$0xff]  ;;  %v43_v9 = vld [vmem:[%s277_s1 + $0xd8] sm:$0xff]  ;;  %v42_v12 = vld [vmem:[%s277_s1 + $0xd0] sm:$0xff] }
   0x5   :  { %90 = vmatpush.msra.mxu1 %v46_v3  ;;  %v51_v10 = vld [vmem:[%s277_s1 + $0x118] sm:$0xff]  ;;  %v50_v13 = vld [vmem:[%s277_s1 + $0x110] sm:$0xff]  ;;  %v49_v14 = vld [vmem:[%s277_s1 + $0x108] sm:$0xff] }
   0x6   :  { %71 = vmatpush.msra.mxu0 %v29_v4  ;;  %121 = vmatpush.msra.mxu2 %v51_v10  ;;  %v25_v15 = vld [vmem:[%s277_s1 + $0x48] sm:$0xff]  ;;  %v24_v17 = vld [vmem:[%s277_s1 + $0x40] sm:$0xff]  ;;  %v23_v22 = vld [vmem:[%s277_s1 + $0x38] sm:$0xff] }
   0x7   :  { %91 = vmatpush.msra.mxu1 %v45_v5  ;;  %v41_v16 = vld [vmem:[%s277_s1 + $0xc8] sm:$0xff]  ;;  %v48_v18 = vld [vmem:[%s277_s1 + $0x100] sm:$0xff]  ;;  %v39_v23 = vld [vmem:[%s277_s1 + $0xb8] sm:$0xff] }
   0x8   :  { %72 = vmatpush.msra.mxu0 %v28_v6  ;;  %122 = vmatpush.msra.mxu2 %v50_v13  ;;  %v15_v19 = vld [vmem:[%s278_s0 + $0x8] sm:$0xf]  ;;  %v40_v20 = vld [vmem:[%s277_s1 + $0xc0] sm:$0xff]  ;;  %v22_v24 = vld [vmem:[%s277_s1 + $0x30] sm:$0xff] }
   0x9   :  { %92 = vmatpush.msra.mxu1 %v44_v7  ;;  %60 = vst [vmem:[#allocation1 + $0x10] ss:$2 sm:$0xff] %v15_v19  ;;  %v14_v21 = vld [vmem:[%s278_s0] sm:$0xff]  ;;  %v38_v25 = vld [vmem:[%s277_s1 + $0xb0] sm:$0xff]  ;;  %v21_v26 = vld [vmem:[%s277_s1 + $0x28] sm:$0xff] }
   0xa   :  { %73 = vmatpush.msra.mxu0 %v27_v8  ;;  %123 = vmatpush.msra.mxu2 %v49_v14  ;;  %58 = vst [vmem:[#allocation1] ss:$2 sm:$0xff] %v14_v21  ;;  %v37_v27 = vld [vmem:[%s277_s1 + $0xa8] sm:$0xff]  ;;  %v20_v29 = vld [vmem:[%s277_s1 + $0x20] sm:$0xff]  ;;  %v19_v31 = vld [vmem:[%s277_s1 + $0x18] sm:$0xff] }
   0xb   :  { %93 = vmatpush.msra.mxu1 %v43_v9  ;;  %v36_v30 = vld [vmem:[%s277_s1 + $0xa0] sm:$0xff]  ;;  %v35_v32 = vld [vmem:[%s277_s1 + $0x98] sm:$0xff]  ;;  %v18_v33 = vld [vmem:[%s277_s1 + $0x10] sm:$0xff] }
   0xc   :  { %74 = vmatpush.msra.mxu0 %v26_v11  ;;  %124 = vmatpush.msra.mxu2 %v48_v18  ;;  %v34_v34 = vld [vmem:[%s277_s1 + $0x90] sm:$0xff]  ;;  %v17_v35 = vld [vmem:[%s277_s1 + $0x8] sm:$0xff]  ;;  %v16_v37 = vld [vmem:[%s277_s1] sm:$0xff] }
   0xd   :  { %94 = vmatpush.msra.mxu1 %v42_v12  ;;  %v33_v36 = vld [vmem:[%s277_s1 + $0x88] sm:$0xff]  ;;  %v32_v38 = vld [vmem:[%s277_s1 + $0x80] sm:$0xff] }
   0xe   :  { %75 = vmatpush.msra.mxu0 %v25_v15  ;;  %v136_v41 = vld [vmem:[%s279_s2] ss:$0 sm:$0xff] }
   0xf   :  { %95 = vmatpush.msra.mxu1 %v41_v16 }
  0x10   :  { %76 = vmatpush.msra.mxu0 %v24_v17  ;;  %v63_v28 = vld.sshfl [vmem:[#allocation1 + $0x10] sm:$0xff pattern:$0x75316420] }
  0x11   :  { %96 = vmatpush.msra.mxu1 %v40_v20  ;;  %135 = vmatmul.msk.f32.vlgmr.msra.gmra.mxu2 %vm66_vm0, %v63_v28  ;;  %v61_v39 = vld.sshfl [vmem:[#allocation1] sm:$0xff pattern:$0x75316420]  ;;  %v62_v40 = vld.sshfl [vmem:[#allocation1 + $0x8] sm:$0xff pattern:$0x75316420] }
  0x12   :  { %77 = vmatpush.msra.mxu0 %v23_v22 }
  0x13   :  { %97 = vmatpush.msra.mxu1 %v39_v23 }
  0x14   :  { %78 = vmatpush.msra.mxu0 %v22_v24 }
  0x15   :  { %98 = vmatpush.msra.mxu1 %v38_v25 }
  0x16   :  { %79 = vmatpush.msra.mxu0 %v21_v26 }
  0x17   :  { %99 = vmatpush.msra.mxu1 %v37_v27 }
  0x18   :  { %80 = vmatpush.msra.mxu0 %v20_v29 }
  0x19   :  { %100 = vmatpush.msra.mxu1 %v36_v30 }
  0x1a   :  { %81 = vmatpush.msra.mxu0 %v19_v31 }
  0x1b   :  { %101 = vmatpush.msra.mxu1 %v35_v32 }
  0x1c   :  { %82 = vmatpush.msra.mxu0 %v18_v33 }
  0x1d   :  { %102 = vmatpush.msra.mxu1 %v34_v34 }
  0x1e   :  { %83 = vmatpush.msra.mxu0 %v17_v35 }
  0x1f   :  { %103 = vmatpush.msra.mxu1 %v33_v36 }
  0x20   :  { %84 = vmatpush.msra.mxu0 %v16_v37 }
  0x21   :  { %104 = vmatpush.msra.mxu1 %v32_v38  ;;  %85 = vmatmul.f32.vlgmr.msra.gmra.mxu0 %v61_v39 }
  0x22   :  { %105 = vmatmul.f32.vlgmr.msra.gmra.mxu1 %v62_v40 }
  0x94   :  { %v126_v45 = vpop.f32.mrf.mxu2 }
  0x9e   :  { %v86_v42 = vpop.f32.mrf.mxu0 }
  0x9f   :  { %v106_v43 = vpop.f32.mrf.mxu1  ;;  %v87_v44 = vadd.f32 %v136_v41, %v86_v42 }
  0xa1   :  { %v107_v46 = vadd.f32 %v106_v43, %v87_v44 }
  0xa3   :  { %v127_v47 = vadd.f32 %v126_v45, %v107_v46 }
  0xa5   :  { %130 = vst.msk [vmem:[%s280_s3] sm:$0xf] %vm129_vm1, %v127_v47 }

</bundles_post_ra>
